<compile_context>
chip_gen: v6e
topology: v6e:2x2x1
jax: 0.10.0
libtpu: 0.0.40
codegen_flags: <defaults>
</compile_context>

<pallas_src>
import numpy as np
import jax
import jax.numpy as jnp
from jax import lax
from jax.experimental import pallas as pl
from jax.experimental.pallas import tpu as pltpu


# pool after blocks 1_2, 2_2, 3_2 (not after 1_1, 2_1, 3_1, 4_1, 4_2)
_POOL_AFTER = (False, True, False, True, False, True, False, False)
_BN_EPS = 1e-5  # module code uses the BatchNorm2d default


# ---------------------------------------------------------------------------
# Static geometry (all Python ints, known at trace time)
# ---------------------------------------------------------------------------
def _layer_geometry(H0, W0, channels, input_channel, pool_after):
    geo = []
    H, W, cin = H0, W0, input_channel
    for cout, pool in zip(channels, pool_after):
        geo.append(dict(
            H=H, W=W, Cin=cin, Cout=cout, pool=pool,
            PADN=(H + 2) * (W + 2),   # flattened zero-padded image length
            L=H * (W + 2) - 2,        # conv-output slab length (padded-flat coords)
            P0=W + 3,                 # first interior index of the padded-flat image
        ))
        cin = cout
        if pool:
            H, W = H // 2, W // 2
    return geo, (H, W, cin)


def _halo_mask_np(H, W):
    """(L, 1) f32 mask: 1 at real pixels, 0 at the left/right halo columns that
    appear inside the flattened conv-output slab (their conv values are garbage
    and must become zero padding for the next layer)."""
    L, p0 = H * (W + 2) - 2, W + 3
    c = (np.arange(L) + p0) % (W + 2)
    return ((c >= 1) & (c <= W)).astype(np.float32)[:, None]


def _pool_selectors_np(H, W):
    """4 one-hot matrices (4, Lnext, Lcur) such that max_k(S_k @ y) is the 2x2/2
    max-pool of the conv-output slab y, written directly in the NEXT layer's
    padded-flat coordinates (halo positions select nothing -> exact zeros)."""
    Ho, Wo = H // 2, W // 2
    Lcur, Lnxt = H * (W + 2) - 2, Ho * (Wo + 2) - 2
    p0c, p0n = W + 3, Wo + 3
    sel = np.zeros((4, Lnxt, Lcur), np.float32)
    for qn in range(Lnxt):
        rn, cn = divmod(p0n + qn, Wo + 2)
        if 1 <= cn <= Wo:                       # real pooled pixel (not halo)
            i, j = rn - 1, cn - 1
            for k, (a, b) in enumerate(((0, 0), (0, 1), (1, 0), (1, 1))):
                q = (2 * i + a + 1) * (W + 2) + (2 * j + b + 1) - p0c
                sel[k, qn, q] = 1.0
    return sel


# ---------------------------------------------------------------------------
# Fused whole-backbone kernel (built as a closure over the static geometry)
# ---------------------------------------------------------------------------
def _build_kernel(geo, out_hw, mask_layers, pool_layers):
    n_layers = len(geo)
    n_masks, n_pools = len(mask_layers), len(pool_layers)
    mask_idx = {l: i for i, l in enumerate(mask_layers)}
    pool_idx = {l: i for i, l in enumerate(pool_layers)}
    Hf, Wf = out_hw

    def kernel(*refs):
        assert len(refs) == 3 * n_layers + n_masks + n_pools + 3
        x_ref = refs[0]
        w_refs = refs[1:1 + n_layers]                                   # (9*Cin, Cout) bf16
        bss_refs = refs[1 + n_layers:1 + 2 * n_layers]                  # (3, Cout) f32
        mask_refs = refs[1 + 2 * n_layers:1 + 2 * n_layers + n_masks]   # (L, 1) f32
        sel_refs = refs[1 + 2 * n_layers + n_masks:
                        1 + 2 * n_layers + n_masks + n_pools]           # (4, Lnxt, Lcur)
        o_ref = refs[1 + 2 * n_layers + n_masks + n_pools]
        base = 2 + 2 * n_layers + n_masks + n_pools
        pad_refs = refs[base:base + n_layers]                           # VMEM activations
        yout_ref = refs[base + n_layers]

        # ---- stage the input image into layer 0's zero-padded flat buffer ----
        g0 = geo[0]
        pad_refs[0][...] = jnp.zeros(pad_refs[0].shape, jnp.float32)
        for h in range(g0['H']):
            pad_refs[0][pl.ds((h + 1) * (g0['W'] + 2) + 1, g0['W']), :] = x_ref[0, h, :, :]

        for l, g in enumerate(geo):
            W, Cout, L = g['W'], g['Cout'], g['L']

            # ---- 3x3 'same' conv as ONE im2col matmul over the whole image ----
            # 9 contiguous shifted slabs of the flattened padded image -> (L, 9*Cin)
            pad = pad_refs[l]
            taps = [pad[pl.ds(dy * (W + 2) + dx, L), :]
                    for dy in range(3) for dx in range(3)]
            lhs = jnp.concatenate(taps, axis=1).astype(jnp.bfloat16)
            acc = jnp.dot(lhs, w_refs[l][...],
                          preferred_element_type=jnp.float32)           # (L, Cout) f32

            # ---- conv bias -> ReLU -> BatchNorm (eval, folded), all in f32 ----
            bias = bss_refs[l][pl.ds(0, 1), :]
            scale = bss_refs[l][pl.ds(1, 1), :]
            shift = bss_refs[l][pl.ds(2, 1), :]
            y = jnp.maximum(acc + bias, 0.0) * scale + shift             # (L, Cout)

            if l == n_layers - 1:
                yout_ref[...] = y
                continue

            if g['pool']:
                # fused 2x2/2 max-pool: max of 4 exact one-hot selections (MXU),
                # already laid out in the next layer's padded-flat coordinates.
                sel = sel_refs[pool_idx[l]]
                slab = jnp.dot(sel[0], y, preferred_element_type=jnp.float32)
                for k in range(1, 4):
                    slab = jnp.maximum(
                        slab, jnp.dot(sel[k], y, preferred_element_type=jnp.float32))
            else:
                # zero the halo-column garbage before handing to the next layer
                slab = y * mask_refs[mask_idx[l]][...]

            gn = geo[l + 1]
            nxt = pad_refs[l + 1]
            head, Ln, padn = gn['P0'], gn['L'], gn['PADN']
            tail = padn - head - Ln
            nxt[pl.ds(0, head), :] = jnp.zeros((head, gn['Cin']), jnp.float32)
            nxt[pl.ds(head + Ln, tail), :] = jnp.zeros((tail, gn['Cin']), jnp.float32)
            nxt[pl.ds(head, Ln), :] = slab

        # ---- unflatten the final slab into the (Hf, Wf, Cf) output block ----
        for i in range(Hf):
            o_ref[0, i, :, :] = yout_ref[pl.ds(i * (Wf + 2), Wf), :]

    return kernel


# ---------------------------------------------------------------------------
# Public wrapper (NCHW in / NCHW out, like the PyTorch module)
# ---------------------------------------------------------------------------
def vgg_backbone_bn(x_nchw, params):
    assert len(params) == len(_POOL_AFTER)
    x = jnp.transpose(x_nchw, (0, 2, 3, 1)).astype(jnp.float32)   # NCHW -> NHWC
    N, H0, W0, Cin0 = x.shape
    assert H0 % 8 == 0 and W0 % 8 == 0, "spatial dims must be divisible by 8"

    channels = [int(p['w'].shape[-1]) for p in params]
    geo, (Hf, Wf, Cf) = _layer_geometry(H0, W0, channels, Cin0, _POOL_AFTER)
    n_layers = len(geo)
    assert not geo[-1]['pool']

    mask_layers = [l for l in range(n_layers - 1) if not geo[l]['pool']]
    pool_layers = [l for l in range(n_layers) if geo[l]['pool']]

    # flattened HWIO weights -> (9*Cin, Cout) in bf16 for the MXU
    w2d = [params[l]['w'].reshape(9 * geo[l]['Cin'], geo[l]['Cout']).astype(jnp.bfloat16)
           for l in range(n_layers)]
    # conv bias / BN scale / BN shift stacked -> (3, Cout), f32 epilogue
    bss = [jnp.stack([params[l]['b'], params[l]['scale'], params[l]['shift']], axis=0)
           for l in range(n_layers)]
    masks = [jnp.asarray(_halo_mask_np(geo[l]['H'], geo[l]['W'])) for l in mask_layers]
    sels = [jnp.asarray(_pool_selectors_np(geo[l]['H'], geo[l]['W'])) for l in pool_layers]

    kernel = _build_kernel(geo, (Hf, Wf), mask_layers, pool_layers)

    def _const_spec(a):
        zeros = (0,) * a.ndim
        return pl.BlockSpec(a.shape, lambda n: zeros)

    in_specs = ([pl.BlockSpec((1, H0, W0, Cin0), lambda n: (n, 0, 0, 0))]
                + [_const_spec(a) for a in (*w2d, *bss, *masks, *sels)])
    out_specs = pl.BlockSpec((1, Hf, Wf, Cf), lambda n: (n, 0, 0, 0))
    scratch = [pltpu.VMEM((g['PADN'], g['Cin']), jnp.float32) for g in geo]
    scratch.append(pltpu.VMEM((geo[-1]['L'], geo[-1]['Cout']), jnp.float32))

    y = pl.pallas_call(
        kernel,
        out_shape=jax.ShapeDtypeStruct((N, Hf, Wf, Cf), jnp.float32),
        grid=(N,),
        in_specs=in_specs,
        out_specs=out_specs,
        scratch_shapes=scratch,
        compiler_params=pltpu.CompilerParams(dimension_semantics=("parallel",)),
    )(x, *w2d, *bss, *masks, *sels)
    return jnp.transpose(y, (0, 3, 1, 2))                         # back to NCHW


# ---------------------------------------------------------------------------
# Parameters + pure-JAX reference
# ---------------------------------------------------------------------------
def init_params(key, channels, input_channel=1):
    """Deterministic synthetic parameters (no checkpoint load)."""
    params = []
    cin = input_channel
    for cout in channels:
        key, k1, k2, k3, k4, k5, k6 = jax.random.split(key, 7)
        w = jax.random.normal(k1, (3, 3, cin, cout), jnp.float32) / np.sqrt(9.0 * cin)
        b = 0.05 * jax.random.normal(k2, (cout,), jnp.float32)
        gamma = 1.0 + 0.1 * jax.random.normal(k3, (cout,), jnp.float32)
        beta = 0.05 * jax.random.normal(k4, (cout,), jnp.float32)
        rmean = 0.05 * jax.random.normal(k5, (cout,), jnp.float32)
        rvar = jnp.abs(1.0 + 0.1 * jax.random.normal(k6, (cout,), jnp.float32))
        scale = gamma / jnp.sqrt(rvar + _BN_EPS)
        shift = beta - rmean * scale
        params.append(dict(w=w, b=b, scale=scale, shift=shift))
        cin = cout
    return params


def vgg_backbone_bn_reference(x_nchw, params):
    """Pure-JAX (XLA) reference.  Conv inputs/weights are cast to bf16 exactly
    like the Pallas kernel's MXU path (f32 accumulation + f32 epilogue)."""
    x = jnp.transpose(x_nchw, (0, 2, 3, 1)).astype(jnp.float32)
    for p, pool in zip(params, _POOL_AFTER):
        y = lax.conv_general_dilated(
            x.astype(jnp.bfloat16), p['w'].astype(jnp.bfloat16),
            window_strides=(1, 1), padding="SAME",
            dimension_numbers=("NHWC", "HWIO", "NHWC"),
            preferred_element_type=jnp.float32)
        y = jnp.maximum(y + p['b'], 0.0) * p['scale'] + p['shift']
        if pool:
            n, h, w, c = y.shape
            y = jnp.max(y.reshape(n, h // 2, 2, w // 2, 2, c), axis=(2, 4))
        x = y
    return jnp.transpose(x, (0, 3, 1, 2))


# ---------------------------------------------------------------------------
if __name__ == "__main__":
    key = jax.random.PRNGKey(0)
    kx, kp = jax.random.split(key)

    # Small shapes consistent with the module: grayscale input, 8 conv blocks.
    config = {"channels": [8, 8, 16, 16, 32, 32, 64, 64]}
    params = init_params(kp, config["channels"], input_channel=1)
    x = jax.random.normal(kx, (2, 1, 16, 16), jnp.float32)        # NCHW like PyTorch

    feat_map = jax.block_until_ready(jax.jit(vgg_backbone_bn)(x, params))
    assert feat_map.shape == (2, 64, 2, 2), feat_map.shape

    ref = jax.block_until_ready(jax.jit(vgg_backbone_bn_reference)(x, params))
    err = float(jnp.max(jnp.abs(feat_map - ref)))
    assert err < 5e-3, f"max abs error vs reference: {err}"

    print("KERNEL_OK")
</pallas_src>

<mosaic_0001>
module attributes {stable_mosaic.version = 11 : i64} {
  func.func @kernel(%arg0: i32, %arg1: memref<1x16x16x1xf32, #tpu.memory_space<vmem>>, %arg2: memref<9x8xbf16, #tpu.memory_space<vmem>>, %arg3: memref<72x8xbf16, #tpu.memory_space<vmem>>, %arg4: memref<72x16xbf16, #tpu.memory_space<vmem>>, %arg5: memref<144x16xbf16, #tpu.memory_space<vmem>>, %arg6: memref<144x32xbf16, #tpu.memory_space<vmem>>, %arg7: memref<288x32xbf16, #tpu.memory_space<vmem>>, %arg8: memref<288x64xbf16, #tpu.memory_space<vmem>>, %arg9: memref<576x64xbf16, #tpu.memory_space<vmem>>, %arg10: memref<3x8xf32, #tpu.memory_space<vmem>>, %arg11: memref<3x8xf32, #tpu.memory_space<vmem>>, %arg12: memref<3x16xf32, #tpu.memory_space<vmem>>, %arg13: memref<3x16xf32, #tpu.memory_space<vmem>>, %arg14: memref<3x32xf32, #tpu.memory_space<vmem>>, %arg15: memref<3x32xf32, #tpu.memory_space<vmem>>, %arg16: memref<3x64xf32, #tpu.memory_space<vmem>>, %arg17: memref<3x64xf32, #tpu.memory_space<vmem>>, %arg18: memref<286x1xf32, #tpu.memory_space<vmem>>, %arg19: memref<78x1xf32, #tpu.memory_space<vmem>>, %arg20: memref<22x1xf32, #tpu.memory_space<vmem>>, %arg21: memref<6x1xf32, #tpu.memory_space<vmem>>, %arg22: memref<4x78x286xf32, #tpu.memory_space<vmem>>, %arg23: memref<4x22x78xf32, #tpu.memory_space<vmem>>, %arg24: memref<4x6x22xf32, #tpu.memory_space<vmem>>, %arg25: memref<1x2x2x64xf32, #tpu.memory_space<vmem>>, %arg26: memref<324x1xf32, #tpu.memory_space<vmem>>, %arg27: memref<324x8xf32, #tpu.memory_space<vmem>>, %arg28: memref<100x8xf32, #tpu.memory_space<vmem>>, %arg29: memref<100x16xf32, #tpu.memory_space<vmem>>, %arg30: memref<36x16xf32, #tpu.memory_space<vmem>>, %arg31: memref<36x32xf32, #tpu.memory_space<vmem>>, %arg32: memref<16x32xf32, #tpu.memory_space<vmem>>, %arg33: memref<16x64xf32, #tpu.memory_space<vmem>>, %arg34: memref<6x64xf32, #tpu.memory_space<vmem>>) attributes {dimension_semantics = [#tpu.dimension_semantics<parallel>], iteration_bounds = array<i64: 2>, scalar_prefetch = 0 : i64, scratch_operands = 9 : i64, tpu.core_type = #tpu.core_type<tc>, window_params = [{transform_indices = @transform_0, window_bounds = array<i64: 1, 16, 16, 1>}, {pipeline_mode = #tpu.pipeline_mode<synchronous>, transform_indices = @transform_1, window_bounds = array<i64: 9, 8>}, {pipeline_mode = #tpu.pipeline_mode<synchronous>, transform_indices = @transform_2, window_bounds = array<i64: 72, 8>}, {pipeline_mode = #tpu.pipeline_mode<synchronous>, transform_indices = @transform_3, window_bounds = array<i64: 72, 16>}, {pipeline_mode = #tpu.pipeline_mode<synchronous>, transform_indices = @transform_4, window_bounds = array<i64: 144, 16>}, {pipeline_mode = #tpu.pipeline_mode<synchronous>, transform_indices = @transform_5, window_bounds = array<i64: 144, 32>}, {pipeline_mode = #tpu.pipeline_mode<synchronous>, transform_indices = @transform_6, window_bounds = array<i64: 288, 32>}, {pipeline_mode = #tpu.pipeline_mode<synchronous>, transform_indices = @transform_7, window_bounds = array<i64: 288, 64>}, {pipeline_mode = #tpu.pipeline_mode<synchronous>, transform_indices = @transform_8, window_bounds = array<i64: 576, 64>}, {pipeline_mode = #tpu.pipeline_mode<synchronous>, transform_indices = @transform_9, window_bounds = array<i64: 3, 8>}, {pipeline_mode = #tpu.pipeline_mode<synchronous>, transform_indices = @transform_10, window_bounds = array<i64: 3, 8>}, {pipeline_mode = #tpu.pipeline_mode<synchronous>, transform_indices = @transform_11, window_bounds = array<i64: 3, 16>}, {pipeline_mode = #tpu.pipeline_mode<synchronous>, transform_indices = @transform_12, window_bounds = array<i64: 3, 16>}, {pipeline_mode = #tpu.pipeline_mode<synchronous>, transform_indices = @transform_13, window_bounds = array<i64: 3, 32>}, {pipeline_mode = #tpu.pipeline_mode<synchronous>, transform_indices = @transform_14, window_bounds = array<i64: 3, 32>}, {pipeline_mode = #tpu.pipeline_mode<synchronous>, transform_indices = @transform_15, window_bounds = array<i64: 3, 64>}, {pipeline_mode = #tpu.pipeline_mode<synchronous>, transform_indices = @transform_16, window_bounds = array<i64: 3, 64>}, {pipeline_mode = #tpu.pipeline_mode<synchronous>, transform_indices = @transform_17, window_bounds = array<i64: 286, 1>}, {pipeline_mode = #tpu.pipeline_mode<synchronous>, transform_indices = @transform_18, window_bounds = array<i64: 78, 1>}, {pipeline_mode = #tpu.pipeline_mode<synchronous>, transform_indices = @transform_19, window_bounds = array<i64: 22, 1>}, {pipeline_mode = #tpu.pipeline_mode<synchronous>, transform_indices = @transform_20, window_bounds = array<i64: 6, 1>}, {pipeline_mode = #tpu.pipeline_mode<synchronous>, transform_indices = @transform_21, window_bounds = array<i64: 4, 78, 286>}, {pipeline_mode = #tpu.pipeline_mode<synchronous>, transform_indices = @transform_22, window_bounds = array<i64: 4, 22, 78>}, {pipeline_mode = #tpu.pipeline_mode<synchronous>, transform_indices = @transform_23, window_bounds = array<i64: 4, 6, 22>}, {transform_indices = @transform_24, window_bounds = array<i64: 1, 2, 2, 64>}]} {
    %cst = arith.constant 0.000000e+00 : f32
    %0 = vector.broadcast %cst : f32 to vector<324x1xf32>
    %c0 = arith.constant 0 : index
    %c0_0 = arith.constant 0 : index
    %1 = vector.load %arg26[%c0, %c0_0] : memref<324x1xf32, #tpu.memory_space<vmem>>, vector<324x1xf32>
    tpu.vector_store %arg26[%c0, %c0_0], %0 {strides = array<i32>} : memref<324x1xf32, #tpu.memory_space<vmem>>, vector<324x1xf32>,
    %c0_1 = arith.constant 0 : index
    %c0_2 = arith.constant 0 : index
    %c0_3 = arith.constant 0 : index
    %c0_4 = arith.constant 0 : index
    %2 = vector.load %arg1[%c0_1, %c0_2, %c0_3, %c0_4] : memref<1x16x16x1xf32, #tpu.memory_space<vmem>>, vector<1x1x16x1xf32>
    %3 = vector.shape_cast %2 : vector<1x1x16x1xf32> to vector<16x1xf32>
    %c19 = arith.constant 19 : index
    %c0_5 = arith.constant 0 : index
    %4 = vector.load %arg26[%c19, %c0_5] : memref<324x1xf32, #tpu.memory_space<vmem>>, vector<16x1xf32>
    tpu.vector_store %arg26[%c19, %c0_5], %3 {strides = array<i32>} : memref<324x1xf32, #tpu.memory_space<vmem>>, vector<16x1xf32>,
    %c0_6 = arith.constant 0 : index
    %c1 = arith.constant 1 : index
    %c0_7 = arith.constant 0 : index
    %c0_8 = arith.constant 0 : index
    %5 = vector.load %arg1[%c0_6, %c1, %c0_7, %c0_8] : memref<1x16x16x1xf32, #tpu.memory_space<vmem>>, vector<1x1x16x1xf32>
    %6 = vector.shape_cast %5 : vector<1x1x16x1xf32> to vector<16x1xf32>
    %c37 = arith.constant 37 : index
    %c0_9 = arith.constant 0 : index
    %7 = vector.load %arg26[%c37, %c0_9] : memref<324x1xf32, #tpu.memory_space<vmem>>, vector<16x1xf32>
    tpu.vector_store %arg26[%c37, %c0_9], %6 {strides = array<i32>} : memref<324x1xf32, #tpu.memory_space<vmem>>, vector<16x1xf32>,
    %c0_10 = arith.constant 0 : index
    %c2 = arith.constant 2 : index
    %c0_11 = arith.constant 0 : index
    %c0_12 = arith.constant 0 : index
    %8 = vector.load %arg1[%c0_10, %c2, %c0_11, %c0_12] : memref<1x16x16x1xf32, #tpu.memory_space<vmem>>, vector<1x1x16x1xf32>
    %9 = vector.shape_cast %8 : vector<1x1x16x1xf32> to vector<16x1xf32>
    %c55 = arith.constant 55 : index
    %c0_13 = arith.constant 0 : index
    %10 = vector.load %arg26[%c55, %c0_13] : memref<324x1xf32, #tpu.memory_space<vmem>>, vector<16x1xf32>
    tpu.vector_store %arg26[%c55, %c0_13], %9 {strides = array<i32>} : memref<324x1xf32, #tpu.memory_space<vmem>>, vector<16x1xf32>,
    %c0_14 = arith.constant 0 : index
    %c3 = arith.constant 3 : index
    %c0_15 = arith.constant 0 : index
    %c0_16 = arith.constant 0 : index
    %11 = vector.load %arg1[%c0_14, %c3, %c0_15, %c0_16] : memref<1x16x16x1xf32, #tpu.memory_space<vmem>>, vector<1x1x16x1xf32>
    %12 = vector.shape_cast %11 : vector<1x1x16x1xf32> to vector<16x1xf32>
    %c73 = arith.constant 73 : index
    %c0_17 = arith.constant 0 : index
    %13 = vector.load %arg26[%c73, %c0_17] : memref<324x1xf32, #tpu.memory_space<vmem>>, vector<16x1xf32>
    tpu.vector_store %arg26[%c73, %c0_17], %12 {strides = array<i32>} : memref<324x1xf32, #tpu.memory_space<vmem>>, vector<16x1xf32>,
    %c0_18 = arith.constant 0 : index
    %c4 = arith.constant 4 : index
    %c0_19 = arith.constant 0 : index
    %c0_20 = arith.constant 0 : index
    %14 = vector.load %arg1[%c0_18, %c4, %c0_19, %c0_20] : memref<1x16x16x1xf32, #tpu.memory_space<vmem>>, vector<1x1x16x1xf32>
    %15 = vector.shape_cast %14 : vector<1x1x16x1xf32> to vector<16x1xf32>
    %c91 = arith.constant 91 : index
    %c0_21 = arith.constant 0 : index
    %16 = vector.load %arg26[%c91, %c0_21] : memref<324x1xf32, #tpu.memory_space<vmem>>, vector<16x1xf32>
    tpu.vector_store %arg26[%c91, %c0_21], %15 {strides = array<i32>} : memref<324x1xf32, #tpu.memory_space<vmem>>, vector<16x1xf32>,
    %c0_22 = arith.constant 0 : index
    %c5 = arith.constant 5 : index
    %c0_23 = arith.constant 0 : index
    %c0_24 = arith.constant 0 : index
    %17 = vector.load %arg1[%c0_22, %c5, %c0_23, %c0_24] : memref<1x16x16x1xf32, #tpu.memory_space<vmem>>, vector<1x1x16x1xf32>
    %18 = vector.shape_cast %17 : vector<1x1x16x1xf32> to vector<16x1xf32>
    %c109 = arith.constant 109 : index
    %c0_25 = arith.constant 0 : index
    %19 = vector.load %arg26[%c109, %c0_25] : memref<324x1xf32, #tpu.memory_space<vmem>>, vector<16x1xf32>
    tpu.vector_store %arg26[%c109, %c0_25], %18 {strides = array<i32>} : memref<324x1xf32, #tpu.memory_space<vmem>>, vector<16x1xf32>,
    %c0_26 = arith.constant 0 : index
    %c6 = arith.constant 6 : index
    %c0_27 = arith.constant 0 : index
    %c0_28 = arith.constant 0 : index
    %20 = vector.load %arg1[%c0_26, %c6, %c0_27, %c0_28] : memref<1x16x16x1xf32, #tpu.memory_space<vmem>>, vector<1x1x16x1xf32>
    %21 = vector.shape_cast %20 : vector<1x1x16x1xf32> to vector<16x1xf32>
    %c127 = arith.constant 127 : index
    %c0_29 = arith.constant 0 : index
    %22 = vector.load %arg26[%c127, %c0_29] : memref<324x1xf32, #tpu.memory_space<vmem>>, vector<16x1xf32>
    tpu.vector_store %arg26[%c127, %c0_29], %21 {strides = array<i32>} : memref<324x1xf32, #tpu.memory_space<vmem>>, vector<16x1xf32>,
    %c0_30 = arith.constant 0 : index
    %c7 = arith.constant 7 : index
    %c0_31 = arith.constant 0 : index
    %c0_32 = arith.constant 0 : index
    %23 = vector.load %arg1[%c0_30, %c7, %c0_31, %c0_32] : memref<1x16x16x1xf32, #tpu.memory_space<vmem>>, vector<1x1x16x1xf32>
    %24 = vector.shape_cast %23 : vector<1x1x16x1xf32> to vector<16x1xf32>
    %c145 = arith.constant 145 : index
    %c0_33 = arith.constant 0 : index
    %25 = vector.load %arg26[%c145, %c0_33] : memref<324x1xf32, #tpu.memory_space<vmem>>, vector<16x1xf32>
    tpu.vector_store %arg26[%c145, %c0_33], %24 {strides = array<i32>} : memref<324x1xf32, #tpu.memory_space<vmem>>, vector<16x1xf32>,
    %c0_34 = arith.constant 0 : index
    %c8 = arith.constant 8 : index
    %c0_35 = arith.constant 0 : index
    %c0_36 = arith.constant 0 : index
    %26 = vector.load %arg1[%c0_34, %c8, %c0_35, %c0_36] : memref<1x16x16x1xf32, #tpu.memory_space<vmem>>, vector<1x1x16x1xf32>
    %27 = vector.shape_cast %26 : vector<1x1x16x1xf32> to vector<16x1xf32>
    %c163 = arith.constant 163 : index
    %c0_37 = arith.constant 0 : index
    %28 = vector.load %arg26[%c163, %c0_37] : memref<324x1xf32, #tpu.memory_space<vmem>>, vector<16x1xf32>
    tpu.vector_store %arg26[%c163, %c0_37], %27 {strides = array<i32>} : memref<324x1xf32, #tpu.memory_space<vmem>>, vector<16x1xf32>,
    %c0_38 = arith.constant 0 : index
    %c9 = arith.constant 9 : index
    %c0_39 = arith.constant 0 : index
    %c0_40 = arith.constant 0 : index
    %29 = vector.load %arg1[%c0_38, %c9, %c0_39, %c0_40] : memref<1x16x16x1xf32, #tpu.memory_space<vmem>>, vector<1x1x16x1xf32>
    %30 = vector.shape_cast %29 : vector<1x1x16x1xf32> to vector<16x1xf32>
    %c181 = arith.constant 181 : index
    %c0_41 = arith.constant 0 : index
    %31 = vector.load %arg26[%c181, %c0_41] : memref<324x1xf32, #tpu.memory_space<vmem>>, vector<16x1xf32>
    tpu.vector_store %arg26[%c181, %c0_41], %30 {strides = array<i32>} : memref<324x1xf32, #tpu.memory_space<vmem>>, vector<16x1xf32>,
    %c0_42 = arith.constant 0 : index
    %c10 = arith.constant 10 : index
    %c0_43 = arith.constant 0 : index
    %c0_44 = arith.constant 0 : index
    %32 = vector.load %arg1[%c0_42, %c10, %c0_43, %c0_44] : memref<1x16x16x1xf32, #tpu.memory_space<vmem>>, vector<1x1x16x1xf32>
    %33 = vector.shape_cast %32 : vector<1x1x16x1xf32> to vector<16x1xf32>
    %c199 = arith.constant 199 : index
    %c0_45 = arith.constant 0 : index
    %34 = vector.load %arg26[%c199, %c0_45] : memref<324x1xf32, #tpu.memory_space<vmem>>, vector<16x1xf32>
    tpu.vector_store %arg26[%c199, %c0_45], %33 {strides = array<i32>} : memref<324x1xf32, #tpu.memory_space<vmem>>, vector<16x1xf32>,
    %c0_46 = arith.constant 0 : index
    %c11 = arith.constant 11 : index
    %c0_47 = arith.constant 0 : index
    %c0_48 = arith.constant 0 : index
    %35 = vector.load %arg1[%c0_46, %c11, %c0_47, %c0_48] : memref<1x16x16x1xf32, #tpu.memory_space<vmem>>, vector<1x1x16x1xf32>
    %36 = vector.shape_cast %35 : vector<1x1x16x1xf32> to vector<16x1xf32>
    %c217 = arith.constant 217 : index
    %c0_49 = arith.constant 0 : index
    %37 = vector.load %arg26[%c217, %c0_49] : memref<324x1xf32, #tpu.memory_space<vmem>>, vector<16x1xf32>
    tpu.vector_store %arg26[%c217, %c0_49], %36 {strides = array<i32>} : memref<324x1xf32, #tpu.memory_space<vmem>>, vector<16x1xf32>,
    %c0_50 = arith.constant 0 : index
    %c12 = arith.constant 12 : index
    %c0_51 = arith.constant 0 : index
    %c0_52 = arith.constant 0 : index
    %38 = vector.load %arg1[%c0_50, %c12, %c0_51, %c0_52] : memref<1x16x16x1xf32, #tpu.memory_space<vmem>>, vector<1x1x16x1xf32>
    %39 = vector.shape_cast %38 : vector<1x1x16x1xf32> to vector<16x1xf32>
    %c235 = arith.constant 235 : index
    %c0_53 = arith.constant 0 : index
    %40 = vector.load %arg26[%c235, %c0_53] : memref<324x1xf32, #tpu.memory_space<vmem>>, vector<16x1xf32>
    tpu.vector_store %arg26[%c235, %c0_53], %39 {strides = array<i32>} : memref<324x1xf32, #tpu.memory_space<vmem>>, vector<16x1xf32>,
    %c0_54 = arith.constant 0 : index
    %c13 = arith.constant 13 : index
    %c0_55 = arith.constant 0 : index
    %c0_56 = arith.constant 0 : index
    %41 = vector.load %arg1[%c0_54, %c13, %c0_55, %c0_56] : memref<1x16x16x1xf32, #tpu.memory_space<vmem>>, vector<1x1x16x1xf32>
    %42 = vector.shape_cast %41 : vector<1x1x16x1xf32> to vector<16x1xf32>
    %c253 = arith.constant 253 : index
    %c0_57 = arith.constant 0 : index
    %43 = vector.load %arg26[%c253, %c0_57] : memref<324x1xf32, #tpu.memory_space<vmem>>, vector<16x1xf32>
    tpu.vector_store %arg26[%c253, %c0_57], %42 {strides = array<i32>} : memref<324x1xf32, #tpu.memory_space<vmem>>, vector<16x1xf32>,
    %c0_58 = arith.constant 0 : index
    %c14 = arith.constant 14 : index
    %c0_59 = arith.constant 0 : index
    %c0_60 = arith.constant 0 : index
    %44 = vector.load %arg1[%c0_58, %c14, %c0_59, %c0_60] : memref<1x16x16x1xf32, #tpu.memory_space<vmem>>, vector<1x1x16x1xf32>
    %45 = vector.shape_cast %44 : vector<1x1x16x1xf32> to vector<16x1xf32>
    %c271 = arith.constant 271 : index
    %c0_61 = arith.constant 0 : index
    %46 = vector.load %arg26[%c271, %c0_61] : memref<324x1xf32, #tpu.memory_space<vmem>>, vector<16x1xf32>
    tpu.vector_store %arg26[%c271, %c0_61], %45 {strides = array<i32>} : memref<324x1xf32, #tpu.memory_space<vmem>>, vector<16x1xf32>,
    %c0_62 = arith.constant 0 : index
    %c15 = arith.constant 15 : index
    %c0_63 = arith.constant 0 : index
    %c0_64 = arith.constant 0 : index
    %47 = vector.load %arg1[%c0_62, %c15, %c0_63, %c0_64] : memref<1x16x16x1xf32, #tpu.memory_space<vmem>>, vector<1x1x16x1xf32>
    %48 = vector.shape_cast %47 : vector<1x1x16x1xf32> to vector<16x1xf32>
    %c289 = arith.constant 289 : index
    %c0_65 = arith.constant 0 : index
    %49 = vector.load %arg26[%c289, %c0_65] : memref<324x1xf32, #tpu.memory_space<vmem>>, vector<16x1xf32>
    tpu.vector_store %arg26[%c289, %c0_65], %48 {strides = array<i32>} : memref<324x1xf32, #tpu.memory_space<vmem>>, vector<16x1xf32>,
    %c0_66 = arith.constant 0 : index
    %c0_67 = arith.constant 0 : index
    %50 = vector.load %arg26[%c0_66, %c0_67] : memref<324x1xf32, #tpu.memory_space<vmem>>, vector<286x1xf32>
    %c1_68 = arith.constant 1 : index
    %c0_69 = arith.constant 0 : index
    %51 = vector.load %arg26[%c1_68, %c0_69] : memref<324x1xf32, #tpu.memory_space<vmem>>, vector<286x1xf32>
    %c2_70 = arith.constant 2 : index
    %c0_71 = arith.constant 0 : index
    %52 = vector.load %arg26[%c2_70, %c0_71] : memref<324x1xf32, #tpu.memory_space<vmem>>, vector<286x1xf32>
    %c18 = arith.constant 18 : index
    %c0_72 = arith.constant 0 : index
    %53 = vector.load %arg26[%c18, %c0_72] : memref<324x1xf32, #tpu.memory_space<vmem>>, vector<286x1xf32>
    %c19_73 = arith.constant 19 : index
    %c0_74 = arith.constant 0 : index
    %54 = vector.load %arg26[%c19_73, %c0_74] : memref<324x1xf32, #tpu.memory_space<vmem>>, vector<286x1xf32>
    %c20 = arith.constant 20 : index
    %c0_75 = arith.constant 0 : index
    %55 = vector.load %arg26[%c20, %c0_75] : memref<324x1xf32, #tpu.memory_space<vmem>>, vector<286x1xf32>
    %c36 = arith.constant 36 : index
    %c0_76 = arith.constant 0 : index
    %56 = vector.load %arg26[%c36, %c0_76] : memref<324x1xf32, #tpu.memory_space<vmem>>, vector<286x1xf32>
    %c37_77 = arith.constant 37 : index
    %c0_78 = arith.constant 0 : index
    %57 = vector.load %arg26[%c37_77, %c0_78] : memref<324x1xf32, #tpu.memory_space<vmem>>, vector<286x1xf32>
    %c38 = arith.constant 38 : index
    %c0_79 = arith.constant 0 : index
    %58 = vector.load %arg26[%c38, %c0_79] : memref<324x1xf32, #tpu.memory_space<vmem>>, vector<286x1xf32>
    %59 = tpu.concatenate %50, %51, %52, %53, %54, %55, %56, %57, %58 in 1 : vector<286x1xf32>, vector<286x1xf32>, vector<286x1xf32>, vector<286x1xf32>, vector<286x1xf32>, vector<286x1xf32>, vector<286x1xf32>, vector<286x1xf32>, vector<286x1xf32> -> vector<286x9xf32>
    %60 = arith.truncf %59 : vector<286x9xf32> to vector<286x9xbf16>
    %c0_80 = arith.constant 0 : index
    %c0_81 = arith.constant 0 : index
    %61 = vector.load %arg2[%c0_80, %c0_81] : memref<9x8xbf16, #tpu.memory_space<vmem>>, vector<9x8xbf16>
    %cst_82 = arith.constant dense<0.000000e+00> : vector<286x8xf32>
    %62 = tpu.matmul %60, %61, %cst_82 {dimension_numbers = #tpu.dot_dimension_numbers<[1], [0], [0], [1], [0, 0, 1, 1], [], []>} : vector<286x9xbf16>, vector<9x8xbf16>, vector<286x8xf32> -> vector<286x8xf32>
    %c0_83 = arith.constant 0 : index
    %c0_84 = arith.constant 0 : index
    %63 = vector.load %arg10[%c0_83, %c0_84] : memref<3x8xf32, #tpu.memory_space<vmem>>, vector<1x8xf32>
    %c1_85 = arith.constant 1 : index
    %c0_86 = arith.constant 0 : index
    %64 = vector.load %arg10[%c1_85, %c0_86] : memref<3x8xf32, #tpu.memory_space<vmem>>, vector<1x8xf32>
    %c2_87 = arith.constant 2 : index
    %c0_88 = arith.constant 0 : index
    %65 = vector.load %arg10[%c2_87, %c0_88] : memref<3x8xf32, #tpu.memory_space<vmem>>, vector<1x8xf32>
    %66 = vector.broadcast %63 : vector<1x8xf32> to vector<286x8xf32>
    %67 = arith.addf %62, %66 : vector<286x8xf32>
    %cst_89 = arith.constant 0.000000e+00 : f32
    %68 = vector.broadcast %cst_89 : f32 to vector<286x8xf32>
    %69 = arith.maximumf %67, %68 : vector<286x8xf32>
    %70 = vector.broadcast %64 : vector<1x8xf32> to vector<286x8xf32>
    %71 = arith.mulf %69, %70 : vector<286x8xf32>
    %72 = vector.broadcast %65 : vector<1x8xf32> to vector<286x8xf32>
    %73 = arith.addf %71, %72 : vector<286x8xf32>
    %c0_90 = arith.constant 0 : index
    %c0_91 = arith.constant 0 : index
    %74 = vector.load %arg18[%c0_90, %c0_91] : memref<286x1xf32, #tpu.memory_space<vmem>>, vector<286x1xf32>
    %75 = vector.broadcast %74 : vector<286x1xf32> to vector<286x8xf32>
    %76 = arith.mulf %73, %75 : vector<286x8xf32>
    %cst_92 = arith.constant 0.000000e+00 : f32
    %77 = vector.broadcast %cst_92 : f32 to vector<19x8xf32>
    %c0_93 = arith.constant 0 : index
    %c0_94 = arith.constant 0 : index
    %78 = vector.load %arg27[%c0_93, %c0_94] : memref<324x8xf32, #tpu.memory_space<vmem>>, vector<19x8xf32>
    tpu.vector_store %arg27[%c0_93, %c0_94], %77 {strides = array<i32>} : memref<324x8xf32, #tpu.memory_space<vmem>>, vector<19x8xf32>,
    %cst_95 = arith.constant 0.000000e+00 : f32
    %79 = vector.broadcast %cst_95 : f32 to vector<19x8xf32>
    %c305 = arith.constant 305 : index
    %c0_96 = arith.constant 0 : index
    %80 = vector.load %arg27[%c305, %c0_96] : memref<324x8xf32, #tpu.memory_space<vmem>>, vector<19x8xf32>
    tpu.vector_store %arg27[%c305, %c0_96], %79 {strides = array<i32>} : memref<324x8xf32, #tpu.memory_space<vmem>>, vector<19x8xf32>,
    %c19_97 = arith.constant 19 : index
    %c0_98 = arith.constant 0 : index
    %81 = vector.load %arg27[%c19_97, %c0_98] : memref<324x8xf32, #tpu.memory_space<vmem>>, vector<286x8xf32>
    tpu.vector_store %arg27[%c19_97, %c0_98], %76 {strides = array<i32>} : memref<324x8xf32, #tpu.memory_space<vmem>>, vector<286x8xf32>,
    %c0_99 = arith.constant 0 : index
    %c0_100 = arith.constant 0 : index
    %82 = vector.load %arg27[%c0_99, %c0_100] : memref<324x8xf32, #tpu.memory_space<vmem>>, vector<286x8xf32>
    %c1_101 = arith.constant 1 : index
    %c0_102 = arith.constant 0 : index
    %83 = vector.load %arg27[%c1_101, %c0_102] : memref<324x8xf32, #tpu.memory_space<vmem>>, vector<286x8xf32>
    %c2_103 = arith.constant 2 : index
    %c0_104 = arith.constant 0 : index
    %84 = vector.load %arg27[%c2_103, %c0_104] : memref<324x8xf32, #tpu.memory_space<vmem>>, vector<286x8xf32>
    %c18_105 = arith.constant 18 : index
    %c0_106 = arith.constant 0 : index
    %85 = vector.load %arg27[%c18_105, %c0_106] : memref<324x8xf32, #tpu.memory_space<vmem>>, vector<286x8xf32>
    %c19_107 = arith.constant 19 : index
    %c0_108 = arith.constant 0 : index
    %86 = vector.load %arg27[%c19_107, %c0_108] : memref<324x8xf32, #tpu.memory_space<vmem>>, vector<286x8xf32>
    %c20_109 = arith.constant 20 : index
    %c0_110 = arith.constant 0 : index
    %87 = vector.load %arg27[%c20_109, %c0_110] : memref<324x8xf32, #tpu.memory_space<vmem>>, vector<286x8xf32>
    %c36_111 = arith.constant 36 : index
    %c0_112 = arith.constant 0 : index
    %88 = vector.load %arg27[%c36_111, %c0_112] : memref<324x8xf32, #tpu.memory_space<vmem>>, vector<286x8xf32>
    %c37_113 = arith.constant 37 : index
    %c0_114 = arith.constant 0 : index
    %89 = vector.load %arg27[%c37_113, %c0_114] : memref<324x8xf32, #tpu.memory_space<vmem>>, vector<286x8xf32>
    %c38_115 = arith.constant 38 : index
    %c0_116 = arith.constant 0 : index
    %90 = vector.load %arg27[%c38_115, %c0_116] : memref<324x8xf32, #tpu.memory_space<vmem>>, vector<286x8xf32>
    %91 = tpu.concatenate %82, %83, %84, %85, %86, %87, %88, %89, %90 in 1 : vector<286x8xf32>, vector<286x8xf32>, vector<286x8xf32>, vector<286x8xf32>, vector<286x8xf32>, vector<286x8xf32>, vector<286x8xf32>, vector<286x8xf32>, vector<286x8xf32> -> vector<286x72xf32>
    %92 = arith.truncf %91 : vector<286x72xf32> to vector<286x72xbf16>
    %c0_117 = arith.constant 0 : index
    %c0_118 = arith.constant 0 : index
    %93 = vector.load %arg3[%c0_117, %c0_118] : memref<72x8xbf16, #tpu.memory_space<vmem>>, vector<72x8xbf16>
    %cst_119 = arith.constant dense<0.000000e+00> : vector<286x8xf32>
    %94 = tpu.matmul %92, %93, %cst_119 {dimension_numbers = #tpu.dot_dimension_numbers<[1], [0], [0], [1], [0, 0, 1, 1], [], []>} : vector<286x72xbf16>, vector<72x8xbf16>, vector<286x8xf32> -> vector<286x8xf32>
    %c0_120 = arith.constant 0 : index
    %c0_121 = arith.constant 0 : index
    %95 = vector.load %arg11[%c0_120, %c0_121] : memref<3x8xf32, #tpu.memory_space<vmem>>, vector<1x8xf32>
    %c1_122 = arith.constant 1 : index
    %c0_123 = arith.constant 0 : index
    %96 = vector.load %arg11[%c1_122, %c0_123] : memref<3x8xf32, #tpu.memory_space<vmem>>, vector<1x8xf32>
    %c2_124 = arith.constant 2 : index
    %c0_125 = arith.constant 0 : index
    %97 = vector.load %arg11[%c2_124, %c0_125] : memref<3x8xf32, #tpu.memory_space<vmem>>, vector<1x8xf32>
    %98 = vector.broadcast %95 : vector<1x8xf32> to vector<286x8xf32>
    %99 = arith.addf %94, %98 : vector<286x8xf32>
    %cst_126 = arith.constant 0.000000e+00 : f32
    %100 = vector.broadcast %cst_126 : f32 to vector<286x8xf32>
    %101 = arith.maximumf %99, %100 : vector<286x8xf32>
    %102 = vector.broadcast %96 : vector<1x8xf32> to vector<286x8xf32>
    %103 = arith.mulf %101, %102 : vector<286x8xf32>
    %104 = vector.broadcast %97 : vector<1x8xf32> to vector<286x8xf32>
    %105 = arith.addf %103, %104 : vector<286x8xf32>
    %c0_127 = arith.constant 0 : index
    %c0_128 = arith.constant 0 : index
    %c0_129 = arith.constant 0 : index
    %106 = vector.load %arg22[%c0_127, %c0_128, %c0_129] : memref<4x78x286xf32, #tpu.memory_space<vmem>>, vector<1x78x286xf32>
    %107 = vector.shape_cast %106 : vector<1x78x286xf32> to vector<78x286xf32>
    %cst_130 = arith.constant dense<0.000000e+00> : vector<78x8xf32>
    %108 = tpu.matmul %107, %105, %cst_130 {dimension_numbers = #tpu.dot_dimension_numbers<[1], [0], [0], [1], [0, 0, 1, 1], [], []>} : vector<78x286xf32>, vector<286x8xf32>, vector<78x8xf32> -> vector<78x8xf32>
    %c1_131 = arith.constant 1 : index
    %c0_132 = arith.constant 0 : index
    %c0_133 = arith.constant 0 : index
    %109 = vector.load %arg22[%c1_131, %c0_132, %c0_133] : memref<4x78x286xf32, #tpu.memory_space<vmem>>, vector<1x78x286xf32>
    %110 = vector.shape_cast %109 : vector<1x78x286xf32> to vector<78x286xf32>
    %cst_134 = arith.constant dense<0.000000e+00> : vector<78x8xf32>
    %111 = tpu.matmul %110, %105, %cst_134 {dimension_numbers = #tpu.dot_dimension_numbers<[1], [0], [0], [1], [0, 0, 1, 1], [], []>} : vector<78x286xf32>, vector<286x8xf32>, vector<78x8xf32> -> vector<78x8xf32>
    %112 = arith.maximumf %108, %111 : vector<78x8xf32>
    %c2_135 = arith.constant 2 : index
    %c0_136 = arith.constant 0 : index
    %c0_137 = arith.constant 0 : index
    %113 = vector.load %arg22[%c2_135, %c0_136, %c0_137] : memref<4x78x286xf32, #tpu.memory_space<vmem>>, vector<1x78x286xf32>
    %114 = vector.shape_cast %113 : vector<1x78x286xf32> to vector<78x286xf32>
    %cst_138 = arith.constant dense<0.000000e+00> : vector<78x8xf32>
    %115 = tpu.matmul %114, %105, %cst_138 {dimension_numbers = #tpu.dot_dimension_numbers<[1], [0], [0], [1], [0, 0, 1, 1], [], []>} : vector<78x286xf32>, vector<286x8xf32>, vector<78x8xf32> -> vector<78x8xf32>
    %116 = arith.maximumf %112, %115 : vector<78x8xf32>
    %c3_139 = arith.constant 3 : index
    %c0_140 = arith.constant 0 : index
    %c0_141 = arith.constant 0 : index
    %117 = vector.load %arg22[%c3_139, %c0_140, %c0_141] : memref<4x78x286xf32, #tpu.memory_space<vmem>>, vector<1x78x286xf32>
    %118 = vector.shape_cast %117 : vector<1x78x286xf32> to vector<78x286xf32>
    %cst_142 = arith.constant dense<0.000000e+00> : vector<78x8xf32>
    %119 = tpu.matmul %118, %105, %cst_142 {dimension_numbers = #tpu.dot_dimension_numbers<[1], [0], [0], [1], [0, 0, 1, 1], [], []>} : vector<78x286xf32>, vector<286x8xf32>, vector<78x8xf32> -> vector<78x8xf32>
    %120 = arith.maximumf %116, %119 : vector<78x8xf32>
    %cst_143 = arith.constant 0.000000e+00 : f32
    %121 = vector.broadcast %cst_143 : f32 to vector<11x8xf32>
    %c0_144 = arith.constant 0 : index
    %c0_145 = arith.constant 0 : index
    %122 = vector.load %arg28[%c0_144, %c0_145] : memref<100x8xf32, #tpu.memory_space<vmem>>, vector<11x8xf32>
    tpu.vector_store %arg28[%c0_144, %c0_145], %121 {strides = array<i32>} : memref<100x8xf32, #tpu.memory_space<vmem>>, vector<11x8xf32>,
    %cst_146 = arith.constant 0.000000e+00 : f32
    %123 = vector.broadcast %cst_146 : f32 to vector<11x8xf32>
    %c89 = arith.constant 89 : index
    %c0_147 = arith.constant 0 : index
    %124 = vector.load %arg28[%c89, %c0_147] : memref<100x8xf32, #tpu.memory_space<vmem>>, vector<11x8xf32>
    tpu.vector_store %arg28[%c89, %c0_147], %123 {strides = array<i32>} : memref<100x8xf32, #tpu.memory_space<vmem>>, vector<11x8xf32>,
    %c11_148 = arith.constant 11 : index
    %c0_149 = arith.constant 0 : index
    %125 = vector.load %arg28[%c11_148, %c0_149] : memref<100x8xf32, #tpu.memory_space<vmem>>, vector<78x8xf32>
    tpu.vector_store %arg28[%c11_148, %c0_149], %120 {strides = array<i32>} : memref<100x8xf32, #tpu.memory_space<vmem>>, vector<78x8xf32>,
    %c0_150 = arith.constant 0 : index
    %c0_151 = arith.constant 0 : index
    %126 = vector.load %arg28[%c0_150, %c0_151] : memref<100x8xf32, #tpu.memory_space<vmem>>, vector<78x8xf32>
    %c1_152 = arith.constant 1 : index
    %c0_153 = arith.constant 0 : index
    %127 = vector.load %arg28[%c1_152, %c0_153] : memref<100x8xf32, #tpu.memory_space<vmem>>, vector<78x8xf32>
    %c2_154 = arith.constant 2 : index
    %c0_155 = arith.constant 0 : index
    %128 = vector.load %arg28[%c2_154, %c0_155] : memref<100x8xf32, #tpu.memory_space<vmem>>, vector<78x8xf32>
    %c10_156 = arith.constant 10 : index
    %c0_157 = arith.constant 0 : index
    %129 = vector.load %arg28[%c10_156, %c0_157] : memref<100x8xf32, #tpu.memory_space<vmem>>, vector<78x8xf32>
    %c11_158 = arith.constant 11 : index
    %c0_159 = arith.constant 0 : index
    %130 = vector.load %arg28[%c11_158, %c0_159] : memref<100x8xf32, #tpu.memory_space<vmem>>, vector<78x8xf32>
    %c12_160 = arith.constant 12 : index
    %c0_161 = arith.constant 0 : index
    %131 = vector.load %arg28[%c12_160, %c0_161] : memref<100x8xf32, #tpu.memory_space<vmem>>, vector<78x8xf32>
    %c20_162 = arith.constant 20 : index
    %c0_163 = arith.constant 0 : index
    %132 = vector.load %arg28[%c20_162, %c0_163] : memref<100x8xf32, #tpu.memory_space<vmem>>, vector<78x8xf32>
    %c21 = arith.constant 21 : index
    %c0_164 = arith.constant 0 : index
    %133 = vector.load %arg28[%c21, %c0_164] : memref<100x8xf32, #tpu.memory_space<vmem>>, vector<78x8xf32>
    %c22 = arith.constant 22 : index
    %c0_165 = arith.constant 0 : index
    %134 = vector.load %arg28[%c22, %c0_165] : memref<100x8xf32, #tpu.memory_space<vmem>>, vector<78x8xf32>
    %135 = tpu.concatenate %126, %127, %128, %129, %130, %131, %132, %133, %134 in 1 : vector<78x8xf32>, vector<78x8xf32>, vector<78x8xf32>, vector<78x8xf32>, vector<78x8xf32>, vector<78x8xf32>, vector<78x8xf32>, vector<78x8xf32>, vector<78x8xf32> -> vector<78x72xf32>
    %136 = arith.truncf %135 : vector<78x72xf32> to vector<78x72xbf16>
    %c0_166 = arith.constant 0 : index
    %c0_167 = arith.constant 0 : index
    %137 = vector.load %arg4[%c0_166, %c0_167] : memref<72x16xbf16, #tpu.memory_space<vmem>>, vector<72x16xbf16>
    %cst_168 = arith.constant dense<0.000000e+00> : vector<78x16xf32>
    %138 = tpu.matmul %136, %137, %cst_168 {dimension_numbers = #tpu.dot_dimension_numbers<[1], [0], [0], [1], [0, 0, 1, 1], [], []>} : vector<78x72xbf16>, vector<72x16xbf16>, vector<78x16xf32> -> vector<78x16xf32>
    %c0_169 = arith.constant 0 : index
    %c0_170 = arith.constant 0 : index
    %139 = vector.load %arg12[%c0_169, %c0_170] : memref<3x16xf32, #tpu.memory_space<vmem>>, vector<1x16xf32>
    %c1_171 = arith.constant 1 : index
    %c0_172 = arith.constant 0 : index
    %140 = vector.load %arg12[%c1_171, %c0_172] : memref<3x16xf32, #tpu.memory_space<vmem>>, vector<1x16xf32>
    %c2_173 = arith.constant 2 : index
    %c0_174 = arith.constant 0 : index
    %141 = vector.load %arg12[%c2_173, %c0_174] : memref<3x16xf32, #tpu.memory_space<vmem>>, vector<1x16xf32>
    %142 = vector.broadcast %139 : vector<1x16xf32> to vector<78x16xf32>
    %143 = arith.addf %138, %142 : vector<78x16xf32>
    %cst_175 = arith.constant 0.000000e+00 : f32
    %144 = vector.broadcast %cst_175 : f32 to vector<78x16xf32>
    %145 = arith.maximumf %143, %144 : vector<78x16xf32>
    %146 = vector.broadcast %140 : vector<1x16xf32> to vector<78x16xf32>
    %147 = arith.mulf %145, %146 : vector<78x16xf32>
    %148 = vector.broadcast %141 : vector<1x16xf32> to vector<78x16xf32>
    %149 = arith.addf %147, %148 : vector<78x16xf32>
    %c0_176 = arith.constant 0 : index
    %c0_177 = arith.constant 0 : index
    %150 = vector.load %arg19[%c0_176, %c0_177] : memref<78x1xf32, #tpu.memory_space<vmem>>, vector<78x1xf32>
    %151 = vector.broadcast %150 : vector<78x1xf32> to vector<78x16xf32>
    %152 = arith.mulf %149, %151 : vector<78x16xf32>
    %cst_178 = arith.constant 0.000000e+00 : f32
    %153 = vector.broadcast %cst_178 : f32 to vector<11x16xf32>
    %c0_179 = arith.constant 0 : index
    %c0_180 = arith.constant 0 : index
    %154 = vector.load %arg29[%c0_179, %c0_180] : memref<100x16xf32, #tpu.memory_space<vmem>>, vector<11x16xf32>
    tpu.vector_store %arg29[%c0_179, %c0_180], %153 {strides = array<i32>} : memref<100x16xf32, #tpu.memory_space<vmem>>, vector<11x16xf32>,
    %cst_181 = arith.constant 0.000000e+00 : f32
    %155 = vector.broadcast %cst_181 : f32 to vector<11x16xf32>
    %c89_182 = arith.constant 89 : index
    %c0_183 = arith.constant 0 : index
    %156 = vector.load %arg29[%c89_182, %c0_183] : memref<100x16xf32, #tpu.memory_space<vmem>>, vector<11x16xf32>
    tpu.vector_store %arg29[%c89_182, %c0_183], %155 {strides = array<i32>} : memref<100x16xf32, #tpu.memory_space<vmem>>, vector<11x16xf32>,
    %c11_184 = arith.constant 11 : index
    %c0_185 = arith.constant 0 : index
    %157 = vector.load %arg29[%c11_184, %c0_185] : memref<100x16xf32, #tpu.memory_space<vmem>>, vector<78x16xf32>
    tpu.vector_store %arg29[%c11_184, %c0_185], %152 {strides = array<i32>} : memref<100x16xf32, #tpu.memory_space<vmem>>, vector<78x16xf32>,
    %c0_186 = arith.constant 0 : index
    %c0_187 = arith.constant 0 : index
    %158 = vector.load %arg29[%c0_186, %c0_187] : memref<100x16xf32, #tpu.memory_space<vmem>>, vector<78x16xf32>
    %c1_188 = arith.constant 1 : index
    %c0_189 = arith.constant 0 : index
    %159 = vector.load %arg29[%c1_188, %c0_189] : memref<100x16xf32, #tpu.memory_space<vmem>>, vector<78x16xf32>
    %c2_190 = arith.constant 2 : index
    %c0_191 = arith.constant 0 : index
    %160 = vector.load %arg29[%c2_190, %c0_191] : memref<100x16xf32, #tpu.memory_space<vmem>>, vector<78x16xf32>
    %c10_192 = arith.constant 10 : index
    %c0_193 = arith.constant 0 : index
    %161 = vector.load %arg29[%c10_192, %c0_193] : memref<100x16xf32, #tpu.memory_space<vmem>>, vector<78x16xf32>
    %c11_194 = arith.constant 11 : index
    %c0_195 = arith.constant 0 : index
    %162 = vector.load %arg29[%c11_194, %c0_195] : memref<100x16xf32, #tpu.memory_space<vmem>>, vector<78x16xf32>
    %c12_196 = arith.constant 12 : index
    %c0_197 = arith.constant 0 : index
    %163 = vector.load %arg29[%c12_196, %c0_197] : memref<100x16xf32, #tpu.memory_space<vmem>>, vector<78x16xf32>
    %c20_198 = arith.constant 20 : index
    %c0_199 = arith.constant 0 : index
    %164 = vector.load %arg29[%c20_198, %c0_199] : memref<100x16xf32, #tpu.memory_space<vmem>>, vector<78x16xf32>
    %c21_200 = arith.constant 21 : index
    %c0_201 = arith.constant 0 : index
    %165 = vector.load %arg29[%c21_200, %c0_201] : memref<100x16xf32, #tpu.memory_space<vmem>>, vector<78x16xf32>
    %c22_202 = arith.constant 22 : index
    %c0_203 = arith.constant 0 : index
    %166 = vector.load %arg29[%c22_202, %c0_203] : memref<100x16xf32, #tpu.memory_space<vmem>>, vector<78x16xf32>
    %167 = tpu.concatenate %158, %159, %160, %161, %162, %163, %164, %165, %166 in 1 : vector<78x16xf32>, vector<78x16xf32>, vector<78x16xf32>, vector<78x16xf32>, vector<78x16xf32>, vector<78x16xf32>, vector<78x16xf32>, vector<78x16xf32>, vector<78x16xf32> -> vector<78x144xf32>
    %168 = arith.truncf %167 : vector<78x144xf32> to vector<78x144xbf16>
    %c0_204 = arith.constant 0 : index
    %c0_205 = arith.constant 0 : index
    %169 = vector.load %arg5[%c0_204, %c0_205] : memref<144x16xbf16, #tpu.memory_space<vmem>>, vector<144x16xbf16>
    %cst_206 = arith.constant dense<0.000000e+00> : vector<78x16xf32>
    %170 = tpu.matmul %168, %169, %cst_206 {dimension_numbers = #tpu.dot_dimension_numbers<[1], [0], [0], [1], [0, 0, 1, 1], [], []>} : vector<78x144xbf16>, vector<144x16xbf16>, vector<78x16xf32> -> vector<78x16xf32>
    %c0_207 = arith.constant 0 : index
    %c0_208 = arith.constant 0 : index
    %171 = vector.load %arg13[%c0_207, %c0_208] : memref<3x16xf32, #tpu.memory_space<vmem>>, vector<1x16xf32>
    %c1_209 = arith.constant 1 : index
    %c0_210 = arith.constant 0 : index
    %172 = vector.load %arg13[%c1_209, %c0_210] : memref<3x16xf32, #tpu.memory_space<vmem>>, vector<1x16xf32>
    %c2_211 = arith.constant 2 : index
    %c0_212 = arith.constant 0 : index
    %173 = vector.load %arg13[%c2_211, %c0_212] : memref<3x16xf32, #tpu.memory_space<vmem>>, vector<1x16xf32>
    %174 = vector.broadcast %171 : vector<1x16xf32> to vector<78x16xf32>
    %175 = arith.addf %170, %174 : vector<78x16xf32>
    %cst_213 = arith.constant 0.000000e+00 : f32
    %176 = vector.broadcast %cst_213 : f32 to vector<78x16xf32>
    %177 = arith.maximumf %175, %176 : vector<78x16xf32>
    %178 = vector.broadcast %172 : vector<1x16xf32> to vector<78x16xf32>
    %179 = arith.mulf %177, %178 : vector<78x16xf32>
    %180 = vector.broadcast %173 : vector<1x16xf32> to vector<78x16xf32>
    %181 = arith.addf %179, %180 : vector<78x16xf32>
    %c0_214 = arith.constant 0 : index
    %c0_215 = arith.constant 0 : index
    %c0_216 = arith.constant 0 : index
    %182 = vector.load %arg23[%c0_214, %c0_215, %c0_216] : memref<4x22x78xf32, #tpu.memory_space<vmem>>, vector<1x22x78xf32>
    %183 = vector.shape_cast %182 : vector<1x22x78xf32> to vector<22x78xf32>
    %cst_217 = arith.constant dense<0.000000e+00> : vector<22x16xf32>
    %184 = tpu.matmul %183, %181, %cst_217 {dimension_numbers = #tpu.dot_dimension_numbers<[1], [0], [0], [1], [0, 0, 1, 1], [], []>} : vector<22x78xf32>, vector<78x16xf32>, vector<22x16xf32> -> vector<22x16xf32>
    %c1_218 = arith.constant 1 : index
    %c0_219 = arith.constant 0 : index
    %c0_220 = arith.constant 0 : index
    %185 = vector.load %arg23[%c1_218, %c0_219, %c0_220] : memref<4x22x78xf32, #tpu.memory_space<vmem>>, vector<1x22x78xf32>
    %186 = vector.shape_cast %185 : vector<1x22x78xf32> to vector<22x78xf32>
    %cst_221 = arith.constant dense<0.000000e+00> : vector<22x16xf32>
    %187 = tpu.matmul %186, %181, %cst_221 {dimension_numbers = #tpu.dot_dimension_numbers<[1], [0], [0], [1], [0, 0, 1, 1], [], []>} : vector<22x78xf32>, vector<78x16xf32>, vector<22x16xf32> -> vector<22x16xf32>
    %188 = arith.maximumf %184, %187 : vector<22x16xf32>
    %c2_222 = arith.constant 2 : index
    %c0_223 = arith.constant 0 : index
    %c0_224 = arith.constant 0 : index
    %189 = vector.load %arg23[%c2_222, %c0_223, %c0_224] : memref<4x22x78xf32, #tpu.memory_space<vmem>>, vector<1x22x78xf32>
    %190 = vector.shape_cast %189 : vector<1x22x78xf32> to vector<22x78xf32>
    %cst_225 = arith.constant dense<0.000000e+00> : vector<22x16xf32>
    %191 = tpu.matmul %190, %181, %cst_225 {dimension_numbers = #tpu.dot_dimension_numbers<[1], [0], [0], [1], [0, 0, 1, 1], [], []>} : vector<22x78xf32>, vector<78x16xf32>, vector<22x16xf32> -> vector<22x16xf32>
    %192 = arith.maximumf %188, %191 : vector<22x16xf32>
    %c3_226 = arith.constant 3 : index
    %c0_227 = arith.constant 0 : index
    %c0_228 = arith.constant 0 : index
    %193 = vector.load %arg23[%c3_226, %c0_227, %c0_228] : memref<4x22x78xf32, #tpu.memory_space<vmem>>, vector<1x22x78xf32>
    %194 = vector.shape_cast %193 : vector<1x22x78xf32> to vector<22x78xf32>
    %cst_229 = arith.constant dense<0.000000e+00> : vector<22x16xf32>
    %195 = tpu.matmul %194, %181, %cst_229 {dimension_numbers = #tpu.dot_dimension_numbers<[1], [0], [0], [1], [0, 0, 1, 1], [], []>} : vector<22x78xf32>, vector<78x16xf32>, vector<22x16xf32> -> vector<22x16xf32>
    %196 = arith.maximumf %192, %195 : vector<22x16xf32>
    %cst_230 = arith.constant 0.000000e+00 : f32
    %197 = vector.broadcast %cst_230 : f32 to vector<7x16xf32>
    %c0_231 = arith.constant 0 : index
    %c0_232 = arith.constant 0 : index
    %198 = vector.load %arg30[%c0_231, %c0_232] : memref<36x16xf32, #tpu.memory_space<vmem>>, vector<7x16xf32>
    tpu.vector_store %arg30[%c0_231, %c0_232], %197 {strides = array<i32>} : memref<36x16xf32, #tpu.memory_space<vmem>>, vector<7x16xf32>,
    %cst_233 = arith.constant 0.000000e+00 : f32
    %199 = vector.broadcast %cst_233 : f32 to vector<7x16xf32>
    %c29 = arith.constant 29 : index
    %c0_234 = arith.constant 0 : index
    %200 = vector.load %arg30[%c29, %c0_234] : memref<36x16xf32, #tpu.memory_space<vmem>>, vector<7x16xf32>
    tpu.vector_store %arg30[%c29, %c0_234], %199 {strides = array<i32>} : memref<36x16xf32, #tpu.memory_space<vmem>>, vector<7x16xf32>,
    %c7_235 = arith.constant 7 : index
    %c0_236 = arith.constant 0 : index
    %201 = vector.load %arg30[%c7_235, %c0_236] : memref<36x16xf32, #tpu.memory_space<vmem>>, vector<22x16xf32>
    tpu.vector_store %arg30[%c7_235, %c0_236], %196 {strides = array<i32>} : memref<36x16xf32, #tpu.memory_space<vmem>>, vector<22x16xf32>,
    %c0_237 = arith.constant 0 : index
    %c0_238 = arith.constant 0 : index
    %202 = vector.load %arg30[%c0_237, %c0_238] : memref<36x16xf32, #tpu.memory_space<vmem>>, vector<22x16xf32>
    %c1_239 = arith.constant 1 : index
    %c0_240 = arith.constant 0 : index
    %203 = vector.load %arg30[%c1_239, %c0_240] : memref<36x16xf32, #tpu.memory_space<vmem>>, vector<22x16xf32>
    %c2_241 = arith.constant 2 : index
    %c0_242 = arith.constant 0 : index
    %204 = vector.load %arg30[%c2_241, %c0_242] : memref<36x16xf32, #tpu.memory_space<vmem>>, vector<22x16xf32>
    %c6_243 = arith.constant 6 : index
    %c0_244 = arith.constant 0 : index
    %205 = vector.load %arg30[%c6_243, %c0_244] : memref<36x16xf32, #tpu.memory_space<vmem>>, vector<22x16xf32>
    %c7_245 = arith.constant 7 : index
    %c0_246 = arith.constant 0 : index
    %206 = vector.load %arg30[%c7_245, %c0_246] : memref<36x16xf32, #tpu.memory_space<vmem>>, vector<22x16xf32>
    %c8_247 = arith.constant 8 : index
    %c0_248 = arith.constant 0 : index
    %207 = vector.load %arg30[%c8_247, %c0_248] : memref<36x16xf32, #tpu.memory_space<vmem>>, vector<22x16xf32>
    %c12_249 = arith.constant 12 : index
    %c0_250 = arith.constant 0 : index
    %208 = vector.load %arg30[%c12_249, %c0_250] : memref<36x16xf32, #tpu.memory_space<vmem>>, vector<22x16xf32>
    %c13_251 = arith.constant 13 : index
    %c0_252 = arith.constant 0 : index
    %209 = vector.load %arg30[%c13_251, %c0_252] : memref<36x16xf32, #tpu.memory_space<vmem>>, vector<22x16xf32>
    %c14_253 = arith.constant 14 : index
    %c0_254 = arith.constant 0 : index
    %210 = vector.load %arg30[%c14_253, %c0_254] : memref<36x16xf32, #tpu.memory_space<vmem>>, vector<22x16xf32>
    %211 = tpu.concatenate %202, %203, %204, %205, %206, %207, %208, %209, %210 in 1 : vector<22x16xf32>, vector<22x16xf32>, vector<22x16xf32>, vector<22x16xf32>, vector<22x16xf32>, vector<22x16xf32>, vector<22x16xf32>, vector<22x16xf32>, vector<22x16xf32> -> vector<22x144xf32>
    %212 = arith.truncf %211 : vector<22x144xf32> to vector<22x144xbf16>
    %c0_255 = arith.constant 0 : index
    %c0_256 = arith.constant 0 : index
    %213 = vector.load %arg6[%c0_255, %c0_256] : memref<144x32xbf16, #tpu.memory_space<vmem>>, vector<144x32xbf16>
    %cst_257 = arith.constant dense<0.000000e+00> : vector<22x32xf32>
    %214 = tpu.matmul %212, %213, %cst_257 {dimension_numbers = #tpu.dot_dimension_numbers<[1], [0], [0], [1], [0, 0, 1, 1], [], []>} : vector<22x144xbf16>, vector<144x32xbf16>, vector<22x32xf32> -> vector<22x32xf32>
    %c0_258 = arith.constant 0 : index
    %c0_259 = arith.constant 0 : index
    %215 = vector.load %arg14[%c0_258, %c0_259] : memref<3x32xf32, #tpu.memory_space<vmem>>, vector<1x32xf32>
    %c1_260 = arith.constant 1 : index
    %c0_261 = arith.constant 0 : index
    %216 = vector.load %arg14[%c1_260, %c0_261] : memref<3x32xf32, #tpu.memory_space<vmem>>, vector<1x32xf32>
    %c2_262 = arith.constant 2 : index
    %c0_263 = arith.constant 0 : index
    %217 = vector.load %arg14[%c2_262, %c0_263] : memref<3x32xf32, #tpu.memory_space<vmem>>, vector<1x32xf32>
    %218 = vector.broadcast %215 : vector<1x32xf32> to vector<22x32xf32>
    %219 = arith.addf %214, %218 : vector<22x32xf32>
    %cst_264 = arith.constant 0.000000e+00 : f32
    %220 = vector.broadcast %cst_264 : f32 to vector<22x32xf32>
    %221 = arith.maximumf %219, %220 : vector<22x32xf32>
    %222 = vector.broadcast %216 : vector<1x32xf32> to vector<22x32xf32>
    %223 = arith.mulf %221, %222 : vector<22x32xf32>
    %224 = vector.broadcast %217 : vector<1x32xf32> to vector<22x32xf32>
    %225 = arith.addf %223, %224 : vector<22x32xf32>
    %c0_265 = arith.constant 0 : index
    %c0_266 = arith.constant 0 : index
    %226 = vector.load %arg20[%c0_265, %c0_266] : memref<22x1xf32, #tpu.memory_space<vmem>>, vector<22x1xf32>
    %227 = vector.broadcast %226 : vector<22x1xf32> to vector<22x32xf32>
    %228 = arith.mulf %225, %227 : vector<22x32xf32>
    %cst_267 = arith.constant 0.000000e+00 : f32
    %229 = vector.broadcast %cst_267 : f32 to vector<7x32xf32>
    %c0_268 = arith.constant 0 : index
    %c0_269 = arith.constant 0 : index
    %230 = vector.load %arg31[%c0_268, %c0_269] : memref<36x32xf32, #tpu.memory_space<vmem>>, vector<7x32xf32>
    tpu.vector_store %arg31[%c0_268, %c0_269], %229 {strides = array<i32>} : memref<36x32xf32, #tpu.memory_space<vmem>>, vector<7x32xf32>,
    %cst_270 = arith.constant 0.000000e+00 : f32
    %231 = vector.broadcast %cst_270 : f32 to vector<7x32xf32>
    %c29_271 = arith.constant 29 : index
    %c0_272 = arith.constant 0 : index
    %232 = vector.load %arg31[%c29_271, %c0_272] : memref<36x32xf32, #tpu.memory_space<vmem>>, vector<7x32xf32>
    tpu.vector_store %arg31[%c29_271, %c0_272], %231 {strides = array<i32>} : memref<36x32xf32, #tpu.memory_space<vmem>>, vector<7x32xf32>,
    %c7_273 = arith.constant 7 : index
    %c0_274 = arith.constant 0 : index
    %233 = vector.load %arg31[%c7_273, %c0_274] : memref<36x32xf32, #tpu.memory_space<vmem>>, vector<22x32xf32>
    tpu.vector_store %arg31[%c7_273, %c0_274], %228 {strides = array<i32>} : memref<36x32xf32, #tpu.memory_space<vmem>>, vector<22x32xf32>,
    %c0_275 = arith.constant 0 : index
    %c0_276 = arith.constant 0 : index
    %234 = vector.load %arg31[%c0_275, %c0_276] : memref<36x32xf32, #tpu.memory_space<vmem>>, vector<22x32xf32>
    %c1_277 = arith.constant 1 : index
    %c0_278 = arith.constant 0 : index
    %235 = vector.load %arg31[%c1_277, %c0_278] : memref<36x32xf32, #tpu.memory_space<vmem>>, vector<22x32xf32>
    %c2_279 = arith.constant 2 : index
    %c0_280 = arith.constant 0 : index
    %236 = vector.load %arg31[%c2_279, %c0_280] : memref<36x32xf32, #tpu.memory_space<vmem>>, vector<22x32xf32>
    %c6_281 = arith.constant 6 : index
    %c0_282 = arith.constant 0 : index
    %237 = vector.load %arg31[%c6_281, %c0_282] : memref<36x32xf32, #tpu.memory_space<vmem>>, vector<22x32xf32>
    %c7_283 = arith.constant 7 : index
    %c0_284 = arith.constant 0 : index
    %238 = vector.load %arg31[%c7_283, %c0_284] : memref<36x32xf32, #tpu.memory_space<vmem>>, vector<22x32xf32>
    %c8_285 = arith.constant 8 : index
    %c0_286 = arith.constant 0 : index
    %239 = vector.load %arg31[%c8_285, %c0_286] : memref<36x32xf32, #tpu.memory_space<vmem>>, vector<22x32xf32>
    %c12_287 = arith.constant 12 : index
    %c0_288 = arith.constant 0 : index
    %240 = vector.load %arg31[%c12_287, %c0_288] : memref<36x32xf32, #tpu.memory_space<vmem>>, vector<22x32xf32>
    %c13_289 = arith.constant 13 : index
    %c0_290 = arith.constant 0 : index
    %241 = vector.load %arg31[%c13_289, %c0_290] : memref<36x32xf32, #tpu.memory_space<vmem>>, vector<22x32xf32>
    %c14_291 = arith.constant 14 : index
    %c0_292 = arith.constant 0 : index
    %242 = vector.load %arg31[%c14_291, %c0_292] : memref<36x32xf32, #tpu.memory_space<vmem>>, vector<22x32xf32>
    %243 = tpu.concatenate %234, %235, %236, %237, %238, %239, %240, %241, %242 in 1 : vector<22x32xf32>, vector<22x32xf32>, vector<22x32xf32>, vector<22x32xf32>, vector<22x32xf32>, vector<22x32xf32>, vector<22x32xf32>, vector<22x32xf32>, vector<22x32xf32> -> vector<22x288xf32>
    %244 = arith.truncf %243 : vector<22x288xf32> to vector<22x288xbf16>
    %c0_293 = arith.constant 0 : index
    %c0_294 = arith.constant 0 : index
    %245 = vector.load %arg7[%c0_293, %c0_294] : memref<288x32xbf16, #tpu.memory_space<vmem>>, vector<288x32xbf16>
    %cst_295 = arith.constant dense<0.000000e+00> : vector<22x32xf32>
    %246 = tpu.matmul %244, %245, %cst_295 {dimension_numbers = #tpu.dot_dimension_numbers<[1], [0], [0], [1], [0, 0, 1, 1], [], []>} : vector<22x288xbf16>, vector<288x32xbf16>, vector<22x32xf32> -> vector<22x32xf32>
    %c0_296 = arith.constant 0 : index
    %c0_297 = arith.constant 0 : index
    %247 = vector.load %arg15[%c0_296, %c0_297] : memref<3x32xf32, #tpu.memory_space<vmem>>, vector<1x32xf32>
    %c1_298 = arith.constant 1 : index
    %c0_299 = arith.constant 0 : index
    %248 = vector.load %arg15[%c1_298, %c0_299] : memref<3x32xf32, #tpu.memory_space<vmem>>, vector<1x32xf32>
    %c2_300 = arith.constant 2 : index
    %c0_301 = arith.constant 0 : index
    %249 = vector.load %arg15[%c2_300, %c0_301] : memref<3x32xf32, #tpu.memory_space<vmem>>, vector<1x32xf32>
    %250 = vector.broadcast %247 : vector<1x32xf32> to vector<22x32xf32>
    %251 = arith.addf %246, %250 : vector<22x32xf32>
    %cst_302 = arith.constant 0.000000e+00 : f32
    %252 = vector.broadcast %cst_302 : f32 to vector<22x32xf32>
    %253 = arith.maximumf %251, %252 : vector<22x32xf32>
    %254 = vector.broadcast %248 : vector<1x32xf32> to vector<22x32xf32>
    %255 = arith.mulf %253, %254 : vector<22x32xf32>
    %256 = vector.broadcast %249 : vector<1x32xf32> to vector<22x32xf32>
    %257 = arith.addf %255, %256 : vector<22x32xf32>
    %c0_303 = arith.constant 0 : index
    %c0_304 = arith.constant 0 : index
    %c0_305 = arith.constant 0 : index
    %258 = vector.load %arg24[%c0_303, %c0_304, %c0_305] : memref<4x6x22xf32, #tpu.memory_space<vmem>>, vector<1x6x22xf32>
    %259 = vector.shape_cast %258 : vector<1x6x22xf32> to vector<6x22xf32>
    %cst_306 = arith.constant dense<0.000000e+00> : vector<6x32xf32>
    %260 = tpu.matmul %259, %257, %cst_306 {dimension_numbers = #tpu.dot_dimension_numbers<[1], [0], [0], [1], [0, 0, 1, 1], [], []>} : vector<6x22xf32>, vector<22x32xf32>, vector<6x32xf32> -> vector<6x32xf32>
    %c1_307 = arith.constant 1 : index
    %c0_308 = arith.constant 0 : index
    %c0_309 = arith.constant 0 : index
    %261 = vector.load %arg24[%c1_307, %c0_308, %c0_309] : memref<4x6x22xf32, #tpu.memory_space<vmem>>, vector<1x6x22xf32>
    %262 = vector.shape_cast %261 : vector<1x6x22xf32> to vector<6x22xf32>
    %cst_310 = arith.constant dense<0.000000e+00> : vector<6x32xf32>
    %263 = tpu.matmul %262, %257, %cst_310 {dimension_numbers = #tpu.dot_dimension_numbers<[1], [0], [0], [1], [0, 0, 1, 1], [], []>} : vector<6x22xf32>, vector<22x32xf32>, vector<6x32xf32> -> vector<6x32xf32>
    %264 = arith.maximumf %260, %263 : vector<6x32xf32>
    %c2_311 = arith.constant 2 : index
    %c0_312 = arith.constant 0 : index
    %c0_313 = arith.constant 0 : index
    %265 = vector.load %arg24[%c2_311, %c0_312, %c0_313] : memref<4x6x22xf32, #tpu.memory_space<vmem>>, vector<1x6x22xf32>
    %266 = vector.shape_cast %265 : vector<1x6x22xf32> to vector<6x22xf32>
    %cst_314 = arith.constant dense<0.000000e+00> : vector<6x32xf32>
    %267 = tpu.matmul %266, %257, %cst_314 {dimension_numbers = #tpu.dot_dimension_numbers<[1], [0], [0], [1], [0, 0, 1, 1], [], []>} : vector<6x22xf32>, vector<22x32xf32>, vector<6x32xf32> -> vector<6x32xf32>
    %268 = arith.maximumf %264, %267 : vector<6x32xf32>
    %c3_315 = arith.constant 3 : index
    %c0_316 = arith.constant 0 : index
    %c0_317 = arith.constant 0 : index
    %269 = vector.load %arg24[%c3_315, %c0_316, %c0_317] : memref<4x6x22xf32, #tpu.memory_space<vmem>>, vector<1x6x22xf32>
    %270 = vector.shape_cast %269 : vector<1x6x22xf32> to vector<6x22xf32>
    %cst_318 = arith.constant dense<0.000000e+00> : vector<6x32xf32>
    %271 = tpu.matmul %270, %257, %cst_318 {dimension_numbers = #tpu.dot_dimension_numbers<[1], [0], [0], [1], [0, 0, 1, 1], [], []>} : vector<6x22xf32>, vector<22x32xf32>, vector<6x32xf32> -> vector<6x32xf32>
    %272 = arith.maximumf %268, %271 : vector<6x32xf32>
    %cst_319 = arith.constant 0.000000e+00 : f32
    %273 = vector.broadcast %cst_319 : f32 to vector<5x32xf32>
    %c0_320 = arith.constant 0 : index
    %c0_321 = arith.constant 0 : index
    %274 = vector.load %arg32[%c0_320, %c0_321] : memref<16x32xf32, #tpu.memory_space<vmem>>, vector<5x32xf32>
    tpu.vector_store %arg32[%c0_320, %c0_321], %273 {strides = array<i32>} : memref<16x32xf32, #tpu.memory_space<vmem>>, vector<5x32xf32>,
    %cst_322 = arith.constant 0.000000e+00 : f32
    %275 = vector.broadcast %cst_322 : f32 to vector<5x32xf32>
    %c11_323 = arith.constant 11 : index
    %c0_324 = arith.constant 0 : index
    %276 = vector.load %arg32[%c11_323, %c0_324] : memref<16x32xf32, #tpu.memory_space<vmem>>, vector<5x32xf32>
    tpu.vector_store %arg32[%c11_323, %c0_324], %275 {strides = array<i32>} : memref<16x32xf32, #tpu.memory_space<vmem>>, vector<5x32xf32>,
    %c5_325 = arith.constant 5 : index
    %c0_326 = arith.constant 0 : index
    %277 = vector.load %arg32[%c5_325, %c0_326] : memref<16x32xf32, #tpu.memory_space<vmem>>, vector<6x32xf32>
    tpu.vector_store %arg32[%c5_325, %c0_326], %272 {strides = array<i32>} : memref<16x32xf32, #tpu.memory_space<vmem>>, vector<6x32xf32>,
    %c0_327 = arith.constant 0 : index
    %c0_328 = arith.constant 0 : index
    %278 = vector.load %arg32[%c0_327, %c0_328] : memref<16x32xf32, #tpu.memory_space<vmem>>, vector<6x32xf32>
    %c1_329 = arith.constant 1 : index
    %c0_330 = arith.constant 0 : index
    %279 = vector.load %arg32[%c1_329, %c0_330] : memref<16x32xf32, #tpu.memory_space<vmem>>, vector<6x32xf32>
    %c2_331 = arith.constant 2 : index
    %c0_332 = arith.constant 0 : index
    %280 = vector.load %arg32[%c2_331, %c0_332] : memref<16x32xf32, #tpu.memory_space<vmem>>, vector<6x32xf32>
    %c4_333 = arith.constant 4 : index
    %c0_334 = arith.constant 0 : index
    %281 = vector.load %arg32[%c4_333, %c0_334] : memref<16x32xf32, #tpu.memory_space<vmem>>, vector<6x32xf32>
    %c5_335 = arith.constant 5 : index
    %c0_336 = arith.constant 0 : index
    %282 = vector.load %arg32[%c5_335, %c0_336] : memref<16x32xf32, #tpu.memory_space<vmem>>, vector<6x32xf32>
    %c6_337 = arith.constant 6 : index
    %c0_338 = arith.constant 0 : index
    %283 = vector.load %arg32[%c6_337, %c0_338] : memref<16x32xf32, #tpu.memory_space<vmem>>, vector<6x32xf32>
    %c8_339 = arith.constant 8 : index
    %c0_340 = arith.constant 0 : index
    %284 = vector.load %arg32[%c8_339, %c0_340] : memref<16x32xf32, #tpu.memory_space<vmem>>, vector<6x32xf32>
    %c9_341 = arith.constant 9 : index
    %c0_342 = arith.constant 0 : index
    %285 = vector.load %arg32[%c9_341, %c0_342] : memref<16x32xf32, #tpu.memory_space<vmem>>, vector<6x32xf32>
    %c10_343 = arith.constant 10 : index
    %c0_344 = arith.constant 0 : index
    %286 = vector.load %arg32[%c10_343, %c0_344] : memref<16x32xf32, #tpu.memory_space<vmem>>, vector<6x32xf32>
    %287 = tpu.concatenate %278, %279, %280, %281, %282, %283, %284, %285, %286 in 1 : vector<6x32xf32>, vector<6x32xf32>, vector<6x32xf32>, vector<6x32xf32>, vector<6x32xf32>, vector<6x32xf32>, vector<6x32xf32>, vector<6x32xf32>, vector<6x32xf32> -> vector<6x288xf32>
    %288 = arith.truncf %287 : vector<6x288xf32> to vector<6x288xbf16>
    %c0_345 = arith.constant 0 : index
    %c0_346 = arith.constant 0 : index
    %289 = vector.load %arg8[%c0_345, %c0_346] : memref<288x64xbf16, #tpu.memory_space<vmem>>, vector<288x64xbf16>
    %cst_347 = arith.constant dense<0.000000e+00> : vector<6x64xf32>
    %290 = tpu.matmul %288, %289, %cst_347 {dimension_numbers = #tpu.dot_dimension_numbers<[1], [0], [0], [1], [0, 0, 1, 1], [], []>} : vector<6x288xbf16>, vector<288x64xbf16>, vector<6x64xf32> -> vector<6x64xf32>
    %c0_348 = arith.constant 0 : index
    %c0_349 = arith.constant 0 : index
    %291 = vector.load %arg16[%c0_348, %c0_349] : memref<3x64xf32, #tpu.memory_space<vmem>>, vector<1x64xf32>
    %c1_350 = arith.constant 1 : index
    %c0_351 = arith.constant 0 : index
    %292 = vector.load %arg16[%c1_350, %c0_351] : memref<3x64xf32, #tpu.memory_space<vmem>>, vector<1x64xf32>
    %c2_352 = arith.constant 2 : index
    %c0_353 = arith.constant 0 : index
    %293 = vector.load %arg16[%c2_352, %c0_353] : memref<3x64xf32, #tpu.memory_space<vmem>>, vector<1x64xf32>
    %294 = vector.broadcast %291 : vector<1x64xf32> to vector<6x64xf32>
    %295 = arith.addf %290, %294 : vector<6x64xf32>
    %cst_354 = arith.constant 0.000000e+00 : f32
    %296 = vector.broadcast %cst_354 : f32 to vector<6x64xf32>
    %297 = arith.maximumf %295, %296 : vector<6x64xf32>
    %298 = vector.broadcast %292 : vector<1x64xf32> to vector<6x64xf32>
    %299 = arith.mulf %297, %298 : vector<6x64xf32>
    %300 = vector.broadcast %293 : vector<1x64xf32> to vector<6x64xf32>
    %301 = arith.addf %299, %300 : vector<6x64xf32>
    %c0_355 = arith.constant 0 : index
    %c0_356 = arith.constant 0 : index
    %302 = vector.load %arg21[%c0_355, %c0_356] : memref<6x1xf32, #tpu.memory_space<vmem>>, vector<6x1xf32>
    %303 = vector.broadcast %302 : vector<6x1xf32> to vector<6x64xf32>
    %304 = arith.mulf %301, %303 : vector<6x64xf32>
    %cst_357 = arith.constant 0.000000e+00 : f32
    %305 = vector.broadcast %cst_357 : f32 to vector<5x64xf32>
    %c0_358 = arith.constant 0 : index
    %c0_359 = arith.constant 0 : index
    %306 = vector.load %arg33[%c0_358, %c0_359] : memref<16x64xf32, #tpu.memory_space<vmem>>, vector<5x64xf32>
    tpu.vector_store %arg33[%c0_358, %c0_359], %305 {strides = array<i32>} : memref<16x64xf32, #tpu.memory_space<vmem>>, vector<5x64xf32>,
    %cst_360 = arith.constant 0.000000e+00 : f32
    %307 = vector.broadcast %cst_360 : f32 to vector<5x64xf32>
    %c11_361 = arith.constant 11 : index
    %c0_362 = arith.constant 0 : index
    %308 = vector.load %arg33[%c11_361, %c0_362] : memref<16x64xf32, #tpu.memory_space<vmem>>, vector<5x64xf32>
    tpu.vector_store %arg33[%c11_361, %c0_362], %307 {strides = array<i32>} : memref<16x64xf32, #tpu.memory_space<vmem>>, vector<5x64xf32>,
    %c5_363 = arith.constant 5 : index
    %c0_364 = arith.constant 0 : index
    %309 = vector.load %arg33[%c5_363, %c0_364] : memref<16x64xf32, #tpu.memory_space<vmem>>, vector<6x64xf32>
    tpu.vector_store %arg33[%c5_363, %c0_364], %304 {strides = array<i32>} : memref<16x64xf32, #tpu.memory_space<vmem>>, vector<6x64xf32>,
    %c0_365 = arith.constant 0 : index
    %c0_366 = arith.constant 0 : index
    %310 = vector.load %arg33[%c0_365, %c0_366] : memref<16x64xf32, #tpu.memory_space<vmem>>, vector<6x64xf32>
    %c1_367 = arith.constant 1 : index
    %c0_368 = arith.constant 0 : index
    %311 = vector.load %arg33[%c1_367, %c0_368] : memref<16x64xf32, #tpu.memory_space<vmem>>, vector<6x64xf32>
    %c2_369 = arith.constant 2 : index
    %c0_370 = arith.constant 0 : index
    %312 = vector.load %arg33[%c2_369, %c0_370] : memref<16x64xf32, #tpu.memory_space<vmem>>, vector<6x64xf32>
    %c4_371 = arith.constant 4 : index
    %c0_372 = arith.constant 0 : index
    %313 = vector.load %arg33[%c4_371, %c0_372] : memref<16x64xf32, #tpu.memory_space<vmem>>, vector<6x64xf32>
    %c5_373 = arith.constant 5 : index
    %c0_374 = arith.constant 0 : index
    %314 = vector.load %arg33[%c5_373, %c0_374] : memref<16x64xf32, #tpu.memory_space<vmem>>, vector<6x64xf32>
    %c6_375 = arith.constant 6 : index
    %c0_376 = arith.constant 0 : index
    %315 = vector.load %arg33[%c6_375, %c0_376] : memref<16x64xf32, #tpu.memory_space<vmem>>, vector<6x64xf32>
    %c8_377 = arith.constant 8 : index
    %c0_378 = arith.constant 0 : index
    %316 = vector.load %arg33[%c8_377, %c0_378] : memref<16x64xf32, #tpu.memory_space<vmem>>, vector<6x64xf32>
    %c9_379 = arith.constant 9 : index
    %c0_380 = arith.constant 0 : index
    %317 = vector.load %arg33[%c9_379, %c0_380] : memref<16x64xf32, #tpu.memory_space<vmem>>, vector<6x64xf32>
    %c10_381 = arith.constant 10 : index
    %c0_382 = arith.constant 0 : index
    %318 = vector.load %arg33[%c10_381, %c0_382] : memref<16x64xf32, #tpu.memory_space<vmem>>, vector<6x64xf32>
    %319 = tpu.concatenate %310, %311, %312, %313, %314, %315, %316, %317, %318 in 1 : vector<6x64xf32>, vector<6x64xf32>, vector<6x64xf32>, vector<6x64xf32>, vector<6x64xf32>, vector<6x64xf32>, vector<6x64xf32>, vector<6x64xf32>, vector<6x64xf32> -> vector<6x576xf32>
    %320 = arith.truncf %319 : vector<6x576xf32> to vector<6x576xbf16>
    %c0_383 = arith.constant 0 : index
    %c0_384 = arith.constant 0 : index
    %321 = vector.load %arg9[%c0_383, %c0_384] : memref<576x64xbf16, #tpu.memory_space<vmem>>, vector<576x64xbf16>
    %cst_385 = arith.constant dense<0.000000e+00> : vector<6x64xf32>
    %322 = tpu.matmul %320, %321, %cst_385 {dimension_numbers = #tpu.dot_dimension_numbers<[1], [0], [0], [1], [0, 0, 1, 1], [], []>} : vector<6x576xbf16>, vector<576x64xbf16>, vector<6x64xf32> -> vector<6x64xf32>
    %c0_386 = arith.constant 0 : index
    %c0_387 = arith.constant 0 : index
    %323 = vector.load %arg17[%c0_386, %c0_387] : memref<3x64xf32, #tpu.memory_space<vmem>>, vector<1x64xf32>
    %c1_388 = arith.constant 1 : index
    %c0_389 = arith.constant 0 : index
    %324 = vector.load %arg17[%c1_388, %c0_389] : memref<3x64xf32, #tpu.memory_space<vmem>>, vector<1x64xf32>
    %c2_390 = arith.constant 2 : index
    %c0_391 = arith.constant 0 : index
    %325 = vector.load %arg17[%c2_390, %c0_391] : memref<3x64xf32, #tpu.memory_space<vmem>>, vector<1x64xf32>
    %326 = vector.broadcast %323 : vector<1x64xf32> to vector<6x64xf32>
    %327 = arith.addf %322, %326 : vector<6x64xf32>
    %cst_392 = arith.constant 0.000000e+00 : f32
    %328 = vector.broadcast %cst_392 : f32 to vector<6x64xf32>
    %329 = arith.maximumf %327, %328 : vector<6x64xf32>
    %330 = vector.broadcast %324 : vector<1x64xf32> to vector<6x64xf32>
    %331 = arith.mulf %329, %330 : vector<6x64xf32>
    %332 = vector.broadcast %325 : vector<1x64xf32> to vector<6x64xf32>
    %333 = arith.addf %331, %332 : vector<6x64xf32>
    %c0_393 = arith.constant 0 : index
    %c0_394 = arith.constant 0 : index
    %334 = vector.load %arg34[%c0_393, %c0_394] : memref<6x64xf32, #tpu.memory_space<vmem>>, vector<6x64xf32>
    tpu.vector_store %arg34[%c0_393, %c0_394], %333 {strides = array<i32>} : memref<6x64xf32, #tpu.memory_space<vmem>>, vector<6x64xf32>,
    %c0_395 = arith.constant 0 : index
    %c0_396 = arith.constant 0 : index
    %335 = vector.load %arg34[%c0_395, %c0_396] : memref<6x64xf32, #tpu.memory_space<vmem>>, vector<2x64xf32>
    %c0_397 = arith.constant 0 : index
    %c0_398 = arith.constant 0 : index
    %c0_399 = arith.constant 0 : index
    %c0_400 = arith.constant 0 : index
    %336 = vector.load %arg25[%c0_397, %c0_398, %c0_399, %c0_400] : memref<1x2x2x64xf32, #tpu.memory_space<vmem>>, vector<1x1x2x64xf32>
    %337 = vector.shape_cast %336 : vector<1x1x2x64xf32> to vector<2x64xf32>
    %338 = vector.shape_cast %335 : vector<2x64xf32> to vector<1x1x2x64xf32>
    tpu.vector_store %arg25[%c0_397, %c0_398, %c0_399, %c0_400], %338 {strides = array<i32>} : memref<1x2x2x64xf32, #tpu.memory_space<vmem>>, vector<1x1x2x64xf32>,
    %c4_401 = arith.constant 4 : index
    %c0_402 = arith.constant 0 : index
    %339 = vector.load %arg34[%c4_401, %c0_402] : memref<6x64xf32, #tpu.memory_space<vmem>>, vector<2x64xf32>
    %c0_403 = arith.constant 0 : index
    %c1_404 = arith.constant 1 : index
    %c0_405 = arith.constant 0 : index
    %c0_406 = arith.constant 0 : index
    %340 = vector.load %arg25[%c0_403, %c1_404, %c0_405, %c0_406] : memref<1x2x2x64xf32, #tpu.memory_space<vmem>>, vector<1x1x2x64xf32>
    %341 = vector.shape_cast %340 : vector<1x1x2x64xf32> to vector<2x64xf32>
    %342 = vector.shape_cast %339 : vector<2x64xf32> to vector<1x1x2x64xf32>
    tpu.vector_store %arg25[%c0_403, %c1_404, %c0_405, %c0_406], %342 {strides = array<i32>} : memref<1x2x2x64xf32, #tpu.memory_space<vmem>>, vector<1x1x2x64xf32>,
    return
  }
  func.func @transform_0(%arg0: i32) -> (i32, i32, i32, i32) {
    %c0_i32 = arith.constant 0 : i32
    %c0_i32_0 = arith.constant 0 : i32
    %c0_i32_1 = arith.constant 0 : i32
    %c0_i32_2 = arith.constant 0 : i32
    return %arg0, %c0_i32, %c0_i32_0, %c0_i32_1 : i32, i32, i32, i32
  }
  func.func @transform_1(%arg0: i32) -> (i32, i32) {
    %c0_i32 = arith.constant 0 : i32
    %c0_i32_0 = arith.constant 0 : i32
    %c0_i32_1 = arith.constant 0 : i32
    return %c0_i32, %c0_i32_0 : i32, i32
  }
  func.func @transform_2(%arg0: i32) -> (i32, i32) {
    %c0_i32 = arith.constant 0 : i32
    %c0_i32_0 = arith.constant 0 : i32
    %c0_i32_1 = arith.constant 0 : i32
    return %c0_i32, %c0_i32_0 : i32, i32
  }
  func.func @transform_3(%arg0: i32) -> (i32, i32) {
    %c0_i32 = arith.constant 0 : i32
    %c0_i32_0 = arith.constant 0 : i32
    %c0_i32_1 = arith.constant 0 : i32
    return %c0_i32, %c0_i32_0 : i32, i32
  }
  func.func @transform_4(%arg0: i32) -> (i32, i32) {
    %c0_i32 = arith.constant 0 : i32
    %c0_i32_0 = arith.constant 0 : i32
    %c0_i32_1 = arith.constant 0 : i32
    return %c0_i32, %c0_i32_0 : i32, i32
  }
  func.func @transform_5(%arg0: i32) -> (i32, i32) {
    %c0_i32 = arith.constant 0 : i32
    %c0_i32_0 = arith.constant 0 : i32
    %c0_i32_1 = arith.constant 0 : i32
    return %c0_i32, %c0_i32_0 : i32, i32
  }
  func.func @transform_6(%arg0: i32) -> (i32, i32) {
    %c0_i32 = arith.constant 0 : i32
    %c0_i32_0 = arith.constant 0 : i32
    %c0_i32_1 = arith.constant 0 : i32
    return %c0_i32, %c0_i32_0 : i32, i32
  }
  func.func @transform_7(%arg0: i32) -> (i32, i32) {
    %c0_i32 = arith.constant 0 : i32
    %c0_i32_0 = arith.constant 0 : i32
    %c0_i32_1 = arith.constant 0 : i32
    return %c0_i32, %c0_i32_0 : i32, i32
  }
  func.func @transform_8(%arg0: i32) -> (i32, i32) {
    %c0_i32 = arith.constant 0 : i32
    %c0_i32_0 = arith.constant 0 : i32
    %c0_i32_1 = arith.constant 0 : i32
    return %c0_i32, %c0_i32_0 : i32, i32
  }
  func.func @transform_9(%arg0: i32) -> (i32, i32) {
    %c0_i32 = arith.constant 0 : i32
    %c0_i32_0 = arith.constant 0 : i32
    %c0_i32_1 = arith.constant 0 : i32
    return %c0_i32, %c0_i32_0 : i32, i32
  }
  func.func @transform_10(%arg0: i32) -> (i32, i32) {
    %c0_i32 = arith.constant 0 : i32
    %c0_i32_0 = arith.constant 0 : i32
    %c0_i32_1 = arith.constant 0 : i32
    return %c0_i32, %c0_i32_0 : i32, i32
  }
  func.func @transform_11(%arg0: i32) -> (i32, i32) {
    %c0_i32 = arith.constant 0 : i32
    %c0_i32_0 = arith.constant 0 : i32
    %c0_i32_1 = arith.constant 0 : i32
    return %c0_i32, %c0_i32_0 : i32, i32
  }
  func.func @transform_12(%arg0: i32) -> (i32, i32) {
    %c0_i32 = arith.constant 0 : i32
    %c0_i32_0 = arith.constant 0 : i32
    %c0_i32_1 = arith.constant 0 : i32
    return %c0_i32, %c0_i32_0 : i32, i32
  }
  func.func @transform_13(%arg0: i32) -> (i32, i32) {
    %c0_i32 = arith.constant 0 : i32
    %c0_i32_0 = arith.constant 0 : i32
    %c0_i32_1 = arith.constant 0 : i32
    return %c0_i32, %c0_i32_0 : i32, i32
  }
  func.func @transform_14(%arg0: i32) -> (i32, i32) {
    %c0_i32 = arith.constant 0 : i32
    %c0_i32_0 = arith.constant 0 : i32
    %c0_i32_1 = arith.constant 0 : i32
    return %c0_i32, %c0_i32_0 : i32, i32
  }
  func.func @transform_15(%arg0: i32) -> (i32, i32) {
    %c0_i32 = arith.constant 0 : i32
    %c0_i32_0 = arith.constant 0 : i32
    %c0_i32_1 = arith.constant 0 : i32
    return %c0_i32, %c0_i32_0 : i32, i32
  }
  func.func @transform_16(%arg0: i32) -> (i32, i32) {
    %c0_i32 = arith.constant 0 : i32
    %c0_i32_0 = arith.constant 0 : i32
    %c0_i32_1 = arith.constant 0 : i32
    return %c0_i32, %c0_i32_0 : i32, i32
  }
  func.func @transform_17(%arg0: i32) -> (i32, i32) {
    %c0_i32 = arith.constant 0 : i32
    %c0_i32_0 = arith.constant 0 : i32
    %c0_i32_1 = arith.constant 0 : i32
    return %c0_i32, %c0_i32_0 : i32, i32
  }
  func.func @transform_18(%arg0: i32) -> (i32, i32) {
    %c0_i32 = arith.constant 0 : i32
    %c0_i32_0 = arith.constant 0 : i32
    %c0_i32_1 = arith.constant 0 : i32
    return %c0_i32, %c0_i32_0 : i32, i32
  }
  func.func @transform_19(%arg0: i32) -> (i32, i32) {
    %c0_i32 = arith.constant 0 : i32
    %c0_i32_0 = arith.constant 0 : i32
    %c0_i32_1 = arith.constant 0 : i32
    return %c0_i32, %c0_i32_0 : i32, i32
  }
  func.func @transform_20(%arg0: i32) -> (i32, i32) {
    %c0_i32 = arith.constant 0 : i32
    %c0_i32_0 = arith.constant 0 : i32
    %c0_i32_1 = arith.constant 0 : i32
    return %c0_i32, %c0_i32_0 : i32, i32
  }
  func.func @transform_21(%arg0: i32) -> (i32, i32, i32) {
    %c0_i32 = arith.constant 0 : i32
    %c0_i32_0 = arith.constant 0 : i32
    %c0_i32_1 = arith.constant 0 : i32
    %c0_i32_2 = arith.constant 0 : i32
    return %c0_i32, %c0_i32_0, %c0_i32_1 : i32, i32, i32
  }
  func.func @transform_22(%arg0: i32) -> (i32, i32, i32) {
    %c0_i32 = arith.constant 0 : i32
    %c0_i32_0 = arith.constant 0 : i32
    %c0_i32_1 = arith.constant 0 : i32
    %c0_i32_2 = arith.constant 0 : i32
    return %c0_i32, %c0_i32_0, %c0_i32_1 : i32, i32, i32
  }
  func.func @transform_23(%arg0: i32) -> (i32, i32, i32) {
    %c0_i32 = arith.constant 0 : i32
    %c0_i32_0 = arith.constant 0 : i32
    %c0_i32_1 = arith.constant 0 : i32
    %c0_i32_2 = arith.constant 0 : i32
    return %c0_i32, %c0_i32_0, %c0_i32_1 : i32, i32, i32
  }
  func.func @transform_24(%arg0: i32) -> (i32, i32, i32, i32) {
    %c0_i32 = arith.constant 0 : i32
    %c0_i32_0 = arith.constant 0 : i32
    %c0_i32_1 = arith.constant 0 : i32
    %c0_i32_2 = arith.constant 0 : i32
    return %arg0, %c0_i32, %c0_i32_0, %c0_i32_1 : i32, i32, i32, i32
  }
}

</mosaic_0001>

<bundles_post_ra>
// kernel: vgg_backbone_bn.1
= control target key start
LH: loop header
LB: loop body
LE: loop exit
PB: predicated region body
PF: predicated region fallthrough
CT: control target
= control target key end

     0   :  { %s18144_s0 = inlined_call_operand.vmem [shape: f32[2,16,16,1], index: 0, kind: input, shape index: {}]   ;;  %s18145_s1 = inlined_call_operand.vmem [shape: bf16[9,8], index: 1, kind: input, shape index: {}]   ;;  %s18146_s2 = inlined_call_operand.vmem [shape: bf16[72,8], index: 2, kind: input, shape index: {}]   ;;  %s18147_s3 = inlined_call_operand.vmem [shape: bf16[72,16], index: 3, kind: input, shape index: {}]   ;;  %s18148_s4 = inlined_call_operand.vmem [shape: bf16[144,16], index: 4, kind: input, shape index: {}]   ;;  %s18149_s5 = inlined_call_operand.vmem [shape: bf16[144,32], index: 5, kind: input, shape index: {}]   ;;  %s18150_s6 = inlined_call_operand.vmem [shape: bf16[288,32], index: 6, kind: input, shape index: {}]   ;;  %s18151_s7 = inlined_call_operand.vmem [shape: bf16[288,64], index: 7, kind: input, shape index: {}]   ;;  %s18152_s8 = inlined_call_operand.vmem [shape: bf16[576,64], index: 8, kind: input, shape index: {}]   ;;  %s18153_s9 = inlined_call_operand.vmem [shape: f32[3,8], index: 9, kind: input, shape index: {}]   ;;  %s18154_s10 = inlined_call_operand.vmem [shape: f32[3,8], index: 10, kind: input, shape index: {}]   ;;  %s18155_s11 = inlined_call_operand.vmem [shape: f32[3,16], index: 11, kind: input, shape index: {}]   ;;  %s18156_s12 = inlined_call_operand.vmem [shape: f32[3,16], index: 12, kind: input, shape index: {}]   ;;  %s18157_s13 = inlined_call_operand.vmem [shape: f32[3,32], index: 13, kind: input, shape index: {}]   ;;  %s18158_s14 = inlined_call_operand.vmem [shape: f32[3,32], index: 14, kind: input, shape index: {}]   ;;  %s18159_s15 = inlined_call_operand.vmem [shape: f32[3,64], index: 15, kind: input, shape index: {}]   ;;  %s18160_s16 = inlined_call_operand.vmem [shape: f32[3,64], index: 16, kind: input, shape index: {}]   ;;  %s18161_s17 = inlined_call_operand.vmem [shape: f32[286,1], index: 17, kind: input, shape index: {}]   ;;  %s18162_s18 = inlined_call_operand.vmem [shape: f32[78,1], index: 18, kind: input, shape index: {}]   ;;  %s18163_s19 = inlined_call_operand.vmem [shape: f32[22,1], index: 19, kind: input, shape index: {}]   ;;  %s18164_s20 = inlined_call_operand.vmem [shape: f32[6,1], index: 20, kind: input, shape index: {}]   ;;  %s18165_s21 = inlined_call_operand.vmem [shape: f32[4,78,286], index: 21, kind: input, shape index: {}]   ;;  %s18166_s22 = inlined_call_operand.vmem [shape: f32[4,22,78], index: 22, kind: input, shape index: {}]   ;;  %s18167_s23 = inlined_call_operand.vmem [shape: f32[4,6,22], index: 23, kind: input, shape index: {}]   ;;  %s18168_s24 = inlined_call_operand.hbm [shape: f32[2,2,2,64], index: 24, kind: output, shape index: {}]  }
   0x1   :  { %18231 = sst [smem:[#allocation29_spill]] %s18144_s0 }
   0x2   :  { %18232 = sst [smem:[#allocation30_spill]] %s18145_s1 }
   0x3   :  { %18233 = sst [smem:[#allocation31_spill]] %s18146_s2 }
   0x4   :  { %18234 = sst [smem:[#allocation32_spill]] %s18147_s3 }
   0x5   :  { %18235 = sst [smem:[#allocation33_spill]] %s18148_s4 }
   0x6   :  { %18236 = sst [smem:[#allocation34_spill]] %s18149_s5 }
   0x7   :  { %18237 = sst [smem:[#allocation35_spill]] %s18150_s6 }
   0x8   :  { %18238 = sst [smem:[#allocation36_spill]] %s18151_s7 }
   0x9   :  { %18239 = sst [smem:[#allocation37_spill]] %s18152_s8 }
   0xa   :  { %18240 = sst [smem:[#allocation38_spill]] %s18153_s9 }
   0xb   :  { %18241 = sst [smem:[#allocation39_spill]] %s18154_s10 }
   0xc   :  { %18242 = sst [smem:[#allocation40_spill]] %s18161_s17 }
   0xd   :  { %18243 = sst [smem:[#allocation41_spill]] %s18168_s24 }
   0xe   :  { %29 = vsyncpa [#allocation12], 0 }
   0xf   :  { %31 = vsyncpa [#allocation12 + $0x1], 0  ;;  %s13645_s5 = smov 0   ;;  %s13647_s26 = smov 0  }
  0x10   :  { %s13649_s27 = smov 0   ;;  %s13651_s28 = smov 0  }
  0x11 LB: > { %18244 = sst [smem:[#allocation14_spill]] %s13483_s5  ;;  %s13666_s6 = sadd.s32 4294967295, %s13495_s28   ;;  %s13495_s28 = sphi %s13651_s28, %s18314_s28   ;;  %s13491_s27 = sphi %s13649_s27, %s18316_s27   ;;  %s13487_s26 = sphi %s13647_s26, %s18318_s26   ;;  %s13483_s5 = sphi %s13645_s5, %s18317_s5  }
  0x12   : > { %18245 = sst [smem:[#allocation15_spill]] %s13491_s27  ;;  %s10039_s2 = sadd.s32 4294967294, %s13495_s28  }
  0x13   : > { %18246 = sst [smem:[#allocation16_spill]] %s13495_s28  ;;  %s13670_s29 = sadd.s32 1, %s13495_s28  }
  0x14   : > { %18247 = sst [smem:[#allocation17_spill]] %s13666_s6  ;;  %s553_s0 = sadd.s32 1, %s13491_s27 }
  0x15   : > { %18248 = sst [smem:[#allocation18_spill]] %s13670_s29  ;;  %s550_s7 = ssub.s32 %s13495_s28, %s13670_s29 }
  0x16   : > { %p563_p0 = scmp.ne.s32.totalorder %s13491_s27, %s13487_s26  ;;  %p551_p1 = scmp.eq.s32.totalorder %s550_s7, 0 }
  0x17   : > { %p564_p2 = scmp.eq.s32.totalorder %s13666_s6, 1  ;;  %p569_p3 = scmp.ne.s32.totalorder %s13487_s26, %s13483_s5 }
  0x18   : > { %p570_p4 = scmp.eq.s32.totalorder %s10039_s2, 1  ;;  %p10042_p7 = scmp.ge.s32.totalorder %s13495_s28, 1 }
  0x19   : > { %s13681_s30 = scalar_select %p551_p1, %s13491_s27, %s553_s0  }
  0x1a   : > { %p13683_p5 = por %p564_p2, %p563_p0  ;;  %p13687_p6 = por %p570_p4, %p569_p3 }
  0x1b   : > { %18249 = sst [smem:[#allocation19_spill]] %s13681_s30  ;;  %p665_p8 = scmp.lt.s32.totalorder %s13495_s28, 3 }
  0x1c   : > { %s18250_s3 = scalar_select %p13683_p5, 1, 0 }
  0x1d   : > { %s18252_s25 = scalar_select %p13687_p6, 1, 0 }
  0x1e   : > { %18251 = sst [smem:[#allocation20_spill]] %s18250_s3  ;;  %p666_p9 = pnand %p10042_p7, %p665_p8 }
  0x1f   : > { %18253 = sst [smem:[#allocation21_spill]] %s18252_s25 }
  0x20   : > { %669 = sbr.rel (%p666_p9) target bundleno = 4092 (0xffc), region = 116 }
  0x25   : > { %vm737_vm0 = vcmask 7168   ;;  %v18220_v0 = vmov 0.0   ;;  %p731_p10 = scmp.lt.s32.totalorder %s13666_s6, 1  ;;  %s18254_s0 = sld [smem:[#allocation29_spill]]  ;;  %vm2461_vm1 = vcmask 64512   ;;  %vm2585_vm2 = vcmask 1043456  }
  0x26   : > { %738 = vst.msk [vmem:[#allocation2] sm:$0xff] %vm737_vm0, %v18220_v0  ;;  %739 = vst.msk [vmem:[#allocation2 + $0x8] sm:$0xff] %vm737_vm0, %v18220_v0  ;;  %s18188_s1 = smov 3   ;;  %s18178_s2 = smov 4   ;;  %vm2586_vm3 = vcmask 1044480   ;;  %vm2239_vm4 = vcmask 15360  }
  0x27   : > { %740 = vst.msk [vmem:[#allocation2 + $0x10] sm:$0xff] %vm737_vm0, %v18220_v0  ;;  %741 = vst.msk [vmem:[#allocation2 + $0x18] sm:$0xff] %vm737_vm0, %v18220_v0  ;;  %s732_s8 = scalar_select %p731_p10, %s13666_s6, 1  ;;  %vm2276_vm5 = vcmask 23552   ;;  %vm2313_vm6 = vcmask 31744   ;;  %vm2350_vm7 = vcmask 39936  }
  0x28   : > { %742 = vst.msk [vmem:[#allocation2 + $0x20] sm:$0xff] %vm737_vm0, %v18220_v0  ;;  %743 = vst.msk [vmem:[#allocation2 + $0x28] sm:$0xff] %vm737_vm0, %v18220_v0  ;;  %s18261_s30 = smov 8   ;;  %s18262_s27 = smov 2   ;;  %vm2387_vm8 = vcmask 48128   ;;  %vm2424_vm9 = vcmask 56320  }
  0x29   : > { %744 = vst.msk [vmem:[#allocation2 + $0x30] sm:$0xff] %vm737_vm0, %v18220_v0  ;;  %745 = vst.msk [vmem:[#allocation2 + $0x38] sm:$0xff] %vm737_vm0, %v18220_v0  ;;  %s10429_s4 = sshll.u32 %s732_s8, 8  ;;  %s18184_s8 = smov 1   ;;  %vm2530_vm10 = vcmask 72704   ;;  %vm778_vm11 = vcmask 3072  }
  0x2a   : > { %746 = vst.msk [vmem:[#allocation2 + $0x40] sm:$0xff] %vm737_vm0, %v18220_v0  ;;  %747 = vst.msk [vmem:[#allocation2 + $0x48] sm:$0xff] %vm737_vm0, %v18220_v0  ;;  %s18263_s29 = smov 3   ;;  %vm3139_vm12 = vcmask 59392   ;;  %s18264_s17 = sld [smem:[#allocation40_spill]]  ;;  %vm4561_vm13 = vcmask 130048  }
  0x2b   : > { %748 = vst.msk [vmem:[#allocation2 + $0x50] sm:$0xff] %vm737_vm0, %v18220_v0  ;;  %749 = vst.msk [vmem:[#allocation2 + $0x58] sm:$0xff] %vm737_vm0, %v18220_v0  ;;  %s13778_s7 = scalar_lea.vmem %s18254_s0, %s10429_s4  ;;  %s18190_s4 = smov 2   ;;  %vm4598_vm14 = vcmask 195584   ;;  %vm4635_vm15 = vcmask 261120  }
  0x2c   : > { %750 = vst.msk [vmem:[#allocation2 + $0x60] sm:$0xff] %vm737_vm0, %v18220_v0  ;;  %751 = vst.msk [vmem:[#allocation2 + $0x68] sm:$0xff] %vm737_vm0, %v18220_v0  ;;  %v780_v1 = vld [vmem:[%s13778_s7] sm:$0xff]  ;;  %v781_v2 = vld [vmem:[%s13778_s7 + $0x8] sm:$0xff]  ;;  %s18176_s0 = smov 5   ;;  %s18265_s9 = sld [smem:[#allocation38_spill]] }
  0x2d   : > { %752 = vst.msk [vmem:[#allocation2 + $0x70] sm:$0xff] %vm737_vm0, %v18220_v0  ;;  %753 = vst.msk [vmem:[#allocation2 + $0x78] sm:$0xff] %vm737_vm0, %v18220_v0  ;;  %v10046_v3 = vld [vmem:[%s13778_s7 + $0x10] sm:$0xff]  ;;  %v895_v4 = vld [vmem:[#allocation2 + $0x1] sm:$0xff]  ;;  %s18206_s25 = smov 56   ;;  %s18274_s10 = sld [smem:[#allocation39_spill]] }
  0x2e   : > { %754 = vst.msk [vmem:[#allocation2 + $0x80] sm:$0xff] %vm737_vm0, %v18220_v0  ;;  %755 = vst.msk [vmem:[#allocation2 + $0x88] sm:$0xff] %vm737_vm0, %v18220_v0  ;;  %v896_v5 = vld [vmem:[#allocation2 + $0x9] sm:$0xff]  ;;  %v10047_v9 = vld [vmem:[%s13778_s7 + $0x18] sm:$0xff]  ;;  %s18226_s24 = smov 112   ;;  %s18301_s5 = sld [smem:[#allocation34_spill]] }
  0x2f   : > { %756 = vst.msk [vmem:[#allocation2 + $0x90] sm:$0xff] %vm737_vm0, %v18220_v0  ;;  %757 = vst.msk [vmem:[#allocation2 + $0x98] sm:$0xff] %vm737_vm0, %v18220_v0  ;;  %v931_v6 = vld [vmem:[#allocation2 + $0x2] sm:$0xff]  ;;  %v11409_v7 = vpack.i.bf16 %v896_v5, %v895_v4  ;;  %v932_v8 = vld [vmem:[#allocation2 + $0xa] sm:$0xff]  ;;  %s18303_s3 = smov 112   ;;  %s18304_s6 = sld [smem:[#allocation35_spill]] }
  0x30   : > { %758 = vst.msk [vmem:[#allocation2 + $0xa0] sm:$0xff] %vm737_vm0, %v18220_v0  ;;  %759 = vst.msk [vmem:[#allocation2 + $0xa8] sm:$0xff] %vm737_vm0, %v18220_v0  ;;  %v10048_v10 = vld [vmem:[%s13778_s7 + $0x20] sm:$0xff]  ;;  %v11414_v11 = vpack.i.bf16 %v932_v8, %v931_v6  ;;  %v10049_v12 = vld [vmem:[%s13778_s7 + $0x28] sm:$0xff]  ;;  %s18307_s28 = sld [smem:[#allocation17_spill]] }
  0x31   : > { %760 = vst.msk [vmem:[#allocation2 + $0xb0] sm:$0xff] %vm737_vm0, %v18220_v0  ;;  %761 = vst.msk [vmem:[#allocation2 + $0xb8] sm:$0xff] %vm737_vm0, %v18220_v0  ;;  %v10050_v13 = vld [vmem:[%s13778_s7 + $0x30] sm:$0xff]  ;;  %v10051_v14 = vld [vmem:[%s13778_s7 + $0x38] sm:$0xff]  ;;  %11410 = vrot.lane.b32.xlu0 %v11409_v7, %s18184_s8 }
  0x32   : > { %762 = vst.msk [vmem:[#allocation2 + $0xc0] sm:$0xff] %vm737_vm0, %v18220_v0  ;;  %763 = vst.msk [vmem:[#allocation2 + $0xc8] sm:$0xff] %vm737_vm0, %v18220_v0  ;;  %v10052_v15 = vld [vmem:[%s13778_s7 + $0x40] sm:$0xff]  ;;  %v10053_v16 = vld [vmem:[%s13778_s7 + $0x48] sm:$0xff]  ;;  %11415 = vrot.lane.b32.xlu1 %v11414_v11, %s18190_s4 }
  0x33   : > { %764 = vst.msk [vmem:[#allocation2 + $0xd0] sm:$0xff] %vm737_vm0, %v18220_v0  ;;  %765 = vst.msk [vmem:[#allocation2 + $0xd8] sm:$0xff] %vm737_vm0, %v18220_v0  ;;  %v10054_v17 = vld [vmem:[%s13778_s7 + $0x50] sm:$0xff]  ;;  %v10055_v18 = vld [vmem:[%s13778_s7 + $0x58] sm:$0xff] }
  0x34   : > { %766 = vst.msk [vmem:[#allocation2 + $0xe0] sm:$0xff] %vm737_vm0, %v18220_v0  ;;  %767 = vst.msk [vmem:[#allocation2 + $0xe8] sm:$0xff] %vm737_vm0, %v18220_v0  ;;  %v10056_v19 = vld [vmem:[%s13778_s7 + $0x60] sm:$0xff]  ;;  %v10057_v20 = vld [vmem:[%s13778_s7 + $0x68] sm:$0xff] }
  0x35   : > { %768 = vst.msk [vmem:[#allocation2 + $0xf0] sm:$0xff] %vm737_vm0, %v18220_v0  ;;  %769 = vst.msk [vmem:[#allocation2 + $0xf8] sm:$0xff] %vm737_vm0, %v18220_v0  ;;  %v10058_v21 = vld [vmem:[%s13778_s7 + $0x70] sm:$0xff]  ;;  %v10059_v22 = vld [vmem:[%s13778_s7 + $0x78] sm:$0xff] }
  0x36   : > { %770 = vst.msk [vmem:[#allocation2 + $0x100] sm:$0xff] %vm737_vm0, %v18220_v0  ;;  %771 = vst.msk [vmem:[#allocation2 + $0x108] sm:$0xff] %vm737_vm0, %v18220_v0  ;;  %v10060_v23 = vld [vmem:[%s13778_s7 + $0x80] sm:$0xff]  ;;  %v10061_v24 = vld [vmem:[%s13778_s7 + $0x88] sm:$0xff] }
  0x37   : > { %772 = vst.msk [vmem:[#allocation2 + $0x110] sm:$0xff] %vm737_vm0, %v18220_v0  ;;  %773 = vst.msk [vmem:[#allocation2 + $0x118] sm:$0xff] %vm737_vm0, %v18220_v0 }
  0x38   : > { %774 = vst.msk [vmem:[#allocation2 + $0x120] sm:$0xff] %vm737_vm0, %v18220_v0  ;;  %775 = vst.msk [vmem:[#allocation2 + $0x128] sm:$0xff] %vm737_vm0, %v18220_v0 }
  0x39   : > { %776 = vst.msk [vmem:[#allocation2 + $0x130] sm:$0xff] %vm737_vm0, %v18220_v0  ;;  %777 = vst.msk [vmem:[#allocation2 + $0x138] sm:$0xff] %vm737_vm0, %v18220_v0 }
  0x3a   : > { %782 = vst.msk [vmem:[#allocation2 + $0x13] sm:$0xff] %vm737_vm0, %v780_v1  ;;  %783 = vst.msk [vmem:[#allocation2 + $0x1b] sm:$0xff] %vm737_vm0, %v781_v2 }
  0x3b   : > { %787 = vst.msk [vmem:[#allocation2 + $0x25] sm:$0xff] %vm737_vm0, %v10046_v3  ;;  %788 = vst.msk [vmem:[#allocation2 + $0x2d] sm:$0xff] %vm737_vm0, %v10047_v9  ;;  %v13506_v9 = vmov 65535  }
  0x3c   : > { %792 = vst.msk [vmem:[#allocation2 + $0x37] sm:$0xff] %vm737_vm0, %v10048_v10  ;;  %793 = vst.msk [vmem:[#allocation2 + $0x3f] sm:$0xff] %vm737_vm0, %v10049_v12  ;;  %v2587_v10 = vsel %vm2585_vm2, 4294967295, %v13506_v9 }
  0x3d   : > { %797 = vst.msk [vmem:[#allocation2 + $0x49] sm:$0xff] %vm737_vm0, %v10050_v13  ;;  %798 = vst.msk [vmem:[#allocation2 + $0x51] sm:$0xff] %vm737_vm0, %v10051_v14 }
  0x3e   : > { %802 = vst.msk [vmem:[#allocation2 + $0x5b] sm:$0xff] %vm737_vm0, %v10052_v15  ;;  %803 = vst.msk [vmem:[#allocation2 + $0x63] sm:$0xff] %vm737_vm0, %v10053_v16  ;;  %v2588_v16 = vsel %vm2586_vm3, %v2587_v10, 0  ;;  %vm4709_vm3 = vcmask 392192  }
  0x3f   : > { %807 = vst.msk [vmem:[#allocation2 + $0x6d] sm:$0xff] %vm737_vm0, %v10054_v17  ;;  %808 = vst.msk [vmem:[#allocation2 + $0x75] sm:$0xff] %vm737_vm0, %v10055_v18 }
  0x40   : > { %812 = vst.msk [vmem:[#allocation2 + $0x7f] sm:$0xff] %vm737_vm0, %v10056_v19  ;;  %813 = vst.msk [vmem:[#allocation2 + $0x87] sm:$0xff] %vm737_vm0, %v10057_v20  ;;  %v10062_v19 = vld [vmem:[%s13778_s7 + $0x90] sm:$0xff]  ;;  %v10063_v20 = vld [vmem:[%s13778_s7 + $0x98] sm:$0xff] }
  0x41   : > { %817 = vst.msk [vmem:[#allocation2 + $0x91] sm:$0xff] %vm737_vm0, %v10058_v21  ;;  %v933_v25 = vld [vmem:[#allocation2 + $0x12] sm:$0xff]  ;;  %v934_v26 = vld [vmem:[#allocation2 + $0x1a] sm:$0xff]  ;;  %818 = vst.msk [vmem:[#allocation2 + $0x99] sm:$0xff] %vm737_vm0, %v10059_v22 }
  0x42   : > { %v897_v27 = vld [vmem:[#allocation2 + $0x11] sm:$0xff]  ;;  %822 = vst.msk [vmem:[#allocation2 + $0xa3] sm:$0xff] %vm737_vm0, %v10060_v23  ;;  %823 = vst.msk [vmem:[#allocation2 + $0xab] sm:$0xff] %vm737_vm0, %v10061_v24  ;;  %v11424_v28 = vpack.i.bf16 %v934_v26, %v933_v25  ;;  %v898_v29 = vld [vmem:[#allocation2 + $0x19] sm:$0xff] }
  0x43   : > { %v935_v30 = vld [vmem:[#allocation2 + $0x22] sm:$0xff]  ;;  %v11419_v31 = vpack.i.bf16 %v898_v29, %v897_v27  ;;  %v936_v32 = vld [vmem:[#allocation2 + $0x2a] sm:$0xff]  ;;  %v970_v36 = vld [vmem:[#allocation2 + $0x13] sm:$0xff]  ;;  %3137 = vst.msk [vmem:[#allocation3] sm:$0xff] %vm2461_vm1, %v18220_v0 }
  0x44   : > { %11425 = vrot.lane.b32.xlu1 %v11424_v28, %s18190_s4  ;;  %v13819_v33 = vpack.i.bf16 %v936_v32, %v935_v30  ;;  %v972_v34 = vld [vmem:[#allocation2 + $0x23] sm:$0xff]  ;;  %v973_v35 = vld [vmem:[#allocation2 + $0x2b] sm:$0xff]  ;;  %v971_v37 = vld [vmem:[#allocation2 + $0x1b] sm:$0xff]  ;;  %3138 = vst.msk [vmem:[#allocation3 + $0x8] sm:$0xff] %vm2461_vm1, %v18220_v0 }
  0x45   : > { %11420 = vrot.lane.b32.xlu0 %v11419_v31, %s18184_s8  ;;  %v11444_v38 = vpack.i.bf16 %v973_v35, %v972_v34  ;;  %v11439_v39 = vpack.i.bf16 %v971_v37, %v970_v36  ;;  %v1008_v40 = vld [vmem:[#allocation2 + $0x24] sm:$0xff]  ;;  %v1009_v41 = vld [vmem:[#allocation2 + $0x2c] sm:$0xff]  ;;  %v1006_v42 = vld [vmem:[#allocation2 + $0x14] sm:$0xff]  ;;  %3141 = vst.msk [vmem:[#allocation3 + $0x131] sm:$0xff] %vm2461_vm1, %v18220_v0 }
  0x46   : > { %v1007_v43 = vld [vmem:[#allocation2 + $0x1c] sm:$0xff]  ;;  %v11454_v44 = vpack.i.bf16 %v1009_v41, %v1008_v40  ;;  %v1010_v46 = vld [vmem:[#allocation2 + $0x34] sm:$0xff]  ;;  %v1045_v51 = vld [vmem:[#allocation2 + $0x25] sm:$0xff]  ;;  %3142 = vst.msk [vmem:[#allocation3 + $0x139] sm:$0xff] %vm2461_vm1, %v18220_v0 }
  0x47   : > { %v11449_v45 = vpack.i.bf16 %v1007_v43, %v1006_v42  ;;  %v1011_v47 = vld [vmem:[#allocation2 + $0x3c] sm:$0xff]  ;;  %v1046_v52 = vld [vmem:[#allocation2 + $0x2d] sm:$0xff]  ;;  %6430 = vst.msk [vmem:[#allocation4] sm:$0xff] %vm2461_vm1, %v18220_v0  ;;  %6432 = vst.msk [vmem:[#allocation4 + $0x59] sm:$0xff] %vm2461_vm1, %v18220_v0 }
  0x48   : > { %11435 = vrot.lane.b32.xlu1 %v13819_v33, %s18188_s1  ;;  %v13828_v48 = vpack.i.bf16 %v1011_v47, %v1010_v46  ;;  %v1047_v49 = vld [vmem:[#allocation2 + $0x35] sm:$0xff]  ;;  %v1048_v50 = vld [vmem:[#allocation2 + $0x3d] sm:$0xff]  ;;  %v11469_v54 = vpack.i.bf16 %v1046_v52, %v1045_v51  ;;  %v900_v56 = vld [vmem:[#allocation2 + $0x29] sm:$0xff]  ;;  %827 = vst.msk [vmem:[#allocation2 + $0xb5] sm:$0xff] %vm737_vm0, %v10062_v19 }
  0x49   : > { %11430 = vrot.lane.b32.xlu0 %v11424_v28, %s18188_s1  ;;  %v11474_v53 = vpack.i.bf16 %v1048_v50, %v1047_v49  ;;  %v899_v55 = vld [vmem:[#allocation2 + $0x21] sm:$0xff]  ;;  %v1082_v58 = vld [vmem:[#allocation2 + $0x2e] sm:$0xff]  ;;  %v902_v62 = vld [vmem:[#allocation2 + $0x39] sm:$0xff]  ;;  %828 = vst.msk [vmem:[#allocation2 + $0xbd] sm:$0xff] %vm737_vm0, %v10063_v20 }
  0x4a   : > { %v1081_v57 = vld [vmem:[#allocation2 + $0x26] sm:$0xff]  ;;  %v11484_v59 = vpack.i.bf16 %v900_v56, %v899_v55  ;;  %v901_v61 = vld [vmem:[#allocation2 + $0x31] sm:$0xff]  ;;  %v1084_v1 = vld [vmem:[#allocation2 + $0x3e] sm:$0xff]  ;;  %779 = vst.msk [vmem:[#allocation2 + $0x140] sm:$0xf] %vm778_vm11, %v18220_v0  ;;  %vm7543_vm11 = vcmask 654336  }
  0x4b   : > { %v11479_v60 = vpack.i.bf16 %v1082_v58, %v1081_v57  ;;  %v1083_v63 = vld [vmem:[#allocation2 + $0x36] sm:$0xff]  ;;  %v11494_v2 = vpack.i.bf16 %v902_v62, %v901_v61  ;;  %v939_v7 = vld [vmem:[#allocation2 + $0x42] sm:$0xff]  ;;  %v940_v8 = vld [vmem:[#allocation2 + $0x4a] sm:$0xff]  ;;  %3140 = vst.msk [vmem:[#allocation3 + $0x10] sm:$0x7] %vm3139_vm12, %v18220_v0 }
  0x4c   : > { %11445 = vrot.lane.b32.xlu1 %v11444_v38, %s18178_s2  ;;  %v11489_v3 = vpack.i.bf16 %v1084_v1, %v1083_v63  ;;  %v937_v4 = vld [vmem:[#allocation2 + $0x32] sm:$0xff]  ;;  %v938_v5 = vld [vmem:[#allocation2 + $0x3a] sm:$0xff]  ;;  %v13854_v11 = vpack.i.bf16 %v940_v8, %v939_v7  ;;  %v976_v12 = vld [vmem:[#allocation2 + $0x43] sm:$0xff]  ;;  %3143 = vst.msk [vmem:[#allocation3 + $0x141] sm:$0x7] %vm3139_vm12, %v18220_v0 }
  0x4d   : > { %11440 = vrot.lane.b32.xlu0 %v11439_v39, %s18178_s2  ;;  %s18186_s2 = smov 7   ;;  %v11504_v6 = vpack.i.bf16 %v938_v5, %v937_v4  ;;  %v977_v13 = vld [vmem:[#allocation2 + $0x4b] sm:$0xff]  ;;  %v974_v14 = vld [vmem:[#allocation2 + $0x33] sm:$0xff]  ;;  %v975_v15 = vld [vmem:[#allocation2 + $0x3b] sm:$0xff]  ;;  %6431 = vst.msk [vmem:[#allocation4 + $0x8] sm:$0x7] %vm3139_vm12, %v18220_v0 }
  0x4e   : > { %v11524_v18 = vpack.i.bf16 %v977_v13, %v976_v12  ;;  %v11519_v21 = vpack.i.bf16 %v975_v15, %v974_v14  ;;  %v1012_v22 = vld [vmem:[#allocation2 + $0x44] sm:$0xff]  ;;  %v1013_v23 = vld [vmem:[#allocation2 + $0x4c] sm:$0xff]  ;;  %v1014_v27 = vld [vmem:[#allocation2 + $0x54] sm:$0xff]  ;;  %6433 = vst.msk [vmem:[#allocation4 + $0x61] sm:$0x7] %vm3139_vm12, %v18220_v0  ;;  %vm7554_vm12 = vcmask 785408  }
  0x4f   : > { %v10064_v25 = vld [vmem:[%s13778_s7 + $0xa0] sm:$0xff]  ;;  %v10065_v26 = vld [vmem:[%s13778_s7 + $0xa8] sm:$0xff]  ;;  %v10066_v29 = vld [vmem:[%s13778_s7 + $0xb0] sm:$0xff]  ;;  %v11534_v31 = vpack.i.bf16 %v1013_v23, %v1012_v22  ;;  %7149 = vst.msk [vmem:[#allocation5] sm:$0xff] %vm4561_vm13, %v18220_v0 }
  0x50   : > { %11455 = vrot.lane.b32.xlu1 %v11454_v44, %s18176_s0  ;;  %v1015_v28 = vld [vmem:[#allocation2 + $0x5c] sm:$0xff]  ;;  %832 = vst.msk [vmem:[#allocation2 + $0xc7] sm:$0xff] %vm737_vm0, %v10064_v25  ;;  %833 = vst.msk [vmem:[#allocation2 + $0xcf] sm:$0xff] %vm737_vm0, %v10065_v26  ;;  %v1049_v35 = vld [vmem:[#allocation2 + $0x45] sm:$0xff] }
  0x51   : > { %11450 = vrot.lane.b32.xlu0 %v11449_v45, %s18176_s0  ;;  %s18180_s0 = smov 6   ;;  %v10067_v30 = vld [vmem:[%s13778_s7 + $0xb8] sm:$0xff]  ;;  %837 = vst.msk [vmem:[#allocation2 + $0xd9] sm:$0xff] %vm737_vm0, %v10066_v29  ;;  %v11544_v32 = vpack.i.bf16 %v1015_v28, %v1014_v27  ;;  %v1050_v36 = vld [vmem:[#allocation2 + $0x4d] sm:$0xff]  ;;  %v903_v39 = vld [vmem:[#allocation2 + $0x41] sm:$0xff] }
  0x52   : > { %838 = vst.msk [vmem:[#allocation2 + $0xe1] sm:$0xff] %vm737_vm0, %v10067_v30  ;;  %v1052_v34 = vld [vmem:[#allocation2 + $0x5d] sm:$0xff]  ;;  %v11549_v38 = vpack.i.bf16 %v1050_v36, %v1049_v35  ;;  %v904_v40 = vld [vmem:[#allocation2 + $0x49] sm:$0xff]  ;;  %v941_v49 = vld [vmem:[#allocation2 + $0x52] sm:$0xff] }
  0x53   : > { %v1085_v41 = vld [vmem:[#allocation2 + $0x46] sm:$0xff]  ;;  %v1086_v42 = vld [vmem:[#allocation2 + $0x4e] sm:$0xff]  ;;  %v11564_v43 = vpack.i.bf16 %v904_v40, %v903_v39  ;;  %v906_v45 = vld [vmem:[#allocation2 + $0x59] sm:$0xff]  ;;  %7152 = vst.msk [vmem:[#allocation5 + $0x59] sm:$0xff] %vm4561_vm13, %v18220_v0 }
  0x54   : > { %11465 = vrot.lane.b32.xlu1 %v13828_v48, %s18180_s0  ;;  %v11559_v46 = vpack.i.bf16 %v1086_v42, %v1085_v41  ;;  %v1087_v47 = vld [vmem:[#allocation2 + $0x56] sm:$0xff]  ;;  %v10068_v55 = vld [vmem:[%s13778_s7 + $0xc0] sm:$0xff]  ;;  %v981_v58 = vld [vmem:[#allocation2 + $0x6b] sm:$0xff] }
  0x55   : > { %11460 = vrot.lane.b32.xlu0 %v11454_v44, %s18180_s0  ;;  %s18182_s0 = smov 8   ;;  %v905_v44 = vld [vmem:[#allocation2 + $0x51] sm:$0xff]  ;;  %v942_v50 = vld [vmem:[#allocation2 + $0x5a] sm:$0xff]  ;;  %842 = vst.msk [vmem:[#allocation2 + $0xeb] sm:$0xff] %vm737_vm0, %v10068_v55  ;;  %v980_v57 = vld [vmem:[#allocation2 + $0x63] sm:$0xff] }
  0x56   : > { %v11574_v51 = vpack.i.bf16 %v906_v45, %v905_v44  ;;  %v11584_v56 = vpack.i.bf16 %v942_v50, %v941_v49  ;;  %v979_v61 = vld [vmem:[#allocation2 + $0x5b] sm:$0xff]  ;;  %v10069_v62 = vld [vmem:[%s13778_s7 + $0xc8] sm:$0xff]  ;;  %v909_v19 = vld [vmem:[#allocation2 + $0x71] sm:$0xff] }
  0x57   : > { %v1016_v63 = vld [vmem:[#allocation2 + $0x64] sm:$0xff]  ;;  %v1017_v1 = vld [vmem:[#allocation2 + $0x6c] sm:$0xff]  ;;  %843 = vst.msk [vmem:[#allocation2 + $0xf3] sm:$0xff] %vm737_vm0, %v10069_v62  ;;  %v1018_v4 = vld [vmem:[#allocation2 + $0x74] sm:$0xff] }
  0x58   : > { %11475 = vrot.lane.b32.xlu1 %v11474_v53, %s18186_s2  ;;  %v943_v53 = vld [vmem:[#allocation2 + $0x62] sm:$0xff]  ;;  %v11614_v7 = vpack.i.bf16 %v1017_v1, %v1016_v63  ;;  %v1055_v8 = vld [vmem:[#allocation2 + $0x75] sm:$0xff]  ;;  %v1054_v12 = vld [vmem:[#allocation2 + $0x6d] sm:$0xff] }
  0x59   : > { %11470 = vrot.lane.b32.xlu0 %v11469_v54, %s18186_s2  ;;  %s18255_s2 = sld [smem:[#allocation30_spill]]  ;;  %v944_v54 = vld [vmem:[#allocation2 + $0x6a] sm:$0xff]  ;;  %v1019_v5 = vld [vmem:[#allocation2 + $0x7c] sm:$0xff]  ;;  %v945_v26 = vld [vmem:[#allocation2 + $0x72] sm:$0xff] }
  0x5a   : > { %v1056_v9 = vld [vmem:[#allocation2 + $0x7d] sm:$0xff]  ;;  %v11624_v10 = vpack.i.bf16 %v1019_v5, %v1018_v4  ;;  %v908_v14 = vld [vmem:[#allocation2 + $0x69] sm:$0xff]  ;;  %v913_v63 = vld [vmem:[#allocation2 + $0x91] sm:$0xff] }
  0x5b   : > { %v907_v13 = vld [vmem:[#allocation2 + $0x61] sm:$0xff]  ;;  %v11634_v15 = vpack.i.bf16 %v1056_v9, %v1055_v8  ;;  %v910_v20 = vld [vmem:[#allocation2 + $0x79] sm:$0xff]  ;;  %v985_v35 = vld [vmem:[#allocation2 + $0x8b] sm:$0xff] }
  0x5c   : > { %11485 = vrot.lane.b32.xlu1 %v11484_v59, %s18184_s8  ;;  %v11594_v59 = vpack.i.bf16 %v944_v54, %v943_v53  ;;  %v11644_v22 = vpack.i.bf16 %v908_v14, %v907_v13  ;;  %v1092_v25 = vld [vmem:[#allocation2 + $0x7e] sm:$0xff]  ;;  %v11654_v28 = vpack.i.bf16 %v910_v20, %v909_v19  ;;  %v1021_v40 = vld [vmem:[#allocation2 + $0x8c] sm:$0xff]  ;;  %v1095_v5 = vld [vmem:[#allocation2 + $0x96] sm:$0xff] }
  0x5d   : > { %11480 = vrot.lane.b32.xlu0 %v11479_v60, %s18182_s0  ;;  %v978_v60 = vld [vmem:[#allocation2 + $0x53] sm:$0xff]  ;;  %v947_v30 = vld [vmem:[#allocation2 + $0x82] sm:$0xff]  ;;  %v13960_v19 = vld [vmem:[#allocation2 + $0xab] sm:$0xff] }
  0x5e   : > { %v946_v27 = vld [vmem:[#allocation2 + $0x7a] sm:$0xff]  ;;  %v1020_v39 = vld [vmem:[#allocation2 + $0x84] sm:$0xff]  ;;  %v1058_v54 = vld [vmem:[#allocation2 + $0x8d] sm:$0xff] }
  0x5f   : > { %v13331_v17 = vld [vmem:[%s18255_s2] sm:$0x1f]   ;;  %s18257_s2 = smov 5   ;;  %v10073_v45 = vld [vmem:[%s13778_s7 + $0xe8] sm:$0xff]  ;;  %v949_v8 = vld [vmem:[#allocation2 + $0x92] sm:$0xff] }
  0x60   : > { %11495 = vrot.lane.b32.xlu1 %v11494_v2, %s18184_s8  ;;  %v2590_v24 = vand.u32 %v13331_v17, %v2588_v16  ;;  %s18256_s8 = smov 4   ;;  %v11604_v2 = vpack.i.bf16 %v981_v58, %v980_v57  ;;  %v1089_v17 = vld [vmem:[#allocation2 + $0x66] sm:$0xff]  ;;  %v1023_v44 = vld [vmem:[#allocation2 + $0x9c] sm:$0xff]  ;;  %853 = vst.msk [vmem:[#allocation2 + $0x117] sm:$0xff] %vm737_vm0, %v10073_v45 }
  0x61   : > { %11490 = vrot.lane.b32.xlu0 %v11489_v3, %s18182_s0  ;;  %s18258_s0 = smov 6   ;;  %v11599_v3 = vpack.i.bf16 %v979_v61, %v978_v60  ;;  %v1060_v49 = vld [vmem:[#allocation2 + $0x9d] sm:$0xff]  ;;  %v1057_v53 = vld [vmem:[#allocation2 + $0x85] sm:$0xff]  ;;  %v1094_v61 = vld [vmem:[#allocation2 + $0x8e] sm:$0xff] }
  0x62   : > { %10961 = vmatprep.subr.bf16.mxu0 %v2590_v24  ;;  %v911_v55 = vld [vmem:[#allocation2 + $0x81] sm:$0xff]  ;;  %v11709_v58 = vpack.i.bf16 %v1058_v54, %v1057_v53  ;;  %v914_v1 = vld [vmem:[#allocation2 + $0x99] sm:$0xff] }
  0x63   : > { %10962 = vmatpush3.bf16.msra.mxu0 %v2590_v24  ;;  %v1091_v24 = vld [vmem:[#allocation2 + $0x76] sm:$0xff]  ;;  %v1093_v60 = vld [vmem:[#allocation2 + $0x86] sm:$0xff] }
  0x64   : > { %11505 = vrot.lane.b32.xlu1 %v11504_v6, %s18190_s4  ;;  %v11649_v29 = vpack.i.bf16 %v1092_v25, %v1091_v24  ;;  %v950_v9 = vld [vmem:[#allocation2 + $0x9a] sm:$0xff]  ;;  %v951_v14 = vld [vmem:[#allocation2 + $0xa2] sm:$0xff] }
  0x65   : > { %11500 = vrot.lane.b32.xlu0 %v13819_v33, %s18190_s4  ;;  %v1051_v33 = vld [vmem:[#allocation2 + $0x55] sm:$0xff]  ;;  %s18260_s4 = smov 1   ;;  %v860_v20 = vld [vmem:[#allocation2 + $0x8] sm:$0xff] }
  0x66   : > { %v11554_v37 = vpack.i.bf16 %v1052_v34, %v1051_v33  ;;  %v11664_v33 = vpack.i.bf16 %v946_v27, %v945_v26  ;;  %v984_v34 = vld [vmem:[#allocation2 + $0x83] sm:$0xff]  ;;  %v862_v26 = vld [vmem:[#allocation2 + $0x18] sm:$0xff] }
  0x67   : > { %v11684_v41 = vpack.i.bf16 %v985_v35, %v984_v34  ;;  %v1026_v35 = vld [vmem:[#allocation2 + $0xb4] sm:$0xff] }
  0x68   : > { %11515 = vrot.lane.b32.xlu1 %v13854_v11, %s18188_s1 }
  0x69   : > { %11510 = vrot.lane.b32.xlu0 %v11504_v6, %s18188_s1  ;;  %s18259_s1 = smov 7   ;;  %v10070_v6 = vld [vmem:[%s13778_s7 + $0xd0] sm:$0xff] }
  0x6a   : > { %847 = vst.msk [vmem:[#allocation2 + $0xfd] sm:$0xff] %vm737_vm0, %v10070_v6  ;;  %v1096_v6 = vld [vmem:[#allocation2 + $0x9e] sm:$0xff] }
  0x6c   : > { %11525 = vrot.lane.b32.xlu1 %v11524_v18, %s18256_s8  ;;  %v1090_v18 = vld [vmem:[#allocation2 + $0x6e] sm:$0xff] }
  0x6d   : > { %11520 = vrot.lane.b32.xlu0 %v11519_v21, %s18256_s8  ;;  %v10071_v21 = vld [vmem:[%s13778_s7 + $0xd8] sm:$0xff]  ;;  %v11639_v23 = vpack.i.bf16 %v1090_v18, %v1089_v17  ;;  %v11744_v17 = vpack.i.bf16 %v950_v9, %v949_v8  ;;  %v13958_v18 = vld [vmem:[#allocation2 + $0xa3] sm:$0xff] }
  0x6e   : > { %848 = vst.msk [vmem:[#allocation2 + $0x105] sm:$0xff] %vm737_vm0, %v10071_v21  ;;  %v859_v21 = vld [vmem:[#allocation2] sm:$0xff] }
  0x70   : > { %11535 = vrot.lane.b32.xlu1 %v11534_v31, %s18257_s2 }
  0x71   : > { %11530 = vrot.lane.b32.xlu0 %v13828_v48, %s18257_s2  ;;  %v1088_v48 = vld [vmem:[#allocation2 + $0x5e] sm:$0xff] }
  0x72   : > { %v11569_v52 = vpack.i.bf16 %v1088_v48, %v1087_v47  ;;  %v11694_v47 = vpack.i.bf16 %v1021_v40, %v1020_v39  ;;  %v1059_v48 = vld [vmem:[#allocation2 + $0x95] sm:$0xff]  ;;  %v11764_v40 = vpack.i.bf16 %v13960_v19, %v13958_v18 }
  0x73   : > { %v11714_v57 = vpack.i.bf16 %v1060_v49, %v1059_v48 }
  0x74   : > { %11545 = vrot.lane.b32.xlu1 %v11544_v32, %s18258_s0 }
  0x75   : > { %11540 = vrot.lane.b32.xlu0 %v11534_v31, %s18258_s0  ;;  %v948_v31 = vld [vmem:[#allocation2 + $0x8a] sm:$0xff] }
  0x76   : > { %v13917_v36 = vpack.i.bf16 %v948_v31, %v947_v30 }
  0x78   : > { %11555 = vrot.lane.b32.xlu1 %v11554_v37, %s18259_s1  ;;  %v982_v37 = vld [vmem:[#allocation2 + $0x73] sm:$0xff] }
  0x79   : > { %11550 = vrot.lane.b32.xlu0 %v11549_v38, %s18259_s1  ;;  %v983_v38 = vld [vmem:[#allocation2 + $0x7b] sm:$0xff] }
  0x7a   : > { %v11679_v42 = vpack.i.bf16 %v983_v38, %v982_v37 }
  0x7c   : > { %11565 = vrot.lane.b32.xlu1 %v11564_v43, %s18260_s4  ;;  %v1022_v43 = vld [vmem:[#allocation2 + $0x94] sm:$0xff] }
  0x7d   : > { %11560 = vrot.lane.b32.xlu0 %v11559_v46, %s18261_s30  ;;  %v10074_v46 = vld [vmem:[%s13778_s7 + $0xf0] sm:$0xff] }
  0x7e   : > { %857 = vst.msk [vmem:[#allocation2 + $0x121] sm:$0xff] %vm737_vm0, %v10074_v46  ;;  %v1027_v46 = vld [vmem:[#allocation2 + $0xbc] sm:$0xff] }
  0x80   : > { %11575 = vrot.lane.b32.xlu1 %v11574_v51, %s18260_s4  ;;  %v13932_v51 = vpack.i.bf16 %v1023_v44, %v1022_v43 }
  0x81   : > { %11570 = vrot.lane.b32.xlu0 %v11569_v52, %s18261_s30 }
  0x84   : > { %11585 = vrot.lane.b32.xlu1 %v11584_v56, %s18262_s27 }
  0x85   : > { %11580 = vrot.lane.b32.xlu0 %v13854_v11, %s18262_s27  ;;  %v1053_v11 = vld [vmem:[#allocation2 + $0x65] sm:$0xff] }
  0x86   : > { %v11629_v16 = vpack.i.bf16 %v1054_v12, %v1053_v11  ;;  %v11729_v11 = vpack.i.bf16 %v1096_v6, %v1095_v5 }
  0x88   : > { %11595 = vrot.lane.b32.xlu1 %v11594_v59, %s18263_s29 }
  0x89   : > { %11590 = vrot.lane.b32.xlu0 %v11584_v56, %s18263_s29  ;;  %v912_v56 = vld [vmem:[#allocation2 + $0x89] sm:$0xff] }
  0x8c   : > { %11605 = vrot.lane.b32.xlu1 %v11604_v2, %s18256_s8  ;;  %v11724_v2 = vpack.i.bf16 %v912_v56, %v911_v55 }
  0x8d   : > { %11600 = vrot.lane.b32.xlu0 %v11599_v3, %s18256_s8  ;;  %v11719_v3 = vpack.i.bf16 %v1094_v61, %v1093_v60 }
  0x90   : > { %11615 = vrot.lane.b32.xlu1 %v11614_v7, %s18257_s2 }
  0x91   : > { %11610 = vrot.lane.b32.xlu0 %v11544_v32, %s18257_s2  ;;  %v10072_v32 = vld [vmem:[%s13778_s7 + $0xe0] sm:$0xff] }
  0x92   : > { %852 = vst.msk [vmem:[#allocation2 + $0x10f] sm:$0xff] %vm737_vm0, %v10072_v32  ;;  %v1024_v32 = vld [vmem:[#allocation2 + $0xa4] sm:$0xff] }
  0x94   : > { %11625 = vrot.lane.b32.xlu1 %v11624_v10, %s18258_s0 }
  0x95   : > { %11620 = vrot.lane.b32.xlu0 %v11614_v7, %s18258_s0 }
  0x98   : > { %11635 = vrot.lane.b32.xlu1 %v11634_v15, %s18259_s1  ;;  %v952_v15 = vld [vmem:[#allocation2 + $0xaa] sm:$0xff] }
  0x99   : > { %11630 = vrot.lane.b32.xlu0 %v11629_v16, %s18259_s1  ;;  %v10075_v16 = vld [vmem:[%s13778_s7 + $0xf8] sm:$0xff]  ;;  %v13973_v34 = vpack.i.bf16 %v952_v15, %v951_v14  ;;  %s18198_s7 = smov 24  }
  0x9a   : > { %858 = vst.msk [vmem:[#allocation2 + $0x129] sm:$0xff] %vm737_vm0, %v10075_v16 }
  0x9c   : > { %11645 = vrot.lane.b32.xlu1 %v11644_v22, %s18260_s4  ;;  %v861_v22 = vld [vmem:[#allocation2 + $0x10] sm:$0xff] }
  0x9d   : > { %11640 = vrot.lane.b32.xlu0 %v11639_v23, %s18261_s30 }
  0xa0   : > { %11655 = vrot.lane.b32.xlu1 %v11654_v28, %s18260_s4  ;;  %v986_v28 = vld [vmem:[#allocation2 + $0x93] sm:$0xff] }
  0xa1   : > { %11650 = vrot.lane.b32.xlu0 %v11649_v29, %s18261_s30  ;;  %v987_v29 = vld [vmem:[#allocation2 + $0x9b] sm:$0xff] }
  0xa3   : > { %v13935_v52 = vpop.permute.xlu0 %11410 }
  0xa4   : > { %11665 = vrot.lane.b32.xlu1 %v11664_v33, %s18262_s27  ;;  %v13930_v50 = vpop.permute.xlu1 %11415  ;;  %v11413_v23 = vunpack.i.h.bf16 %v13935_v52  ;;  %v11412_v24 = vunpack.i.l.bf16 %v13935_v52 }
  0xa5   : > { %11660 = vrot.lane.b32.xlu0 %v11594_v59, %s18262_s27  ;;  %v11418_v37 = vunpack.i.h.bf16 %v13930_v50  ;;  %v11417_v38 = vunpack.i.l.bf16 %v13930_v50  ;;  %v11759_v50 = vpack.i.bf16 %v987_v29, %v986_v28  ;;  %v1064_v28 = vld [vmem:[#allocation2 + $0xbd] sm:$0xff] }
  0xa8   : > { %11675 = vrot.lane.b32.xlu1 %v13917_v36, %s18263_s29 }
  0xa9   : > { %11670 = vrot.lane.b32.xlu0 %v11664_v33, %s18263_s29  ;;  %v1025_v33 = vld [vmem:[#allocation2 + $0xac] sm:$0xff] }
  0xaa   : > { %v13995_v54 = vpack.i.bf16 %v1025_v33, %v1024_v32 }
  0xac   : > { %11685 = vrot.lane.b32.xlu1 %v11684_v41, %s18256_s8  ;;  %v2204_v41 = vsel %vm737_vm0, %v860_v20, %v11413_v23 }
  0xad   : > { %11680 = vrot.lane.b32.xlu0 %v11679_v42, %s18256_s8  ;;  %v2203_v42 = vsel %vm737_vm0, %v859_v21, %v11412_v24  ;;  %v2241_v56 = vsel %vm2239_vm4, %v2204_v41, %v11418_v37  ;;  %v1062_v41 = vld [vmem:[#allocation2 + $0xad] sm:$0xff] }
  0xae   : > { %v2240_v55 = vsel %vm2239_vm4, %v2203_v42, %v11417_v38 }
  0xb0   : > { %11695 = vrot.lane.b32.xlu1 %v11694_v47, %s18257_s2 }
  0xb1   : > { %11690 = vrot.lane.b32.xlu0 %v11624_v10, %s18257_s2  ;;  %v11734_v10 = vpack.i.bf16 %v914_v1, %v913_v63 }
  0xb4   : > { %11705 = vrot.lane.b32.xlu1 %v13932_v51, %s18258_s0 }
  0xb5   : > { %11700 = vrot.lane.b32.xlu0 %v11694_v47, %s18258_s0 }
  0xb6   : > { %v13940_v59 = vpop.permute.xlu1 %11425 }
  0xb7   : > { %v13942_v62 = vpop.permute.xlu0 %11420  ;;  %v11427_v39 = vunpack.i.l.bf16 %v13940_v59  ;;  %v11428_v43 = vunpack.i.h.bf16 %v13940_v59 }
  0xb8   : > { %11715 = vrot.lane.b32.xlu1 %v11714_v57, %s18259_s1  ;;  %v11422_v25 = vunpack.i.l.bf16 %v13942_v62  ;;  %v11423_v30 = vunpack.i.h.bf16 %v13942_v62 }
  0xb9   : > { %11710 = vrot.lane.b32.xlu0 %v11709_v58, %s18259_s1  ;;  %v14001_v58 = vpack.i.bf16 %v1027_v46, %v1026_v35 }
  0xba   : > { %v13946_v4 = vpop.permute.xlu1 %11435  ;;  %v2205_v44 = vsel %vm737_vm0, %v861_v22, %v11422_v25  ;;  %v2206_v47 = vsel %vm737_vm0, %v862_v26, %v11423_v30 }
  0xbb   : > { %v13948_v7 = vpop.permute.xlu0 %11430  ;;  %v11437_v48 = vunpack.i.l.bf16 %v13946_v4  ;;  %v2242_v57 = vsel %vm2239_vm4, %v2205_v44, %v11427_v39  ;;  %v2243_v59 = vsel %vm2239_vm4, %v2206_v47, %v11428_v43 }
  0xbc   : > { %11725 = vrot.lane.b32.xlu1 %v11724_v2, %s18260_s4  ;;  %v11433_v52 = vunpack.i.h.bf16 %v13948_v7  ;;  %v11432_v53 = vunpack.i.l.bf16 %v13948_v7 }
  0xbd   : > { %11720 = vrot.lane.b32.xlu0 %v11719_v3, %s18261_s30  ;;  %v2279_v63 = vsel %vm2276_vm5, %v2242_v57, %v11437_v48 }
  0xbe   : > { %v13952_v12 = vpop.permute.xlu1 %11445  ;;  %v2278_v5 = vsel %vm2276_vm5, %v2241_v56, %v11433_v52  ;;  %v2277_v6 = vsel %vm2276_vm5, %v2240_v55, %v11432_v53  ;;  %v915_v53 = vld [vmem:[#allocation2 + $0xa1] sm:$0xff]  ;;  %v916_v55 = vld [vmem:[#allocation2 + $0xa9] sm:$0xff] }
  0xbf   : > { %v13954_v13 = vpop.permute.xlu0 %11440  ;;  %v11448_v9 = vunpack.i.h.bf16 %v13952_v12 }
  0xc0   : > { %11735 = vrot.lane.b32.xlu1 %v11734_v10, %s18260_s4  ;;  %v11443_v60 = vunpack.i.h.bf16 %v13954_v13  ;;  %v11442_v61 = vunpack.i.l.bf16 %v13954_v13  ;;  %v11447_v10 = vunpack.i.l.bf16 %v13952_v12 }
  0xc1   : > { %11730 = vrot.lane.b32.xlu0 %v11729_v11, %s18261_s30 }
  0xc2   : > { %v13967_v27 = vpop.permute.xlu1 %11455  ;;  %v2314_v14 = vsel %vm2313_vm6, %v2277_v6, %v11442_v61  ;;  %v2315_v15 = vsel %vm2313_vm6, %v2278_v5, %v11443_v60  ;;  %v2316_v33 = vsel %vm2313_vm6, %v2279_v63, %v11447_v10  ;;  %v1097_v60 = vld [vmem:[#allocation2 + $0xa6] sm:$0xff]  ;;  %v1098_v61 = vld [vmem:[#allocation2 + $0xae] sm:$0xff]  ;;  %v1099_v5 = vld [vmem:[#allocation2 + $0xb6] sm:$0xff] }
  0xc3   : > { %v13970_v31 = vpop.permute.xlu0 %11450  ;;  %v11458_v16 = vunpack.i.h.bf16 %v13967_v27  ;;  %v1100_v6 = vld [vmem:[#allocation2 + $0xbe] sm:$0xff]  ;;  %v953_v10 = vld [vmem:[#allocation2 + $0xb2] sm:$0xff] }
  0xc4   : > { %11745 = vrot.lane.b32.xlu1 %v11744_v17, %s18262_s27  ;;  %v11453_v2 = vunpack.i.h.bf16 %v13970_v31  ;;  %v11452_v3 = vunpack.i.l.bf16 %v13970_v31 }
  0xc5   : > { %11740 = vrot.lane.b32.xlu0 %v13917_v36, %s18262_s27  ;;  %v11438_v36 = vunpack.i.h.bf16 %v13946_v4 }
  0xc6   : > { %v13986_v45 = vpop.permute.xlu1 %11465  ;;  %v2351_v19 = vsel %vm2350_vm7, %v2314_v14, %v11452_v3  ;;  %v2352_v20 = vsel %vm2350_vm7, %v2315_v15, %v11453_v2  ;;  %v917_v2 = vld [vmem:[#allocation2 + $0xb1] sm:$0xff]  ;;  %v918_v3 = vld [vmem:[#allocation2 + $0xb9] sm:$0xff] }
  0xc7   : > { %v11461_v49 = vpop.permute.xlu0 %11460  ;;  %v2280_v1 = vsel %vm2276_vm5, %v2243_v59, %v11438_v36  ;;  %v11468_v12 = vunpack.i.h.bf16 %v13986_v45  ;;  %v11467_v21 = vunpack.i.l.bf16 %v13986_v45 }
  0xc8   : > { %11755 = vrot.lane.b32.xlu1 %v13973_v34, %s18263_s29  ;;  %v11463_v7 = vunpack.i.h.bf16 %v11461_v49  ;;  %v11462_v8 = vunpack.i.l.bf16 %v11461_v49  ;;  %v2317_v35 = vsel %vm2313_vm6, %v2280_v1, %v11448_v9  ;;  %v11804_v1 = vpack.i.bf16 %v916_v55, %v915_v53 }
  0xc9   : > { %11750 = vrot.lane.b32.xlu0 %v11744_v17, %s18263_s29  ;;  %v11457_v17 = vunpack.i.l.bf16 %v13967_v27  ;;  %v1063_v27 = vld [vmem:[#allocation2 + $0xb5] sm:$0xff]  ;;  %v11809_v9 = vpack.i.bf16 %v1100_v6, %v1099_v5 }
  0xca   : > { %v11476_v62 = vpop.permute.xlu1 %11475  ;;  %v2388_v25 = vsel %vm2387_vm8, %v2351_v19, %v11462_v8  ;;  %v2389_v26 = vsel %vm2387_vm8, %v2352_v20, %v11463_v7  ;;  %v11794_v45 = vpack.i.bf16 %v1064_v28, %v1063_v27  ;;  %v11814_v8 = vpack.i.bf16 %v918_v3, %v917_v2  ;;  %v956_v19 = vld [vmem:[#allocation2 + $0xca] sm:$0xff] }
  0xcb   : > { %v11471_v4 = vpop.permute.xlu0 %11470  ;;  %v11478_v29 = vunpack.i.h.bf16 %v11476_v62  ;;  %v11477_v30 = vunpack.i.l.bf16 %v11476_v62  ;;  %v2353_v42 = vsel %vm2350_vm7, %v2316_v33, %v11457_v17  ;;  %v18218_v17 = vmov 0   ;;  %v992_v20 = vld [vmem:[#allocation2 + $0xc3] sm:$0xff] }
  0xcc   : > { %11765 = vrot.lane.b32.xlu1 %v11764_v40, %s18256_s8  ;;  %v11473_v11 = vunpack.i.h.bf16 %v11471_v4  ;;  %v11472_v13 = vunpack.i.l.bf16 %v11471_v4  ;;  %v1061_v40 = vld [vmem:[#allocation2 + $0xa5] sm:$0xff]  ;;  %v2390_v46 = vsel %vm2387_vm8, %v2353_v42, %v11467_v21  ;;  %12129 = vset.pattern.permute.xlu0 %v18218_v17 }
  0xcd   : > { %11760 = vrot.lane.b32.xlu0 %v11759_v50, %s18256_s8  ;;  %v2427_v49 = vsel %vm2424_vm9, %v2390_v46, %v11477_v30  ;;  %v11789_v52 = vpack.i.bf16 %v1062_v41, %v1061_v40  ;;  %12130 = vset.pattern.permute.xlu1 %v18218_v17  ;;  %v864_v42 = vld [vmem:[#allocation2 + $0x28] sm:$0xff] }
  0xce   : > { %v14021_v18 = vpop.permute.xlu1 %11485  ;;  %v2425_v31 = vsel %vm2424_vm9, %v2388_v25, %v11472_v13  ;;  %v2426_v32 = vsel %vm2424_vm9, %v2389_v26, %v11473_v11  ;;  %v954_v11 = vld [vmem:[#allocation2 + $0xba] sm:$0xff]  ;;  %v1028_v25 = vld [vmem:[#allocation2 + $0xc4] sm:$0xff]  ;;  %v1029_v26 = vld [vmem:[#allocation2 + $0xcc] sm:$0xff] }
  0xcf   : > { %v11481_v22 = vpop.permute.xlu0 %11480  ;;  %v11824_v15 = vpack.i.bf16 %v954_v11, %v953_v10  ;;  %v11488_v33 = vunpack.i.h.bf16 %v14021_v18  ;;  %v14094_v46 = vpack.i.bf16 %v1029_v26, %v1028_v25 }
  0xd0   : > { %v11483_v23 = vunpack.i.h.bf16 %v11481_v22  ;;  %v11482_v24 = vunpack.i.l.bf16 %v11481_v22  ;;  %11775 = vrot.lane.b32.xlu1 %v13995_v54, %s18257_s2  ;;  %v990_v22 = vld [vmem:[#allocation2 + $0xb3] sm:$0xff] }
  0xd1   : > { %11770 = vrot.lane.b32.xlu0 %v13932_v51, %s18257_s2  ;;  %v2354_v51 = vsel %vm2350_vm7, %v2317_v35, %v11458_v16  ;;  %v955_v16 = vld [vmem:[#allocation2 + $0xc2] sm:$0xff]  ;;  %v11487_v35 = vunpack.i.l.bf16 %v14021_v18  ;;  %v2208_v53 = vsel %vm737_vm0, %v864_v42, %v11488_v33 }
  0xd2   : > { %v14037_v37 = vpop.permute.xlu1 %11495  ;;  %v2462_v38 = vsel %vm2461_vm1, %v2425_v31, %v11482_v24  ;;  %v2463_v39 = vsel %vm2461_vm1, %v2426_v32, %v11483_v23  ;;  %v2391_v47 = vsel %vm2387_vm8, %v2354_v51, %v11468_v12  ;;  %v993_v12 = vld [vmem:[#allocation2 + $0xcb] sm:$0xff]  ;;  %v991_v24 = vld [vmem:[#allocation2 + $0xbb] sm:$0xff] }
  0xd3   : > { %v11491_v43 = vpop.permute.xlu0 %11490  ;;  %v2498_v44 = vpack.c.bf16 %v2463_v39, %v2462_v38  ;;  %v2428_v50 = vsel %vm2424_vm9, %v2391_v47, %v11478_v29  ;;  %v11498_v27 = vunpack.i.h.bf16 %v14037_v37  ;;  %v11497_v28 = vunpack.i.l.bf16 %v14037_v37  ;;  %v1030_v31 = vld [vmem:[#allocation2 + $0xd4] sm:$0xff]  ;;  %v1031_v32 = vld [vmem:[#allocation2 + $0xdc] sm:$0xff] }
  0xd4   : > { %v11493_v36 = vunpack.i.h.bf16 %v11491_v43  ;;  %v11492_v48 = vunpack.i.l.bf16 %v11491_v43  ;;  %11785 = vrot.lane.b32.xlu1 %v14001_v58, %s18258_s0  ;;  %v14082_v29 = vpack.i.bf16 %v956_v19, %v955_v16  ;;  %v11844_v30 = vpack.i.bf16 %v993_v12, %v992_v20  ;;  %v865_v38 = vld [vmem:[#allocation2 + $0x30] sm:$0xff]  ;;  %v866_v39 = vld [vmem:[#allocation2 + $0x38] sm:$0xff]  ;;  %v863_v37 = vld [vmem:[#allocation2 + $0x20] sm:$0xff] }
  0xd5   : > { %11780 = vrot.lane.b32.xlu0 %v13995_v54, %s18258_s0  ;;  %10963 = vmatprep.mubr.msk.bf16.mxu0 %vm2530_vm10, %v2498_v44  ;;  %v11799_v54 = vpack.i.bf16 %v1098_v61, %v1097_v60  ;;  %v2207_v55 = vsel %vm737_vm0, %v863_v37, %v11487_v35 }
  0xd6   : > { %v2464_v56 = vsel %vm2461_vm1, %v2427_v49, %v11492_v48  ;;  %v2465_v57 = vsel %vm2461_vm1, %v2428_v50, %v11493_v36  ;;  %v14054_v59 = vpop.permute.xlu1 %11505  ;;  %v14098_v48 = vpack.i.bf16 %v1031_v32, %v1030_v31  ;;  %v2209_v49 = vsel %vm737_vm0, %v865_v38, %v11497_v28  ;;  %v1068_v31 = vld [vmem:[#allocation2 + $0xdd] sm:$0xff] }
  0xd7   : > { %v14056_v62 = vpop.permute.xlu0 %11500  ;;  %v2499_v63 = vpack.c.bf16 %v2465_v57, %v2464_v56  ;;  %v11508_v40 = vunpack.i.h.bf16 %v14054_v59  ;;  %v11507_v41 = vunpack.i.l.bf16 %v14054_v59 }
  0xd8   : > { %11795 = vrot.lane.b32.xlu1 %v11794_v45, %s18259_s1  ;;  %v11503_v51 = vunpack.i.h.bf16 %v14056_v62  ;;  %v11502_v43 = vunpack.i.l.bf16 %v14056_v62  ;;  %v11839_v45 = vpack.i.bf16 %v991_v24, %v990_v22 }
  0xd9   : > { %11790 = vrot.lane.b32.xlu0 %v11789_v52, %s18259_s1  ;;  %10964 = vmatmul.mubr.msk.bf16.vlgmr.msra.gmra.mxu0 %vm2530_vm10, %v2499_v63  ;;  %v2246_v56 = vsel %vm2239_vm4, %v2209_v49, %v11507_v41 }
  0xda   : > { %v14061_v4 = vpop.permute.xlu1 %11515  ;;  %v2245_v59 = vsel %vm2239_vm4, %v2208_v53, %v11503_v51  ;;  %v2244_v60 = vsel %vm2239_vm4, %v2207_v55, %v11502_v43  ;;  %v1065_v51 = vld [vmem:[#allocation2 + $0xc5] sm:$0xff]  ;;  %v1066_v43 = vld [vmem:[#allocation2 + $0xcd] sm:$0xff] }
  0xdb   : > { %v14063_v7 = vpop.permute.xlu0 %11510  ;;  %v11518_v18 = vunpack.i.h.bf16 %v14061_v4  ;;  %v11517_v47 = vunpack.i.l.bf16 %v14061_v4  ;;  %v11869_v55 = vpack.i.bf16 %v1066_v43, %v1065_v51 }
  0xdc   : > { %11805 = vrot.lane.b32.xlu1 %v11804_v1, %s18260_s4  ;;  %v11513_v50 = vunpack.i.h.bf16 %v14063_v7  ;;  %v11512_v52 = vunpack.i.l.bf16 %v14063_v7 }
  0xdd   : > { %11800 = vrot.lane.b32.xlu0 %v11799_v54, %s18261_s30  ;;  %v2283_v1 = vsel %vm2276_vm5, %v2246_v56, %v11517_v47  ;;  %v919_v56 = vld [vmem:[#allocation2 + $0xc1] sm:$0xff] }
  0xde   : > { %v14067_v13 = vpop.permute.xlu1 %11525  ;;  %v2281_v5 = vsel %vm2276_vm5, %v2244_v60, %v11512_v52  ;;  %v2282_v6 = vsel %vm2276_vm5, %v2245_v59, %v11513_v50 }
  0xdf   : > { %v14069_v14 = vpop.permute.xlu0 %11520  ;;  %v11527_v10 = vunpack.i.l.bf16 %v14067_v13 }
  0xe0   : > { %11815 = vrot.lane.b32.xlu1 %v11814_v8, %s18260_s4  ;;  %v11523_v61 = vunpack.i.h.bf16 %v14069_v14  ;;  %v11522_v62 = vunpack.i.l.bf16 %v14069_v14 }
  0xe1   : > { %11810 = vrot.lane.b32.xlu0 %v11809_v9, %s18261_s30  ;;  %v11528_v9 = vunpack.i.h.bf16 %v14067_v13 }
  0xe2   : > { %v14075_v21 = vpop.permute.xlu1 %11535  ;;  %v2319_v16 = vsel %vm2313_vm6, %v2282_v6, %v11523_v61  ;;  %v1103_v6 = vld [vmem:[#allocation2 + $0xd6] sm:$0xff] }
  0xe3   : > { %v14077_v23 = vpop.permute.xlu0 %11530  ;;  %v11538_v19 = vunpack.i.h.bf16 %v14075_v21  ;;  %v11537_v20 = vunpack.i.l.bf16 %v14075_v21  ;;  %v1067_v21 = vld [vmem:[#allocation2 + $0xd5] sm:$0xff] }
  0xe4   : > { %11825 = vrot.lane.b32.xlu1 %v11824_v15, %s18262_s27  ;;  %v11533_v2 = vunpack.i.h.bf16 %v14077_v23  ;;  %v11532_v3 = vunpack.i.l.bf16 %v14077_v23 }
  0xe5   : > { %11820 = vrot.lane.b32.xlu0 %v13973_v34, %s18262_s27  ;;  %v2210_v34 = vsel %vm737_vm0, %v866_v39, %v11498_v27  ;;  %v2320_v39 = vsel %vm2313_vm6, %v2283_v1, %v11527_v10 }
  0xe6   : > { %v14092_v44 = vpop.permute.xlu1 %11545  ;;  %v2247_v57 = vsel %vm2239_vm4, %v2210_v34, %v11508_v40  ;;  %v2356_v23 = vsel %vm2350_vm7, %v2319_v16, %v11533_v2 }
  0xe7   : > { %v11541_v36 = vpop.permute.xlu0 %11540  ;;  %v2284_v54 = vsel %vm2276_vm5, %v2247_v57, %v11518_v18  ;;  %v11548_v13 = vunpack.i.h.bf16 %v14092_v44  ;;  %v11547_v24 = vunpack.i.l.bf16 %v14092_v44  ;;  %v2357_v44 = vsel %vm2350_vm7, %v2320_v39, %v11537_v20  ;;  %v920_v57 = vld [vmem:[#allocation2 + $0xc9] sm:$0xff] }
  0xe8   : > { %11835 = vrot.lane.b32.xlu1 %v14082_v29, %s18263_s29  ;;  %v11543_v7 = vunpack.i.h.bf16 %v11541_v36  ;;  %v11542_v8 = vunpack.i.l.bf16 %v11541_v36  ;;  %v2321_v40 = vsel %vm2313_vm6, %v2284_v54, %v11528_v9  ;;  %v11874_v36 = vpack.i.bf16 %v1068_v31, %v1067_v21  ;;  %v959_v20 = vld [vmem:[#allocation2 + $0xe2] sm:$0xff] }
  0xe9   : > { %11830 = vrot.lane.b32.xlu0 %v11824_v15, %s18263_s29  ;;  %v2318_v15 = vsel %vm2313_vm6, %v2281_v5, %v11522_v62  ;;  %v1101_v62 = vld [vmem:[#allocation2 + $0xc6] sm:$0xff]  ;;  %v11884_v2 = vpack.i.bf16 %v920_v57, %v919_v56 }
  0xea   : > { %v11556_v63 = vpop.permute.xlu1 %11555  ;;  %v2355_v22 = vsel %vm2350_vm7, %v2318_v15, %v11532_v3  ;;  %v2393_v27 = vsel %vm2387_vm8, %v2356_v23, %v11543_v7  ;;  %v921_v3 = vld [vmem:[#allocation2 + $0xd1] sm:$0xff]  ;;  %v1104_v7 = vld [vmem:[#allocation2 + $0xde] sm:$0xff] }
  0xeb   : > { %v11551_v4 = vpop.permute.xlu0 %11550  ;;  %v2392_v26 = vsel %vm2387_vm8, %v2355_v22, %v11542_v8  ;;  %v11558_v32 = vunpack.i.h.bf16 %v11556_v63  ;;  %v11557_v33 = vunpack.i.l.bf16 %v11556_v63  ;;  %v1102_v63 = vld [vmem:[#allocation2 + $0xce] sm:$0xff]  ;;  %v11889_v10 = vpack.i.bf16 %v1104_v7, %v1103_v6  ;;  %v996_v23 = vld [vmem:[#allocation2 + $0xe3] sm:$0xff] }
  0xec   : > { %11845 = vrot.lane.b32.xlu1 %v11844_v30, %s18256_s8  ;;  %v11553_v11 = vunpack.i.h.bf16 %v11551_v4  ;;  %v11552_v14 = vunpack.i.l.bf16 %v11551_v4  ;;  %v922_v4 = vld [vmem:[#allocation2 + $0xd9] sm:$0xff]  ;;  %v960_v22 = vld [vmem:[#allocation2 + $0xea] sm:$0xff] }
  0xed   : > { %11840 = vrot.lane.b32.xlu0 %v11839_v45, %s18256_s8  ;;  %v2358_v45 = vsel %vm2350_vm7, %v2321_v40, %v11538_v19  ;;  %v11894_v9 = vpack.i.bf16 %v922_v4, %v921_v3 }
  0xee   : > { %v14129_v12 = vpop.permute.xlu1 %11565  ;;  %v2429_v35 = vsel %vm2424_vm9, %v2392_v26, %v11552_v14  ;;  %v2430_v38 = vsel %vm2424_vm9, %v2393_v27, %v11553_v11  ;;  %v2395_v34 = vsel %vm2387_vm8, %v2358_v45, %v11548_v13  ;;  %v957_v11 = vld [vmem:[#allocation2 + $0xd2] sm:$0xff]  ;;  %v958_v14 = vld [vmem:[#allocation2 + $0xda] sm:$0xff] }
  0xef   : > { %v11561_v25 = vpop.permute.xlu0 %11560  ;;  %v2432_v53 = vsel %vm2424_vm9, %v2395_v34, %v11558_v32  ;;  %v11904_v19 = vpack.i.bf16 %v958_v14, %v957_v11  ;;  %v997_v13 = vld [vmem:[#allocation2 + $0xeb] sm:$0xff]  ;;  %v995_v27 = vld [vmem:[#allocation2 + $0xdb] sm:$0xff]  ;;  %v14188_v32 = vpack.i.bf16 %v960_v22, %v959_v20  ;;  %v11568_v39 = vunpack.i.h.bf16 %v14129_v12 }
  0xf0   : > { %v11563_v28 = vunpack.i.h.bf16 %v11561_v25  ;;  %v11562_v30 = vunpack.i.l.bf16 %v11561_v25  ;;  %11855 = vrot.lane.b32.xlu1 %v14094_v46, %s18257_s2  ;;  %v994_v25 = vld [vmem:[#allocation2 + $0xd3] sm:$0xff]  ;;  %v11567_v40 = vunpack.i.l.bf16 %v14129_v12 }
  0xf1   : > { %11850 = vrot.lane.b32.xlu0 %v14001_v58, %s18257_s2  ;;  %v2394_v58 = vsel %vm2387_vm8, %v2357_v44, %v11547_v24  ;;  %v868_v44 = vld [vmem:[#allocation2 + $0x48] sm:$0xff] }
  0xf2   : > { %v2466_v41 = vsel %vm2461_vm1, %v2429_v35, %v11562_v30  ;;  %v2467_v37 = vsel %vm2461_vm1, %v2430_v38, %v11563_v28  ;;  %v14147_v42 = vpop.permute.xlu1 %11575  ;;  %v2431_v52 = vsel %vm2424_vm9, %v2394_v58, %v11557_v33  ;;  %v1032_v28 = vld [vmem:[#allocation2 + $0xe4] sm:$0xff]  ;;  %v1033_v30 = vld [vmem:[#allocation2 + $0xec] sm:$0xff]  ;;  %v11924_v33 = vpack.i.bf16 %v997_v13, %v996_v23  ;;  %v1034_v35 = vld [vmem:[#allocation2 + $0xf4] sm:$0xff] }
  0xf3   : > { %v11571_v18 = vpop.permute.xlu0 %11570  ;;  %v2500_v47 = vpack.c.bf16 %v2467_v37, %v2466_v41  ;;  %v11578_v21 = vunpack.i.h.bf16 %v14147_v42  ;;  %v11577_v31 = vunpack.i.l.bf16 %v14147_v42  ;;  %v1035_v38 = vld [vmem:[#allocation2 + $0xfc] sm:$0xff]  ;;  %v869_v41 = vld [vmem:[#allocation2 + $0x50] sm:$0xff]  ;;  %v14200_v58 = vpack.i.bf16 %v1033_v30, %v1032_v28 }
  0xf4   : > { %v11573_v49 = vunpack.i.h.bf16 %v11571_v18  ;;  %v11572_v50 = vunpack.i.l.bf16 %v11571_v18  ;;  %11865 = vrot.lane.b32.xlu1 %v14098_v48, %s18258_s0  ;;  %v870_v37 = vld [vmem:[#allocation2 + $0x58] sm:$0xff]  ;;  %v867_v42 = vld [vmem:[#allocation2 + $0x40] sm:$0xff]  ;;  %v2212_v56 = vsel %vm737_vm0, %v868_v44, %v11568_v39 }
  0xf5   : > { %11860 = vrot.lane.b32.xlu0 %v14094_v46, %s18258_s0  ;;  %10967 = vmatprep.mubr.msk.bf16.mxu0 %vm2530_vm10, %v2500_v47  ;;  %v11879_v46 = vpack.i.bf16 %v1102_v63, %v1101_v62  ;;  %v2211_v57 = vsel %vm737_vm0, %v867_v42, %v11567_v40 }
  0xf6   : > { %v2469_v59 = vsel %vm2461_vm1, %v2432_v53, %v11573_v49  ;;  %v2468_v60 = vsel %vm2461_vm1, %v2431_v52, %v11572_v50  ;;  %v14162_v61 = vpop.permute.xlu1 %11585  ;;  %v14204_v50 = vpack.i.bf16 %v1035_v38, %v1034_v35  ;;  %v2213_v52 = vsel %vm737_vm0, %v869_v41, %v11577_v31  ;;  %v1072_v35 = vld [vmem:[#allocation2 + $0xfd] sm:$0xff] }
  0xf7   : > { %v14164_v1 = vpop.permute.xlu0 %11580  ;;  %v2501_v54 = vpack.c.bf16 %v2469_v59, %v2468_v60  ;;  %v11588_v51 = vunpack.i.h.bf16 %v14162_v61  ;;  %v11587_v43 = vunpack.i.l.bf16 %v14162_v61 }
  0xf8   : > { %11875 = vrot.lane.b32.xlu1 %v11874_v36, %s18259_s1  ;;  %v11583_v45 = vunpack.i.h.bf16 %v14164_v1  ;;  %v11582_v18 = vunpack.i.l.bf16 %v14164_v1  ;;  %v11919_v36 = vpack.i.bf16 %v995_v27, %v994_v25 }
  0xf9   : > { %11870 = vrot.lane.b32.xlu0 %v11869_v55, %s18259_s1  ;;  %10968 = vmatmul.mubr.msk.bf16.gmra.mxu0 %vm2530_vm10, %v2501_v54  ;;  %v2250_v59 = vsel %vm2239_vm4, %v2213_v52, %v11587_v43 }
  0xfa   : > { %v14169_v5 = vpop.permute.xlu1 %11595  ;;  %v2249_v61 = vsel %vm2239_vm4, %v2212_v56, %v11583_v45  ;;  %v2248_v62 = vsel %vm2239_vm4, %v2211_v57, %v11582_v18  ;;  %v1069_v45 = vld [vmem:[#allocation2 + $0xe5] sm:$0xff]  ;;  %v1070_v18 = vld [vmem:[#allocation2 + $0xed] sm:$0xff] }
  0xfb   : > { %v14171_v8 = vpop.permute.xlu0 %11590  ;;  %v11598_v12 = vunpack.i.h.bf16 %v14169_v5  ;;  %v11597_v34 = vunpack.i.l.bf16 %v14169_v5  ;;  %v11949_v57 = vpack.i.bf16 %v1070_v18, %v1069_v45  ;;  %v874_v45 = vld [vmem:[#allocation2 + $0x78] sm:$0xff] }
  0xfc   : > { %11885 = vrot.lane.b32.xlu1 %v11884_v2, %s18260_s4  ;;  %v11593_v53 = vunpack.i.h.bf16 %v14171_v8  ;;  %v11592_v55 = vunpack.i.l.bf16 %v14171_v8 }
  0xfd   : > { %11880 = vrot.lane.b32.xlu0 %v11879_v46, %s18261_s30  ;;  %v2287_v2 = vsel %vm2276_vm5, %v2250_v59, %v11597_v34  ;;  %v923_v59 = vld [vmem:[#allocation2 + $0xe1] sm:$0xff] }
  0xfe   : > { %v14175_v15 = vpop.permute.xlu1 %11605  ;;  %v2285_v6 = vsel %vm2276_vm5, %v2248_v62, %v11592_v55  ;;  %v2286_v7 = vsel %vm2276_vm5, %v2249_v61, %v11593_v53 }
  0xff   : > { %v14177_v16 = vpop.permute.xlu0 %11600  ;;  %v11607_v11 = vunpack.i.l.bf16 %v14175_v15 }
 0x100   : > { %11895 = vrot.lane.b32.xlu1 %v11894_v9, %s18260_s4  ;;  %v11603_v63 = vunpack.i.h.bf16 %v14177_v16  ;;  %v11602_v1 = vunpack.i.l.bf16 %v14177_v16 }
 0x101   : > { %11890 = vrot.lane.b32.xlu0 %v11889_v10, %s18261_s30  ;;  %v11608_v10 = vunpack.i.h.bf16 %v14175_v15 }
 0x102   : > { %v14181_v24 = vpop.permute.xlu1 %11615  ;;  %v2323_v20 = vsel %vm2313_vm6, %v2286_v7, %v11603_v63  ;;  %v1107_v7 = vld [vmem:[#allocation2 + $0xf6] sm:$0xff] }
 0x103   : > { %v14183_v26 = vpop.permute.xlu0 %11610  ;;  %v11618_v22 = vunpack.i.h.bf16 %v14181_v24  ;;  %v11617_v23 = vunpack.i.l.bf16 %v14181_v24  ;;  %v1071_v24 = vld [vmem:[#allocation2 + $0xf5] sm:$0xff] }
 0x104   : > { %11905 = vrot.lane.b32.xlu1 %v11904_v19, %s18262_s27  ;;  %v11613_v3 = vunpack.i.h.bf16 %v14183_v26  ;;  %v11612_v4 = vunpack.i.l.bf16 %v14183_v26 }
 0x105   : > { %11900 = vrot.lane.b32.xlu0 %v14082_v29, %s18262_s27  ;;  %v2214_v29 = vsel %vm737_vm0, %v870_v37, %v11578_v21  ;;  %v2324_v37 = vsel %vm2313_vm6, %v2287_v2, %v11607_v11 }
 0x106   : > { %v14198_v47 = vpop.permute.xlu1 %11625  ;;  %v2251_v60 = vsel %vm2239_vm4, %v2214_v29, %v11588_v51  ;;  %v2360_v26 = vsel %vm2350_vm7, %v2323_v20, %v11613_v3 }
 0x107   : > { %v11621_v49 = vpop.permute.xlu0 %11620  ;;  %v2288_v46 = vsel %vm2276_vm5, %v2251_v60, %v11598_v12  ;;  %v11628_v15 = vunpack.i.h.bf16 %v14198_v47  ;;  %v11627_v27 = vunpack.i.l.bf16 %v14198_v47  ;;  %v2361_v47 = vsel %vm2350_vm7, %v2324_v37, %v11617_v23  ;;  %v924_v60 = vld [vmem:[#allocation2 + $0xe9] sm:$0xff]  ;;  %v1039_v37 = vld [vmem:[#allocation2 + $0x11c] sm:$0xff] }
 0x108   : > { %11915 = vrot.lane.b32.xlu1 %v14188_v32, %s18263_s29  ;;  %v11623_v8 = vunpack.i.h.bf16 %v11621_v49  ;;  %v11622_v9 = vunpack.i.l.bf16 %v11621_v49  ;;  %v2325_v51 = vsel %vm2313_vm6, %v2288_v46, %v11608_v10  ;;  %v11954_v49 = vpack.i.bf16 %v1072_v35, %v1071_v24  ;;  %v963_v23 = vld [vmem:[#allocation2 + $0x102] sm:$0xff]  ;;  %v1037_v24 = vld [vmem:[#allocation2 + $0x10c] sm:$0xff] }
 0x109   : > { %11910 = vrot.lane.b32.xlu0 %v11904_v19, %s18263_s29  ;;  %v2322_v19 = vsel %vm2313_vm6, %v2285_v6, %v11602_v1  ;;  %v1105_v1 = vld [vmem:[#allocation2 + $0xe6] sm:$0xff]  ;;  %v11964_v3 = vpack.i.bf16 %v924_v60, %v923_v59 }
 0x10a   : > { %v11636_v54 = vpop.permute.xlu1 %11635  ;;  %v2359_v25 = vsel %vm2350_vm7, %v2322_v19, %v11612_v4  ;;  %v2397_v21 = vsel %vm2387_vm8, %v2360_v26, %v11623_v8  ;;  %v925_v4 = vld [vmem:[#allocation2 + $0xf1] sm:$0xff]  ;;  %v1108_v8 = vld [vmem:[#allocation2 + $0xfe] sm:$0xff] }
 0x10b   : > { %v11631_v5 = vpop.permute.xlu0 %11630  ;;  %v2396_v30 = vsel %vm2387_vm8, %v2359_v25, %v11622_v9  ;;  %v11638_v38 = vunpack.i.h.bf16 %v11636_v54  ;;  %v11637_v39 = vunpack.i.l.bf16 %v11636_v54  ;;  %v1106_v54 = vld [vmem:[#allocation2 + $0xee] sm:$0xff]  ;;  %v11969_v11 = vpack.i.bf16 %v1108_v8, %v1107_v7  ;;  %v1000_v26 = vld [vmem:[#allocation2 + $0x103] sm:$0xff] }
 0x10c   : > { %11925 = vrot.lane.b32.xlu1 %v11924_v33, %s18256_s8  ;;  %v11633_v14 = vunpack.i.h.bf16 %v11631_v5  ;;  %v11632_v16 = vunpack.i.l.bf16 %v11631_v5  ;;  %v926_v5 = vld [vmem:[#allocation2 + $0xf9] sm:$0xff]  ;;  %v964_v25 = vld [vmem:[#allocation2 + $0x10a] sm:$0xff] }
 0x10d   : > { %11920 = vrot.lane.b32.xlu0 %v11919_v36, %s18256_s8  ;;  %v2362_v36 = vsel %vm2350_vm7, %v2325_v51, %v11618_v22  ;;  %v11974_v10 = vpack.i.bf16 %v926_v5, %v925_v4 }
 0x10e   : > { %v14235_v13 = vpop.permute.xlu1 %11645  ;;  %v2433_v40 = vsel %vm2424_vm9, %v2396_v30, %v11632_v16  ;;  %v2434_v41 = vsel %vm2424_vm9, %v2397_v21, %v11633_v14  ;;  %v2399_v29 = vsel %vm2387_vm8, %v2362_v36, %v11628_v15  ;;  %v961_v14 = vld [vmem:[#allocation2 + $0xf2] sm:$0xff]  ;;  %v962_v16 = vld [vmem:[#allocation2 + $0xfa] sm:$0xff]  ;;  %v872_v36 = vld [vmem:[#allocation2 + $0x68] sm:$0xff] }
 0x10f   : > { %v11641_v28 = vpop.permute.xlu0 %11640  ;;  %v2436_v56 = vsel %vm2424_vm9, %v2399_v29, %v11638_v38  ;;  %v11984_v22 = vpack.i.bf16 %v962_v16, %v961_v14  ;;  %v1001_v15 = vld [vmem:[#allocation2 + $0x10b] sm:$0xff]  ;;  %v11648_v51 = vunpack.i.h.bf16 %v14235_v13 }
 0x110   : > { %v11643_v31 = vunpack.i.h.bf16 %v11641_v28  ;;  %v11642_v33 = vunpack.i.l.bf16 %v11641_v28  ;;  %11935 = vrot.lane.b32.xlu1 %v14200_v58, %s18257_s2  ;;  %v999_v28 = vld [vmem:[#allocation2 + $0xfb] sm:$0xff] }
 0x111   : > { %11930 = vrot.lane.b32.xlu0 %v14098_v48, %s18257_s2  ;;  %v2398_v48 = vsel %vm2387_vm8, %v2361_v47, %v11627_v27  ;;  %v998_v27 = vld [vmem:[#allocation2 + $0xf3] sm:$0xff]  ;;  %v2216_v59 = vsel %vm737_vm0, %v872_v36, %v11648_v51  ;;  %v1073_v36 = vld [vmem:[#allocation2 + $0x105] sm:$0xff] }
 0x112   : > { %v2470_v43 = vsel %vm2461_vm1, %v2433_v40, %v11642_v33  ;;  %v2471_v42 = vsel %vm2461_vm1, %v2434_v41, %v11643_v31  ;;  %v14253_v44 = vpop.permute.xlu1 %11655  ;;  %v2435_v55 = vsel %vm2424_vm9, %v2398_v48, %v11637_v39  ;;  %v14291_v31 = vpack.i.bf16 %v964_v25, %v963_v23  ;;  %v1036_v33 = vld [vmem:[#allocation2 + $0x104] sm:$0xff]  ;;  %v1038_v41 = vld [vmem:[#allocation2 + $0x114] sm:$0xff] }
 0x113   : > { %v11651_v12 = vpop.permute.xlu0 %11650  ;;  %v2502_v34 = vpack.c.bf16 %v2471_v42, %v2470_v43  ;;  %v11658_v35 = vunpack.i.h.bf16 %v14253_v44  ;;  %v11657_v38 = vunpack.i.l.bf16 %v14253_v44  ;;  %v12004_v39 = vpack.i.bf16 %v1001_v15, %v1000_v26  ;;  %v873_v42 = vld [vmem:[#allocation2 + $0x70] sm:$0xff]  ;;  %v871_v44 = vld [vmem:[#allocation2 + $0x60] sm:$0xff] }
 0x114   : > { %v11653_v52 = vunpack.i.h.bf16 %v11651_v12  ;;  %v11652_v53 = vunpack.i.l.bf16 %v11651_v12  ;;  %11945 = vrot.lane.b32.xlu1 %v14204_v50, %s18258_s0  ;;  %v11999_v40 = vpack.i.bf16 %v999_v28, %v998_v27  ;;  %v11647_v43 = vunpack.i.l.bf16 %v14235_v13 }
 0x115   : > { %11940 = vrot.lane.b32.xlu0 %v14200_v58, %s18258_s0  ;;  %10971 = vmatprep.mubr.msk.bf16.mxu0 %vm2530_vm10, %v2502_v34  ;;  %v11959_v58 = vpack.i.bf16 %v1106_v54, %v1105_v1  ;;  %v14306_v48 = vpack.i.bf16 %v1037_v24, %v1036_v33 }
 0x116   : > { %v2473_v61 = vsel %vm2461_vm1, %v2436_v56, %v11653_v52  ;;  %v2472_v62 = vsel %vm2461_vm1, %v2435_v55, %v11652_v53  ;;  %v14268_v63 = vpop.permute.xlu1 %11665  ;;  %v14310_v53 = vpack.i.bf16 %v1039_v37, %v1038_v41  ;;  %v2218_v55 = vsel %vm737_vm0, %v874_v45, %v11658_v35 }
 0x117   : > { %v14270_v2 = vpop.permute.xlu0 %11660  ;;  %v2503_v46 = vpack.c.bf16 %v2473_v61, %v2472_v62  ;;  %v11668_v18 = vunpack.i.h.bf16 %v14268_v63  ;;  %v11667_v47 = vunpack.i.l.bf16 %v14268_v63  ;;  %v2215_v60 = vsel %vm737_vm0, %v871_v44, %v11647_v43 }
 0x118   : > { %11955 = vrot.lane.b32.xlu1 %v11954_v49, %s18259_s1  ;;  %v11663_v12 = vunpack.i.h.bf16 %v14270_v2  ;;  %v11662_v34 = vunpack.i.l.bf16 %v14270_v2 }
 0x119   : > { %11950 = vrot.lane.b32.xlu0 %v11949_v57, %s18259_s1  ;;  %10972 = vmatmul.mubr.msk.bf16.gmra.mxu0 %vm2530_vm10, %v2503_v46  ;;  %v2255_v62 = vsel %vm2239_vm4, %v2218_v55, %v11668_v18 }
 0x11a   : > { %v14275_v6 = vpop.permute.xlu1 %11675  ;;  %v2253_v63 = vsel %vm2239_vm4, %v2216_v59, %v11663_v12  ;;  %v2252_v1 = vsel %vm2239_vm4, %v2215_v60, %v11662_v34  ;;  %v1074_v12 = vld [vmem:[#allocation2 + $0x10d] sm:$0xff] }
 0x11b   : > { %v14277_v9 = vpop.permute.xlu0 %11670  ;;  %v11678_v13 = vunpack.i.h.bf16 %v14275_v6  ;;  %v11677_v29 = vunpack.i.l.bf16 %v14275_v6  ;;  %v12029_v60 = vpack.i.bf16 %v1074_v12, %v1073_v36 }
 0x11c   : > { %11965 = vrot.lane.b32.xlu1 %v11964_v3, %s18260_s4  ;;  %v11673_v56 = vunpack.i.h.bf16 %v14277_v9  ;;  %v11672_v57 = vunpack.i.l.bf16 %v14277_v9 }
 0x11d   : > { %11960 = vrot.lane.b32.xlu0 %v11959_v58, %s18261_s30  ;;  %v2292_v58 = vsel %vm2276_vm5, %v2255_v62, %v11678_v13  ;;  %v928_v62 = vld [vmem:[#allocation2 + $0x109] sm:$0xff] }
 0x11e   : > { %v14281_v19 = vpop.permute.xlu1 %11685  ;;  %v2289_v7 = vsel %vm2276_vm5, %v2252_v1, %v11672_v57  ;;  %v2290_v8 = vsel %vm2276_vm5, %v2253_v63, %v11673_v56 }
 0x11f   : > { %v14283_v20 = vpop.permute.xlu0 %11680  ;;  %v11687_v14 = vunpack.i.l.bf16 %v14281_v19 }
 0x120   : > { %11975 = vrot.lane.b32.xlu1 %v11974_v10, %s18260_s4  ;;  %v11683_v54 = vunpack.i.h.bf16 %v14283_v20  ;;  %v11682_v2 = vunpack.i.l.bf16 %v14283_v20 }
 0x121   : > { %11970 = vrot.lane.b32.xlu0 %v11969_v11, %s18261_s30  ;;  %v11688_v11 = vunpack.i.h.bf16 %v14281_v19 }
 0x122   : > { %v14287_v30 = vpop.permute.xlu1 %11695  ;;  %v2327_v23 = vsel %vm2313_vm6, %v2290_v8, %v11683_v54  ;;  %v1111_v8 = vld [vmem:[#allocation2 + $0x116] sm:$0xff] }
 0x123   : > { %v14289_v21 = vpop.permute.xlu0 %11690  ;;  %v11698_v25 = vunpack.i.h.bf16 %v14287_v30  ;;  %v11697_v26 = vunpack.i.l.bf16 %v14287_v30  ;;  %v1075_v30 = vld [vmem:[#allocation2 + $0x115] sm:$0xff]  ;;  %v2329_v45 = vsel %vm2313_vm6, %v2292_v58, %v11688_v11 }
 0x124   : > { %11985 = vrot.lane.b32.xlu1 %v11984_v22, %s18262_s27  ;;  %v11693_v4 = vunpack.i.h.bf16 %v14289_v21  ;;  %v11692_v5 = vunpack.i.l.bf16 %v14289_v21 }
 0x125   : > { %11980 = vrot.lane.b32.xlu0 %v14188_v32, %s18262_s27  ;;  %v2217_v32 = vsel %vm737_vm0, %v873_v42, %v11657_v38 }
 0x126   : > { %v14304_v49 = vpop.permute.xlu1 %11705  ;;  %v2254_v61 = vsel %vm2239_vm4, %v2217_v32, %v11667_v47  ;;  %v2364_v28 = vsel %vm2350_vm7, %v2327_v23, %v11693_v4 }
 0x127   : > { %v11701_v52 = vpop.permute.xlu0 %11700  ;;  %v2291_v3 = vsel %vm2276_vm5, %v2254_v61, %v11677_v29  ;;  %v11708_v19 = vunpack.i.h.bf16 %v14304_v49  ;;  %v11707_v21 = vunpack.i.l.bf16 %v14304_v49  ;;  %v2366_v49 = vsel %vm2350_vm7, %v2329_v45, %v11698_v25  ;;  %v927_v61 = vld [vmem:[#allocation2 + $0x101] sm:$0xff]  ;;  %v14407_v45 = vld [vmem:[#allocation2 + $0x134] sm:$0xff] }
 0x128   : > { %11995 = vrot.lane.b32.xlu1 %v14291_v31, %s18263_s29  ;;  %v11703_v9 = vunpack.i.h.bf16 %v11701_v52  ;;  %v11702_v10 = vunpack.i.l.bf16 %v11701_v52  ;;  %v2328_v42 = vsel %vm2313_vm6, %v2291_v3, %v11687_v14  ;;  %v12044_v4 = vpack.i.bf16 %v928_v62, %v927_v61  ;;  %v967_v25 = vld [vmem:[#allocation2 + $0x11a] sm:$0xff] }
 0x129   : > { %11990 = vrot.lane.b32.xlu0 %v11984_v22, %s18263_s29  ;;  %v2326_v22 = vsel %vm2313_vm6, %v2289_v7, %v11682_v2  ;;  %v2365_v34 = vsel %vm2350_vm7, %v2328_v42, %v11697_v26  ;;  %v2403_v55 = vsel %vm2387_vm8, %v2366_v49, %v11708_v19  ;;  %v1109_v2 = vld [vmem:[#allocation2 + $0x106] sm:$0xff]  ;;  %v878_v49 = vld [vmem:[#allocation2 + $0x98] sm:$0xff] }
 0x12a   : > { %v11716_v46 = vpop.permute.xlu1 %11715  ;;  %v2363_v27 = vsel %vm2350_vm7, %v2326_v22, %v11692_v5  ;;  %v2401_v35 = vsel %vm2387_vm8, %v2364_v28, %v11703_v9  ;;  %v929_v5 = vld [vmem:[#allocation2 + $0x111] sm:$0xff]  ;;  %v1112_v9 = vld [vmem:[#allocation2 + $0x11e] sm:$0xff]  ;;  %v969_v28 = vld [vmem:[#allocation2 + $0x12a] sm:$0x3f] }
 0x12b   : > { %v11711_v6 = vpop.permute.xlu0 %11710  ;;  %v2400_v24 = vsel %vm2387_vm8, %v2363_v27, %v11702_v10  ;;  %v11718_v41 = vunpack.i.h.bf16 %v11716_v46  ;;  %v11717_v37 = vunpack.i.l.bf16 %v11716_v46  ;;  %v1110_v46 = vld [vmem:[#allocation2 + $0x10e] sm:$0xff]  ;;  %v12049_v14 = vpack.i.bf16 %v1112_v9, %v1111_v8  ;;  %v968_v27 = vld [vmem:[#allocation2 + $0x122] sm:$0xff] }
 0x12c   : > { %12005 = vrot.lane.b32.xlu1 %v12004_v39, %s18256_s8  ;;  %v11713_v16 = vunpack.i.h.bf16 %v11711_v6  ;;  %v11712_v20 = vunpack.i.l.bf16 %v11711_v6  ;;  %v930_v6 = vld [vmem:[#allocation2 + $0x119] sm:$0x3f]  ;;  %v1004_v19 = vld [vmem:[#allocation2 + $0x123] sm:$0xff] }
 0x12d   : > { %12000 = vrot.lane.b32.xlu0 %v11999_v40, %s18256_s8  ;;  %v1076_v40 = vld [vmem:[#allocation2 + $0x11d] sm:$0xff]  ;;  %v2440_v59 = vsel %vm2424_vm9, %v2403_v55, %v11718_v41  ;;  %v12054_v11 = vpack.i.bf16 %v930_v6, %v929_v5  ;;  %v14401_v41 = vld [vmem:[#allocation2 + $0x12c] sm:$0x3f] }
 0x12e   : > { %v14341_v15 = vpop.permute.xlu1 %11725  ;;  %v2437_v51 = vsel %vm2424_vm9, %v2400_v24, %v11712_v20  ;;  %v2438_v43 = vsel %vm2424_vm9, %v2401_v35, %v11713_v16  ;;  %v12034_v52 = vpack.i.bf16 %v1076_v40, %v1075_v30  ;;  %v965_v16 = vld [vmem:[#allocation2 + $0x112] sm:$0xff]  ;;  %v966_v20 = vld [vmem:[#allocation2 + $0x11a] sm:$0x3f]  ;;  %v14399_v40 = vld [vmem:[#allocation2 + $0x124] sm:$0xff] }
 0x12f   : > { %v11721_v33 = vpop.permute.xlu0 %11720  ;;  %v12064_v26 = vpack.i.bf16 %v966_v20, %v965_v16  ;;  %v1003_v24 = vld [vmem:[#allocation2 + $0x11b] sm:$0xff]  ;;  %v12069_v30 = vpack.i.bf16 %v967_v25, %v965_v16  ;;  %v11728_v36 = vunpack.i.h.bf16 %v14341_v15  ;;  %v11727_v12 = vunpack.i.l.bf16 %v14341_v15 }
 0x130   : > { %v11723_v38 = vunpack.i.h.bf16 %v11721_v33  ;;  %v11722_v39 = vunpack.i.l.bf16 %v11721_v33  ;;  %12015 = vrot.lane.b32.xlu1 %v14306_v48, %s18257_s2  ;;  %v14393_v33 = vld [vmem:[#allocation2 + $0x113] sm:$0xff]  ;;  %v12094_v15 = vpack.i.bf16 %v14401_v41, %v14399_v40 }
 0x131   : > { %12010 = vrot.lane.b32.xlu0 %v14204_v50, %s18257_s2  ;;  %v2402_v50 = vsel %vm2387_vm8, %v2365_v34, %v11707_v21  ;;  %v1005_v21 = vld [vmem:[#allocation2 + $0x12b] sm:$0x3f]  ;;  %v12079_v42 = vpack.i.bf16 %v1003_v24, %v14393_v33 }
 0x132   : > { %v2474_v18 = vsel %vm2461_vm1, %v2437_v51, %v11722_v39  ;;  %v2475_v47 = vsel %vm2461_vm1, %v2438_v43, %v11723_v38  ;;  %v14359_v44 = vpop.permute.xlu1 %11735  ;;  %v2439_v57 = vsel %vm2424_vm9, %v2402_v50, %v11717_v37  ;;  %v12074_v39 = vpack.i.bf16 %v969_v28, %v968_v27  ;;  %v877_v34 = vld [vmem:[#allocation2 + $0x90] sm:$0xff] }
 0x133   : > { %v11731_v13 = vpop.permute.xlu0 %11730  ;;  %v2504_v29 = vpack.c.bf16 %v2475_v47, %v2474_v18  ;;  %v11738_v37 = vunpack.i.h.bf16 %v14359_v44  ;;  %v11737_v51 = vunpack.i.l.bf16 %v14359_v44  ;;  %v12084_v43 = vpack.i.bf16 %v1005_v21, %v1004_v19  ;;  %v14409_v18 = vld [vmem:[#allocation2 + $0x13c] sm:$0x3f]  ;;  %v14411_v47 = vld [vmem:[#allocation2 + $0x12c] sm:$0xff] }
 0x134   : > { %v11733_v32 = vunpack.i.h.bf16 %v11731_v13  ;;  %v11732_v56 = vunpack.i.l.bf16 %v11731_v13  ;;  %12025 = vrot.lane.b32.xlu1 %v14310_v53, %s18258_s0 }
 0x135   : > { %12020 = vrot.lane.b32.xlu0 %v14306_v48, %s18258_s0  ;;  %10975 = vmatprep.mubr.msk.bf16.mxu0 %vm2530_vm10, %v2504_v29  ;;  %v12039_v48 = vpack.i.bf16 %v1110_v46, %v1109_v2  ;;  %v875_v29 = vld [vmem:[#allocation2 + $0x80] sm:$0xff]  ;;  %v2222_v61 = vsel %vm737_vm0, %v878_v49, %v11738_v37  ;;  %v2221_v62 = vsel %vm737_vm0, %v877_v34, %v11737_v51 }
 0x136   : > { %v2477_v63 = vsel %vm2461_vm1, %v2440_v59, %v11733_v32  ;;  %v2476_v1 = vsel %vm2461_vm1, %v2439_v57, %v11732_v56  ;;  %v14374_v54 = vpop.permute.xlu1 %11745  ;;  %v2219_v2 = vsel %vm737_vm0, %v875_v29, %v11727_v12  ;;  %v1080_v12 = vld [vmem:[#allocation2 + $0x13d] sm:$0x3f] }
 0x137   : > { %v14376_v3 = vpop.permute.xlu0 %11740  ;;  %v2505_v58 = vpack.c.bf16 %v2477_v63, %v2476_v1  ;;  %v11748_v13 = vunpack.i.h.bf16 %v14374_v54  ;;  %v11747_v44 = vunpack.i.l.bf16 %v14374_v54 }
 0x138   : > { %12035 = vrot.lane.b32.xlu1 %v12034_v52, %s18259_s1  ;;  %v876_v52 = vld [vmem:[#allocation2 + $0x88] sm:$0xff]  ;;  %v11743_v50 = vunpack.i.h.bf16 %v14376_v3  ;;  %v11742_v55 = vunpack.i.l.bf16 %v14376_v3 }
 0x139   : > { %12030 = vrot.lane.b32.xlu0 %v12029_v60, %s18259_s1  ;;  %10976 = vmatmul.mubr.msk.bf16.gmra.mxu0 %vm2530_vm10, %v2505_v58  ;;  %v12104_v60 = vpack.i.bf16 %v14409_v18, %v14407_v45  ;;  %v2220_v54 = vsel %vm737_vm0, %v876_v52, %v11728_v36  ;;  %v2258_v46 = vsel %vm2239_vm4, %v2221_v62, %v11747_v44  ;;  %v1113_v18 = vld [vmem:[#allocation2 + $0x126] sm:$0xff] }
 0x13a   : > { %v14381_v7 = vpop.permute.xlu1 %11755  ;;  %v2259_v3 = vsel %vm2239_vm4, %v2222_v61, %v11748_v13  ;;  %v2257_v58 = vsel %vm2239_vm4, %v2220_v54, %v11743_v50 }
 0x13b   : > { %v14383_v10 = vpop.permute.xlu0 %11750  ;;  %v11758_v56 = vunpack.i.h.bf16 %v14381_v7  ;;  %v11757_v57 = vunpack.i.l.bf16 %v14381_v7 }
 0x13c   : > { %12045 = vrot.lane.b32.xlu1 %v12044_v4, %s18260_s4  ;;  %v11753_v63 = vunpack.i.h.bf16 %v14383_v10  ;;  %v11752_v1 = vunpack.i.l.bf16 %v14383_v10  ;;  %v2256_v4 = vsel %vm2239_vm4, %v2219_v2, %v11742_v55 }
 0x13d   : > { %12040 = vrot.lane.b32.xlu0 %v12039_v48, %s18261_s30  ;;  %v2295_v7 = vsel %vm2276_vm5, %v2258_v46, %v11757_v57  ;;  %v2296_v8 = vsel %vm2276_vm5, %v2259_v3, %v11758_v56  ;;  %v1078_v56 = vld [vmem:[#allocation2 + $0x12d] sm:$0xff] }
 0x13e   : > { %v14387_v22 = vpop.permute.xlu1 %11765  ;;  %v2294_v16 = vsel %vm2276_vm5, %v2257_v58, %v11753_v63 }
 0x13f   : > { %v14389_v23 = vpop.permute.xlu0 %11760 }
 0x140   : > { %12055 = vrot.lane.b32.xlu1 %v12054_v11, %s18260_s4  ;;  %v11763_v48 = vunpack.i.h.bf16 %v14389_v23  ;;  %v11762_v5 = vunpack.i.l.bf16 %v14389_v23  ;;  %v11768_v23 = vunpack.i.h.bf16 %v14387_v22  ;;  %s18204_s4 = smov 64  }
 0x141   : > { %12050 = vrot.lane.b32.xlu0 %v12049_v14, %s18261_s30  ;;  %v2293_v14 = vsel %vm2276_vm5, %v2256_v4, %v11752_v1  ;;  %v1115_v4 = vld [vmem:[#allocation2 + $0x136] sm:$0xff] }
 0x142   : > { %v14395_v35 = vpop.permute.xlu1 %11775  ;;  %v2330_v19 = vsel %vm2313_vm6, %v2293_v14, %v11762_v5  ;;  %v2331_v21 = vsel %vm2313_vm6, %v2294_v16, %v11763_v48  ;;  %v2333_v52 = vsel %vm2313_vm6, %v2296_v8, %v11768_v23  ;;  %v1116_v48 = vld [vmem:[#allocation2 + $0x13e] sm:$0x3f] }
 0x143   : > { %v14397_v38 = vpop.permute.xlu0 %11770  ;;  %v11778_v33 = vunpack.i.h.bf16 %v14395_v35  ;;  %v11777_v24 = vunpack.i.l.bf16 %v14395_v35  ;;  %v1079_v35 = vld [vmem:[#allocation2 + $0x135] sm:$0xff]  ;;  %v2885_v14 = vld [vmem:[%s18264_s17] sm:$0xff] }
 0x144   : > { %12065 = vrot.lane.b32.xlu1 %v12064_v26, %s18262_s27  ;;  %v11773_v9 = vunpack.i.h.bf16 %v14397_v38  ;;  %v11772_v10 = vunpack.i.l.bf16 %v14397_v38  ;;  %v11767_v26 = vunpack.i.l.bf16 %v14387_v22  ;;  %v12114_v63 = vpack.i.bf16 %v1080_v12, %v1079_v35  ;;  %v2888_v23 = vld [vmem:[%s18264_s17 + $0x18] sm:$0xff] }
 0x145   : > { %12060 = vrot.lane.b32.xlu0 %v14291_v31, %s18262_s27  ;;  %v12099_v31 = vpack.i.bf16 %v14411_v47, %v14399_v40  ;;  %s13517_s27 = smov 96  }
 0x146   : > { %v14421_v32 = vpop.permute.xlu1 %11785  ;;  %v2332_v29 = vsel %vm2313_vm6, %v2295_v7, %v11767_v26 }
 0x147   : > { %v11781_v59 = vpop.permute.xlu0 %11780  ;;  %v11788_v22 = vunpack.i.h.bf16 %v14421_v32  ;;  %v11787_v41 = vunpack.i.l.bf16 %v14421_v32  ;;  %v2369_v57 = vsel %vm2350_vm7, %v2332_v29, %v11777_v24  ;;  %v882_v24 = vld [vmem:[#allocation2 + $0xb8] sm:$0xff] }
 0x148   : > { %12075 = vrot.lane.b32.xlu1 %v12074_v39, %s18263_s29  ;;  %v11783_v20 = vunpack.i.h.bf16 %v11781_v59  ;;  %v11782_v25 = vunpack.i.l.bf16 %v11781_v59  ;;  %v2367_v39 = vsel %vm2350_vm7, %v2330_v19, %v11772_v10  ;;  %v2370_v59 = vsel %vm2350_vm7, %v2333_v52, %v11778_v33  ;;  %v2886_v10 = vld [vmem:[%s18264_s17 + $0x8] sm:$0xff]  ;;  %v881_v33 = vld [vmem:[#allocation2 + $0xb0] sm:$0xff] }
 0x149   : > { %12070 = vrot.lane.b32.xlu0 %v12069_v30, %s18263_s29  ;;  %v2368_v30 = vsel %vm2350_vm7, %v2331_v21, %v11773_v9  ;;  %v2407_v1 = vsel %vm2387_vm8, %v2370_v59, %v11788_v22  ;;  %v12124_v9 = vpack.i.bf16 %v1116_v48, %v1115_v4  ;;  %v2889_v22 = vld [vmem:[%s18264_s17 + $0x20] sm:$0xff]  ;;  %s18266_s29 = sld [smem:[#allocation31_spill]] }
 0x14a   : > { %v11796_v6 = vpop.permute.xlu1 %11795  ;;  %v2404_v51 = vsel %vm2387_vm8, %v2367_v39, %v11782_v25 }
 0x14b   : > { %v11791_v11 = vpop.permute.xlu0 %11790  ;;  %v11798_v34 = vunpack.i.h.bf16 %v11796_v6  ;;  %v11797_v49 = vunpack.i.l.bf16 %v11796_v6 }
 0x14c   : > { %12085 = vrot.lane.b32.xlu1 %v12084_v43, %s18256_s8  ;;  %v11793_v27 = vunpack.i.h.bf16 %v11791_v11  ;;  %v11792_v28 = vunpack.i.l.bf16 %v11791_v11  ;;  %v2405_v43 = vsel %vm2387_vm8, %v2368_v30, %v11783_v20  ;;  %v2887_v20 = vld [vmem:[%s18264_s17 + $0x10] sm:$0xff] }
 0x14d   : > { %12080 = vrot.lane.b32.xlu0 %v12079_v42, %s18256_s8  ;;  %v2444_v3 = vsel %vm2424_vm9, %v2407_v1, %v11798_v34  ;;  %s18196_s8 = smov 32  }
 0x14e   : > { %v14459_v38 = vpop.permute.xlu1 %11805  ;;  %v2441_v13 = vsel %vm2424_vm9, %v2404_v51, %v11792_v28  ;;  %v2442_v44 = vsel %vm2424_vm9, %v2405_v43, %v11793_v27 }
 0x14f   : > { %v11801_v37 = vpop.permute.xlu0 %11800  ;;  %v11808_v19 = vunpack.i.h.bf16 %v14459_v38  ;;  %v11807_v21 = vunpack.i.l.bf16 %v14459_v38 }
 0x150   : > { %v11803_v42 = vunpack.i.h.bf16 %v11801_v37  ;;  %v11802_v36 = vunpack.i.l.bf16 %v11801_v37  ;;  %12095 = vrot.lane.b32.xlu1 %v12094_v15, %s18257_s2  ;;  %v1077_v15 = vld [vmem:[#allocation2 + $0x125] sm:$0xff] }
 0x151   : > { %12090 = vrot.lane.b32.xlu0 %v14310_v53, %s18257_s2  ;;  %v2406_v53 = vsel %vm2387_vm8, %v2369_v57, %v11787_v41  ;;  %v12109_v58 = vpack.i.bf16 %v1078_v56, %v1077_v15  ;;  %v879_v41 = vld [vmem:[#allocation2 + $0xa0] sm:$0xff]  ;;  %v880_v37 = vld [vmem:[#allocation2 + $0xa8] sm:$0xff]  ;;  %s18202_s2 = smov 16  }
 0x152   : > { %v2478_v50 = vsel %vm2461_vm1, %v2441_v13, %v11802_v36  ;;  %v2479_v55 = vsel %vm2461_vm1, %v2442_v44, %v11803_v42  ;;  %v14476_v32 = vpop.permute.xlu1 %11815  ;;  %v2443_v46 = vsel %vm2424_vm9, %v2406_v53, %v11797_v49  ;;  %v2890_v36 = vld [vmem:[%s18264_s17 + $0x28] sm:$0xff]  ;;  %v2224_v29 = vsel %vm737_vm0, %v880_v37, %v11808_v19  ;;  %v2896_v37 = vld [vmem:[%s18264_s17 + $0x58] sm:$0xff] }
 0x153   : > { %v11811_v61 = vpop.permute.xlu0 %11810  ;;  %v2506_v62 = vpack.c.bf16 %v2479_v55, %v2478_v50  ;;  %v11818_v27 = vunpack.i.h.bf16 %v14476_v32  ;;  %v11817_v28 = vunpack.i.l.bf16 %v14476_v32  ;;  %v2223_v52 = vsel %vm737_vm0, %v879_v41, %v11807_v21  ;;  %v2891_v32 = vld [vmem:[%s18264_s17 + $0x30] sm:$0xff] }
 0x154   : > { %v11813_v54 = vunpack.i.h.bf16 %v11811_v61  ;;  %v11812_v2 = vunpack.i.l.bf16 %v11811_v61  ;;  %12105 = vrot.lane.b32.xlu1 %v12104_v60, %s18258_s0  ;;  %v1114_v60 = vld [vmem:[#allocation2 + $0x12e] sm:$0xff] }
 0x155   : > { %12100 = vrot.lane.b32.xlu0 %v12099_v31, %s18258_s0  ;;  %10979 = vmatprep.mubr.msk.bf16.mxu0 %vm2530_vm10, %v2506_v62  ;;  %v12119_v40 = vpack.i.bf16 %v1114_v60, %v1113_v18  ;;  %v2226_v34 = vsel %vm737_vm0, %v882_v24, %v11818_v27  ;;  %v2225_v49 = vsel %vm737_vm0, %v881_v33, %v11817_v28  ;;  %v2892_v62 = vld [vmem:[%s18264_s17 + $0x38] sm:$0xff]  ;;  %v2893_v18 = vld [vmem:[%s18264_s17 + $0x40] sm:$0xff]  ;;  %v2895_v33 = vld [vmem:[%s18264_s17 + $0x50] sm:$0xff]  ;;  %s18208_s0 = smov 48  }
 0x156   : > { %v2481_v5 = vsel %vm2461_vm1, %v2444_v3, %v11813_v54  ;;  %v2480_v6 = vsel %vm2461_vm1, %v2443_v46, %v11812_v2  ;;  %v11826_v45 = vpop.permute.xlu1 %11825 }
 0x157   : > { %v11821_v7 = vpop.permute.xlu0 %11820  ;;  %v2507_v8 = vpack.c.bf16 %v2481_v5, %v2480_v6  ;;  %v11828_v39 = vunpack.i.h.bf16 %v11826_v45  ;;  %v11827_v30 = vunpack.i.l.bf16 %v11826_v45 }
 0x158   : > { %12115 = vrot.lane.b32.xlu1 %v12114_v63, %s18259_s1  ;;  %v11823_v51 = vunpack.i.h.bf16 %v11821_v7  ;;  %v11822_v43 = vunpack.i.l.bf16 %v11821_v7 }
 0x159   : > { %12110 = vrot.lane.b32.xlu0 %v12109_v58, %s18259_s1  ;;  %10980 = vmatmul.mubr.msk.bf16.gmra.mxu0 %vm2530_vm10, %v2507_v8  ;;  %v2262_v50 = vsel %vm2239_vm4, %v2225_v49, %v11827_v30  ;;  %v2263_v55 = vsel %vm2239_vm4, %v2226_v34, %v11828_v39  ;;  %s18200_s1 = smov 40  }
 0x15a   : > { %v11836_v47 = vpop.permute.xlu1 %11835  ;;  %v2261_v15 = vsel %vm2239_vm4, %v2224_v29, %v11823_v51  ;;  %v2260_v56 = vsel %vm2239_vm4, %v2223_v52, %v11822_v43 }
 0x15b   : > { %v11831_v31 = vpop.permute.xlu0 %11830  ;;  %v11838_v38 = vunpack.i.h.bf16 %v11836_v47  ;;  %v11837_v35 = vunpack.i.l.bf16 %v11836_v47  ;;  %v2894_v47 = vld [vmem:[%s18264_s17 + $0x48] sm:$0xff] }
 0x15c   : > { %12125 = vrot.lane.b32.xlu1 %v12124_v9, %s18261_s30  ;;  %v11833_v13 = vunpack.i.h.bf16 %v11831_v31  ;;  %v11832_v44 = vunpack.i.l.bf16 %v11831_v31 }
 0x15d   : > { %12120 = vrot.lane.b32.xlu0 %v12119_v40, %s18261_s30  ;;  %v2299_v63 = vsel %vm2276_vm5, %v2262_v50, %v11837_v35  ;;  %v2300_v53 = vsel %vm2276_vm5, %v2263_v55, %v11838_v38  ;;  %v2898_v55 = vld [vmem:[%s18264_s17 + $0x68] sm:$0xff] }
 0x15e   : > { %v14507_v11 = vpop.permute.xlu1 %11845  ;;  %v2297_v46 = vsel %vm2276_vm5, %v2260_v56, %v11832_v44  ;;  %v2298_v3 = vsel %vm2276_vm5, %v2261_v15, %v11833_v13  ;;  %v2897_v44 = vld [vmem:[%s18264_s17 + $0x60] sm:$0xff]  ;;  %v2899_v56 = vld [vmem:[%s18264_s17 + $0x70] sm:$0xff] }
 0x15f   : > { %v14512_v16 = vpop.permute.xlu0 %11840  ;;  %v11848_v48 = vunpack.i.h.bf16 %v14507_v11  ;;  %v11847_v5 = vunpack.i.l.bf16 %v14507_v11 }
 0x160   : > { %2928 = vperm.xlu1 %12130, %v2886_v10   ;;  %v11843_v57 = vunpack.i.h.bf16 %v14512_v16  ;;  %v11842_v59 = vunpack.i.l.bf16 %v14512_v16 }
 0x161   : > { %2923 = vperm.xlu0 %12129, %v2885_v14   ;;  %v2336_v24 = vsel %vm2313_vm6, %v2299_v63, %v11847_v5  ;;  %v2337_v39 = vsel %vm2313_vm6, %v2300_v53, %v11848_v48  ;;  %v2902_v53 = vld [vmem:[%s18264_s17 + $0x88] sm:$0xff] }
 0x162   : > { %v14517_v25 = vpop.permute.xlu1 %11855  ;;  %v2334_v60 = vsel %vm2313_vm6, %v2297_v46, %v11842_v59  ;;  %v2335_v7 = vsel %vm2313_vm6, %v2298_v3, %v11843_v57  ;;  %v2900_v59 = vld [vmem:[%s18264_s17 + $0x78] sm:$0xff] }
 0x163   : > { %v14522_v26 = vpop.permute.xlu0 %11850  ;;  %v11858_v8 = vunpack.i.h.bf16 %v14517_v25  ;;  %v11857_v9 = vunpack.i.l.bf16 %v14517_v25  ;;  %v2904_v46 = vld [vmem:[%s18264_s17 + $0x98] sm:$0xff] }
 0x164   : > { %2933 = vperm.xlu1 %12130, %v2887_v20   ;;  %v11853_v1 = vunpack.i.h.bf16 %v14522_v26  ;;  %v11852_v54 = vunpack.i.l.bf16 %v14522_v26 }
 0x165   : > { %2938 = vperm.xlu0 %12129, %v2888_v23   ;;  %v2373_v51 = vsel %vm2350_vm7, %v2336_v24, %v11857_v9  ;;  %v2374_v43 = vsel %vm2350_vm7, %v2337_v39, %v11858_v8  ;;  %v883_v8 = vld [vmem:[#allocation2 + $0xc0] sm:$0xff]  ;;  %v884_v9 = vld [vmem:[#allocation2 + $0xc8] sm:$0xff] }
 0x166   : > { %v14531_v42 = vpop.permute.xlu1 %11865  ;;  %v2371_v31 = vsel %vm2350_vm7, %v2334_v60, %v11852_v54  ;;  %v2372_v10 = vsel %vm2350_vm7, %v2335_v7, %v11853_v1  ;;  %v2903_v54 = vld [vmem:[%s18264_s17 + $0x90] sm:$0xff]  ;;  %v2905_v7 = vld [vmem:[%s18264_s17 + $0xa0] sm:$0xff] }
 0x167   : > { %v11861_v12 = vpop.permute.xlu0 %11860  ;;  %v11868_v11 = vunpack.i.h.bf16 %v14531_v42  ;;  %v11867_v14 = vunpack.i.l.bf16 %v14531_v42 }
 0x168   : > { %2943 = vperm.xlu1 %12130, %v2889_v22   ;;  %v11863_v58 = vunpack.i.h.bf16 %v11861_v12  ;;  %v11862_v4 = vunpack.i.l.bf16 %v11861_v12 }
 0x169   : > { %2948 = vperm.xlu0 %12129, %v2890_v36   ;;  %v2410_v38 = vsel %vm2387_vm8, %v2373_v51, %v11867_v14  ;;  %v2411_v35 = vsel %vm2387_vm8, %v2374_v43, %v11868_v11  ;;  %v2906_v11 = vld [vmem:[%s18264_s17 + $0xa8] sm:$0xff] }
 0x16a   : > { %v11876_v61 = vpop.permute.xlu1 %11875  ;;  %v2408_v20 = vsel %vm2387_vm8, %v2371_v31, %v11862_v4  ;;  %v2409_v23 = vsel %vm2387_vm8, %v2372_v10, %v11863_v58 }
 0x16b   : > { %v11871_v2 = vpop.permute.xlu0 %11870  ;;  %v11878_v27 = vunpack.i.h.bf16 %v11876_v61  ;;  %v11877_v28 = vunpack.i.l.bf16 %v11876_v61 }
 0x16c   : > { %2953 = vperm.xlu1 %12130, %v2891_v32   ;;  %v11873_v6 = vunpack.i.h.bf16 %v11871_v2  ;;  %v11872_v45 = vunpack.i.l.bf16 %v11871_v2 }
 0x16d   : > { %2958 = vperm.xlu0 %12129, %v2892_v62   ;;  %v2447_v49 = vsel %vm2424_vm9, %v2410_v38, %v11877_v28  ;;  %v2448_v13 = vsel %vm2424_vm9, %v2411_v35, %v11878_v27  ;;  %v2901_v62 = vld [vmem:[%s18264_s17 + $0x80] sm:$0xff] }
 0x16e   : > { %v14567_v40 = vpop.permute.xlu1 %11885  ;;  %v2445_v19 = vsel %vm2424_vm9, %v2408_v20, %v11872_v45  ;;  %v2446_v21 = vsel %vm2424_vm9, %v2409_v23, %v11873_v6  ;;  %v885_v6 = vld [vmem:[#allocation2 + $0xd0] sm:$0xff]  ;;  %v886_v45 = vld [vmem:[#allocation2 + $0xd8] sm:$0xff] }
 0x16f   : > { %v11881_v16 = vpop.permute.xlu0 %11880  ;;  %v11888_v48 = vunpack.i.h.bf16 %v14567_v40  ;;  %v11887_v5 = vunpack.i.l.bf16 %v14567_v40 }
 0x170   : > { %v11883_v25 = vunpack.i.h.bf16 %v11881_v16  ;;  %v11882_v26 = vunpack.i.l.bf16 %v11881_v16  ;;  %2963 = vperm.xlu1 %12130, %v2893_v18  }
 0x171   : > { %2968 = vperm.xlu0 %12129, %v2894_v47   ;;  %v2228_v27 = vsel %vm737_vm0, %v884_v9, %v11888_v48  ;;  %v2227_v28 = vsel %vm737_vm0, %v883_v8, %v11887_v5  ;;  %v2912_v9 = vld [vmem:[%s18264_s17 + $0xd8] sm:$0xff] }
 0x172   : > { %v2482_v30 = vsel %vm2461_vm1, %v2445_v19, %v11882_v26  ;;  %v2483_v22 = vsel %vm2461_vm1, %v2446_v21, %v11883_v25  ;;  %v14587_v41 = vpop.permute.xlu1 %11895 }
 0x173   : > { %v11891_v42 = vpop.permute.xlu0 %11890  ;;  %v2508_v36 = vpack.c.bf16 %v2483_v22, %v2482_v30  ;;  %v11898_v58 = vunpack.i.h.bf16 %v14587_v41  ;;  %v11897_v4 = vunpack.i.l.bf16 %v14587_v41 }
 0x174   : > { %v11893_v12 = vunpack.i.h.bf16 %v11891_v42  ;;  %v11892_v34 = vunpack.i.l.bf16 %v11891_v42  ;;  %2973 = vperm.xlu1 %12130, %v2895_v33   ;;  %v2907_v33 = vld [vmem:[%s18264_s17 + $0xb0] sm:$0xff] }
 0x175   : > { %2978 = vperm.xlu0 %12129, %v2896_v37   ;;  %10983 = vmatprep.mubr.msk.bf16.mxu0 %vm2530_vm10, %v2508_v36  ;;  %v2230_v20 = vsel %vm737_vm0, %v886_v45, %v11898_v58  ;;  %v2229_v23 = vsel %vm737_vm0, %v885_v6, %v11897_v4  ;;  %v2908_v37 = vld [vmem:[%s18264_s17 + $0xb8] sm:$0xff]  ;;  %v2911_v6 = vld [vmem:[%s18264_s17 + $0xd0] sm:$0xff] }
 0x176   : > { %v2485_v29 = vsel %vm2461_vm1, %v2448_v13, %v11893_v12  ;;  %v2484_v52 = vsel %vm2461_vm1, %v2447_v49, %v11892_v34  ;;  %v11906_v50 = vpop.permute.xlu1 %11905 }
 0x177   : > { %v11901_v32 = vpop.permute.xlu0 %11900  ;;  %v2509_v15 = vpack.c.bf16 %v2485_v29, %v2484_v52  ;;  %v11908_v18 = vunpack.i.h.bf16 %v11906_v50  ;;  %v11907_v60 = vunpack.i.l.bf16 %v11906_v50  ;;  %v2909_v50 = vld [vmem:[%s18264_s17 + $0xc0] sm:$0xff] }
 0x178   : > { %2983 = vperm.xlu1 %12130, %v2897_v44   ;;  %v11903_v47 = vunpack.i.h.bf16 %v11901_v32  ;;  %v11902_v31 = vunpack.i.l.bf16 %v11901_v32 }
 0x179   : > { %2988 = vperm.xlu0 %12129, %v2898_v55   ;;  %10984 = vmatmul.mubr.msk.bf16.gmra.mxu0 %vm2530_vm10, %v2509_v15  ;;  %v2266_v19 = vsel %vm2239_vm4, %v2229_v23, %v11907_v60  ;;  %v2267_v21 = vsel %vm2239_vm4, %v2230_v20, %v11908_v18 }
 0x17a   : > { %v11916_v57 = vpop.permute.xlu1 %11915  ;;  %v2265_v24 = vsel %vm2239_vm4, %v2228_v27, %v11903_v47  ;;  %v2264_v39 = vsel %vm2239_vm4, %v2227_v28, %v11902_v31 }
 0x17b   : > { %v11911_v61 = vpop.permute.xlu0 %11910  ;;  %v11918_v40 = vunpack.i.h.bf16 %v11916_v57  ;;  %v11917_v14 = vunpack.i.l.bf16 %v11916_v57 }
 0x17c   : > { %2993 = vperm.xlu1 %12130, %v2899_v56   ;;  %v11913_v25 = vunpack.i.h.bf16 %v11911_v61  ;;  %v11912_v26 = vunpack.i.l.bf16 %v11911_v61 }
 0x17d   : > { %2998 = vperm.xlu0 %12129, %v2900_v59   ;;  %v2303_v51 = vsel %vm2276_vm5, %v2266_v19, %v11917_v14  ;;  %v2304_v43 = vsel %vm2276_vm5, %v2267_v21, %v11918_v40  ;;  %v2910_v59 = vld [vmem:[%s18264_s17 + $0xc8] sm:$0xff] }
 0x17e   : > { %v14617_v63 = vpop.permute.xlu1 %11925  ;;  %v2301_v35 = vsel %vm2276_vm5, %v2264_v39, %v11912_v26  ;;  %v2302_v12 = vsel %vm2276_vm5, %v2265_v24, %v11913_v25  ;;  %v2913_v26 = vld [vmem:[%s18264_s17 + $0xe0] sm:$0xff]  ;;  %v2914_v21 = vld [vmem:[%s18264_s17 + $0xe8] sm:$0xff]  ;;  %v2915_v39 = vld [vmem:[%s18264_s17 + $0xf0] sm:$0xff] }
 0x17f   : > { %v14622_v1 = vpop.permute.xlu0 %11920  ;;  %v11928_v13 = vunpack.i.h.bf16 %v14617_v63  ;;  %v11927_v44 = vunpack.i.l.bf16 %v14617_v63 }
 0x180   : > { %3003 = vperm.xlu1 %12130, %v2901_v62   ;;  %v11923_v30 = vunpack.i.h.bf16 %v14622_v1  ;;  %v11922_v22 = vunpack.i.l.bf16 %v14622_v1 }
 0x181   : > { %3008 = vperm.xlu0 %12129, %v2902_v53   ;;  %v2340_v45 = vsel %vm2313_vm6, %v2303_v51, %v11927_v44  ;;  %v2341_v18 = vsel %vm2313_vm6, %v2304_v43, %v11928_v13  ;;  %v2918_v43 = vld [vmem:[%s18264_s17 + $0x108] sm:$0xff] }
 0x182   : > { %v14627_v2 = vpop.permute.xlu1 %11935  ;;  %v2338_v55 = vsel %vm2313_vm6, %v2301_v35, %v11922_v22  ;;  %v2339_v32 = vsel %vm2313_vm6, %v2302_v12, %v11923_v30  ;;  %v2916_v22 = vld [vmem:[%s18264_s17 + $0xf8] sm:$0xff]  ;;  %v2919_v35 = vld [vmem:[%s18264_s17 + $0x110] sm:$0xff] }
 0x183   : > { %v14632_v3 = vpop.permute.xlu0 %11930  ;;  %v11938_v15 = vunpack.i.h.bf16 %v14627_v2  ;;  %v11937_v56 = vunpack.i.l.bf16 %v14627_v2 }
 0x184   : > { %3013 = vperm.xlu1 %12130, %v2903_v54   ;;  %v11933_v42 = vunpack.i.h.bf16 %v14632_v3  ;;  %v11932_v36 = vunpack.i.l.bf16 %v14632_v3 }
 0x185   : > { %3018 = vperm.xlu0 %12129, %v2904_v46   ;;  %v2377_v47 = vsel %vm2350_vm7, %v2340_v45, %v11937_v56  ;;  %v2378_v31 = vsel %vm2350_vm7, %v2341_v18, %v11938_v15  ;;  %v889_v15 = vld [vmem:[#allocation2 + $0xf0] sm:$0xff]  ;;  %v890_v56 = vld [vmem:[#allocation2 + $0xf8] sm:$0xff] }
 0x186   : > { %v14641_v10 = vpop.permute.xlu1 %11945  ;;  %v2375_v61 = vsel %vm2350_vm7, %v2338_v55, %v11932_v36  ;;  %v2376_v62 = vsel %vm2350_vm7, %v2339_v32, %v11933_v42  ;;  %v3217_v42 = vld [vmem:[#allocation3 + $0x1] sm:$0xff]  ;;  %v3218_v36 = vld [vmem:[#allocation3 + $0x9] sm:$0xff] }
 0x187   : > { %v11941_v16 = vpop.permute.xlu0 %11940  ;;  %v11948_v63 = vunpack.i.h.bf16 %v14641_v10  ;;  %v11947_v53 = vunpack.i.l.bf16 %v14641_v10  ;;  %v12131_v12 = vpack.i.bf16 %v3218_v36, %v3217_v42 }
 0x188   : > { %3023 = vperm.xlu1 %12130, %v2905_v7   ;;  %v11943_v34 = vunpack.i.h.bf16 %v11941_v16  ;;  %v11942_v49 = vunpack.i.l.bf16 %v11941_v16 }
 0x189   : > { %3028 = vperm.xlu0 %12129, %v2906_v11   ;;  %v2414_v40 = vsel %vm2387_vm8, %v2377_v47, %v11947_v53  ;;  %v2415_v14 = vsel %vm2387_vm8, %v2378_v31, %v11948_v63  ;;  %v888_v63 = vld [vmem:[#allocation2 + $0xe8] sm:$0xff] }
 0x18a   : > { %v11956_v41 = vpop.permute.xlu1 %11955  ;;  %v2412_v54 = vsel %vm2387_vm8, %v2375_v61, %v11942_v49  ;;  %v2413_v46 = vsel %vm2387_vm8, %v2376_v62, %v11943_v34  ;;  %v3253_v34 = vld [vmem:[#allocation3 + $0x2] sm:$0xff]  ;;  %v3254_v49 = vld [vmem:[#allocation3 + $0xa] sm:$0xff]  ;;  %v887_v62 = vld [vmem:[#allocation2 + $0xe0] sm:$0xff] }
 0x18b   : > { %v11951_v38 = vpop.permute.xlu0 %11950  ;;  %v11958_v58 = vunpack.i.h.bf16 %v11956_v41  ;;  %v11957_v4 = vunpack.i.l.bf16 %v11956_v41 }
 0x18c   : > { %3033 = vperm.xlu1 %12130, %v2907_v33   ;;  %v11953_v29 = vunpack.i.h.bf16 %v11951_v38  ;;  %v11952_v52 = vunpack.i.l.bf16 %v11951_v38 }
 0x18d   : > { %3038 = vperm.xlu0 %12129, %v2908_v37   ;;  %v2451_v23 = vsel %vm2424_vm9, %v2414_v40, %v11957_v4  ;;  %v2452_v25 = vsel %vm2424_vm9, %v2415_v14, %v11958_v58  ;;  %v2917_v37 = vld [vmem:[%s18264_s17 + $0x100] sm:$0xff] }
 0x18e   : > { %v14677_v57 = vpop.permute.xlu1 %11965  ;;  %v2449_v48 = vsel %vm2424_vm9, %v2412_v54, %v11952_v52  ;;  %v2450_v5 = vsel %vm2424_vm9, %v2413_v46, %v11953_v29 }
 0x18f   : > { %v11961_v1 = vpop.permute.xlu0 %11960  ;;  %v11968_v55 = vunpack.i.h.bf16 %v14677_v57  ;;  %v11967_v32 = vunpack.i.l.bf16 %v14677_v57 }
 0x190   : > { %v11963_v2 = vunpack.i.h.bf16 %v11961_v1  ;;  %v11962_v3 = vunpack.i.l.bf16 %v11961_v1  ;;  %3043 = vperm.xlu1 %12130, %v2909_v50   ;;  %v12141_v50 = vpack.i.bf16 %v3254_v49, %v3253_v34 }
 0x191   : > { %3048 = vperm.xlu0 %12129, %v2910_v59  }
 0x192   : > { %v2486_v60 = vsel %vm2461_vm1, %v2449_v48, %v11962_v3  ;;  %v2487_v7 = vsel %vm2461_vm1, %v2450_v5, %v11963_v2  ;;  %v14697_v8 = vpop.permute.xlu1 %11975  ;;  %v2232_v5 = vsel %vm737_vm0, %v888_v63, %v11968_v55 }
 0x193   : > { %v11971_v10 = vpop.permute.xlu0 %11970  ;;  %v2510_v11 = vpack.c.bf16 %v2487_v7, %v2486_v60  ;;  %v11978_v29 = vunpack.i.h.bf16 %v14697_v8  ;;  %v11977_v52 = vunpack.i.l.bf16 %v14697_v8 }
 0x194   : > { %v11973_v16 = vunpack.i.h.bf16 %v11971_v10  ;;  %v11972_v20 = vunpack.i.l.bf16 %v11971_v10  ;;  %3053 = vperm.xlu1 %12130, %v2911_v6   ;;  %v2231_v6 = vsel %vm737_vm0, %v887_v62, %v11967_v32 }
 0x195   : > { %3058 = vperm.xlu0 %12129, %v2912_v9   ;;  %10987 = vmatprep.mubr.msk.bf16.mxu0 %vm2530_vm10, %v2510_v11  ;;  %v2234_v58 = vsel %vm737_vm0, %v890_v56, %v11978_v29  ;;  %v2233_v4 = vsel %vm737_vm0, %v889_v15, %v11977_v52 }
 0x196   : > { %v2489_v27 = vsel %vm2461_vm1, %v2452_v25, %v11973_v16  ;;  %v2488_v28 = vsel %vm2461_vm1, %v2451_v23, %v11972_v20  ;;  %v11986_v19 = vpop.permute.xlu1 %11985 }
 0x197   : > { %v11981_v33 = vpop.permute.xlu0 %11980  ;;  %v2511_v24 = vpack.c.bf16 %v2489_v27, %v2488_v28  ;;  %v11988_v59 = vunpack.i.h.bf16 %v11986_v19  ;;  %v11987_v61 = vunpack.i.l.bf16 %v11986_v19 }
 0x198   : > { %3063 = vperm.xlu1 %12130, %v2913_v26   ;;  %v11983_v53 = vunpack.i.h.bf16 %v11981_v33  ;;  %v11982_v1 = vunpack.i.l.bf16 %v11981_v33 }
 0x199   : > { %3068 = vperm.xlu0 %12129, %v2914_v21   ;;  %10988 = vmatmul.mubr.msk.bf16.gmra.mxu0 %vm2530_vm10, %v2511_v24  ;;  %v2270_v45 = vsel %vm2239_vm4, %v2233_v4, %v11987_v61  ;;  %v2271_v18 = vsel %vm2239_vm4, %v2234_v58, %v11988_v59 }
 0x19a   : > { %v11996_v30 = vpop.permute.xlu1 %11995  ;;  %v2269_v60 = vsel %vm2239_vm4, %v2232_v5, %v11983_v53  ;;  %v2268_v7 = vsel %vm2239_vm4, %v2231_v6, %v11982_v1  ;;  %v10965_v1 = vpop.f32.mrf.mxu0 }
 0x19b   : > { %v11991_v41 = vpop.permute.xlu0 %11990  ;;  %v11998_v46 = vunpack.i.h.bf16 %v11996_v30  ;;  %v11997_v2 = vunpack.i.l.bf16 %v11996_v30 }
 0x19c   : > { %3073 = vperm.xlu1 %12130, %v2915_v39   ;;  %v11993_v48 = vunpack.i.h.bf16 %v11991_v41  ;;  %v11992_v57 = vunpack.i.l.bf16 %v11991_v41 }
 0x19d   : > { %3078 = vperm.xlu0 %12129, %v2916_v22   ;;  %v2307_v31 = vsel %vm2276_vm5, %v2270_v45, %v11997_v2  ;;  %v2308_v10 = vsel %vm2276_vm5, %v2271_v18, %v11998_v46 }
 0x19e   : > { %v14727_v51 = vpop.permute.xlu1 %12005  ;;  %v2305_v16 = vsel %vm2276_vm5, %v2268_v7, %v11992_v57  ;;  %v2306_v20 = vsel %vm2276_vm5, %v2269_v60, %v11993_v48  ;;  %v2626_v57 = vpop.f32.mrf.mxu0  ;;  %v14788_v7 = vld [vmem:[%s18265_s9] ss:$0 sm:$0xff] }
 0x19f   : > { %v12001_v38 = vpop.permute.xlu0 %12000  ;;  %v12008_v26 = vunpack.i.h.bf16 %v14727_v51  ;;  %v12007_v27 = vunpack.i.l.bf16 %v14727_v51 }
 0x1a0   : > { %3083 = vperm.xlu1 %12130, %v2917_v37   ;;  %v12003_v8 = vunpack.i.h.bf16 %v12001_v38  ;;  %v12002_v9 = vunpack.i.l.bf16 %v12001_v38  ;;  %v14783_v45 = vpop.f32.mrf.mxu0 }
 0x1a1   : > { %3088 = vperm.xlu0 %12129, %v2918_v43   ;;  %v2345_v29 = vsel %vm2313_vm6, %v2308_v10, %v12008_v26  ;;  %v892_v26 = vld [vmem:[#allocation2 + $0x108] sm:$0xff] }
 0x1a2   : > { %v14735_v13 = vpop.permute.xlu1 %12015  ;;  %v2342_v21 = vsel %vm2313_vm6, %v2305_v16, %v12002_v9  ;;  %v2343_v33 = vsel %vm2313_vm6, %v2306_v20, %v12003_v8  ;;  %v2629_v8 = vpop.f32.mrf.mxu0 }
 0x1a3   : > { %v12011_v44 = vpop.permute.xlu0 %12010  ;;  %v12018_v24 = vunpack.i.h.bf16 %v14735_v13  ;;  %v12017_v39 = vunpack.i.l.bf16 %v14735_v13 }
 0x1a4   : > { %3093 = vperm.xlu1 %12130, %v2919_v35   ;;  %v12013_v11 = vunpack.i.h.bf16 %v12011_v44  ;;  %v12012_v40 = vunpack.i.l.bf16 %v12011_v44  ;;  %v2344_v44 = vsel %vm2313_vm6, %v2307_v31, %v12007_v27 }
 0x1a5   : > { %12132 = vrot.lane.b32.xlu0 %v12131_v12, %s18261_s30  ;;  %v2381_v32 = vsel %vm2350_vm7, %v2344_v44, %v12017_v39  ;;  %v2382_v15 = vsel %vm2350_vm7, %v2345_v29, %v12018_v24 }
 0x1a6   : > { %v12026_v54 = vpop.permute.xlu1 %12025  ;;  %v2379_v22 = vsel %vm2350_vm7, %v2342_v21, %v12012_v40  ;;  %v2380_v41 = vsel %vm2350_vm7, %v2343_v33, %v12013_v11  ;;  %v893_v11 = vld [vmem:[#allocation2 + $0x110] sm:$0xff]  ;;  %v894_v40 = vld [vmem:[#allocation2 + $0x118] sm:$0x3f]  ;;  %v14796_v21 = vadd.f32 %v14788_v7, %v2626_v57  ;;  %v14799_v33 = vadd.f32 %v14788_v7, %v2629_v8 }
 0x1a7   : > { %v12021_v3 = vpop.permute.xlu0 %12020  ;;  %v12028_v37 = vunpack.i.h.bf16 %v12026_v54  ;;  %v12027_v43 = vunpack.i.l.bf16 %v12026_v54 }
 0x1a8   : > { %v12023_v23 = vunpack.i.h.bf16 %v12021_v3  ;;  %v12022_v25 = vunpack.i.l.bf16 %v12021_v3 }
 0x1a9   : > { %12142 = vrot.lane.b32.xlu0 %v12141_v50, %s18202_s2  ;;  %v2418_v61 = vsel %vm2387_vm8, %v2381_v32, %v12027_v43  ;;  %v2419_v62 = vsel %vm2387_vm8, %v2382_v15, %v12028_v37 }
 0x1aa   : > { %v12036_v47 = vpop.permute.xlu1 %12035  ;;  %v2416_v51 = vsel %vm2387_vm8, %v2379_v22, %v12022_v25  ;;  %v2417_v36 = vsel %vm2387_vm8, %v2380_v41, %v12023_v23  ;;  %v14793_v23 = vadd.f32 %v10965_v1, %v14788_v7  ;;  %v891_v25 = vld [vmem:[#allocation2 + $0x100] sm:$0xff] }
 0x1ab   : > { %v12031_v14 = vpop.permute.xlu0 %12030  ;;  %v12038_v12 = vunpack.i.h.bf16 %v12036_v47  ;;  %v12037_v34 = vunpack.i.l.bf16 %v12036_v47 }
 0x1ac   : > { %v12033_v28 = vunpack.i.h.bf16 %v12031_v14  ;;  %v12032_v19 = vunpack.i.l.bf16 %v12031_v14 }
 0x1ad   : > { %v2455_v54 = vsel %vm2424_vm9, %v2418_v61, %v12037_v34  ;;  %v2456_v46 = vsel %vm2424_vm9, %v2419_v62, %v12038_v12 }
 0x1ae   : > { %v14761_v30 = vpop.permute.xlu1 %12045  ;;  %v2453_v49 = vsel %vm2424_vm9, %v2416_v51, %v12032_v19  ;;  %v2454_v13 = vsel %vm2424_vm9, %v2417_v36, %v12033_v28 }
 0x1af   : > { %v12041_v42 = vpop.permute.xlu0 %12040  ;;  %v12048_v31 = vunpack.i.h.bf16 %v14761_v30  ;;  %v12047_v10 = vunpack.i.l.bf16 %v14761_v30 }
 0x1b0   : > { %v12043_v38 = vunpack.i.h.bf16 %v12041_v42  ;;  %v12042_v35 = vunpack.i.l.bf16 %v12041_v42 }
 0x1b1   : > { %v2236_v43 = vsel %vm737_vm0, %v892_v26, %v12048_v31  ;;  %v2235_v42 = vsel %vm737_vm0, %v891_v25, %v12047_v10 }
 0x1b2   : > { %v2490_v52 = vsel %vm2461_vm1, %v2453_v49, %v12042_v35  ;;  %v2491_v50 = vsel %vm2461_vm1, %v2454_v13, %v12043_v38  ;;  %v12056_v55 = vpop.permute.xlu1 %12055 }
 0x1b3   : > { %v12051_v56 = vpop.permute.xlu0 %12050  ;;  %v2512_v59 = vpack.c.bf16 %v2491_v50, %v2490_v52  ;;  %v12058_v9 = vunpack.i.h.bf16 %v12056_v55  ;;  %v12057_v47 = vunpack.i.l.bf16 %v12056_v55 }
 0x1b4   : > { %v12053_v63 = vunpack.i.h.bf16 %v12051_v56  ;;  %v12052_v53 = vunpack.i.l.bf16 %v12051_v56 }
 0x1b5   : > { %10991 = vmatprep.mubr.msk.bf16.mxu0 %vm2530_vm10, %v2512_v59  ;;  %v2238_v30 = vsel %vm737_vm0, %v894_v40, %v12058_v9  ;;  %v2237_v22 = vsel %vm737_vm0, %v893_v11, %v12057_v47  ;;  %vm4672_vm0 = vcmask 326656  }
 0x1b6   : > { %v2493_v2 = vsel %vm2461_vm1, %v2456_v46, %v12053_v63  ;;  %v2492_v3 = vsel %vm2461_vm1, %v2455_v54, %v12052_v53  ;;  %v12066_v58 = vpop.permute.xlu1 %12065 }
 0x1b7   : > { %v12061_v4 = vpop.permute.xlu0 %12060  ;;  %v2513_v48 = vpack.c.bf16 %v2493_v2, %v2492_v3  ;;  %v12068_v14 = vunpack.i.h.bf16 %v12066_v58  ;;  %v12067_v16 = vunpack.i.l.bf16 %v12066_v58 }
 0x1b8   : > { %v12063_v27 = vunpack.i.h.bf16 %v12061_v4  ;;  %v12062_v28 = vunpack.i.l.bf16 %v12061_v4 }
 0x1b9   : > { %10992 = vmatmul.mubr.msk.bf16.gmra.mxu0 %vm2530_vm10, %v2513_v48  ;;  %v2274_v51 = vsel %vm2239_vm4, %v2237_v22, %v12067_v16  ;;  %v2275_v36 = vsel %vm2239_vm4, %v2238_v30, %v12068_v14  ;;  %v14809_v44 = vpop.f32.mrf.mxu0 }
 0x1ba   : > { %v12076_v5 = vpop.permute.xlu1 %12075  ;;  %v2273_v35 = vsel %vm2239_vm4, %v2236_v43, %v12063_v27  ;;  %v2272_v12 = vsel %vm2239_vm4, %v2235_v42, %v12062_v28  ;;  %v2770_v43 = vmax.f32 %v14799_v33, 0.0  ;;  %v2771_v33 = vmax.f32 %v14793_v23, 0.0  ;;  %v14858_v23 = vld [vmem:[%s18265_s9 + $0x2] ss:$0 sm:$0xff] }
 0x1bb   : > { %v12071_v6 = vpop.permute.xlu0 %12070  ;;  %v12078_v24 = vunpack.i.h.bf16 %v12076_v5  ;;  %v12077_v39 = vunpack.i.l.bf16 %v12076_v5  ;;  %v2642_v4 = vpop.f32.mrf.mxu0  ;;  %vm4746_vm4 = vcmask 457728  }
 0x1bc   : > { %v12073_v41 = vunpack.i.h.bf16 %v12071_v6  ;;  %v12072_v37 = vunpack.i.l.bf16 %v12071_v6 }
 0x1bd   : > { %v2311_v29 = vsel %vm2276_vm5, %v2274_v51, %v12077_v39  ;;  %v2312_v52 = vsel %vm2276_vm5, %v2275_v36, %v12078_v24  ;;  %v10970_v27 = vpop.f32.mrf.mxu0 }
 0x1be   : > { %v12086_v18 = vpop.permute.xlu1 %12085  ;;  %v2309_v32 = vsel %vm2276_vm5, %v2272_v12, %v12072_v37  ;;  %v2310_v15 = vsel %vm2276_vm5, %v2273_v35, %v12073_v41  ;;  %v2638_v35 = vadd.f32 %v14783_v45, %v14788_v7  ;;  %vm4783_vm5 = vcmask 523264  }
 0x1bf   : > { %v12081_v60 = vpop.permute.xlu0 %12080  ;;  %v12088_v34 = vunpack.i.h.bf16 %v12086_v18  ;;  %v12087_v49 = vunpack.i.l.bf16 %v12086_v18 }
 0x1c0   : > { %v12083_v50 = vunpack.i.h.bf16 %v12081_v60  ;;  %v12082_v55 = vunpack.i.l.bf16 %v12081_v60 }
 0x1c1   : > { %v2348_v54 = vsel %vm2313_vm6, %v2311_v29, %v12087_v49  ;;  %v2349_v46 = vsel %vm2313_vm6, %v2312_v52, %v12088_v34  ;;  %v2645_v34 = vpop.f32.mrf.mxu0  ;;  %v14842_v49 = vld [vmem:[%s18265_s9 + $0x1] ss:$0 sm:$0xff]  ;;  %v2643_v29 = vadd.f32 %v14788_v7, %v2642_v4 }
 0x1c2   : > { %v12096_v20 = vpop.permute.xlu1 %12095  ;;  %v2346_v48 = vsel %vm2313_vm6, %v2309_v32, %v12082_v55  ;;  %v2347_v57 = vsel %vm2313_vm6, %v2310_v15, %v12083_v50  ;;  %v2646_v52 = vadd.f32 %v14788_v7, %v2645_v34  ;;  %v2811_v55 = vmul.f32 %v14842_v49, %v2771_v33 }
 0x1c3   : > { %v12091_v19 = vpop.permute.xlu0 %12090  ;;  %v12098_v56 = vunpack.i.h.bf16 %v12096_v20  ;;  %v12097_v59 = vunpack.i.l.bf16 %v12096_v20  ;;  %v2651_v32 = vadd.f32 %v14809_v44, %v14788_v7  ;;  %v2773_v15 = vmax.f32 %v2643_v29, 0.0 }
 0x1c4   : > { %v12093_v61 = vunpack.i.h.bf16 %v12091_v19  ;;  %v12092_v62 = vunpack.i.l.bf16 %v12091_v19  ;;  %vm4881_vm6 = vcmask 588800  }
 0x1c5   : > { %v2385_v18 = vsel %vm2350_vm7, %v2348_v54, %v12097_v59  ;;  %v2386_v60 = vsel %vm2350_vm7, %v2349_v46, %v12098_v56  ;;  %v2813_v4 = vmul.f32 %v14842_v49, %v2773_v15 }
 0x1c6   : > { %v12106_v38 = vpop.permute.xlu1 %12105  ;;  %v2383_v47 = vsel %vm2350_vm7, %v2346_v48, %v12092_v62  ;;  %v2384_v31 = vsel %vm2350_vm7, %v2347_v57, %v12093_v61  ;;  %v2654_v61 = vadd.f32 %v10970_v27, %v14788_v7  ;;  %v2774_v62 = vmax.f32 %v2646_v52, 0.0 }
 0x1c7   : > { %v12101_v13 = vpop.permute.xlu0 %12100  ;;  %v12108_v63 = vunpack.i.h.bf16 %v12106_v38  ;;  %v12107_v53 = vunpack.i.l.bf16 %v12106_v38  ;;  %v2769_v38 = vmax.f32 %v14796_v21, 0.0  ;;  %v2772_v21 = vmax.f32 %v2638_v35, 0.0 }
 0x1c8   : > { %v12103_v2 = vunpack.i.h.bf16 %v12101_v13  ;;  %v12102_v3 = vunpack.i.l.bf16 %v12101_v13  ;;  %v2810_v13 = vmul.f32 %v14842_v49, %v2770_v43  ;;  %v2851_v48 = vadd.f32 %v14858_v23, %v2811_v55 }
 0x1c9   : > { %v2422_v10 = vsel %vm2387_vm8, %v2385_v18, %v12107_v53  ;;  %v2423_v11 = vsel %vm2387_vm8, %v2386_v60, %v12108_v63  ;;  %v2809_v45 = vmul.f32 %v14842_v49, %v2769_v38  ;;  %v2812_v59 = vmul.f32 %v14842_v49, %v2772_v21  ;;  %v13332_v21 = vld [vmem:[%s18266_s29 + $0x20] ss:$0 sps:$4 sm:$0xff]  }
 0x1ca   : > { %v12116_v1 = vpop.permute.xlu1 %12115  ;;  %v2420_v14 = vsel %vm2387_vm8, %v2383_v47, %v12102_v3  ;;  %v2421_v16 = vsel %vm2387_vm8, %v2384_v31, %v12103_v2  ;;  %v2850_v56 = vadd.f32 %v14858_v23, %v2810_v13  ;;  %v2776_v57 = vmax.f32 %v2654_v61, 0.0  ;;  %11347 = vmatprep.subr.msk.bf16.mxu1 %vm2585_vm2, %v13332_v21 }
 0x1cb   : > { %v12111_v58 = vpop.permute.xlu0 %12110  ;;  %v12118_v5 = vunpack.i.h.bf16 %v12116_v1  ;;  %v12117_v6 = vunpack.i.l.bf16 %v12116_v1  ;;  %v2849_v1 = vadd.f32 %v14858_v23, %v2809_v45  ;;  %v2852_v60 = vadd.f32 %v14858_v23, %v2812_v59 }
 0x1cc   : > { %v12113_v8 = vunpack.i.h.bf16 %v12111_v58  ;;  %v12112_v9 = vunpack.i.l.bf16 %v12111_v58  ;;  %v2775_v58 = vmax.f32 %v2651_v32, 0.0  ;;  %v4937_v32 = vsel %vm2585_vm2, %v13332_v21, 0 }
 0x1cd   : > { %v2459_v28 = vsel %vm2424_vm9, %v2422_v10, %v12117_v6  ;;  %v2460_v19 = vsel %vm2424_vm9, %v2423_v11, %v12118_v5  ;;  %v2814_v5 = vmul.f32 %v14842_v49, %v2774_v62  ;;  %11000 = vmatpush3.bf16.msra.mxu1 %v4937_v32  ;;  %vm3179_vm7 = vcmask 62464  }
 0x1ce   : > { %v12126_v40 = vpop.permute.xlu1 %12125  ;;  %v2457_v30 = vsel %vm2424_vm9, %v2420_v14, %v12112_v9  ;;  %v2458_v22 = vsel %vm2424_vm9, %v2421_v16, %v12113_v8  ;;  %v2815_v10 = vmul.f32 %v14842_v49, %v2775_v58  ;;  %v2853_v14 = vadd.f32 %v14858_v23, %v2813_v4 }
 0x1cf   : > { %v12128_v20 = vunpack.i.h.bf16 %v12126_v40  ;;  %v12127_v25 = vunpack.i.l.bf16 %v12126_v40  ;;  %v12121_v26 = vpop.permute.xlu0 %12120  ;;  %v2816_v16 = vmul.f32 %v14842_v49, %v2776_v57  ;;  %v2854_v27 = vadd.f32 %v14858_v23, %v2814_v5 }
 0x1d0   : > { %v12123_v24 = vunpack.i.h.bf16 %v12121_v26  ;;  %v12122_v39 = vunpack.i.l.bf16 %v12121_v26  ;;  %vm5262_vm8 = vcmask 244736   ;;  %vm5293_vm9 = vcmask 1045504  }
 0x1d1   : > { %v2496_v41 = vsel %vm2461_vm1, %v2459_v28, %v12127_v25  ;;  %v2497_v37 = vsel %vm2461_vm1, %v2460_v19, %v12128_v20  ;;  %v2856_v38 = vadd.f32 %v14858_v23, %v2816_v16 }
 0x1d2   : > { %v2494_v42 = vsel %vm2461_vm1, %v2457_v30, %v12122_v39  ;;  %v2495_v51 = vsel %vm2461_vm1, %v2458_v22, %v12123_v24  ;;  %v2515_v36 = vpack.c.bf16 %v2497_v37, %v2496_v41  ;;  %v2855_v22 = vadd.f32 %v14858_v23, %v2815_v10 }
 0x1d3   : > { %v2514_v12 = vpack.c.bf16 %v2495_v51, %v2494_v42 }
 0x1d5   : > { %10995 = vmatprep.mubr.msk.bf16.mxu0 %vm2530_vm10, %v2514_v12 }
 0x1d6   : > { %10996 = vmatmul.mubr.msk.bf16.gmra.mxu0 %vm2530_vm10, %v2515_v36  ;;  %vm7163_vm10 = vcmask 128000  }
 0x1d9   : > { %v10973_v50 = vpop.f32.mrf.mxu0 }
 0x1da   : > { %v2667_v11 = vadd.f32 %v10973_v50, %v14788_v7 }
 0x1db   : > { %v2658_v63 = vpop.f32.mrf.mxu0  ;;  %v2929_v53 = vpop.permute.xlu1 %2928 }
 0x1dc   : > { %v3102_v54 = vmul.f32 %v2929_v53, %v2850_v56  ;;  %v2924_v46 = vpop.permute.xlu0 %2923  ;;  %v2659_v44 = vadd.f32 %v14788_v7, %v2658_v63  ;;  %v2779_v39 = vmax.f32 %v2667_v11, 0.0 }
 0x1dd   : > { %v3101_v2 = vmul.f32 %v2924_v46, %v2849_v1  ;;  %v10974_v3 = vpop.f32.mrf.mxu0  ;;  %v13333_v1 = vld [vmem:[%s18266_s29 + $0x18] sm:$0xff]  }
 0x1de   : > { %3145 = vst.msk [vmem:[#allocation3 + $0x1b] sm:$0xff] %vm2461_vm1, %v3102_v54  ;;  %v2777_v40 = vmax.f32 %v2659_v44, 0.0  ;;  %v2670_v20 = vadd.f32 %v10974_v3, %v14788_v7  ;;  %v2819_v50 = vmul.f32 %v14842_v49, %v2779_v39  ;;  %11001 = vmatprep.subr.bf16.mxu1 %v13333_v1 }
 0x1df   : > { %3144 = vst.msk [vmem:[#allocation3 + $0x13] sm:$0xff] %vm2461_vm1, %v3101_v2  ;;  %v2661_v6 = vpop.f32.mrf.mxu0  ;;  %v2934_v18 = vpop.permute.xlu1 %2933  ;;  %11002 = vmatpush3.bf16.msra.mxu1 %v13333_v1 }
 0x1e0   : > { %v2662_v8 = vadd.f32 %v14788_v7, %v2661_v6  ;;  %v3103_v9 = vmul.f32 %v2934_v18, %v2851_v48  ;;  %v2939_v47 = vpop.permute.xlu0 %2938  ;;  %v2817_v30 = vmul.f32 %v14842_v49, %v2777_v40  ;;  %v2780_v42 = vmax.f32 %v2670_v20, 0.0 }
 0x1e1   : > { %v3104_v31 = vmul.f32 %v2939_v47, %v2852_v60  ;;  %v2859_v3 = vadd.f32 %v14858_v23, %v2819_v50 }
 0x1e2   : > { %3146 = vst.msk [vmem:[#allocation3 + $0x23] sm:$0xff] %vm2461_vm1, %v3103_v9  ;;  %v2778_v25 = vmax.f32 %v2662_v8, 0.0  ;;  %v2857_v55 = vadd.f32 %v14858_v23, %v2817_v30  ;;  %v2820_v15 = vmul.f32 %v14842_v49, %v2780_v42 }
 0x1e3   : > { %3147 = vst.msk [vmem:[#allocation3 + $0x2b] sm:$0xff] %vm2461_vm1, %v3104_v31  ;;  %v2944_v26 = vpop.permute.xlu1 %2943 }
 0x1e4   : > { %v3105_v28 = vmul.f32 %v2944_v26, %v2853_v14  ;;  %v2949_v19 = vpop.permute.xlu0 %2948  ;;  %v2818_v51 = vmul.f32 %v14842_v49, %v2778_v25  ;;  %v2860_v44 = vadd.f32 %v14858_v23, %v2820_v15 }
 0x1e5   : > { %v3106_v24 = vmul.f32 %v2949_v19, %v2854_v27  ;;  %v3293_v45 = vld [vmem:[#allocation3 + $0x1b] sm:$0xff] }
 0x1e6   : > { %3148 = vst.msk [vmem:[#allocation3 + $0x33] sm:$0xff] %vm2461_vm1, %v3105_v28  ;;  %v3255_v41 = vld [vmem:[#allocation3 + $0x12] sm:$0xff]  ;;  %v3256_v37 = vld [vmem:[#allocation3 + $0x1a] sm:$0xff]  ;;  %v2858_v59 = vadd.f32 %v14858_v23, %v2818_v51  ;;  %v13334_v51 = vld [vmem:[%s18266_s29 + $0x10] sm:$0xff]  }
 0x1e7   : > { %v3219_v43 = vld [vmem:[#allocation3 + $0x11] sm:$0xff]  ;;  %3149 = vst.msk [vmem:[#allocation3 + $0x3b] sm:$0xff] %vm2461_vm1, %v3106_v24  ;;  %v2954_v36 = vpop.permute.xlu1 %2953  ;;  %v12151_v35 = vpack.i.bf16 %v3256_v37, %v3255_v41  ;;  %v3220_v12 = vld [vmem:[#allocation3 + $0x19] sm:$0xff]  ;;  %11003 = vmatprep.subr.bf16.mxu1 %v13334_v51 }
 0x1e8   : > { %v3107_v34 = vmul.f32 %v2954_v36, %v2855_v22  ;;  %v2959_v33 = vpop.permute.xlu0 %2958  ;;  %v12136_v13 = vpack.i.bf16 %v3220_v12, %v3219_v43  ;;  %v3292_v29 = vld [vmem:[#allocation3 + $0x13] sm:$0xff]  ;;  %v13335_v36 = vld [vmem:[%s18266_s29 + $0x8] sm:$0xff]   ;;  %11004 = vmatpush3.bf16.msra.mxu1 %v13334_v51 }
 0x1e9   : > { %v3108_v52 = vmul.f32 %v2959_v33, %v2856_v38  ;;  %12152 = vrot.lane.b32.xlu0 %v12151_v35, %s18198_s7  ;;  %v12161_v61 = vpack.i.bf16 %v3293_v45, %v3292_v29  ;;  %v3329_v53 = vld [vmem:[#allocation3 + $0x1c] sm:$0xff]  ;;  %v3328_v58 = vld [vmem:[#allocation3 + $0x14] sm:$0xff]  ;;  %11005 = vmatprep.subr.bf16.mxu1 %v13335_v36 }
 0x1ea   : > { %3150 = vst.msk [vmem:[#allocation3 + $0x43] sm:$0xff] %vm2461_vm1, %v3107_v34  ;;  %12137 = vrot.lane.b32.xlu1 %v12136_v13, %s18261_s30  ;;  %v3257_v46 = vld [vmem:[#allocation3 + $0x22] sm:$0xff]  ;;  %v3258_v2 = vld [vmem:[#allocation3 + $0x2a] sm:$0xff]  ;;  %v12171_v48 = vpack.i.bf16 %v3329_v53, %v3328_v58 }
 0x1eb   : > { %3151 = vst.msk [vmem:[#allocation3 + $0x4b] sm:$0xff] %vm2461_vm1, %v3108_v52  ;;  %v2964_v56 = vpop.permute.xlu1 %2963  ;;  %v14911_v6 = vpack.i.bf16 %v3258_v2, %v3257_v46  ;;  %v3294_v8 = vld [vmem:[#allocation3 + $0x23] sm:$0xff]  ;;  %v3295_v9 = vld [vmem:[#allocation3 + $0x2b] sm:$0xff] }
 0x1ec   : > { %v3109_v62 = vmul.f32 %v2964_v56, %v2857_v55  ;;  %v2969_v63 = vpop.permute.xlu0 %2968  ;;  %v3330_v47 = vld [vmem:[#allocation3 + $0x24] sm:$0xff]  ;;  %v12166_v10 = vpack.i.bf16 %v3295_v9, %v3294_v8  ;;  %11006 = vmatpush3.bf16.msra.mxu1 %v13335_v36 }
 0x1ed   : > { %v3110_v54 = vmul.f32 %v2969_v63, %v2858_v59  ;;  %12162 = vrot.lane.b32.xlu0 %v12161_v61, %s18196_s8  ;;  %v3331_v18 = vld [vmem:[#allocation3 + $0x2c] sm:$0xff]  ;;  %v3221_v56 = vld [vmem:[#allocation3 + $0x21] sm:$0xff]  ;;  %v13336_v61 = vld [vmem:[%s18266_s29] sm:$0xff]  }
 0x1ee   : > { %3152 = vst.msk [vmem:[#allocation3 + $0x53] sm:$0xff] %vm2461_vm1, %v3109_v62  ;;  %12147 = vrot.lane.b32.xlu1 %v12151_v35, %s18202_s2  ;;  %v12181_v31 = vpack.i.bf16 %v3331_v18, %v3330_v47  ;;  %v3368_v11 = vld [vmem:[#allocation3 + $0x2d] sm:$0xff]  ;;  %v3367_v40 = vld [vmem:[#allocation3 + $0x25] sm:$0xff]  ;;  %v3405_v34 = vld [vmem:[#allocation3 + $0x36] sm:$0xff]  ;;  %11007 = vmatprep.subr.bf16.mxu1 %v13336_v61  ;;  %s18271_s2 = smov 64  }
 0x1ef   : > { %3153 = vst.msk [vmem:[#allocation3 + $0x5b] sm:$0xff] %vm2461_vm1, %v3110_v54  ;;  %v2974_v4 = vpop.permute.xlu1 %2973  ;;  %v12191_v14 = vpack.i.bf16 %v3368_v11, %v3367_v40  ;;  %v3404_v16 = vld [vmem:[#allocation3 + $0x2e] sm:$0xff]  ;;  %v3403_v27 = vld [vmem:[#allocation3 + $0x26] sm:$0xff] }
 0x1f0   : > { %v3111_v57 = vmul.f32 %v2974_v4, %v2859_v3  ;;  %v2979_v5 = vpop.permute.xlu0 %2978  ;;  %v12201_v24 = vpack.i.bf16 %v3404_v16, %v3403_v27  ;;  %v3332_v39 = vld [vmem:[#allocation3 + $0x34] sm:$0xff]  ;;  %v3222_v59 = vld [vmem:[#allocation3 + $0x29] sm:$0xff]  ;;  %11008 = vmatpush3.bf16.msra.mxu1 %v13336_v61 }
 0x1f1   : > { %v3112_v60 = vmul.f32 %v2979_v5, %v2860_v44  ;;  %12172 = vrot.lane.b32.xlu0 %v12171_v48, %s18200_s1  ;;  %v3333_v25 = vld [vmem:[#allocation3 + $0x3c] sm:$0xff]  ;;  %v12206_v3 = vpack.i.bf16 %v3222_v59, %v3221_v56  ;;  %v3259_v58 = vld [vmem:[#allocation3 + $0x32] sm:$0xff] }
 0x1f2   : > { %3154 = vst.msk [vmem:[#allocation3 + $0x63] sm:$0xff] %vm2461_vm1, %v3111_v57  ;;  %12157 = vrot.lane.b32.xlu1 %v14911_v6, %s18198_s7  ;;  %v14924_v41 = vpack.i.bf16 %v3333_v25, %v3332_v39  ;;  %v3406_v37 = vld [vmem:[#allocation3 + $0x3e] sm:$0xff]  ;;  %v3369_v33 = vld [vmem:[#allocation3 + $0x35] sm:$0xff]  ;;  %v3299_v40 = vld [vmem:[#allocation3 + $0x4b] sm:$0xff]  ;;  %s18268_s7 = smov 24  }
 0x1f3   : > { %3155 = vst.msk [vmem:[#allocation3 + $0x6b] sm:$0xff] %vm2461_vm1, %v3112_v60  ;;  %v2984_v28 = vpop.permute.xlu1 %2983  ;;  %v3370_v43 = vld [vmem:[#allocation3 + $0x3d] sm:$0xff]  ;;  %v12211_v45 = vpack.i.bf16 %v3406_v37, %v3405_v34  ;;  %v3223_v48 = vld [vmem:[#allocation3 + $0x31] sm:$0xff] }
 0x1f4   : > { %v2989_v13 = vpop.permute.xlu0 %2988  ;;  %v12196_v21 = vpack.i.bf16 %v3370_v43, %v3369_v33  ;;  %v3260_v4 = vld [vmem:[#allocation3 + $0x3a] sm:$0xff]  ;;  %v3261_v47 = vld [vmem:[#allocation3 + $0x42] sm:$0xff] }
 0x1f5   : > { %12182 = vrot.lane.b32.xlu0 %v12181_v31, %s18208_s0  ;;  %v3224_v57 = vld [vmem:[#allocation3 + $0x39] sm:$0xff]  ;;  %v12226_v60 = vpack.i.bf16 %v3260_v4, %v3259_v58  ;;  %v3298_v11 = vld [vmem:[#allocation3 + $0x43] sm:$0xff]  ;;  %v3335_v16 = vld [vmem:[#allocation3 + $0x4c] sm:$0xff] }
 0x1f6   : > { %12167 = vrot.lane.b32.xlu1 %v12166_v10, %s18196_s8  ;;  %s18267_s8 = smov 16   ;;  %v12216_v9 = vpack.i.bf16 %v3224_v57, %v3223_v48  ;;  %v2920_v10 = vld [vmem:[%s18264_s17 + $0x118] sm:$0x3f]  ;;  %v3297_v25 = vld [vmem:[#allocation3 + $0x3b] sm:$0xff]  ;;  %s18273_s17 = smov 48  }
 0x1f7   : > { %v2994_v15 = vpop.permute.xlu1 %2993  ;;  %v3225_v34 = vld [vmem:[#allocation3 + $0x41] sm:$0xff]  ;;  %v3226_v33 = vld [vmem:[#allocation3 + $0x49] sm:$0xff] }
 0x1f8   : > { %v2999_v44 = vpop.permute.xlu0 %2998 }
 0x1f9   : > { %v10977_v20 = vpop.f32.mrf.mxu0  ;;  %12192 = vrot.lane.b32.xlu0 %v12191_v14, %s18206_s25  ;;  %v12246_v14 = vpack.i.bf16 %v3299_v40, %v3298_v11  ;;  %v3409_v40 = vld [vmem:[#allocation3 + $0x56] sm:$0xff] }
 0x1fa   : > { %v2683_v26 = vadd.f32 %v10977_v20, %v14788_v7  ;;  %12177 = vrot.lane.b32.xlu1 %v12181_v31, %s18200_s1  ;;  %v3262_v31 = vld [vmem:[#allocation3 + $0x4a] sm:$0xff]  ;;  %v3296_v20 = vld [vmem:[#allocation3 + $0x33] sm:$0xff]  ;;  %s18270_s1 = smov 40  }
 0x1fb   : > { %v2674_v19 = vpop.f32.mrf.mxu0  ;;  %v3004_v37 = vpop.permute.xlu1 %3003 }
 0x1fc   : > { %v2783_v30 = vmax.f32 %v2683_v26, 0.0  ;;  %v2675_v22 = vadd.f32 %v14788_v7, %v2674_v19  ;;  %v3334_v26 = vld [vmem:[#allocation3 + $0x44] sm:$0xff]  ;;  %v3337_v19 = vld [vmem:[#allocation3 + $0x5c] sm:$0xff]  ;;  %v3009_v51 = vpop.permute.xlu0 %3008 }
 0x1fd   : > { %v10978_v42 = vpop.f32.mrf.mxu0  ;;  %12202 = vrot.lane.b32.xlu0 %v12201_v24, %s18204_s4  ;;  %v12256_v27 = vpack.i.bf16 %v3335_v16, %v3334_v26  ;;  %v3336_v24 = vld [vmem:[#allocation3 + $0x54] sm:$0xff] }
 0x1fe   : > { %v2823_v38 = vmul.f32 %v14842_v49, %v2783_v30  ;;  %v2781_v35 = vmax.f32 %v2675_v22, 0.0  ;;  %v2686_v12 = vadd.f32 %v10978_v42, %v14788_v7  ;;  %12187 = vrot.lane.b32.xlu1 %v14924_v41, %s18208_s0  ;;  %v14970_v39 = vpack.i.bf16 %v3337_v19, %v3336_v24  ;;  %v3374_v30 = vld [vmem:[#allocation3 + $0x5d] sm:$0xff]  ;;  %v3373_v42 = vld [vmem:[#allocation3 + $0x55] sm:$0xff] }
 0x1ff   : > { %v2677_v29 = vpop.f32.mrf.mxu0 }
 0x200   : > { %v2863_v52 = vadd.f32 %v14858_v23, %v2823_v38  ;;  %v2821_v50 = vmul.f32 %v14842_v49, %v2781_v35  ;;  %v2784_v55 = vmax.f32 %v2686_v12, 0.0  ;;  %v2678_v32 = vadd.f32 %v14788_v7, %v2677_v29 }
 0x201   : > { %12212 = vrot.lane.b32.xlu0 %v12211_v45, %s18204_s4  ;;  %s18269_s4 = smov 32   ;;  %v12276_v38 = vpack.i.bf16 %v3374_v30, %v3373_v42  ;;  %v3338_v42 = vld [vmem:[#allocation3 + $0x64] sm:$0xff] }
 0x202   : > { %v3115_v62 = vmul.f32 %v2994_v15, %v2863_v52  ;;  %v2861_v63 = vadd.f32 %v14858_v23, %v2821_v50  ;;  %v2824_v53 = vmul.f32 %v14842_v49, %v2784_v55  ;;  %v2782_v1 = vmax.f32 %v2678_v32, 0.0  ;;  %12197 = vrot.lane.b32.xlu1 %v12196_v21, %s18206_s25 }
 0x203   : > { %v12286_v55 = vpack.i.bf16 %v3226_v33, %v3225_v34 }
 0x204   : > { %3158 = vst.msk [vmem:[#allocation3 + $0x83] sm:$0xff] %vm2461_vm1, %v3115_v62  ;;  %v3113_v54 = vmul.f32 %v2984_v28, %v2861_v63  ;;  %v2864_v46 = vadd.f32 %v14858_v23, %v2824_v53  ;;  %v2822_v2 = vmul.f32 %v14842_v49, %v2782_v1  ;;  %v12241_v28 = vpack.i.bf16 %v3297_v25, %v3296_v20  ;;  %v3227_v62 = vld [vmem:[#allocation3 + $0x51] sm:$0xff]  ;;  %v3228_v63 = vld [vmem:[#allocation3 + $0x59] sm:$0xff]  ;;  %v3014_v53 = vpop.permute.xlu1 %3013  ;;  %v3019_v1 = vpop.permute.xlu0 %3018  ;;  %v3265_v20 = vld [vmem:[#allocation3 + $0x62] sm:$0xff] }
 0x205   : > { %12222 = vrot.lane.b32.xlu0 %v14911_v6, %s18267_s8  ;;  %v14959_v6 = vpack.i.bf16 %v3262_v31, %v3261_v47  ;;  %v12296_v4 = vpack.i.bf16 %v3228_v63, %v3227_v62  ;;  %v3266_v25 = vld [vmem:[#allocation3 + $0x6a] sm:$0xff] }
 0x206   : > { %3156 = vst.msk [vmem:[#allocation3 + $0x73] sm:$0xff] %vm2461_vm1, %v3113_v54  ;;  %v3116_v5 = vmul.f32 %v2999_v44, %v2864_v46  ;;  %v2862_v18 = vadd.f32 %v14858_v23, %v2822_v2  ;;  %12207 = vrot.lane.b32.xlu1 %v12206_v3, %s18261_s30  ;;  %v3408_v54 = vld [vmem:[#allocation3 + $0x4e] sm:$0xff]  ;;  %v3407_v44 = vld [vmem:[#allocation3 + $0x46] sm:$0xff]  ;;  %v15002_v26 = vpack.i.bf16 %v3266_v25, %v3265_v20 }
 0x208   : > { %3159 = vst.msk [vmem:[#allocation3 + $0x8b] sm:$0xff] %vm2461_vm1, %v3116_v5  ;;  %v3114_v8 = vmul.f32 %v2989_v13, %v2862_v18  ;;  %v3372_v13 = vld [vmem:[#allocation3 + $0x4d] sm:$0xff]  ;;  %v12281_v18 = vpack.i.bf16 %v3408_v54, %v3407_v44  ;;  %v3024_v24 = vpop.permute.xlu1 %3023 }
 0x209   : > { %12227 = vrot.lane.b32.xlu0 %v12226_v60, %s18267_s8 }
 0x20a   : > { %3157 = vst.msk [vmem:[#allocation3 + $0x7b] sm:$0xff] %vm2461_vm1, %v3114_v8  ;;  %12217 = vrot.lane.b32.xlu1 %v12216_v9, %s18261_s30  ;;  %v3264_v8 = vld [vmem:[#allocation3 + $0x5a] sm:$0xff] }
 0x20b   : > { %v3410_v9 = vld [vmem:[#allocation3 + $0x5e] sm:$0xff] }
 0x20c   : > { %v12291_v16 = vpack.i.bf16 %v3410_v9, %v3409_v40 }
 0x20d   : > { %12237 = vrot.lane.b32.xlu0 %v14959_v6, %s18268_s7 }
 0x20e   : > { %3098 = vperm.xlu1 %12130, %v2920_v10   ;;  %v14996_v10 = vpop.permute.xlu0 %3028 }
 0x211   : > { %12247 = vrot.lane.b32.xlu0 %v12246_v14, %s18269_s4  ;;  %v3341_v34 = vld [vmem:[#allocation3 + $0x7c] sm:$0xff] }
 0x212   : > { %12232 = vrot.lane.b32.xlu1 %v12226_v60, %s18268_s7  ;;  %v3263_v60 = vld [vmem:[#allocation3 + $0x52] sm:$0xff]  ;;  %v15004_v19 = vpop.permute.xlu0 %3038  ;;  %v3268_v20 = vld [vmem:[#allocation3 + $0x7a] sm:$0xff] }
 0x213   : > { %v12306_v11 = vpack.i.bf16 %v3264_v8, %v3263_v60  ;;  %v3377_v33 = vld [vmem:[#allocation3 + $0x75] sm:$0xff] }
 0x215   : > { %12257 = vrot.lane.b32.xlu0 %v12256_v27, %s18270_s1 }
 0x216   : > { %12242 = vrot.lane.b32.xlu1 %v12241_v28, %s18269_s4  ;;  %v3303_v28 = vld [vmem:[#allocation3 + $0x6b] sm:$0xff] }
 0x219   : > { %v10981_v22 = vpop.f32.mrf.mxu0  ;;  %12267 = vrot.lane.b32.xlu0 %v14970_v39, %s18208_s0 }
 0x21a   : > { %v2699_v43 = vadd.f32 %v10981_v22, %v14788_v7  ;;  %12252 = vrot.lane.b32.xlu1 %v14924_v41, %s18270_s1  ;;  %v3371_v41 = vld [vmem:[#allocation3 + $0x45] sm:$0xff] }
 0x21b   : > { %v2690_v36 = vpop.f32.mrf.mxu0  ;;  %v12271_v32 = vpack.i.bf16 %v3372_v13, %v3371_v41  ;;  %v3339_v22 = vld [vmem:[#allocation3 + $0x6c] sm:$0xff]  ;;  %v3378_v13 = vld [vmem:[#allocation3 + $0x7d] sm:$0xff] }
 0x21c   : > { %v2787_v35 = vmax.f32 %v2699_v43, 0.0  ;;  %v2691_v12 = vadd.f32 %v14788_v7, %v2690_v36  ;;  %v3301_v43 = vld [vmem:[#allocation3 + $0x5b] sm:$0xff]  ;;  %v12336_v36 = vpack.i.bf16 %v3339_v22, %v3338_v42 }
 0x21d   : > { %v10982_v29 = vpop.f32.mrf.mxu0  ;;  %12277 = vrot.lane.b32.xlu0 %v12276_v38, %s18206_s25  ;;  %v3034_v38 = vpop.permute.xlu1 %3033 }
 0x21e   : > { %v2827_v45 = vmul.f32 %v14842_v49, %v2787_v35  ;;  %v2785_v21 = vmax.f32 %v2691_v12, 0.0  ;;  %v2702_v52 = vadd.f32 %v10982_v29, %v14788_v7  ;;  %12262 = vrot.lane.b32.xlu1 %v12256_v27, %s18208_s0  ;;  %v3302_v27 = vld [vmem:[#allocation3 + $0x63] sm:$0xff]  ;;  %v3340_v12 = vld [vmem:[#allocation3 + $0x74] sm:$0xff] }
 0x21f   : > { %v2693_v50 = vpop.f32.mrf.mxu0  ;;  %v12326_v30 = vpack.i.bf16 %v3303_v28, %v3302_v27  ;;  %v3413_v27 = vld [vmem:[#allocation3 + $0x76] sm:$0xff]  ;;  %v3414_v28 = vld [vmem:[#allocation3 + $0x7e] sm:$0xff] }
 0x220   : > { %v2867_v15 = vadd.f32 %v14858_v23, %v2827_v45  ;;  %v2825_v56 = vmul.f32 %v14842_v49, %v2785_v21  ;;  %v2788_v59 = vmax.f32 %v2702_v52, 0.0  ;;  %v2694_v61 = vadd.f32 %v14788_v7, %v2693_v50 }
 0x221   : > { %12287 = vrot.lane.b32.xlu0 %v12286_v55, %s18261_s30  ;;  %v15022_v21 = vpop.permute.xlu1 %3043  ;;  %v12356_v50 = vpack.i.bf16 %v3378_v13, %v3377_v33  ;;  %v3307_v33 = vld [vmem:[#allocation3 + $0x8b] sm:$0xff] }
 0x222   : > { %v3119_v46 = vmul.f32 %v3014_v53, %v2867_v15  ;;  %v2865_v2 = vadd.f32 %v14858_v23, %v2825_v56  ;;  %v2828_v3 = vmul.f32 %v14842_v49, %v2788_v59  ;;  %v2786_v58 = vmax.f32 %v2694_v61, 0.0  ;;  %12272 = vrot.lane.b32.xlu1 %v12271_v32, %s18206_s25  ;;  %v3229_v15 = vld [vmem:[#allocation3 + $0x61] sm:$0xff]  ;;  %v3230_v56 = vld [vmem:[#allocation3 + $0x69] sm:$0xff] }
 0x223   : > { %v3376_v59 = vld [vmem:[#allocation3 + $0x6d] sm:$0xff] }
 0x224   : > { %3162 = vst.msk [vmem:[#allocation3 + $0xa3] sm:$0xff] %vm2461_vm1, %v3119_v46  ;;  %v3117_v48 = vmul.f32 %v3004_v37, %v2865_v2  ;;  %v2868_v57 = vadd.f32 %v14858_v23, %v2828_v3  ;;  %v2826_v5 = vmul.f32 %v14842_v49, %v2786_v58  ;;  %v3300_v37 = vld [vmem:[#allocation3 + $0x53] sm:$0xff]  ;;  %v12366_v46 = vpack.i.bf16 %v3230_v56, %v3229_v15 }
 0x225   : > { %12297 = vrot.lane.b32.xlu0 %v12296_v4, %s18261_s30  ;;  %v12321_v35 = vpack.i.bf16 %v3301_v43, %v3300_v37  ;;  %v15034_v3 = vpop.permute.xlu1 %3053  ;;  %v3267_v37 = vld [vmem:[#allocation3 + $0x72] sm:$0xff] }
 0x226   : > { %3160 = vst.msk [vmem:[#allocation3 + $0x93] sm:$0xff] %vm2461_vm1, %v3117_v48  ;;  %v3120_v47 = vmul.f32 %v3019_v1, %v2868_v57  ;;  %v2866_v31 = vadd.f32 %v14858_v23, %v2826_v5  ;;  %12282 = vrot.lane.b32.xlu1 %v12281_v18, %s18271_s2  ;;  %v3375_v1 = vld [vmem:[#allocation3 + $0x65] sm:$0xff]  ;;  %v3232_v57 = vld [vmem:[#allocation3 + $0x79] sm:$0xff]  ;;  %v3412_v5 = vld [vmem:[#allocation3 + $0x6e] sm:$0xff]  ;;  %v12386_v43 = vpack.i.bf16 %v3268_v20, %v3267_v37 }
 0x227   : > { %v12351_v2 = vpack.i.bf16 %v3376_v59, %v3375_v1  ;;  %v3304_v15 = vld [vmem:[#allocation3 + $0x73] sm:$0xff]  ;;  %v3379_v20 = vld [vmem:[#allocation3 + $0x85] sm:$0xff] }
 0x228   : > { %3163 = vst.msk [vmem:[#allocation3 + $0xab] sm:$0xff] %vm2461_vm1, %v3120_v47  ;;  %v3118_v14 = vmul.f32 %v3009_v51, %v2866_v31  ;;  %v15012_v51 = vpop.permute.xlu0 %3048  ;;  %v3231_v47 = vld [vmem:[#allocation3 + $0x71] sm:$0xff] }
 0x229   : > { %12307 = vrot.lane.b32.xlu0 %v12306_v11, %s18267_s8  ;;  %v12376_v31 = vpack.i.bf16 %v3232_v57, %v3231_v47 }
 0x22a   : > { %3161 = vst.msk [vmem:[#allocation3 + $0x9b] sm:$0xff] %vm2461_vm1, %v3118_v14  ;;  %12292 = vrot.lane.b32.xlu1 %v12291_v16, %s18271_s2 }
 0x22c   : > { %v15018_v29 = vpop.permute.xlu0 %3058 }
 0x22d   : > { %12317 = vrot.lane.b32.xlu0 %v15002_v26, %s18268_s7 }
 0x22e   : > { %12302 = vrot.lane.b32.xlu1 %v14959_v6, %s18267_s8  ;;  %v15016_v6 = vpack.i.bf16 %v3341_v34, %v3340_v12 }
 0x231   : > { %12327 = vrot.lane.b32.xlu0 %v12326_v30, %s18269_s4  ;;  %v15049_v30 = vpop.permute.xlu1 %3063  ;;  %v3344_v59 = vld [vmem:[#allocation3 + $0x94] sm:$0xff]  ;;  %v3382_v1 = vld [vmem:[#allocation3 + $0x9d] sm:$0xff] }
 0x232   : > { %12312 = vrot.lane.b32.xlu1 %v12306_v11, %s18268_s7  ;;  %v3411_v11 = vld [vmem:[#allocation3 + $0x66] sm:$0xff] }
 0x233   : > { %v12361_v16 = vpack.i.bf16 %v3412_v5, %v3411_v11 }
 0x235   : > { %12337 = vrot.lane.b32.xlu0 %v12336_v36, %s18270_s1  ;;  %v15064_v34 = vpop.permute.xlu1 %3073 }
 0x236   : > { %12322 = vrot.lane.b32.xlu1 %v12321_v35, %s18269_s4  ;;  %v3270_v35 = vld [vmem:[#allocation3 + $0x8a] sm:$0xff] }
 0x239   : > { %v10985_v45 = vpop.f32.mrf.mxu0  ;;  %12347 = vrot.lane.b32.xlu0 %v15016_v6, %s18208_s0 }
 0x23a   : > { %v2715_v52 = vadd.f32 %v10985_v45, %v14788_v7  ;;  %12332 = vrot.lane.b32.xlu1 %v14970_v39, %s18270_s1  ;;  %v15032_v39 = vpop.permute.xlu0 %3068 }
 0x23b   : > { %v2706_v41 = vpop.f32.mrf.mxu0 }
 0x23c   : > { %v2791_v55 = vmax.f32 %v2715_v52, 0.0  ;;  %v2707_v32 = vadd.f32 %v14788_v7, %v2706_v41  ;;  %v3343_v52 = vld [vmem:[#allocation3 + $0x8c] sm:$0xff]  ;;  %v3305_v41 = vld [vmem:[#allocation3 + $0x7b] sm:$0xff] }
 0x23d   : > { %v10986_v61 = vpop.f32.mrf.mxu0  ;;  %12357 = vrot.lane.b32.xlu0 %v12356_v50, %s18206_s25  ;;  %v15073_v50 = vpop.permute.xlu1 %3083  ;;  %v12401_v56 = vpack.i.bf16 %v3305_v41, %v3304_v15  ;;  %v3235_v41 = vld [vmem:[#allocation3 + $0x91] sm:$0xff] }
 0x23e   : > { %v2831_v62 = vmul.f32 %v14842_v49, %v2791_v55  ;;  %v2789_v63 = vmax.f32 %v2707_v32, 0.0  ;;  %v2718_v53 = vadd.f32 %v10986_v61, %v14788_v7  ;;  %12342 = vrot.lane.b32.xlu1 %v12336_v36, %s18208_s0  ;;  %v15046_v25 = vpop.permute.xlu0 %3078  ;;  %v12371_v36 = vpack.i.bf16 %v3414_v28, %v3413_v27  ;;  %v3342_v55 = vld [vmem:[#allocation3 + $0x84] sm:$0xff]  ;;  %v3345_v61 = vld [vmem:[#allocation3 + $0x9c] sm:$0xff] }
 0x23f   : > { %v2709_v54 = vpop.f32.mrf.mxu0  ;;  %v12416_v32 = vpack.i.bf16 %v3343_v52, %v3342_v55  ;;  %v3181_v27 = vld [vmem:[#allocation3] sm:$0xff]  ;;  %v3182_v28 = vld [vmem:[#allocation3 + $0x8] sm:$0xff] }
 0x240   : > { %v2871_v58 = vadd.f32 %v14858_v23, %v2831_v62  ;;  %v2829_v4 = vmul.f32 %v14842_v49, %v2789_v63  ;;  %v2792_v44 = vmax.f32 %v2718_v53, 0.0  ;;  %v2710_v48 = vadd.f32 %v14788_v7, %v2709_v54  ;;  %v3381_v53 = vld [vmem:[#allocation3 + $0x95] sm:$0xff] }
 0x241   : > { %12367 = vrot.lane.b32.xlu0 %v12366_v46, %s18261_s30  ;;  %v15080_v62 = vpack.i.bf16 %v3345_v61, %v3344_v59  ;;  %v15082_v63 = vpop.permute.xlu1 %3093  ;;  %v15089_v46 = vld [vmem:[%s18265_s9] ss:$0 sm:$0xff]  ;;  %v3415_v61 = vld [vmem:[#allocation3 + $0x86] sm:$0xff] }
 0x242   : > { %v3123_v18 = vmul.f32 %v3034_v38, %v2871_v58  ;;  %v2869_v60 = vadd.f32 %v14858_v23, %v2829_v4  ;;  %v2832_v8 = vmul.f32 %v14842_v49, %v2792_v44  ;;  %v2790_v9 = vmax.f32 %v2710_v48, 0.0  ;;  %12352 = vrot.lane.b32.xlu1 %v12351_v2, %s18206_s25  ;;  %v3269_v38 = vld [vmem:[#allocation3 + $0x82] sm:$0xff]  ;;  %s18282_s25 = sld [smem:[#allocation32_spill]] }
 0x243   : > { %v15062_v12 = vpack.i.bf16 %v3270_v35, %v3269_v38  ;;  %v12436_v44 = vpack.i.bf16 %v3382_v1, %v3381_v53 }
 0x244   : > { %3166 = vst.msk [vmem:[#allocation3 + $0xc3] sm:$0xff] %vm2461_vm1, %v3123_v18  ;;  %v3121_v40 = vmul.f32 %v3024_v24, %v2869_v60  ;;  %v2872_v7 = vadd.f32 %v14858_v23, %v2832_v8  ;;  %v2830_v14 = vmul.f32 %v14842_v49, %v2790_v9  ;;  %v3233_v18 = vld [vmem:[#allocation3 + $0x81] sm:$0xff]  ;;  %v3380_v8 = vld [vmem:[#allocation3 + $0x8d] sm:$0xff] }
 0x245   : > { %12377 = vrot.lane.b32.xlu0 %v12376_v31, %s18261_s30 }
 0x246   : > { %3164 = vst.msk [vmem:[#allocation3 + $0xb3] sm:$0xff] %vm2461_vm1, %v3121_v40  ;;  %v3124_v22 = vmul.f32 %v15004_v19, %v2872_v7  ;;  %v2870_v24 = vadd.f32 %v14858_v23, %v2830_v14  ;;  %12362 = vrot.lane.b32.xlu1 %v12361_v16, %s18271_s2  ;;  %v15060_v19 = vpop.permute.xlu0 %3088 }
 0x248   : > { %3167 = vst.msk [vmem:[#allocation3 + $0xcb] sm:$0xff] %vm2461_vm1, %v3124_v22  ;;  %v3122_v42 = vmul.f32 %v14996_v10, %v2870_v24  ;;  %v3306_v10 = vld [vmem:[#allocation3 + $0x83] sm:$0xff] }
 0x249   : > { %12387 = vrot.lane.b32.xlu0 %v12386_v43, %s18267_s8  ;;  %v12406_v13 = vpack.i.bf16 %v3307_v33, %v3306_v10  ;;  %v3416_v33 = vld [vmem:[#allocation3 + $0x8e] sm:$0xff] }
 0x24a   : > { %3165 = vst.msk [vmem:[#allocation3 + $0xbb] sm:$0xff] %vm2461_vm1, %v3122_v42  ;;  %12372 = vrot.lane.b32.xlu1 %v12371_v36, %s18271_s2  ;;  %v15070_v45 = vpop.permute.xlu0 %12132  ;;  %v12431_v42 = vpack.i.bf16 %v3380_v8, %v3379_v20  ;;  %v3236_v36 = vld [vmem:[#allocation3 + $0x99] sm:$0xff]  ;;  %v12441_v1 = vpack.i.bf16 %v3416_v33, %v3415_v61 }
 0x24b   : > { %v12135_v31 = vunpack.i.h.bf16 %v15070_v45  ;;  %v12134_v11 = vunpack.i.l.bf16 %v15070_v45  ;;  %v12456_v59 = vpack.i.bf16 %v3236_v36, %v3235_v41 }
 0x24d   : > { %12397 = vrot.lane.b32.xlu0 %v15062_v12, %s18268_s7  ;;  %v4526_v55 = vsel %vm2461_vm1, %v3182_v28, %v12135_v31  ;;  %v3273_v31 = vld [vmem:[#allocation3 + $0xa2] sm:$0xff]  ;;  %v3274_v28 = vld [vmem:[#allocation3 + $0xaa] sm:$0xff] }
 0x24e   : > { %12382 = vrot.lane.b32.xlu1 %v15002_v26, %s18267_s8  ;;  %v15077_v26 = vpop.permute.xlu0 %12142 }
 0x24f   : > { %v12145_v38 = vunpack.i.h.bf16 %v15077_v26  ;;  %v12144_v10 = vunpack.i.l.bf16 %v15077_v26 }
 0x251   : > { %12407 = vrot.lane.b32.xlu0 %v12406_v13, %s18269_s4 }
 0x252   : > { %12392 = vrot.lane.b32.xlu1 %v12386_v43, %s18268_s7 }
 0x255   : > { %12417 = vrot.lane.b32.xlu0 %v12416_v32, %s18270_s1 }
 0x256   : > { %12402 = vrot.lane.b32.xlu1 %v12401_v56, %s18269_s4 }
 0x259   : > { %v10989_v54 = vpop.f32.mrf.mxu0  ;;  %12427 = vrot.lane.b32.xlu0 %v15080_v62, %s18208_s0  ;;  %s18272_s0 = smov 56  }
 0x25a   : > { %v2731_v2 = vadd.f32 %v15089_v46, %v10989_v54  ;;  %12412 = vrot.lane.b32.xlu1 %v15016_v6, %s18270_s1  ;;  %v3234_v6 = vld [vmem:[#allocation3 + $0x89] sm:$0xff]  ;;  %v3272_v54 = vld [vmem:[#allocation3 + $0x9a] sm:$0xff] }
 0x25b   : > { %v2722_v58 = vpop.f32.mrf.mxu0  ;;  %v15094_v4 = vpop.permute.xlu0 %12152  ;;  %v12446_v16 = vpack.i.bf16 %v3234_v6, %v3233_v18  ;;  %v15135_v18 = vld [vmem:[#allocation3 + $0xab] sm:$0xff] }
 0x25c   : > { %v2795_v48 = vmax.f32 %v2731_v2, 0.0  ;;  %v2723_v57 = vadd.f32 %v15089_v46, %v2722_v58  ;;  %v15097_v5 = vpop.permute.xlu1 %12137  ;;  %v3417_v58 = vld [vmem:[#allocation3 + $0x96] sm:$0xff]  ;;  %v12154_v8 = vunpack.i.l.bf16 %v15094_v4 }
 0x25d   : > { %v10990_v60 = vpop.f32.mrf.mxu0  ;;  %12437 = vrot.lane.b32.xlu0 %v12436_v44, %s18272_s0  ;;  %v3418_v44 = vld [vmem:[#allocation3 + $0x9e] sm:$0xff] }
 0x25e   : > { %v2835_v9 = vmul.f32 %v14842_v49, %v2795_v48  ;;  %v2793_v47 = vmax.f32 %v2723_v57, 0.0  ;;  %12422 = vrot.lane.b32.xlu1 %v12416_v32, %s18273_s17  ;;  %v2734_v40 = vadd.f32 %v15089_v46, %v10990_v60  ;;  %v4525_v32 = vsel %vm2461_vm1, %v3181_v27, %v12134_v11  ;;  %v3271_v57 = vld [vmem:[#allocation3 + $0x92] sm:$0xff]  ;;  %v15142_v11 = vld [vmem:[#allocation3 + $0x9b] sm:$0xff]  ;;  %v3310_v27 = vld [vmem:[#allocation3 + $0xa3] sm:$0xff] }
 0x25f   : > { %v2725_v7 = vpop.f32.mrf.mxu0  ;;  %v15105_v14 = vpop.permute.xlu0 %12162  ;;  %v4562_v48 = vsel %vm4561_vm13, %v4525_v32, %v12144_v10  ;;  %v12155_v60 = vunpack.i.h.bf16 %v15094_v4  ;;  %v15140_v6 = vpack.i.bf16 %v3272_v54, %v3271_v57  ;;  %v12451_v20 = vpack.i.bf16 %v3418_v44, %v3417_v58 }
 0x260   : > { %v2875_v22 = vadd.f32 %v14858_v23, %v2835_v9  ;;  %v2833_v24 = vmul.f32 %v14842_v49, %v2793_v47  ;;  %v2726_v37 = vadd.f32 %v15089_v46, %v2725_v7  ;;  %v15110_v43 = vpop.permute.xlu1 %12147  ;;  %v2796_v35 = vmax.f32 %v2734_v40, 0.0 }
 0x261   : > { %12447 = vrot.lane.b32.xlu0 %v12446_v16, %s18261_s30  ;;  %v12139_v40 = vunpack.i.l.bf16 %v15097_v5  ;;  %v12164_v4 = vunpack.i.l.bf16 %v15105_v14  ;;  %v4599_v36 = vsel %vm4598_vm14, %v4562_v48, %v12154_v8 }
 0x262   : > { %v3127_v13 = vmul.f32 %v15034_v3, %v2875_v22  ;;  %v2873_v45 = vadd.f32 %v14858_v23, %v2833_v24  ;;  %v2794_v52 = vmax.f32 %v2726_v37, 0.0  ;;  %12432 = vrot.lane.b32.xlu1 %v12431_v42, %s18272_s0  ;;  %v2836_v15 = vmul.f32 %v14842_v49, %v2796_v35  ;;  %v15155_v24 = vld [vmem:[#allocation3 + $0x93] sm:$0xff] }
 0x263   : > { %v15121_v56 = vpop.permute.xlu0 %12172  ;;  %v12486_v22 = vpack.i.bf16 %v15135_v18, %v3310_v27  ;;  %v15161_v37 = vpack.i.bf16 %v3274_v28, %v3273_v31  ;;  %v3184_v35 = vld [vmem:[#allocation3 + $0x18] sm:$0xff]  ;;  %v4636_v32 = vsel %vm4635_vm15, %v4599_v36, %v12164_v4  ;;  %v3347_v18 = vld [vmem:[#allocation3 + $0xac] sm:$0xff] }
 0x264   : > { %3170 = vst.msk [vmem:[#allocation3 + $0xe3] sm:$0xff] %vm2461_vm1, %v3127_v13  ;;  %v3125_v3 = vmul.f32 %v15022_v21, %v2873_v45  ;;  %v2834_v26 = vmul.f32 %v14842_v49, %v2794_v52  ;;  %v15126_v53 = vpop.permute.xlu1 %12157  ;;  %v2876_v2 = vadd.f32 %v14858_v23, %v2836_v15  ;;  %v4563_v21 = vsel %vm4561_vm13, %v4526_v55, %v12145_v38  ;;  %v3183_v38 = vld [vmem:[#allocation3 + $0x10] sm:$0xff] }
 0x265   : > { %12457 = vrot.lane.b32.xlu0 %v12456_v59, %s18261_s30  ;;  %v4600_v42 = vsel %vm4598_vm14, %v4563_v21, %v12155_v60  ;;  %v12175_v33 = vunpack.i.h.bf16 %v15121_v56  ;;  %v12174_v10 = vunpack.i.l.bf16 %v15121_v56 }
 0x266   : > { %3168 = vst.msk [vmem:[#allocation3 + $0xd3] sm:$0xff] %vm2461_vm1, %v3125_v3  ;;  %v2874_v49 = vadd.f32 %v14858_v23, %v2834_v26  ;;  %12442 = vrot.lane.b32.xlu1 %v12441_v1, %s18271_s2  ;;  %v3128_v9 = vmul.f32 %v15018_v29, %v2876_v2  ;;  %v12140_v23 = vunpack.i.h.bf16 %v15097_v5  ;;  %v12165_v29 = vunpack.i.h.bf16 %v15105_v14 }
 0x267   : > { %v12183_v47 = vpop.permute.xlu0 %12182  ;;  %v12149_v5 = vunpack.i.l.bf16 %v15110_v43  ;;  %v12481_v14 = vpack.i.bf16 %v15142_v11, %v15155_v24  ;;  %v12160_v26 = vunpack.i.h.bf16 %v15126_v53  ;;  %v12159_v1 = vunpack.i.l.bf16 %v15126_v53 }
 0x268   : > { %v3126_v7 = vmul.f32 %v15012_v51, %v2874_v49  ;;  %v15147_v16 = vpop.permute.xlu1 %12167  ;;  %3171 = vst.msk [vmem:[#allocation3 + $0xeb] sm:$0xff] %vm2461_vm1, %v3128_v9  ;;  %v12150_v51 = vunpack.i.h.bf16 %v15110_v43  ;;  %v4527_v43 = vsel %vm2461_vm1, %v3183_v38, %v12139_v40  ;;  %v4528_v45 = vsel %vm2461_vm1, %v3184_v35, %v12140_v23  ;;  %v3346_v40 = vld [vmem:[#allocation3 + $0xa4] sm:$0xff]  ;;  %v3349_v38 = vld [vmem:[#allocation3 + $0xbc] sm:$0xff] }
 0x269   : > { %12467 = vrot.lane.b32.xlu0 %v15140_v6, %s18267_s8  ;;  %v12185_v52 = vunpack.i.h.bf16 %v12183_v47  ;;  %v12184_v41 = vunpack.i.l.bf16 %v12183_v47  ;;  %v4637_v15 = vsel %vm4635_vm15, %v4600_v42, %v12165_v29  ;;  %v4564_v3 = vsel %vm4561_vm13, %v4527_v43, %v12149_v5 }
 0x26a   : > { %3169 = vst.msk [vmem:[#allocation3 + $0xdb] sm:$0xff] %vm2461_vm1, %v3126_v7  ;;  %12452 = vrot.lane.b32.xlu1 %v12451_v20, %s18271_s2  ;;  %v4565_v56 = vsel %vm4561_vm13, %v4528_v45, %v12150_v51  ;;  %v4673_v54 = vsel %vm4672_vm0, %v4636_v32, %v12174_v10  ;;  %v4674_v2 = vsel %vm4672_vm0, %v4637_v15, %v12175_v33  ;;  %v12170_v58 = vunpack.i.h.bf16 %v15147_v16 }
 0x26b   : > { %v12193_v13 = vpop.permute.xlu0 %12192  ;;  %v12169_v44 = vunpack.i.l.bf16 %v15147_v16  ;;  %v4710_v60 = vsel %vm4709_vm3, %v4673_v54, %v12184_v41  ;;  %v4711_v53 = vsel %vm4709_vm3, %v4674_v2, %v12185_v52  ;;  %v4601_v20 = vsel %vm4598_vm14, %v4564_v3, %v12159_v1  ;;  %v3386_v3 = vld [vmem:[#allocation3 + $0xbd] sm:$0xff] }
 0x26c   : > { %v12178_v55 = vpop.permute.xlu1 %12177  ;;  %v12195_v59 = vunpack.i.h.bf16 %v12193_v13  ;;  %v12194_v61 = vunpack.i.l.bf16 %v12193_v13  ;;  %v4602_v27 = vsel %vm4598_vm14, %v4565_v56, %v12160_v26  ;;  %v12496_v4 = vpack.i.bf16 %v3347_v18, %v3346_v40 }
 0x26d   : > { %12477 = vrot.lane.b32.xlu0 %v15161_v37, %s18268_s7  ;;  %v12180_v8 = vunpack.i.h.bf16 %v12178_v55  ;;  %v12179_v9 = vunpack.i.l.bf16 %v12178_v55  ;;  %v4639_v51 = vsel %vm4635_vm15, %v4602_v27, %v12170_v58  ;;  %v3237_v58 = vld [vmem:[#allocation3 + $0xa1] sm:$0xff]  ;;  %v3420_v27 = vld [vmem:[#allocation3 + $0xae] sm:$0xff] }
 0x26e   : > { %12462 = vrot.lane.b32.xlu1 %v15062_v12, %s18267_s8  ;;  %v4747_v12 = vsel %vm4746_vm4, %v4710_v60, %v12194_v61  ;;  %v4748_v47 = vsel %vm4746_vm4, %v4711_v53, %v12195_v59  ;;  %v3385_v61 = vld [vmem:[#allocation3 + $0xb5] sm:$0xff]  ;;  %v3238_v60 = vld [vmem:[#allocation3 + $0xa9] sm:$0xff] }
 0x26f   : > { %v12203_v48 = vpop.permute.xlu0 %12202  ;;  %v4676_v33 = vsel %vm4672_vm0, %v4639_v51, %v12180_v8  ;;  %v12516_v1 = vpack.i.bf16 %v3386_v3, %v3385_v61  ;;  %v3383_v53 = vld [vmem:[#allocation3 + $0xa5] sm:$0xff]  ;;  %v3239_v51 = vld [vmem:[#allocation3 + $0xb1] sm:$0xff] }
 0x270   : > { %v12205_v21 = vunpack.i.h.bf16 %v12203_v48  ;;  %v12204_v49 = vunpack.i.l.bf16 %v12203_v48  ;;  %v12188_v57 = vpop.permute.xlu1 %12187  ;;  %v3277_v3 = vld [vmem:[#allocation3 + $0xc2] sm:$0xff] }
 0x271   : > { %12487 = vrot.lane.b32.xlu0 %v12486_v22, %s18269_s4  ;;  %v12190_v31 = vunpack.i.h.bf16 %v12188_v57  ;;  %v12189_v23 = vunpack.i.l.bf16 %v12188_v57  ;;  %v4638_v22 = vsel %vm4635_vm15, %v4601_v20, %v12169_v44  ;;  %v3384_v44 = vld [vmem:[#allocation3 + $0xad] sm:$0xff]  ;;  %v3240_v20 = vld [vmem:[#allocation3 + $0xb9] sm:$0xff] }
 0x272   : > { %12472 = vrot.lane.b32.xlu1 %v15140_v6, %s18268_s7  ;;  %v4784_v7 = vsel %vm4783_vm5, %v4747_v12, %v12204_v49  ;;  %v4785_v16 = vsel %vm4783_vm5, %v4748_v47, %v12205_v21  ;;  %v3348_v6 = vld [vmem:[#allocation3 + $0xb4] sm:$0xff]  ;;  %v4675_v35 = vsel %vm4672_vm0, %v4638_v22, %v12179_v9  ;;  %v12526_v12 = vpack.i.bf16 %v3238_v60, %v3237_v58  ;;  %v3186_v60 = vld [vmem:[#allocation3 + $0x28] sm:$0xff] }
 0x273   : > { %v12213_v29 = vpop.permute.xlu0 %12212  ;;  %v4820_v28 = vpack.c.bf16 %v4785_v16, %v4784_v7  ;;  %v4712_v43 = vsel %vm4709_vm3, %v4675_v35, %v12189_v23  ;;  %v4713_v45 = vsel %vm4709_vm3, %v4676_v33, %v12190_v31  ;;  %v15212_v32 = vpack.i.bf16 %v3349_v38, %v3348_v6  ;;  %v15241_v31 = vld [vmem:[%s18265_s9 + $0x2] ss:$0 sm:$0xff] }
 0x274   : > { %v12215_v5 = vunpack.i.h.bf16 %v12213_v29  ;;  %v12214_v42 = vunpack.i.l.bf16 %v12213_v29  ;;  %v12198_v36 = vpop.permute.xlu1 %12197  ;;  %v12511_v47 = vpack.i.bf16 %v3384_v44, %v3383_v53  ;;  %v3276_v33 = vld [vmem:[#allocation3 + $0xba] sm:$0xff] }
 0x275   : > { %v12200_v10 = vunpack.i.h.bf16 %v12198_v36  ;;  %v12199_v13 = vunpack.i.l.bf16 %v12198_v36  ;;  %12497 = vrot.lane.b32.xlu0 %v12496_v4, %s18270_s1  ;;  %11009 = vmatprep.mubr.msk.bf16.mxu1 %vm4881_vm6, %v4820_v28  ;;  %v3419_v36 = vld [vmem:[#allocation3 + $0xa6] sm:$0xff] }
 0x276   : > { %12482 = vrot.lane.b32.xlu1 %v12481_v14, %s18269_s4  ;;  %v12521_v35 = vpack.i.bf16 %v3420_v27, %v3419_v36 }
 0x277   : > { %v4749_v52 = vsel %vm4746_vm4, %v4712_v43, %v12199_v13  ;;  %v4750_v41 = vsel %vm4746_vm4, %v4713_v45, %v12200_v10  ;;  %v15210_v55 = vpop.permute.xlu0 %12222  ;;  %v3421_v13 = vld [vmem:[#allocation3 + $0xb6] sm:$0xff]  ;;  %v3422_v43 = vld [vmem:[#allocation3 + $0xbe] sm:$0xff] }
 0x278   : > { %v4786_v15 = vsel %vm4783_vm5, %v4749_v52, %v12214_v42  ;;  %v4787_v59 = vsel %vm4783_vm5, %v4750_v41, %v12215_v5  ;;  %v15226_v21 = vpop.permute.xlu1 %12207  ;;  %v12536_v42 = vpack.i.bf16 %v3240_v20, %v3239_v51  ;;  %v12531_v61 = vpack.i.bf16 %v3422_v43, %v3421_v13  ;;  %v15300_v20 = vld [vmem:[#allocation3 + $0xce] sm:$0xff]  ;;  %v15309_v51 = vld [vmem:[#allocation3 + $0xdd] sm:$0xff] }
 0x279   : > { %v10993_v56 = vpop.f32.mrf.mxu0  ;;  %12507 = vrot.lane.b32.xlu0 %v15212_v32, %s18273_s17  ;;  %v4821_v11 = vpack.c.bf16 %v4787_v59, %v4786_v15  ;;  %v12210_v58 = vunpack.i.h.bf16 %v15226_v21  ;;  %v12209_v44 = vunpack.i.l.bf16 %v15226_v21  ;;  %v3352_v21 = vld [vmem:[#allocation3 + $0xd4] sm:$0xff]  ;;  %v12225_v27 = vunpack.i.h.bf16 %v15210_v55 }
 0x27a   : > { %v2747_v24 = vadd.f32 %v15089_v46, %v10993_v56  ;;  %12492 = vrot.lane.b32.xlu1 %v15080_v62, %s18270_s1  ;;  %v15231_v62 = vld [vmem:[%s18265_s9 + $0x1] ss:$0 sm:$0xff]  ;;  %s18306_s9 = sld [smem:[#allocation37_spill]] }
 0x27b   : > { %11010 = vmatmul.mubr.msk.bf16.vlgmr.msra.gmra.mxu1 %vm4881_vm6, %v4821_v11  ;;  %v2738_v14 = vpop.f32.mrf.mxu0  ;;  %v15222_v26 = vpop.permute.xlu0 %12227 }
 0x27c   : > { %v2799_v54 = vmax.f32 %v2747_v24, 0.0  ;;  %v2739_v2 = vadd.f32 %v15089_v46, %v2738_v14  ;;  %v15257_v10 = vpop.permute.xlu1 %12217  ;;  %v3315_v14 = vld [vmem:[#allocation3 + $0xcb] sm:$0xff] }
 0x27d   : > { %v10994_v48 = vpop.f32.mrf.mxu0  ;;  %12517 = vrot.lane.b32.xlu0 %v12516_v1, %s18272_s0  ;;  %v12220_v53 = vunpack.i.h.bf16 %v15257_v10 }
 0x27e   : > { %v2839_v49 = vmul.f32 %v15231_v62, %v2799_v54  ;;  %v2797_v57 = vmax.f32 %v2739_v2, 0.0  ;;  %v2750_v18 = vadd.f32 %v15089_v46, %v10994_v48  ;;  %12502 = vrot.lane.b32.xlu1 %v12496_v4, %s18273_s17  ;;  %v3313_v54 = vld [vmem:[#allocation3 + $0xbb] sm:$0xff] }
 0x27f   : > { %v2741_v8 = vpop.f32.mrf.mxu0  ;;  %v15236_v9 = vpop.permute.xlu0 %12237  ;;  %v15283_v2 = vld [vmem:[#allocation3 + $0xc1] sm:$0xff] }
 0x280   : > { %v2879_v23 = vadd.f32 %v15241_v31, %v2839_v49  ;;  %v2837_v40 = vmul.f32 %v15231_v62, %v2797_v57  ;;  %v2800_v7 = vmax.f32 %v2750_v18, 0.0  ;;  %v2742_v16 = vadd.f32 %v15089_v46, %v2741_v8  ;;  %v3351_v57 = vld [vmem:[#allocation3 + $0xcc] sm:$0xff]  ;;  %v3185_v18 = vld [vmem:[#allocation3 + $0x20] sm:$0xff] }
 0x281   : > { %12527 = vrot.lane.b32.xlu0 %v12526_v12, %s18261_s30  ;;  %v12219_v8 = vunpack.i.l.bf16 %v15257_v10  ;;  %v3350_v12 = vld [vmem:[#allocation3 + $0xc4] sm:$0xff]  ;;  %v4529_v36 = vsel %vm2461_vm1, %v3185_v18, %v12209_v44  ;;  %v12240_v43 = vunpack.i.h.bf16 %v15236_v9 }
 0x282   : > { %v3131_v29 = vmul.f32 %v15064_v34, %v2879_v23  ;;  %v2877_v4 = vadd.f32 %v15241_v31, %v2837_v40  ;;  %v2840_v28 = vmul.f32 %v15231_v62, %v2800_v7  ;;  %v2798_v22 = vmax.f32 %v2742_v16, 0.0  ;;  %12512 = vrot.lane.b32.xlu1 %v12511_v47, %s18272_s0  ;;  %v15291_v47 = vld [vmem:[#allocation3 + $0xc9] sm:$0xff] }
 0x283   : > { %v15251_v5 = vpop.permute.xlu0 %12247  ;;  %v12606_v7 = vpack.i.bf16 %v15291_v47, %v15283_v2  ;;  %v15298_v16 = vld [vmem:[#allocation3 + $0xcd] sm:$0xff] }
 0x284   : > { %3174 = vst.msk [vmem:[#allocation3 + $0x103] sm:$0xff] %vm2461_vm1, %v3131_v29  ;;  %v3129_v6 = vmul.f32 %v15049_v30, %v2877_v4  ;;  %v2880_v38 = vadd.f32 %v15241_v31, %v2840_v28  ;;  %v2838_v34 = vmul.f32 %v15231_v62, %v2798_v22  ;;  %v3275_v30 = vld [vmem:[#allocation3 + $0xb2] sm:$0xff]  ;;  %v12224_v29 = vunpack.i.l.bf16 %v15210_v55  ;;  %v3353_v28 = vld [vmem:[#allocation3 + $0xdc] sm:$0xff] }
 0x285   : > { %12537 = vrot.lane.b32.xlu0 %v12536_v42, %s18261_s30  ;;  %v12546_v15 = vpack.i.bf16 %v3276_v33, %v3275_v30  ;;  %v15305_v4 = vpack.i.bf16 %v3351_v57, %v3350_v12  ;;  %v15307_v22 = vld [vmem:[#allocation3 + $0xd5] sm:$0xff]  ;;  %v4530_v42 = vsel %vm2461_vm1, %v3186_v60, %v12210_v58  ;;  %v15325_v30 = vld [vmem:[#allocation3 + $0xc6] sm:$0xff]  ;;  %v12250_v12 = vunpack.i.h.bf16 %v15251_v5 }
 0x286   : > { %3172 = vst.msk [vmem:[#allocation3 + $0xf3] sm:$0xff] %vm2461_vm1, %v3129_v6  ;;  %v3132_v45 = vmul.f32 %v15046_v25, %v2880_v38  ;;  %v2878_v52 = vadd.f32 %v15241_v31, %v2838_v34  ;;  %12522 = vrot.lane.b32.xlu1 %v12521_v35, %s18271_s2  ;;  %v3278_v25 = vld [vmem:[#allocation3 + $0xca] sm:$0xff]  ;;  %v12230_v6 = vunpack.i.h.bf16 %v15222_v26  ;;  %v12229_v38 = vunpack.i.l.bf16 %v15222_v26  ;;  %v3188_v35 = vld [vmem:[#allocation3 + $0x38] sm:$0xff] }
 0x287   : > { %v15264_v41 = vpop.permute.xlu0 %12257  ;;  %v15275_v24 = vpack.i.bf16 %v3278_v25, %v3277_v3  ;;  %v3187_v34 = vld [vmem:[#allocation3 + $0x30] sm:$0xff]  ;;  %v15317_v33 = vld [vmem:[#allocation3 + $0xd9] sm:$0xff]  ;;  %v4532_v10 = vsel %vm2461_vm1, %v3188_v35, %v12220_v53  ;;  %v15331_v26 = vpack.i.bf16 %v3353_v28, %v3352_v21  ;;  %v12249_v21 = vunpack.i.l.bf16 %v15251_v5 }
 0x288   : > { %3175 = vst.msk [vmem:[#allocation3 + $0x10b] sm:$0xff] %vm2461_vm1, %v3132_v45  ;;  %v3130_v59 = vmul.f32 %v15032_v39, %v2878_v52  ;;  %v3314_v39 = vld [vmem:[#allocation3 + $0xc3] sm:$0xff]  ;;  %v4531_v13 = vsel %vm2461_vm1, %v3187_v34, %v12219_v8  ;;  %v12239_v45 = vunpack.i.l.bf16 %v15236_v9  ;;  %v15337_v3 = vld [vmem:[#allocation3 + $0xd1] sm:$0xff]  ;;  %v12601_v9 = vpack.i.bf16 %v15300_v20, %v15325_v30 }
 0x289   : > { %v15268_v56 = vpop.permute.xlu1 %3098  ;;  %12547 = vrot.lane.b32.xlu0 %v12546_v15, %s18267_s8  ;;  %v12566_v49 = vpack.i.bf16 %v3315_v14, %v3314_v39  ;;  %v15323_v52 = vld [vmem:[#allocation3 + $0xc5] sm:$0xff]  ;;  %v4566_v14 = vsel %vm4561_vm13, %v4529_v36, %v12224_v29  ;;  %v4567_v39 = vsel %vm4561_vm13, %v4530_v42, %v12225_v27  ;;  %v12616_v58 = vpack.i.bf16 %v15317_v33, %v15337_v3 }
 0x28a   : > { %3173 = vst.msk [vmem:[#allocation3 + $0xfb] sm:$0xff] %vm2461_vm1, %v3130_v59  ;;  %12532 = vrot.lane.b32.xlu1 %v12531_v61, %s18271_s2  ;;  %v12596_v59 = vpack.i.bf16 %v15309_v51, %v15307_v22  ;;  %v12591_v61 = vpack.i.bf16 %v15298_v16, %v15323_v52  ;;  %v4568_v44 = vsel %vm4561_vm13, %v4531_v13, %v12229_v38  ;;  %v12260_v27 = vunpack.i.h.bf16 %v15264_v41 }
 0x28b   : > { %v15273_v11 = vpop.permute.xlu0 %12267  ;;  %v15354_v53 = vsel %vm4598_vm14, %v4568_v44, %v12239_v45  ;;  %v12259_v22 = vunpack.i.l.bf16 %v15264_v41 }
 0x28c   : > { %v12270_v51 = vunpack.i.h.bf16 %v15273_v11  ;;  %v12269_v42 = vunpack.i.l.bf16 %v15273_v11 }
 0x28d   : > { %v15277_v1 = vpop.permute.xlu1 %12232  ;;  %12557 = vrot.lane.b32.xlu0 %v15275_v24, %s18268_s7 }
 0x28e   : > { %12542 = vrot.lane.b32.xlu1 %v15161_v37, %s18267_s8  ;;  %v3312_v37 = vld [vmem:[#allocation3 + $0xb3] sm:$0xff]  ;;  %v12234_v25 = vunpack.i.l.bf16 %v15277_v1  ;;  %v12235_v57 = vunpack.i.h.bf16 %v15277_v1 }
 0x28f   : > { %v15287_v48 = vpop.permute.xlu0 %12277  ;;  %v12561_v40 = vpack.i.bf16 %v3313_v54, %v3312_v37 }
 0x290   : > { %v4603_v36 = vsel %vm4598_vm14, %v4566_v14, %v12234_v25  ;;  %v4604_v38 = vsel %vm4598_vm14, %v4567_v39, %v12235_v57 }
 0x291   : > { %v15293_v23 = vpop.permute.xlu1 %12242  ;;  %12567 = vrot.lane.b32.xlu0 %v12566_v49, %s18269_s4  ;;  %v4569_v49 = vsel %vm4561_vm13, %v4532_v10, %v12230_v6 }
 0x292   : > { %12552 = vrot.lane.b32.xlu1 %v12546_v15, %s18268_s7  ;;  %v15357_v8 = vsel %vm4598_vm14, %v4569_v49, %v12240_v43  ;;  %v12244_v37 = vunpack.i.l.bf16 %v15293_v23  ;;  %v12245_v43 = vunpack.i.h.bf16 %v15293_v23 }
 0x293   : > { %v15315_v55 = vpop.permute.xlu0 %12287  ;;  %v4643_v16 = vsel %vm4635_vm15, %v15357_v8, %v12250_v12  ;;  %v3425_v8 = vld [vmem:[#allocation3 + $0xd6] sm:$0xff]  ;;  %v3426_v12 = vld [vmem:[#allocation3 + $0xde] sm:$0xff] }
 0x294   : > { %v4640_v45 = vsel %vm4635_vm15, %v4603_v36, %v12244_v37 }
 0x295   : > { %v15327_v15 = vpop.permute.xlu1 %12252  ;;  %12577 = vrot.lane.b32.xlu0 %v15305_v4, %s18270_s1 }
 0x296   : > { %12562 = vrot.lane.b32.xlu1 %v12561_v40, %s18269_s4  ;;  %v10997_v54 = vpop.f32.mrf.mxu0  ;;  %v12255_v25 = vunpack.i.h.bf16 %v15327_v15  ;;  %v12254_v14 = vunpack.i.l.bf16 %v15327_v15 }
 0x297   : > { %v2763_v18 = vadd.f32 %v15089_v46, %v10997_v54  ;;  %v15351_v60 = vpop.permute.xlu0 %12297 }
 0x298   : > { %v2754_v40 = vpop.f32.mrf.mxu0 }
 0x299   : > { %v2803_v1 = vmax.f32 %v2763_v18, 0.0  ;;  %v2755_v29 = vadd.f32 %v15089_v46, %v2754_v40  ;;  %v12263_v28 = vpop.permute.xlu1 %12262  ;;  %12587 = vrot.lane.b32.xlu0 %v15331_v26, %s18273_s17 }
 0x29a   : > { %12572 = vrot.lane.b32.xlu1 %v15212_v32, %s18270_s1  ;;  %v10998_v6 = vpop.f32.mrf.mxu0  ;;  %v12265_v18 = vunpack.i.h.bf16 %v12263_v28  ;;  %v12264_v40 = vunpack.i.l.bf16 %v12263_v28  ;;  %v4641_v28 = vsel %vm4635_vm15, %v4604_v38, %v12245_v43 }
 0x29b   : > { %v2843_v34 = vmul.f32 %v15231_v62, %v2803_v1  ;;  %v2801_v35 = vmax.f32 %v2755_v29, 0.0  ;;  %v2766_v10 = vadd.f32 %v15089_v46, %v10998_v6  ;;  %v15375_v13 = vpop.permute.xlu0 %12307 }
 0x29c   : > { %v2757_v32 = vpop.f32.mrf.mxu0 }
 0x29d   : > { %v2883_v54 = vadd.f32 %v15241_v31, %v2843_v34  ;;  %v2841_v39 = vmul.f32 %v15231_v62, %v2801_v35  ;;  %v2804_v44 = vmax.f32 %v2766_v10, 0.0  ;;  %v2758_v49 = vadd.f32 %v15089_v46, %v2757_v32  ;;  %v12273_v57 = vpop.permute.xlu1 %12272  ;;  %12597 = vrot.lane.b32.xlu0 %v12596_v59, %s18272_s0 }
 0x29e   : > { %v12275_v23 = vunpack.i.h.bf16 %v12273_v57  ;;  %v12274_v1 = vunpack.i.l.bf16 %v12273_v57  ;;  %12582 = vrot.lane.b32.xlu1 %v15305_v4, %s18273_s17  ;;  %v12280_v46 = vunpack.i.h.bf16 %v15287_v48  ;;  %v12279_v59 = vunpack.i.l.bf16 %v15287_v48 }
 0x29f   : > { %v3135_v15 = vmul.f32 %v15082_v63, %v2883_v54  ;;  %v2881_v37 = vadd.f32 %v15241_v31, %v2841_v39  ;;  %v2844_v29 = vmul.f32 %v15231_v62, %v2804_v44  ;;  %v2802_v36 = vmax.f32 %v2758_v49, 0.0  ;;  %v15390_v6 = vpop.permute.xlu0 %12317  ;;  %v3281_v44 = vld [vmem:[#allocation3 + $0xe2] sm:$0xff] }
 0x2a0   : > { %v4677_v34 = vsel %vm4672_vm0, %v4640_v45, %v12254_v14  ;;  %v4678_v35 = vsel %vm4672_vm0, %v4641_v28, %v12255_v25  ;;  %v4642_v25 = vsel %vm4635_vm15, %v15354_v53, %v12249_v21  ;;  %v4680_v14 = vsel %vm4672_vm0, %v4643_v16, %v12260_v27 }
 0x2a1   : > { %3178 = vst.msk [vmem:[#allocation3 + $0x123] sm:$0xff] %vm2461_vm1, %v3135_v15  ;;  %v3133_v63 = vmul.f32 %v15073_v50, %v2881_v37  ;;  %v2884_v4 = vadd.f32 %v15241_v31, %v2844_v29  ;;  %v2842_v10 = vmul.f32 %v15231_v62, %v2802_v36  ;;  %v12283_v32 = vpop.permute.xlu1 %12282  ;;  %12607 = vrot.lane.b32.xlu0 %v12606_v7, %s18261_s30  ;;  %v3355_v37 = vld [vmem:[#allocation3 + $0xec] sm:$0xff]  ;;  %v3317_v36 = vld [vmem:[#allocation3 + $0xdb] sm:$0xff]  ;;  %v12310_v16 = vunpack.i.h.bf16 %v15375_v13 }
 0x2a2   : > { %v4714_v48 = vsel %vm4709_vm3, %v4677_v34, %v12264_v40  ;;  %v4715_v38 = vsel %vm4709_vm3, %v4678_v35, %v12265_v18  ;;  %v12285_v43 = vunpack.i.h.bf16 %v12283_v32  ;;  %v12284_v45 = vunpack.i.l.bf16 %v12283_v32  ;;  %12592 = vrot.lane.b32.xlu1 %v12591_v61, %s18272_s0  ;;  %v3280_v61 = vld [vmem:[#allocation3 + $0xda] sm:$0xff]  ;;  %v3319_v18 = vld [vmem:[#allocation3 + $0xeb] sm:$0xff] }
 0x2a3   : > { %3176 = vst.msk [vmem:[#allocation3 + $0x113] sm:$0xff] %vm2461_vm1, %v3133_v63  ;;  %v3136_v50 = vmul.f32 %v15268_v56, %v2884_v4  ;;  %v2882_v62 = vadd.f32 %v15241_v31, %v2842_v10  ;;  %v4751_v2 = vsel %vm4746_vm4, %v4714_v48, %v12274_v1  ;;  %v4752_v47 = vsel %vm4746_vm4, %v4715_v38, %v12275_v23  ;;  %v15416_v7 = vpop.permute.xlu0 %12327  ;;  %v3318_v23 = vld [vmem:[#allocation3 + $0xe3] sm:$0xff]  ;;  %v3316_v34 = vld [vmem:[#allocation3 + $0xd3] sm:$0xff] }
 0x2a4   : > { %v4788_v52 = vsel %vm4783_vm5, %v4751_v2, %v12284_v45  ;;  %v4789_v56 = vsel %vm4783_vm5, %v4752_v47, %v12285_v43  ;;  %v4679_v31 = vsel %vm4672_vm0, %v4642_v25, %v12259_v22  ;;  %v4717_v41 = vsel %vm4709_vm3, %v4680_v14, %v12270_v51  ;;  %v15479_v35 = vld [vmem:[#allocation3 + $0xe1] sm:$0xff]  ;;  %v3356_v63 = vld [vmem:[#allocation3 + $0xf4] sm:$0xff]  ;;  %v15487_v38 = vld [vmem:[#allocation3 + $0xe9] sm:$0xff] }
 0x2a5   : > { %3180 = vst.msk [vmem:[#allocation3 + $0x12b] sm:$0x3f] %vm3179_vm7, %v3136_v50  ;;  %v3134_v53 = vmul.f32 %v15060_v19, %v2882_v62  ;;  %v12293_v21 = vpop.permute.xlu1 %12292  ;;  %12617 = vrot.lane.b32.xlu0 %v12616_v58, %s18261_s30  ;;  %v4822_v5 = vpack.c.bf16 %v4789_v56, %v4788_v52  ;;  %v4716_v22 = vsel %vm4709_vm3, %v4679_v31, %v12269_v42  ;;  %v3279_v19 = vld [vmem:[#allocation3 + $0xd2] sm:$0xff]  ;;  %v3357_v4 = vld [vmem:[#allocation3 + $0xfc] sm:$0xff]  ;;  %v12290_v10 = vunpack.i.h.bf16 %v15315_v55  ;;  %v3391_v31 = vld [vmem:[#allocation3 + $0xe5] sm:$0xff] }
 0x2a6   : > { %v12295_v27 = vunpack.i.h.bf16 %v12293_v21  ;;  %v12294_v54 = vunpack.i.l.bf16 %v12293_v21  ;;  %12602 = vrot.lane.b32.xlu1 %v12601_v9, %s18271_s2  ;;  %v4753_v33 = vsel %vm4746_vm4, %v4716_v22, %v12279_v59  ;;  %v4754_v3 = vsel %vm4746_vm4, %v4717_v41, %v12280_v46  ;;  %v3282_v9 = vld [vmem:[#allocation3 + $0xea] sm:$0xff]  ;;  %v3393_v2 = vld [vmem:[#allocation3 + $0xf5] sm:$0xff]  ;;  %v3394_v47 = vld [vmem:[#allocation3 + $0xfd] sm:$0xff] }
 0x2a7   : > { %3177 = vst.msk [vmem:[#allocation3 + $0x11b] sm:$0xff] %vm2461_vm1, %v3134_v53  ;;  %11013 = vmatprep.mubr.msk.bf16.mxu1 %vm4881_vm6, %v4822_v5  ;;  %v15450_v58 = vpop.permute.xlu0 %12337  ;;  %v12626_v11 = vpack.i.bf16 %v3280_v61, %v3279_v19  ;;  %v12611_v39 = vpack.i.bf16 %v3426_v12, %v3425_v8  ;;  %v15461_v57 = vpack.i.bf16 %v3282_v9, %v3281_v44  ;;  %v3354_v46 = vld [vmem:[#allocation3 + $0xe4] sm:$0xff]  ;;  %v12289_v32 = vunpack.i.l.bf16 %v15315_v55  ;;  %v15489_v43 = vld [vmem:[#allocation3 + $0xed] sm:$0xff]  ;;  %v15498_v25 = vld [vmem:[#allocation3 + $0xf9] sm:$0xff] }
 0x2a8   : > { %v4790_v51 = vsel %vm4783_vm5, %v4753_v33, %v12294_v54  ;;  %v4791_v42 = vsel %vm4783_vm5, %v4754_v3, %v12295_v27  ;;  %v12646_v15 = vpack.i.bf16 %v3319_v18, %v3318_v23  ;;  %v15477_v28 = vpack.i.bf16 %v3355_v37, %v3354_v46  ;;  %v15491_v45 = vld [vmem:[#allocation3 + $0xee] sm:$0xff]  ;;  %v15506_v14 = vld [vmem:[#allocation3 + $0xe6] sm:$0xff]  ;;  %v3192_v54 = vld [vmem:[#allocation3 + $0x58] sm:$0xff] }
 0x2a9   : > { %v15454_v20 = vpop.permute.xlu1 %12302  ;;  %12627 = vrot.lane.b32.xlu0 %v12626_v11, %s18267_s8  ;;  %v4823_v30 = vpack.c.bf16 %v4791_v42, %v4790_v51  ;;  %v12300_v50 = vunpack.i.h.bf16 %v15351_v60  ;;  %v12299_v62 = vunpack.i.l.bf16 %v15351_v60  ;;  %v12686_v55 = vpack.i.bf16 %v15487_v38, %v15479_v35  ;;  %v3189_v60 = vld [vmem:[#allocation3 + $0x40] sm:$0xff]  ;;  %v3190_v53 = vld [vmem:[#allocation3 + $0x48] sm:$0xff]  ;;  %v15511_v12 = vld [vmem:[#allocation3 + $0xf1] sm:$0xff] }
 0x2aa   : > { %12612 = vrot.lane.b32.xlu1 %v12611_v39, %s18271_s2  ;;  %v12309_v52 = vunpack.i.l.bf16 %v15375_v13  ;;  %v15504_v61 = vpack.i.bf16 %v3357_v4, %v3356_v63  ;;  %v12320_v21 = vunpack.i.h.bf16 %v15390_v6  ;;  %v12319_v5 = vunpack.i.l.bf16 %v15390_v6  ;;  %v3191_v27 = vld [vmem:[#allocation3 + $0x50] sm:$0xff] }
 0x2ab   : > { %11014 = vmatmul.mubr.msk.bf16.gmra.mxu1 %vm4881_vm6, %v4823_v30  ;;  %v15459_v49 = vpop.permute.xlu0 %12347  ;;  %v12671_v8 = vpack.i.bf16 %v15489_v43, %v3391_v31  ;;  %v12681_v13 = vpack.i.bf16 %v15491_v45, %v15506_v14  ;;  %v4534_v22 = vsel %vm2461_vm1, %v3190_v53, %v12290_v10  ;;  %v4533_v41 = vsel %vm2461_vm1, %v3189_v60, %v12289_v32  ;;  %v3286_v14 = vld [vmem:[#allocation3 + $0x10a] sm:$0xff] }
 0x2ac   : > { %v12676_v33 = vpack.i.bf16 %v3394_v47, %v3393_v2  ;;  %v12696_v6 = vpack.i.bf16 %v15498_v25, %v15511_v12  ;;  %v4536_v3 = vsel %vm2461_vm1, %v3192_v54, %v12300_v50  ;;  %v12305_v51 = vunpack.i.h.bf16 %v15454_v20  ;;  %v3284_v54 = vld [vmem:[#allocation3 + $0xfa] sm:$0xff] }
 0x2ad   : > { %v15463_v40 = vpop.permute.xlu1 %12312  ;;  %12637 = vrot.lane.b32.xlu0 %v15461_v57, %s18268_s7  ;;  %v12304_v42 = vunpack.i.l.bf16 %v15454_v20  ;;  %v4573_v44 = vsel %vm4561_vm13, %v4536_v3, %v12310_v16  ;;  %v12339_v43 = vunpack.i.l.bf16 %v15450_v58  ;;  %v12350_v2 = vunpack.i.h.bf16 %v15459_v49  ;;  %v3429_v3 = vld [vmem:[#allocation3 + $0xf6] sm:$0xff] }
 0x2ae   : > { %12622 = vrot.lane.b32.xlu1 %v15275_v24, %s18267_s8  ;;  %v12641_v24 = vpack.i.bf16 %v3317_v36, %v3316_v34  ;;  %v12315_v30 = vunpack.i.h.bf16 %v15463_v40  ;;  %v12314_v9 = vunpack.i.l.bf16 %v15463_v40  ;;  %v12329_v36 = vunpack.i.l.bf16 %v15416_v7 }
 0x2af   : > { %v15469_v1 = vpop.permute.xlu0 %12357  ;;  %v4571_v40 = vsel %vm4561_vm13, %v4534_v22, %v12305_v51 }
 0x2b0   : > { %v12360_v53 = vunpack.i.h.bf16 %v15469_v1 }
 0x2b1   : > { %v15471_v29 = vpop.permute.xlu1 %12322  ;;  %12647 = vrot.lane.b32.xlu0 %v12646_v15, %s18269_s4  ;;  %v4610_v15 = vsel %vm4598_vm14, %v4573_v44, %v12320_v21  ;;  %v12359_v21 = vunpack.i.l.bf16 %v15469_v1 }
 0x2b2   : > { %12632 = vrot.lane.b32.xlu1 %v12626_v11, %s18268_s7  ;;  %v4535_v11 = vsel %vm2461_vm1, %v3191_v27, %v12299_v62  ;;  %v12325_v37 = vunpack.i.h.bf16 %v15471_v29  ;;  %v12324_v20 = vunpack.i.l.bf16 %v15471_v29 }
 0x2b3   : > { %v15475_v59 = vpop.permute.xlu0 %12367  ;;  %v4572_v39 = vsel %vm4561_vm13, %v4535_v11, %v12309_v52  ;;  %v3430_v11 = vld [vmem:[#allocation3 + $0xfe] sm:$0xff] }
 0x2b4   : > { %v4609_v23 = vsel %vm4598_vm14, %v4572_v39, %v12319_v5 }
 0x2b5   : > { %v15483_v48 = vpop.permute.xlu1 %12332  ;;  %12657 = vrot.lane.b32.xlu0 %v15477_v28, %s18270_s1 }
 0x2b6   : > { %12642 = vrot.lane.b32.xlu1 %v12641_v24, %s18269_s4  ;;  %v12335_v46 = vunpack.i.h.bf16 %v15483_v48  ;;  %v12334_v34 = vunpack.i.l.bf16 %v15483_v48  ;;  %v4570_v24 = vsel %vm4561_vm13, %v4533_v41, %v12304_v42  ;;  %v12340_v48 = vunpack.i.h.bf16 %v15450_v58 }
 0x2b7   : > { %v15502_v56 = vpop.permute.xlu0 %12377  ;;  %v4607_v29 = vsel %vm4598_vm14, %v4570_v24, %v12314_v9  ;;  %v3322_v24 = vld [vmem:[#allocation3 + $0x103] sm:$0xff] }
 0x2b8   : > { %v4644_v50 = vsel %vm4635_vm15, %v4607_v29, %v12324_v20  ;;  %v3359_v29 = vld [vmem:[#allocation3 + $0x10c] sm:$0xff] }
 0x2b9   : > { %v12343_v19 = vpop.permute.xlu1 %12342  ;;  %12667 = vrot.lane.b32.xlu0 %v15504_v61, %s18273_s17  ;;  %v4681_v47 = vsel %vm4672_vm0, %v4644_v50, %v12334_v34  ;;  %v3320_v50 = vld [vmem:[#allocation3 + $0xf3] sm:$0xff] }
 0x2ba   : > { %12652 = vrot.lane.b32.xlu1 %v15331_v26, %s18270_s1  ;;  %v12330_v26 = vunpack.i.h.bf16 %v15416_v7  ;;  %v12345_v63 = vunpack.i.h.bf16 %v12343_v19  ;;  %v12344_v4 = vunpack.i.l.bf16 %v12343_v19  ;;  %v4608_v7 = vsel %vm4598_vm14, %v4571_v40, %v12315_v30  ;;  %v3283_v30 = vld [vmem:[#allocation3 + $0xf2] sm:$0xff] }
 0x2bb   : > { %v15531_v18 = vpop.permute.xlu0 %12387  ;;  %v4645_v62 = vsel %vm4635_vm15, %v4608_v7, %v12325_v37 }
 0x2bc   : > { %v4682_v25 = vsel %vm4672_vm0, %v4645_v62, %v12335_v46  ;;  %v4718_v52 = vsel %vm4709_vm3, %v4681_v47, %v12344_v4  ;;  %v4647_v22 = vsel %vm4635_vm15, %v4610_v15, %v12330_v26  ;;  %v12706_v15 = vpack.i.bf16 %v3284_v54, %v3283_v30  ;;  %v15615_v47 = vld [vmem:[#allocation3 + $0x10d] sm:$0xff] }
 0x2bd   : > { %v12353_v35 = vpop.permute.xlu1 %12352  ;;  %12677 = vrot.lane.b32.xlu0 %v12676_v33, %s18272_s0  ;;  %v4719_v31 = vsel %vm4709_vm3, %v4682_v25, %v12345_v63  ;;  %v4684_v19 = vsel %vm4672_vm0, %v4647_v22, %v12340_v48  ;;  %v12691_v26 = vpack.i.bf16 %v3430_v11, %v3429_v3  ;;  %v12370_v25 = vunpack.i.h.bf16 %v15475_v59  ;;  %v15644_v11 = vld [vmem:[#allocation3 + $0x111] sm:$0xff] }
 0x2be   : > { %12662 = vrot.lane.b32.xlu1 %v15477_v28, %s18273_s17  ;;  %v12355_v10 = vunpack.i.h.bf16 %v12353_v35  ;;  %v12354_v32 = vunpack.i.l.bf16 %v12353_v35  ;;  %v12349_v28 = vunpack.i.l.bf16 %v15459_v49  ;;  %v4721_v42 = vsel %vm4709_vm3, %v4684_v19, %v12350_v2  ;;  %v3323_v35 = vld [vmem:[#allocation3 + $0x10b] sm:$0xff]  ;;  %v3361_v2 = vld [vmem:[#allocation3 + $0x11c] sm:$0xff] }
 0x2bf   : > { %v15548_v38 = vpop.permute.xlu0 %12397  ;;  %v12726_v4 = vpack.i.bf16 %v3323_v35, %v3322_v24  ;;  %v12389_v22 = vunpack.i.l.bf16 %v15531_v18  ;;  %v3194_v19 = vld [vmem:[#allocation3 + $0x68] sm:$0xff] }
 0x2c0   : > { %v4755_v49 = vsel %vm4746_vm4, %v4718_v52, %v12354_v32  ;;  %v4756_v5 = vsel %vm4746_vm4, %v4719_v31, %v12355_v10  ;;  %v3321_v10 = vld [vmem:[#allocation3 + $0xfb] sm:$0xff]  ;;  %v3358_v32 = vld [vmem:[#allocation3 + $0x104] sm:$0xff] }
 0x2c1   : > { %v12363_v16 = vpop.permute.xlu1 %12362  ;;  %12687 = vrot.lane.b32.xlu0 %v12686_v55, %s18261_s30  ;;  %v4646_v55 = vsel %vm4635_vm15, %v4609_v23, %v12329_v36  ;;  %v4758_v23 = vsel %vm4746_vm4, %v4721_v42, %v12360_v53  ;;  %v3285_v36 = vld [vmem:[#allocation3 + $0x102] sm:$0xff]  ;;  %v12721_v62 = vpack.i.bf16 %v3321_v10, %v3320_v50  ;;  %v3397_v31 = vld [vmem:[#allocation3 + $0x115] sm:$0xff]  ;;  %v12380_v53 = vunpack.i.h.bf16 %v15502_v56 }
 0x2c2   : > { %v12365_v58 = vunpack.i.h.bf16 %v12363_v16  ;;  %v12364_v60 = vunpack.i.l.bf16 %v12363_v16  ;;  %12672 = vrot.lane.b32.xlu1 %v12671_v8, %s18272_s0  ;;  %v4683_v8 = vsel %vm4672_vm0, %v4646_v55, %v12339_v43  ;;  %v15595_v34 = vpack.i.bf16 %v3286_v14, %v3285_v36  ;;  %v15630_v55 = vld [vmem:[#allocation3 + $0x119] sm:$0x3f] }
 0x2c3   : > { %v15566_v12 = vpop.permute.xlu0 %12407  ;;  %v4720_v51 = vsel %vm4709_vm3, %v4683_v8, %v12349_v28  ;;  %v15611_v43 = vpack.i.bf16 %v3359_v29, %v3358_v32  ;;  %v15613_v28 = vld [vmem:[#allocation3 + $0x105] sm:$0xff]  ;;  %v12369_v16 = vunpack.i.l.bf16 %v15475_v59  ;;  %v12390_v59 = vunpack.i.h.bf16 %v15531_v18 }
 0x2c4   : > { %v4792_v41 = vsel %vm4783_vm5, %v4755_v49, %v12364_v60  ;;  %v4793_v27 = vsel %vm4783_vm5, %v4756_v5, %v12365_v58  ;;  %v4757_v9 = vsel %vm4746_vm4, %v4720_v51, %v12359_v21  ;;  %v3398_v58 = vld [vmem:[#allocation3 + $0x11d] sm:$0xff]  ;;  %v15623_v60 = vld [vmem:[#allocation3 + $0x10e] sm:$0xff]  ;;  %v12379_v21 = vunpack.i.l.bf16 %v15502_v56  ;;  %v15640_v8 = vld [vmem:[#allocation3 + $0x106] sm:$0xff] }
 0x2c5   : > { %v12373_v1 = vpop.permute.xlu1 %12372  ;;  %12697 = vrot.lane.b32.xlu0 %v12696_v6, %s18261_s30  ;;  %v4824_v33 = vpack.c.bf16 %v4793_v27, %v4792_v41  ;;  %v15628_v49 = vld [vmem:[#allocation3 + $0x116] sm:$0xff]  ;;  %v3434_v5 = vld [vmem:[#allocation3 + $0x11e] sm:$0xff]  ;;  %v12751_v54 = vpack.i.bf16 %v15615_v47, %v15613_v28  ;;  %v12756_v3 = vpack.i.bf16 %v3398_v58, %v3397_v31  ;;  %v12761_v18 = vpack.i.bf16 %v15623_v60, %v15640_v8  ;;  %v3291_v8 = vld [vmem:[#allocation3 + $0x12a] sm:$0x3f] }
 0x2c6   : > { %v12375_v39 = vunpack.i.h.bf16 %v12373_v1  ;;  %v12374_v44 = vunpack.i.l.bf16 %v12373_v1  ;;  %12682 = vrot.lane.b32.xlu1 %v12681_v13, %s18271_s2  ;;  %v3193_v56 = vld [vmem:[#allocation3 + $0x60] sm:$0xff]  ;;  %v12400_v1 = vunpack.i.h.bf16 %v15548_v38  ;;  %v4538_v51 = vsel %vm2461_vm1, %v3194_v19, %v12370_v25 }
 0x2c7   : > { %11017 = vmatprep.mubr.msk.bf16.mxu1 %vm4881_vm6, %v4824_v33  ;;  %v15584_v6 = vpop.permute.xlu0 %12417  ;;  %v12399_v33 = vunpack.i.l.bf16 %v15548_v38  ;;  %v4537_v42 = vsel %vm2461_vm1, %v3193_v56, %v12369_v16  ;;  %v12776_v38 = vpack.i.bf16 %v15630_v55, %v15644_v11  ;;  %v12409_v10 = vunpack.i.l.bf16 %v15566_v12 }
 0x2c8   : > { %v4795_v37 = vsel %vm4783_vm5, %v4758_v23, %v12375_v39  ;;  %v4794_v20 = vsel %vm4783_vm5, %v4757_v9, %v12374_v44  ;;  %v3195_v39 = vld [vmem:[#allocation3 + $0x70] sm:$0xff]  ;;  %v3196_v44 = vld [vmem:[#allocation3 + $0x78] sm:$0xff]  ;;  %v12766_v9 = vpack.i.bf16 %v3434_v5, %v15628_v49  ;;  %v12419_v31 = vunpack.i.l.bf16 %v15584_v6 }
 0x2c9   : > { %v15588_v46 = vpop.permute.xlu1 %12382  ;;  %12707 = vrot.lane.b32.xlu0 %v12706_v15, %s18267_s8  ;;  %v4825_v45 = vpack.c.bf16 %v4795_v37, %v4794_v20  ;;  %v4540_v23 = vsel %vm2461_vm1, %v3196_v44, %v12380_v53  ;;  %v3288_v44 = vld [vmem:[#allocation3 + $0x11a] sm:$0x3f] }
 0x2ca   : > { %12692 = vrot.lane.b32.xlu1 %v12691_v26, %s18271_s2  ;;  %v12385_v37 = vunpack.i.h.bf16 %v15588_v46  ;;  %v12384_v20 = vunpack.i.l.bf16 %v15588_v46  ;;  %v4577_v36 = vsel %vm4561_vm13, %v4540_v23, %v12390_v59  ;;  %v3249_v23 = vld [vmem:[#allocation3 + $0x101] sm:$0xff] }
 0x2cb   : > { %11018 = vmatmul.mubr.msk.bf16.gmra.mxu1 %vm4881_vm6, %v4825_v45  ;;  %v15593_v13 = vpop.permute.xlu0 %12427 }
 0x2cd   : > { %v15597_v40 = vpop.permute.xlu1 %12392  ;;  %12717 = vrot.lane.b32.xlu0 %v15595_v34, %s18268_s7 }
 0x2ce   : > { %12702 = vrot.lane.b32.xlu1 %v15461_v57, %s18267_s8  ;;  %v3360_v57 = vld [vmem:[#allocation3 + $0x114] sm:$0xff]  ;;  %v12395_v45 = vunpack.i.h.bf16 %v15597_v40  ;;  %v12394_v14 = vunpack.i.l.bf16 %v15597_v40  ;;  %v4575_v40 = vsel %vm4561_vm13, %v4538_v51, %v12385_v37 }
 0x2cf   : > { %v15603_v63 = vpop.permute.xlu0 %12437  ;;  %v15636_v27 = vpack.i.bf16 %v3361_v2, %v3360_v57  ;;  %v4574_v57 = vsel %vm4561_vm13, %v4537_v42, %v12384_v20 }
 0x2d0   : > { %v12440_v19 = vunpack.i.h.bf16 %v15603_v63 }
 0x2d1   : > { %v15605_v7 = vpop.permute.xlu1 %12402  ;;  %12727 = vrot.lane.b32.xlu0 %v12726_v4, %s18269_s4  ;;  %v4614_v4 = vsel %vm4598_vm14, %v4577_v36, %v12400_v1  ;;  %v12439_v1 = vunpack.i.l.bf16 %v15603_v63  ;;  %v3287_v36 = vld [vmem:[#allocation3 + $0x112] sm:$0xff] }
 0x2d2   : > { %12712 = vrot.lane.b32.xlu1 %v12706_v15, %s18268_s7  ;;  %v4539_v15 = vsel %vm2461_vm1, %v3195_v39, %v12379_v21  ;;  %v12405_v29 = vunpack.i.h.bf16 %v15605_v7  ;;  %v12404_v46 = vunpack.i.l.bf16 %v15605_v7  ;;  %v4611_v7 = vsel %vm4598_vm14, %v4574_v57, %v12394_v14  ;;  %v3289_v57 = vld [vmem:[#allocation3 + $0x11a] sm:$0xff] }
 0x2d3   : > { %v15609_v48 = vpop.permute.xlu0 %12447  ;;  %v4576_v26 = vsel %vm4561_vm13, %v4539_v15, %v12389_v22  ;;  %v12430_v21 = vunpack.i.h.bf16 %v15593_v13 }
 0x2d4   : > { %v4613_v24 = vsel %vm4598_vm14, %v4576_v26, %v12399_v33  ;;  %v4648_v58 = vsel %vm4635_vm15, %v4611_v7, %v12404_v46 }
 0x2d5   : > { %v15619_v52 = vpop.permute.xlu1 %12412  ;;  %12737 = vrot.lane.b32.xlu0 %v15611_v43, %s18270_s1  ;;  %v4650_v11 = vsel %vm4635_vm15, %v4613_v24, %v12409_v10  ;;  %v12786_v24 = vpack.i.bf16 %v3288_v44, %v3287_v36  ;;  %v3290_v10 = vld [vmem:[#allocation3 + $0x122] sm:$0xff]  ;;  %v15763_v44 = vld [vmem:[#allocation3 + $0x12e] sm:$0xff] }
 0x2d6   : > { %12722 = vrot.lane.b32.xlu1 %v12721_v62, %s18269_s4  ;;  %v12415_v32 = vunpack.i.h.bf16 %v15619_v52  ;;  %v12414_v50 = vunpack.i.l.bf16 %v15619_v52  ;;  %v12420_v52 = vunpack.i.h.bf16 %v15584_v6 }
 0x2d7   : > { %v15634_v41 = vpop.permute.xlu0 %12457 }
 0x2d8   : > { %v4685_v49 = vsel %vm4672_vm0, %v4648_v58, %v12414_v50  ;;  %v12796_v50 = vpack.i.bf16 %v3291_v8, %v3290_v10  ;;  %v3365_v58 = vld [vmem:[#allocation3 + $0x134] sm:$0xff] }
 0x2d9   : > { %v12423_v30 = vpop.permute.xlu1 %12422  ;;  %12747 = vrot.lane.b32.xlu0 %v15636_v27, %s18273_s17 }
 0x2da   : > { %12732 = vrot.lane.b32.xlu1 %v15504_v61, %s18270_s1  ;;  %v12410_v61 = vunpack.i.h.bf16 %v15566_v12  ;;  %v12425_v2 = vunpack.i.h.bf16 %v12423_v30  ;;  %v12424_v28 = vunpack.i.l.bf16 %v12423_v30  ;;  %v4612_v12 = vsel %vm4598_vm14, %v4575_v40, %v12395_v45 }
 0x2db   : > { %v15665_v35 = vpop.permute.xlu0 %12467  ;;  %v4649_v53 = vsel %vm4635_vm15, %v4612_v12, %v12405_v29  ;;  %v12791_v12 = vpack.i.bf16 %v3289_v57, %v3287_v36 }
 0x2dc   : > { %v4686_v5 = vsel %vm4672_vm0, %v4649_v53, %v12415_v32  ;;  %v4722_v59 = vsel %vm4709_vm3, %v4685_v49, %v12424_v28  ;;  %v4651_v51 = vsel %vm4635_vm15, %v4614_v4, %v12410_v61  ;;  %v3250_v4 = vld [vmem:[#allocation3 + $0x109] sm:$0xff]  ;;  %v3366_v53 = vld [vmem:[#allocation3 + $0x13c] sm:$0x3f] }
 0x2dd   : > { %v12433_v62 = vpop.permute.xlu1 %12432  ;;  %12757 = vrot.lane.b32.xlu0 %v12756_v3, %s18272_s0  ;;  %v4723_v22 = vsel %vm4709_vm3, %v4686_v5, %v12425_v2  ;;  %v4688_v30 = vsel %vm4672_vm0, %v4651_v51, %v12420_v52  ;;  %v12771_v61 = vpack.i.bf16 %v3250_v4, %v3249_v23  ;;  %v3326_v2 = vld [vmem:[#allocation3 + $0x123] sm:$0xff]  ;;  %v3401_v49 = vld [vmem:[#allocation3 + $0x135] sm:$0xff]  ;;  %v12459_v51 = vunpack.i.l.bf16 %v15634_v41 }
 0x2de   : > { %12742 = vrot.lane.b32.xlu1 %v15611_v43, %s18273_s17  ;;  %v12435_v47 = vunpack.i.h.bf16 %v12433_v62  ;;  %v12434_v25 = vunpack.i.l.bf16 %v12433_v62  ;;  %v12429_v43 = vunpack.i.l.bf16 %v15593_v13  ;;  %v4725_v37 = vsel %vm4709_vm3, %v4688_v30, %v12430_v21  ;;  %v3327_v62 = vld [vmem:[#allocation3 + $0x12b] sm:$0x3f]  ;;  %v3197_v23 = vld [vmem:[#allocation3 + $0x80] sm:$0xff] }
 0x2df   : > { %v15682_v16 = vpop.permute.xlu0 %12477  ;;  %v4762_v14 = vsel %vm4746_vm4, %v4725_v37, %v12440_v19  ;;  %v12806_v7 = vpack.i.bf16 %v3327_v62, %v3326_v2 }
 0x2e0   : > { %v4759_v13 = vsel %vm4746_vm4, %v4722_v59, %v12434_v25  ;;  %v4760_v33 = vsel %vm4746_vm4, %v4723_v22, %v12435_v47  ;;  %v15736_v47 = vld [vmem:[#allocation3 + $0x124] sm:$0xff]  ;;  %v3363_v25 = vld [vmem:[#allocation3 + $0x12c] sm:$0x3f]  ;;  %v15745_v59 = vld [vmem:[#allocation3 + $0x136] sm:$0xff]  ;;  %v12479_v37 = vunpack.i.l.bf16 %v15682_v16 }
 0x2e1   : > { %v12443_v55 = vpop.permute.xlu1 %12442  ;;  %12767 = vrot.lane.b32.xlu0 %v12766_v9, %s18271_s2  ;;  %v15747_v22 = vld [vmem:[#allocation3 + $0x13e] sm:$0x3f] }
 0x2e2   : > { %v12445_v6 = vunpack.i.h.bf16 %v12443_v55  ;;  %v12444_v56 = vunpack.i.l.bf16 %v12443_v55  ;;  %12752 = vrot.lane.b32.xlu1 %v12751_v54, %s18272_s0  ;;  %v4687_v54 = vsel %vm4672_vm0, %v4650_v11, %v12419_v31  ;;  %v3325_v31 = vld [vmem:[#allocation3 + $0x11b] sm:$0xff]  ;;  %v12460_v11 = vunpack.i.h.bf16 %v15634_v41  ;;  %v3198_v41 = vld [vmem:[#allocation3 + $0x88] sm:$0xff] }
 0x2e3   : > { %v15700_v3 = vpop.permute.xlu0 %12487  ;;  %v4724_v15 = vsel %vm4709_vm3, %v4687_v54, %v12429_v43  ;;  %v3324_v43 = vld [vmem:[#allocation3 + $0x113] sm:$0xff]  ;;  %v3402_v55 = vld [vmem:[#allocation3 + $0x13d] sm:$0x3f]  ;;  %v12469_v54 = vunpack.i.l.bf16 %v15665_v35 }
 0x2e4   : > { %v4796_v42 = vsel %vm4783_vm5, %v4759_v13, %v12444_v56  ;;  %v4797_v39 = vsel %vm4783_vm5, %v4760_v33, %v12445_v6  ;;  %v4761_v45 = vsel %vm4746_vm4, %v4724_v15, %v12439_v1  ;;  %v12801_v5 = vpack.i.bf16 %v3325_v31, %v3324_v43  ;;  %v3364_v13 = vld [vmem:[#allocation3 + $0x12c] sm:$0xff] }
 0x2e5   : > { %v12453_v63 = vpop.permute.xlu1 %12452  ;;  %12777 = vrot.lane.b32.xlu0 %v12776_v38, %s18261_s30  ;;  %v4826_v9 = vpack.c.bf16 %v4797_v39, %v4796_v42  ;;  %v12450_v6 = vunpack.i.h.bf16 %v15609_v48  ;;  %v12449_v56 = vunpack.i.l.bf16 %v15609_v48  ;;  %v12826_v1 = vpack.i.bf16 %v3366_v53, %v3365_v58  ;;  %v15754_v33 = vld [vmem:[#allocation3 + $0x125] sm:$0xff]  ;;  %v15759_v42 = vld [vmem:[#allocation3 + $0x12d] sm:$0xff] }
 0x2e6   : > { %v12455_v20 = vunpack.i.h.bf16 %v12453_v63  ;;  %v12454_v26 = vunpack.i.l.bf16 %v12453_v63  ;;  %12762 = vrot.lane.b32.xlu1 %v12761_v18, %s18271_s2  ;;  %v15761_v39 = vld [vmem:[#allocation3 + $0x126] sm:$0xff]  ;;  %v12470_v48 = vunpack.i.h.bf16 %v15665_v35  ;;  %v12836_v63 = vpack.i.bf16 %v3402_v55, %v3401_v49  ;;  %v3200_v35 = vld [vmem:[#allocation3 + $0x98] sm:$0xff] }
 0x2e7   : > { %11021 = vmatprep.mubr.msk.bf16.mxu1 %vm4881_vm6, %v4826_v9  ;;  %v15718_v38 = vpop.permute.xlu0 %12497  ;;  %v12846_v9 = vpack.i.bf16 %v15747_v22, %v15745_v59  ;;  %v12480_v15 = vunpack.i.h.bf16 %v15682_v16  ;;  %v4541_v36 = vsel %vm2461_vm1, %v3197_v23, %v12449_v56  ;;  %v12841_v4 = vpack.i.bf16 %v15763_v44, %v15761_v39 }
 0x2e8   : > { %v4799_v29 = vsel %vm4783_vm5, %v4762_v14, %v12455_v20  ;;  %v4798_v46 = vsel %vm4783_vm5, %v4761_v45, %v12454_v26  ;;  %v12821_v20 = vpack.i.bf16 %v3364_v13, %v15736_v47  ;;  %v4542_v26 = vsel %vm2461_vm1, %v3198_v41, %v12450_v6  ;;  %v3199_v45 = vld [vmem:[#allocation3 + $0x90] sm:$0xff] }
 0x2e9   : > { %v15722_v32 = vpop.permute.xlu1 %12462  ;;  %12787 = vrot.lane.b32.xlu0 %v12786_v24, %s18267_s8  ;;  %v4827_v60 = vpack.c.bf16 %v4799_v29, %v4798_v46  ;;  %v12831_v24 = vpack.i.bf16 %v15759_v42, %v15754_v33  ;;  %v4544_v29 = vsel %vm2461_vm1, %v3200_v35, %v12460_v11  ;;  %v4543_v16 = vsel %vm2461_vm1, %v3199_v45, %v12459_v51 }
 0x2ea   : > { %12772 = vrot.lane.b32.xlu1 %v12771_v61, %s18261_s30  ;;  %v12465_v46 = vunpack.i.h.bf16 %v15722_v32  ;;  %v12464_v61 = vunpack.i.l.bf16 %v15722_v32  ;;  %v4580_v10 = vsel %vm4561_vm13, %v4543_v16, %v12469_v54  ;;  %v12500_v55 = vunpack.i.h.bf16 %v15718_v38 }
 0x2eb   : > { %11022 = vmatmul.mubr.msk.bf16.gmra.mxu1 %vm4881_vm6, %v4827_v60  ;;  %v15727_v18 = vpop.permute.xlu0 %12507  ;;  %v4581_v60 = vsel %vm4561_vm13, %v4544_v29, %v12470_v48  ;;  %v4617_v57 = vsel %vm4598_vm14, %v4580_v10, %v12479_v37  ;;  %v12499_v59 = vunpack.i.l.bf16 %v15718_v38 }
 0x2ec   : > { %v4618_v2 = vsel %vm4598_vm14, %v4581_v60, %v12480_v15  ;;  %v4578_v58 = vsel %vm4561_vm13, %v4541_v36, %v12464_v61  ;;  %v12510_v56 = vunpack.i.h.bf16 %v15727_v18 }
 0x2ed   : > { %v15729_v40 = vpop.permute.xlu1 %12472  ;;  %12797 = vrot.lane.b32.xlu0 %v12796_v50, %s18268_s7 }
 0x2ee   : > { %12782 = vrot.lane.b32.xlu1 %v15595_v34, %s18267_s8  ;;  %v12816_v34 = vpack.i.bf16 %v3363_v25, %v15736_v47  ;;  %v12475_v8 = vunpack.i.h.bf16 %v15729_v40  ;;  %v12474_v50 = vunpack.i.l.bf16 %v15729_v40  ;;  %v4579_v40 = vsel %vm4561_vm13, %v4542_v26, %v12465_v46 }
 0x2ef   : > { %v15734_v28 = vpop.permute.xlu0 %12517 }
 0x2f0   : > { %v4616_v43 = vsel %vm4598_vm14, %v4579_v40, %v12475_v8  ;;  %v12520_v39 = vunpack.i.h.bf16 %v15734_v28  ;;  %v12519_v44 = vunpack.i.l.bf16 %v15734_v28  ;;  %v3201_v40 = vld [vmem:[#allocation3 + $0xa0] sm:$0xff] }
 0x2f1   : > { %v15738_v52 = vpop.permute.xlu1 %12482  ;;  %12807 = vrot.lane.b32.xlu0 %v12806_v7, %s18269_s4 }
 0x2f2   : > { %12792 = vrot.lane.b32.xlu1 %v12791_v12, %s18268_s7  ;;  %v12485_v7 = vunpack.i.h.bf16 %v15738_v52  ;;  %v12484_v32 = vunpack.i.l.bf16 %v15738_v52  ;;  %v12489_v12 = vunpack.i.l.bf16 %v15700_v3  ;;  %v4615_v52 = vsel %vm4598_vm14, %v4578_v58, %v12474_v50  ;;  %v3202_v58 = vld [vmem:[#allocation3 + $0xa8] sm:$0xff] }
 0x2f3   : > { %v15742_v21 = vpop.permute.xlu0 %12527 }
 0x2f4   : > { %v4652_v22 = vsel %vm4635_vm15, %v4615_v52, %v12484_v32  ;;  %v4653_v6 = vsel %vm4635_vm15, %v4616_v43, %v12485_v7  ;;  %v12529_v7 = vunpack.i.l.bf16 %v15742_v21  ;;  %v3203_v43 = vld [vmem:[#allocation3 + $0xb0] sm:$0xff] }
 0x2f5   : > { %v15751_v19 = vpop.permute.xlu1 %12492  ;;  %12817 = vrot.lane.b32.xlu0 %v12816_v34, %s18270_s1 }
 0x2f6   : > { %12802 = vrot.lane.b32.xlu1 %v12801_v5, %s18269_s4  ;;  %v12495_v47 = vunpack.i.h.bf16 %v15751_v19  ;;  %v12494_v25 = vunpack.i.l.bf16 %v15751_v19  ;;  %v12509_v19 = vunpack.i.l.bf16 %v15727_v18 }
 0x2f7   : > { %v15767_v30 = vpop.permute.xlu0 %12537 }
 0x2f8   : > { %v4690_v13 = vsel %vm4672_vm0, %v4653_v6, %v12495_v47 }
 0x2f9   : > { %v12503_v14 = vpop.permute.xlu1 %12502  ;;  %12827 = vrot.lane.b32.xlu0 %v12826_v1, %s18273_s17  ;;  %v4689_v1 = vsel %vm4672_vm0, %v4652_v22, %v12494_v25 }
 0x2fa   : > { %12812 = vrot.lane.b32.xlu1 %v15636_v27, %s18270_s1  ;;  %v12490_v27 = vunpack.i.h.bf16 %v15700_v3  ;;  %v12505_v53 = vunpack.i.h.bf16 %v12503_v14  ;;  %v12504_v34 = vunpack.i.l.bf16 %v12503_v14 }
 0x2fb   : > { %v15791_v62 = vpop.permute.xlu0 %12547 }
 0x2fc   : > { %v4726_v11 = vsel %vm4709_vm3, %v4689_v1, %v12504_v34  ;;  %v4727_v51 = vsel %vm4709_vm3, %v4690_v13, %v12505_v53  ;;  %v12550_v47 = vunpack.i.h.bf16 %v15791_v62  ;;  %v12549_v25 = vunpack.i.l.bf16 %v15791_v62 }
 0x2fd   : > { %v12513_v31 = vpop.permute.xlu1 %12512  ;;  %12837 = vrot.lane.b32.xlu0 %v12836_v63, %s18272_s0  ;;  %v4654_v63 = vsel %vm4635_vm15, %v4617_v57, %v12489_v12  ;;  %v12539_v12 = vunpack.i.l.bf16 %v15767_v30 }
 0x2fe   : > { %12822 = vrot.lane.b32.xlu1 %v12821_v20, %s18273_s17  ;;  %v12515_v3 = vunpack.i.h.bf16 %v12513_v31  ;;  %v12514_v49 = vunpack.i.l.bf16 %v12513_v31  ;;  %v4691_v15 = vsel %vm4672_vm0, %v4654_v63, %v12499_v59 }
 0x2ff   : > { %v15807_v5 = vpop.permute.xlu0 %12557  ;;  %v4728_v26 = vsel %vm4709_vm3, %v4691_v15, %v12509_v19 }
 0x300   : > { %v4763_v18 = vsel %vm4746_vm4, %v4726_v11, %v12514_v49  ;;  %v4764_v48 = vsel %vm4746_vm4, %v4727_v51, %v12515_v3  ;;  %v4765_v14 = vsel %vm4746_vm4, %v4728_v26, %v12519_v44  ;;  %v12560_v53 = vunpack.i.h.bf16 %v15807_v5  ;;  %v3204_v3 = vld [vmem:[#allocation3 + $0xb8] sm:$0xff] }
 0x301   : > { %v12523_v33 = vpop.permute.xlu1 %12522  ;;  %12847 = vrot.lane.b32.xlu0 %v12846_v9, %s18271_s2  ;;  %v4655_v9 = vsel %vm4635_vm15, %v4618_v2, %v12490_v27  ;;  %v12530_v2 = vunpack.i.h.bf16 %v15742_v21  ;;  %v12540_v27 = vunpack.i.h.bf16 %v15767_v30  ;;  %v12559_v34 = vunpack.i.l.bf16 %v15807_v5 }
 0x302   : > { %v12525_v38 = vunpack.i.h.bf16 %v12523_v33  ;;  %v12524_v42 = vunpack.i.l.bf16 %v12523_v33  ;;  %12832 = vrot.lane.b32.xlu1 %v12831_v24, %s18272_s0  ;;  %v4692_v37 = vsel %vm4672_vm0, %v4655_v9, %v12500_v55  ;;  %v4545_v21 = vsel %vm2461_vm1, %v3201_v40, %v12529_v7 }
 0x303   : > { %v15825_v54 = vpop.permute.xlu0 %12567  ;;  %v4729_v36 = vsel %vm4709_vm3, %v4692_v37, %v12510_v56  ;;  %v4546_v52 = vsel %vm2461_vm1, %v3202_v58, %v12530_v2  ;;  %v4548_v30 = vsel %vm2461_vm1, %v3204_v3, %v12540_v27  ;;  %v4547_v55 = vsel %vm2461_vm1, %v3203_v43, %v12539_v12 }
 0x304   : > { %v4800_v23 = vsel %vm4783_vm5, %v4763_v18, %v12524_v42  ;;  %v4801_v41 = vsel %vm4783_vm5, %v4764_v48, %v12525_v38  ;;  %v4766_v24 = vsel %vm4746_vm4, %v4729_v36, %v12520_v39  ;;  %v4584_v22 = vsel %vm4561_vm13, %v4547_v55, %v12549_v25 }
 0x305   : > { %v12533_v20 = vpop.permute.xlu1 %12532  ;;  %v4828_v28 = vpack.c.bf16 %v4801_v41, %v4800_v23  ;;  %v4585_v6 = vsel %vm4561_vm13, %v4548_v30, %v12550_v47  ;;  %v4621_v1 = vsel %vm4598_vm14, %v4584_v22, %v12559_v34  ;;  %v12570_v51 = vunpack.i.h.bf16 %v15825_v54 }
 0x306   : > { %v12535_v45 = vunpack.i.h.bf16 %v12533_v20  ;;  %v12534_v35 = vunpack.i.l.bf16 %v12533_v20  ;;  %12842 = vrot.lane.b32.xlu1 %v12841_v4, %s18271_s2  ;;  %v4622_v13 = vsel %vm4598_vm14, %v4585_v6, %v12560_v53  ;;  %v12569_v38 = vunpack.i.l.bf16 %v15825_v54 }
 0x307   : > { %11025 = vmatprep.mubr.msk.bf16.mxu1 %vm4881_vm6, %v4828_v28  ;;  %v15839_v29 = vpop.permute.xlu0 %12577  ;;  %v4659_v27 = vsel %vm4635_vm15, %v4622_v13, %v12570_v51 }
 0x308   : > { %v4803_v16 = vsel %vm4783_vm5, %v4766_v24, %v12535_v45  ;;  %v4802_v46 = vsel %vm4783_vm5, %v4765_v14, %v12534_v35  ;;  %v12580_v28 = vunpack.i.h.bf16 %v15839_v29  ;;  %v12579_v54 = vunpack.i.l.bf16 %v15839_v29 }
 0x309   : > { %v12543_v61 = vpop.permute.xlu1 %12542  ;;  %v4829_v10 = vpack.c.bf16 %v4803_v16, %v4802_v46 }
 0x30a   : > { %v12545_v62 = vunpack.i.h.bf16 %v12543_v61  ;;  %v12544_v59 = vunpack.i.l.bf16 %v12543_v61  ;;  %v4696_v40 = vsel %vm4672_vm0, %v4659_v27, %v12580_v28 }
 0x30b   : > { %11026 = vmatmul.mubr.msk.bf16.gmra.mxu1 %vm4881_vm6, %v4829_v10  ;;  %v15844_v60 = vpop.permute.xlu0 %12587 }
 0x30c   : > { %v4583_v18 = vsel %vm4561_vm13, %v4546_v52, %v12545_v62  ;;  %v4582_v48 = vsel %vm4561_vm13, %v4545_v21, %v12544_v59  ;;  %v12590_v45 = vunpack.i.h.bf16 %v15844_v60  ;;  %v12589_v35 = vunpack.i.l.bf16 %v15844_v60 }
 0x30d   : > { %v12553_v8 = vpop.permute.xlu1 %12552 }
 0x30e   : > { %v12555_v56 = vunpack.i.h.bf16 %v12553_v8  ;;  %v12554_v19 = vunpack.i.l.bf16 %v12553_v8  ;;  %v4733_v34 = vsel %vm4709_vm3, %v4696_v40, %v12590_v45 }
 0x30f   : > { %v15846_v4 = vpop.permute.xlu0 %12597 }
 0x310   : > { %v4619_v23 = vsel %vm4598_vm14, %v4582_v48, %v12554_v19  ;;  %v4620_v41 = vsel %vm4598_vm14, %v4583_v18, %v12555_v56  ;;  %v12600_v29 = vunpack.i.h.bf16 %v15846_v4  ;;  %v3205_v18 = vld [vmem:[#allocation3 + $0xc0] sm:$0xff]  ;;  %v3206_v48 = vld [vmem:[#allocation3 + $0xc8] sm:$0xff] }
 0x311   : > { %v12563_v50 = vpop.permute.xlu1 %12562 }
 0x312   : > { %v12565_v33 = vunpack.i.h.bf16 %v12563_v50  ;;  %v12564_v11 = vunpack.i.l.bf16 %v12563_v50  ;;  %v12599_v50 = vunpack.i.l.bf16 %v15846_v4  ;;  %v4770_v3 = vsel %vm4746_vm4, %v4733_v34, %v12600_v29 }
 0x313   : > { %v15848_v57 = vpop.permute.xlu0 %12607 }
 0x314   : > { %v4656_v26 = vsel %vm4635_vm15, %v4619_v23, %v12564_v11  ;;  %v4657_v36 = vsel %vm4635_vm15, %v4620_v41, %v12565_v33  ;;  %v12610_v13 = vunpack.i.h.bf16 %v15848_v57  ;;  %v12609_v33 = vunpack.i.l.bf16 %v15848_v57  ;;  %v3207_v41 = vld [vmem:[#allocation3 + $0xd0] sm:$0xff] }
 0x315   : > { %v12573_v32 = vpop.permute.xlu1 %12572 }
 0x316   : > { %v12575_v42 = vunpack.i.h.bf16 %v12573_v32  ;;  %v12574_v39 = vunpack.i.l.bf16 %v12573_v32  ;;  %v4658_v32 = vsel %vm4635_vm15, %v4621_v1, %v12569_v38  ;;  %v4550_v23 = vsel %vm2461_vm1, %v3206_v48, %v12610_v13 }
 0x317   : > { %v15856_v31 = vpop.permute.xlu0 %12617  ;;  %v4695_v25 = vsel %vm4672_vm0, %v4658_v32, %v12579_v54  ;;  %v4549_v57 = vsel %vm2461_vm1, %v3205_v18, %v12609_v33 }
 0x318   : > { %v4693_v14 = vsel %vm4672_vm0, %v4656_v26, %v12574_v39  ;;  %v4694_v24 = vsel %vm4672_vm0, %v4657_v36, %v12575_v42  ;;  %v4732_v53 = vsel %vm4709_vm3, %v4695_v25, %v12589_v35  ;;  %v12620_v51 = vunpack.i.h.bf16 %v15856_v31 }
 0x319   : > { %v12583_v49 = vpop.permute.xlu1 %12582  ;;  %v4769_v43 = vsel %vm4746_vm4, %v4732_v53, %v12599_v50  ;;  %v12619_v38 = vunpack.i.l.bf16 %v15856_v31 }
 0x31a   : > { %v12585_v63 = vunpack.i.h.bf16 %v12583_v49  ;;  %v12584_v9 = vunpack.i.l.bf16 %v12583_v49 }
 0x31b   : > { %v15866_v5 = vpop.permute.xlu0 %12627  ;;  %v4551_v28 = vsel %vm2461_vm1, %v3207_v41, %v12619_v38 }
 0x31c   : > { %v4730_v46 = vsel %vm4709_vm3, %v4693_v14, %v12584_v9  ;;  %v4731_v61 = vsel %vm4709_vm3, %v4694_v24, %v12585_v63  ;;  %v12630_v42 = vunpack.i.h.bf16 %v15866_v5  ;;  %v12629_v39 = vunpack.i.l.bf16 %v15866_v5 }
 0x31d   : > { %v12593_v44 = vpop.permute.xlu1 %12592 }
 0x31e   : > { %v12595_v15 = vunpack.i.h.bf16 %v12593_v44  ;;  %v12594_v37 = vunpack.i.l.bf16 %v12593_v44  ;;  %v4588_v26 = vsel %vm4561_vm13, %v4551_v28, %v12629_v39 }
 0x31f   : > { %v15876_v20 = vpop.permute.xlu0 %12637 }
 0x320   : > { %v4767_v2 = vsel %vm4746_vm4, %v4730_v46, %v12594_v37  ;;  %v4768_v7 = vsel %vm4746_vm4, %v4731_v61, %v12595_v15  ;;  %v12640_v63 = vunpack.i.h.bf16 %v15876_v20  ;;  %v12639_v9 = vunpack.i.l.bf16 %v15876_v20  ;;  %v3208_v15 = vld [vmem:[#allocation3 + $0xd8] sm:$0xff] }
 0x321   : > { %v12603_v16 = vpop.permute.xlu1 %12602  ;;  %v4552_v31 = vsel %vm2461_vm1, %v3208_v15, %v12620_v51 }
 0x322   : > { %v12605_v10 = vunpack.i.h.bf16 %v12603_v16  ;;  %v12604_v8 = vunpack.i.l.bf16 %v12603_v16  ;;  %v4589_v36 = vsel %vm4561_vm13, %v4552_v31, %v12630_v42  ;;  %v4625_v14 = vsel %vm4598_vm14, %v4588_v26, %v12639_v9 }
 0x323   : > { %v15892_v60 = vpop.permute.xlu0 %12647  ;;  %v4626_v24 = vsel %vm4598_vm14, %v4589_v36, %v12640_v63 }
 0x324   : > { %v4804_v12 = vsel %vm4783_vm5, %v4767_v2, %v12604_v8  ;;  %v4805_v47 = vsel %vm4783_vm5, %v4768_v7, %v12605_v10  ;;  %v12650_v61 = vunpack.i.h.bf16 %v15892_v60  ;;  %v12649_v10 = vunpack.i.l.bf16 %v15892_v60 }
 0x325   : > { %v12613_v58 = vpop.permute.xlu1 %12612  ;;  %v4830_v4 = vpack.c.bf16 %v4805_v47, %v4804_v12 }
 0x326   : > { %v12615_v52 = vunpack.i.h.bf16 %v12613_v58  ;;  %v12614_v21 = vunpack.i.l.bf16 %v12613_v58  ;;  %v4663_v51 = vsel %vm4635_vm15, %v4626_v24, %v12650_v61 }
 0x327   : > { %11029 = vmatprep.mubr.msk.bf16.mxu1 %vm4881_vm6, %v4830_v4  ;;  %v15905_v49 = vpop.permute.xlu0 %12657 }
 0x328   : > { %v4807_v30 = vsel %vm4783_vm5, %v4770_v3, %v12615_v52  ;;  %v4806_v55 = vsel %vm4783_vm5, %v4769_v43, %v12614_v21  ;;  %v12660_v4 = vunpack.i.h.bf16 %v15905_v49  ;;  %v12659_v60 = vunpack.i.l.bf16 %v15905_v49 }
 0x329   : > { %v12623_v62 = vpop.permute.xlu1 %12622  ;;  %v4831_v59 = vpack.c.bf16 %v4807_v30, %v4806_v55 }
 0x32a   : > { %v12625_v5 = vunpack.i.h.bf16 %v12623_v62  ;;  %v12624_v54 = vunpack.i.l.bf16 %v12623_v62  ;;  %v4700_v18 = vsel %vm4672_vm0, %v4663_v51, %v12660_v4 }
 0x32b   : > { %11030 = vmatmul.mubr.msk.bf16.gmra.mxu1 %vm4881_vm6, %v4831_v59  ;;  %v15910_v22 = vpop.permute.xlu0 %12667 }
 0x32c   : > { %v4587_v2 = vsel %vm4561_vm13, %v4550_v23, %v12625_v5  ;;  %v4586_v7 = vsel %vm4561_vm13, %v4549_v57, %v12624_v54  ;;  %v12670_v52 = vunpack.i.h.bf16 %v15910_v22  ;;  %v12669_v21 = vunpack.i.l.bf16 %v15910_v22 }
 0x32d   : > { %v12633_v6 = vpop.permute.xlu1 %12632 }
 0x32e   : > { %v12635_v45 = vunpack.i.h.bf16 %v12633_v6  ;;  %v12634_v35 = vunpack.i.l.bf16 %v12633_v6  ;;  %v4737_v9 = vsel %vm4709_vm3, %v4700_v18, %v12670_v52 }
 0x32f   : > { %v15912_v56 = vpop.permute.xlu0 %12677 }
 0x330   : > { %v4623_v12 = vsel %vm4598_vm14, %v4586_v7, %v12634_v35  ;;  %v4624_v47 = vsel %vm4598_vm14, %v4587_v2, %v12635_v45  ;;  %v12680_v49 = vunpack.i.h.bf16 %v15912_v56 }
 0x331   : > { %v12643_v19 = vpop.permute.xlu1 %12642 }
 0x332   : > { %v12645_v16 = vunpack.i.h.bf16 %v12643_v19  ;;  %v12644_v46 = vunpack.i.l.bf16 %v12643_v19  ;;  %v12679_v19 = vunpack.i.l.bf16 %v15912_v56  ;;  %v4774_v15 = vsel %vm4746_vm4, %v4737_v9, %v12680_v49 }
 0x333   : > { %v15914_v1 = vpop.permute.xlu0 %12687 }
 0x334   : > { %v4660_v53 = vsel %vm4635_vm15, %v4623_v12, %v12644_v46  ;;  %v4661_v34 = vsel %vm4635_vm15, %v4624_v47, %v12645_v16 }
 0x335   : > { %v12653_v11 = vpop.permute.xlu1 %12652 }
 0x336   : > { %v12655_v8 = vunpack.i.h.bf16 %v12653_v11  ;;  %v12654_v29 = vunpack.i.l.bf16 %v12653_v11  ;;  %v4662_v11 = vsel %vm4635_vm15, %v4625_v14, %v12649_v10  ;;  %v12690_v10 = vunpack.i.h.bf16 %v15914_v1 }
 0x337   : > { %v15922_v44 = vpop.permute.xlu0 %12697  ;;  %v4699_v39 = vsel %vm4672_vm0, %v4662_v11, %v12659_v60 }
 0x338   : > { %v4697_v43 = vsel %vm4672_vm0, %v4660_v53, %v12654_v29  ;;  %v4698_v3 = vsel %vm4672_vm0, %v4661_v34, %v12655_v8  ;;  %v4736_v56 = vsel %vm4709_vm3, %v4699_v39, %v12669_v21  ;;  %v12700_v14 = vunpack.i.h.bf16 %v15922_v44  ;;  %v3211_v29 = vld [vmem:[#allocation3 + $0xf0] sm:$0xff]  ;;  %v3210_v53 = vld [vmem:[#allocation3 + $0xe8] sm:$0xff] }
 0x339   : > { %v12663_v37 = vpop.permute.xlu1 %12662  ;;  %v4773_v41 = vsel %vm4746_vm4, %v4736_v56, %v12679_v19  ;;  %v12699_v24 = vunpack.i.l.bf16 %v15922_v44  ;;  %v12689_v8 = vunpack.i.l.bf16 %v15914_v1  ;;  %v3209_v1 = vld [vmem:[#allocation3 + $0xe0] sm:$0xff] }
 0x33a   : > { %v12665_v32 = vunpack.i.h.bf16 %v12663_v37  ;;  %v12664_v27 = vunpack.i.l.bf16 %v12663_v37 }
 0x33b   : > { %v15932_v20 = vpop.permute.xlu0 %12707  ;;  %v4555_v44 = vsel %vm2461_vm1, %v3211_v29, %v12699_v24  ;;  %v4553_v21 = vsel %vm2461_vm1, %v3209_v1, %v12689_v8 }
 0x33c   : > { %v4734_v55 = vsel %vm4709_vm3, %v4697_v43, %v12664_v27  ;;  %v4735_v62 = vsel %vm4709_vm3, %v4698_v3, %v12665_v32  ;;  %v12710_v46 = vunpack.i.h.bf16 %v15932_v20  ;;  %v12709_v61 = vunpack.i.l.bf16 %v15932_v20 }
 0x33d   : > { %v12673_v50 = vpop.permute.xlu1 %12672 }
 0x33e   : > { %v12675_v25 = vunpack.i.h.bf16 %v12673_v50  ;;  %v12674_v40 = vunpack.i.l.bf16 %v12673_v50  ;;  %v3212_v50 = vld [vmem:[#allocation3 + $0xf8] sm:$0xff]  ;;  %v4592_v34 = vsel %vm4561_vm13, %v4555_v44, %v12709_v61 }
 0x33f   : > { %v15942_v58 = vpop.permute.xlu0 %12717  ;;  %v4556_v27 = vsel %vm2461_vm1, %v3212_v50, %v12700_v14 }
 0x340   : > { %v4771_v13 = vsel %vm4746_vm4, %v4734_v55, %v12674_v40  ;;  %v4772_v33 = vsel %vm4746_vm4, %v4735_v62, %v12675_v25  ;;  %v12720_v2 = vunpack.i.h.bf16 %v15942_v58  ;;  %v12719_v7 = vunpack.i.l.bf16 %v15942_v58 }
 0x341   : > { %v12683_v30 = vpop.permute.xlu1 %12682  ;;  %v4593_v52 = vsel %vm4561_vm13, %v4556_v27, %v12710_v46  ;;  %v4554_v58 = vsel %vm2461_vm1, %v3210_v53, %v12690_v10 }
 0x342   : > { %v12685_v59 = vunpack.i.h.bf16 %v12683_v30  ;;  %v12684_v6 = vunpack.i.l.bf16 %v12683_v30  ;;  %v4629_v43 = vsel %vm4598_vm14, %v4592_v34, %v12719_v7  ;;  %v4630_v3 = vsel %vm4598_vm14, %v4593_v52, %v12720_v2 }
 0x343   : > { %v12728_v22 = vpop.permute.xlu0 %12727 }
 0x344   : > { %v4808_v38 = vsel %vm4783_vm5, %v4771_v13, %v12684_v6  ;;  %v4809_v42 = vsel %vm4783_vm5, %v4772_v33, %v12685_v59  ;;  %v12730_v12 = vunpack.i.h.bf16 %v12728_v22  ;;  %v12729_v47 = vunpack.i.l.bf16 %v12728_v22 }
 0x345   : > { %v12693_v48 = vpop.permute.xlu1 %12692  ;;  %v4832_v63 = vpack.c.bf16 %v4809_v42, %v4808_v38 }
 0x346   : > { %v12695_v23 = vunpack.i.h.bf16 %v12693_v48  ;;  %v12694_v57 = vunpack.i.l.bf16 %v12693_v48  ;;  %v4666_v55 = vsel %vm4635_vm15, %v4629_v43, %v12729_v47  ;;  %v4667_v62 = vsel %vm4635_vm15, %v4630_v3, %v12730_v12  ;;  %v3215_v3 = vld [vmem:[#allocation3 + $0x110] sm:$0xff] }
 0x347   : > { %11033 = vmatprep.mubr.msk.bf16.mxu1 %vm4881_vm6, %v4832_v63  ;;  %v12738_v37 = vpop.permute.xlu0 %12737 }
 0x348   : > { %v4811_v31 = vsel %vm4783_vm5, %v4774_v15, %v12695_v23  ;;  %v4810_v28 = vsel %vm4783_vm5, %v4773_v41, %v12694_v57  ;;  %v12740_v25 = vunpack.i.h.bf16 %v12738_v37  ;;  %v12739_v40 = vunpack.i.l.bf16 %v12738_v37 }
 0x349   : > { %v12703_v5 = vpop.permute.xlu1 %12702  ;;  %v4833_v54 = vpack.c.bf16 %v4811_v31, %v4810_v28 }
 0x34a   : > { %v12705_v20 = vunpack.i.h.bf16 %v12703_v5  ;;  %v12704_v4 = vunpack.i.l.bf16 %v12703_v5  ;;  %v4703_v49 = vsel %vm4672_vm0, %v4666_v55, %v12739_v40  ;;  %v4704_v19 = vsel %vm4672_vm0, %v4667_v62, %v12740_v25 }
 0x34b   : > { %11034 = vmatmul.mubr.msk.bf16.gmra.mxu1 %vm4881_vm6, %v4833_v54  ;;  %v15972_v26 = vpop.permute.xlu0 %12747 }
 0x34c   : > { %v4591_v13 = vsel %vm4561_vm13, %v4554_v58, %v12705_v20  ;;  %v4590_v33 = vsel %vm4561_vm13, %v4553_v21, %v12704_v4  ;;  %v12750_v11 = vunpack.i.h.bf16 %v15972_v26  ;;  %v12749_v51 = vunpack.i.l.bf16 %v15972_v26 }
 0x34d   : > { %v12713_v36 = vpop.permute.xlu1 %12712 }
 0x34e   : > { %v12715_v59 = vunpack.i.h.bf16 %v12713_v36  ;;  %v12714_v6 = vunpack.i.l.bf16 %v12713_v36  ;;  %v4740_v54 = vsel %vm4709_vm3, %v4703_v49, %v12749_v51  ;;  %v4741_v26 = vsel %vm4709_vm3, %v4704_v19, %v12750_v11 }
 0x34f   : > { %v15974_v45 = vpop.permute.xlu0 %12757 }
 0x350   : > { %v12760_v39 = vunpack.i.h.bf16 %v15974_v45  ;;  %v12759_v18 = vunpack.i.l.bf16 %v15974_v45  ;;  %v4627_v9 = vsel %vm4598_vm14, %v4590_v33, %v12714_v6  ;;  %v4628_v23 = vsel %vm4598_vm14, %v4591_v13, %v12715_v59 }
 0x351   : > { %v15976_v35 = vpop.permute.xlu1 %12722 }
 0x352   : > { %v12725_v38 = vunpack.i.h.bf16 %v15976_v35  ;;  %v12724_v42 = vunpack.i.l.bf16 %v15976_v35  ;;  %v4777_v35 = vsel %vm4746_vm4, %v4740_v54, %v12759_v18  ;;  %v4778_v14 = vsel %vm4746_vm4, %v4741_v26, %v12760_v39 }
 0x353   : > { %v15980_v16 = vpop.permute.xlu0 %12767 }
 0x354   : > { %v12770_v15 = vunpack.i.h.bf16 %v15980_v16  ;;  %v12769_v37 = vunpack.i.l.bf16 %v15980_v16  ;;  %v4664_v36 = vsel %vm4635_vm15, %v4627_v9, %v12724_v42  ;;  %v4665_v45 = vsel %vm4635_vm15, %v4628_v23, %v12725_v38  ;;  %v3213_v23 = vld [vmem:[#allocation3 + $0x100] sm:$0xff] }
 0x355   : > { %v12733_v32 = vpop.permute.xlu1 %12732 }
 0x356   : > { %v12735_v48 = vunpack.i.h.bf16 %v12733_v32  ;;  %v12734_v63 = vunpack.i.l.bf16 %v12733_v32  ;;  %v4814_v50 = vsel %vm4783_vm5, %v4777_v35, %v12769_v37  ;;  %v4815_v2 = vsel %vm4783_vm5, %v4778_v14, %v12770_v15 }
 0x357   : > { %v15990_v60 = vpop.permute.xlu0 %12777  ;;  %v4835_v40 = vpack.c.bf16 %v4815_v2, %v4814_v50 }
 0x358   : > { %v4701_v24 = vsel %vm4672_vm0, %v4664_v36, %v12734_v63  ;;  %v4702_v46 = vsel %vm4672_vm0, %v4665_v45, %v12735_v48  ;;  %v12780_v34 = vunpack.i.h.bf16 %v15990_v60  ;;  %v12779_v52 = vunpack.i.l.bf16 %v15990_v60 }
 0x359   : > { %v12743_v30 = vpop.permute.xlu1 %12742 }
 0x35a   : > { %v12745_v57 = vunpack.i.h.bf16 %v12743_v30  ;;  %v12744_v41 = vunpack.i.l.bf16 %v12743_v30  ;;  %v3216_v30 = vld [vmem:[#allocation3 + $0x118] sm:$0x3f]  ;;  %v4559_v6 = vsel %vm2461_vm1, %v3215_v3, %v12779_v52 }
 0x35b   : > { %v16004_v22 = vpop.permute.xlu0 %12787  ;;  %v4560_v59 = vsel %vm2461_vm1, %v3216_v30, %v12780_v34 }
 0x35c   : > { %v4738_v61 = vsel %vm4709_vm3, %v4701_v24, %v12744_v41  ;;  %v4739_v10 = vsel %vm4709_vm3, %v4702_v46, %v12745_v57  ;;  %v12790_v21 = vunpack.i.h.bf16 %v16004_v22  ;;  %v12789_v43 = vunpack.i.l.bf16 %v16004_v22  ;;  %v3214_v57 = vld [vmem:[#allocation3 + $0x108] sm:$0xff] }
 0x35d   : > { %v12753_v56 = vpop.permute.xlu1 %12752 }
 0x35e   : > { %v12755_v31 = vunpack.i.h.bf16 %v12753_v56  ;;  %v12754_v28 = vunpack.i.l.bf16 %v12753_v56  ;;  %v4596_v33 = vsel %vm4561_vm13, %v4559_v6, %v12789_v43  ;;  %v4597_v60 = vsel %vm4561_vm13, %v4560_v59, %v12790_v21 }
 0x35f   : > { %v12798_v5 = vpop.permute.xlu0 %12797 }
 0x360   : > { %v4775_v7 = vsel %vm4746_vm4, %v4738_v61, %v12754_v28  ;;  %v4776_v32 = vsel %vm4746_vm4, %v4739_v10, %v12755_v31  ;;  %v12800_v55 = vunpack.i.h.bf16 %v12798_v5  ;;  %v12799_v62 = vunpack.i.l.bf16 %v12798_v5 }
 0x361   : > { %v12763_v16 = vpop.permute.xlu1 %12762 }
 0x362   : > { %v12765_v8 = vunpack.i.h.bf16 %v12763_v16  ;;  %v12764_v29 = vunpack.i.l.bf16 %v12763_v16  ;;  %v4634_v48 = vsel %vm4598_vm14, %v4597_v60, %v12800_v55  ;;  %v4633_v63 = vsel %vm4598_vm14, %v4596_v33, %v12799_v62  ;;  %v16072_v60 = vpop.f32.mrf.mxu1 }
 0x363   : > { %v12808_v12 = vpop.permute.xlu0 %12807 }
 0x364   : > { %v4812_v27 = vsel %vm4783_vm5, %v4775_v7, %v12764_v29  ;;  %v4813_v44 = vsel %vm4783_vm5, %v4776_v32, %v12765_v8  ;;  %v12810_v49 = vunpack.i.h.bf16 %v12808_v12  ;;  %v12809_v19 = vunpack.i.l.bf16 %v12808_v12 }
 0x365   : > { %v12773_v47 = vpop.permute.xlu1 %12772  ;;  %v4834_v25 = vpack.c.bf16 %v4813_v44, %v4812_v27 }
 0x366   : > { %v12775_v11 = vunpack.i.h.bf16 %v12773_v47  ;;  %v12774_v51 = vunpack.i.l.bf16 %v12773_v47  ;;  %v4670_v56 = vsel %vm4635_vm15, %v4633_v63, %v12809_v19  ;;  %v4671_v9 = vsel %vm4635_vm15, %v4634_v48, %v12810_v49  ;;  %v5234_v48 = vld [vmem:[%s18165_s21 + $0x10] sm:$0xff] }
 0x367   : > { %11037 = vmatprep.mubr.msk.bf16.mxu1 %vm4881_vm6, %v4834_v25  ;;  %v12818_v4 = vpop.permute.xlu0 %12817 }
 0x368   : > { %11038 = vmatmul.mubr.msk.bf16.gmra.mxu1 %vm4881_vm6, %v4835_v40  ;;  %v12820_v42 = vunpack.i.h.bf16 %v12818_v4  ;;  %v12819_v22 = vunpack.i.l.bf16 %v12818_v4  ;;  %v4558_v15 = vsel %vm2461_vm1, %v3214_v57, %v12775_v11  ;;  %v4557_v37 = vsel %vm2461_vm1, %v3213_v23, %v12774_v51  ;;  %v16074_v11 = vpop.f32.mrf.mxu1 }
 0x369   : > { %v12783_v20 = vpop.permute.xlu1 %12782 }
 0x36a   : > { %v12785_v39 = vunpack.i.h.bf16 %v12783_v20  ;;  %v12784_v18 = vunpack.i.l.bf16 %v12783_v20  ;;  %v4707_v5 = vsel %vm4672_vm0, %v4670_v56, %v12819_v22  ;;  %v4708_v54 = vsel %vm4672_vm0, %v4671_v9, %v12820_v42  ;;  %v16076_v51 = vpop.f32.mrf.mxu1  ;;  %v5233_v22 = vld [vmem:[%s18165_s21 + $0x8] sm:$0xff] }
 0x36b   : > { %v12828_v53 = vpop.permute.xlu0 %12827  ;;  %5361 = vmatprep.mubr.f32.mxu0 %v5233_v22 }
 0x36c   : > { %v4594_v26 = vsel %vm4561_vm13, %v4557_v37, %v12784_v18  ;;  %v4595_v36 = vsel %vm4561_vm13, %v4558_v15, %v12785_v39  ;;  %v12830_v45 = vunpack.i.h.bf16 %v12828_v53  ;;  %v12829_v35 = vunpack.i.l.bf16 %v12828_v53 }
 0x36d   : > { %v12793_v1 = vpop.permute.xlu1 %12792 }
 0x36e   : > { %v12795_v31 = vunpack.i.h.bf16 %v12793_v1  ;;  %v12794_v28 = vunpack.i.l.bf16 %v12793_v1  ;;  %v4744_v25 = vsel %vm4709_vm3, %v4707_v5, %v12829_v35  ;;  %v4745_v40 = vsel %vm4709_vm3, %v4708_v54, %v12830_v45 }
 0x36f   : > { %v12838_v38 = vpop.permute.xlu0 %12837 }
 0x370   : > { %v12840_v16 = vunpack.i.h.bf16 %v12838_v38  ;;  %v12839_v61 = vunpack.i.l.bf16 %v12838_v38  ;;  %v4631_v50 = vsel %vm4598_vm14, %v4594_v26, %v12794_v28  ;;  %v4632_v2 = vsel %vm4598_vm14, %v4595_v36, %v12795_v31  ;;  %v16078_v38 = vpop.f32.mrf.mxu1 }
 0x371   : > { %v12803_v58 = vpop.permute.xlu1 %12802 }
 0x372   : > { %v12805_v14 = vunpack.i.h.bf16 %v12803_v58  ;;  %v12804_v24 = vunpack.i.l.bf16 %v12803_v58  ;;  %v4781_v1 = vsel %vm4746_vm4, %v4744_v25, %v12839_v61  ;;  %v4782_v53 = vsel %vm4746_vm4, %v4745_v40, %v12840_v16  ;;  %v16080_v42 = vpop.f32.mrf.mxu1 }
 0x373   : > { %v12848_v46 = vpop.permute.xlu0 %12847 }
 0x374   : > { %v12850_v27 = vunpack.i.h.bf16 %v12848_v46  ;;  %v12849_v44 = vunpack.i.l.bf16 %v12848_v46  ;;  %v4668_v20 = vsel %vm4635_vm15, %v4631_v50, %v12804_v24  ;;  %v4669_v4 = vsel %vm4635_vm15, %v4632_v2, %v12805_v14  ;;  %v16085_v39 = vpop.f32.mrf.mxu1 }
 0x375   : > { %v12813_v13 = vpop.permute.xlu1 %12812 }
 0x376   : > { %v12815_v10 = vunpack.i.h.bf16 %v12813_v13  ;;  %v12814_v8 = vunpack.i.l.bf16 %v12813_v13  ;;  %v4818_v55 = vsel %vm4783_vm5, %v4781_v1, %v12849_v44  ;;  %v4819_v62 = vsel %vm4783_vm5, %v4782_v53, %v12850_v27  ;;  %v16087_v18 = vpop.f32.mrf.mxu1  ;;  %v16126_v1 = vld [vmem:[%s18274_s10 + $0x1] ss:$0 sm:$0xff] }
 0x377   : > { %v4837_v33 = vpack.c.bf16 %v4819_v62, %v4818_v55 }
 0x378   : > { %v4705_v34 = vsel %vm4672_vm0, %v4668_v20, %v12814_v8  ;;  %v4706_v52 = vsel %vm4672_vm0, %v4669_v4, %v12815_v10  ;;  %v16093_v63 = vpop.f32.mrf.mxu1  ;;  %v16114_v10 = vld [vmem:[%s18274_s10] ss:$0 sm:$0xff] }
 0x379   : > { %v12823_v41 = vpop.permute.xlu1 %12822 }
 0x37a   : > { %v12825_v7 = vunpack.i.h.bf16 %v12823_v41  ;;  %v12824_v32 = vunpack.i.l.bf16 %v12823_v41 }
 0x37c   : > { %v4742_v21 = vsel %vm4709_vm3, %v4705_v34, %v12824_v32  ;;  %v4743_v43 = vsel %vm4709_vm3, %v4706_v52, %v12825_v7 }
 0x37d   : > { %v12833_v29 = vpop.permute.xlu1 %12832 }
 0x37e   : > { %v12835_v12 = vunpack.i.h.bf16 %v12833_v29  ;;  %v12834_v47 = vunpack.i.l.bf16 %v12833_v29 }
 0x380   : > { %v4779_v59 = vsel %vm4746_vm4, %v4742_v21, %v12834_v47  ;;  %v4780_v6 = vsel %vm4746_vm4, %v4743_v43, %v12835_v12 }
 0x381   : > { %v12843_v58 = vpop.permute.xlu1 %12842 }
 0x382   : > { %v12845_v3 = vunpack.i.h.bf16 %v12843_v58  ;;  %v12844_v30 = vunpack.i.l.bf16 %v12843_v58 }
 0x384   : > { %v4816_v49 = vsel %vm4783_vm5, %v4779_v59, %v12844_v30  ;;  %v4817_v19 = vsel %vm4783_vm5, %v4780_v6, %v12845_v3  ;;  %v16138_v6 = vld [vmem:[%s18274_s10 + $0x2] ss:$0 sm:$0xff]  ;;  %s18299_s10 = sld [smem:[#allocation33_spill]] }
 0x385   : > { %v4836_v13 = vpack.c.bf16 %v4817_v19, %v4816_v49 }
 0x387   : > { %11041 = vmatprep.mubr.msk.bf16.mxu1 %vm4881_vm6, %v4836_v13 }
 0x388   : > { %11042 = vmatmul.mubr.msk.bf16.gmra.mxu1 %vm4881_vm6, %v4837_v33 }
 0x389   : > { %11053 = vmatprep.mubr.msk.f32.mxu1 %vm5262_vm8, %v5234_v48 }
 0x38b   : > { %v11019_v56 = vpop.f32.mrf.mxu1 }
 0x38c   : > { %v5014_v49 = vadd.f32 %v11019_v56, %v16114_v10 }
 0x38d   : > { %v16095_v9 = vpop.f32.mrf.mxu1 }
 0x38f   : > { %v11020_v23 = vpop.f32.mrf.mxu1 }
 0x390   : > { %v5017_v58 = vadd.f32 %v11020_v23, %v16114_v10 }
 0x391   : > { %v5008_v57 = vpop.f32.mrf.mxu1 }
 0x3ab   : > { %v11023_v41 = vpop.f32.mrf.mxu1 }
 0x3ac   : > { %v5030_v2 = vadd.f32 %v11023_v41, %v16114_v10  ;;  %v5127_v41 = vmax.f32 %v5017_v58, 0.0 }
 0x3ad   : > { %v5021_v15 = vpop.f32.mrf.mxu1 }
 0x3ae   : > { %v5130_v40 = vmax.f32 %v5030_v2, 0.0  ;;  %v5022_v20 = vadd.f32 %v16114_v10, %v5021_v15  ;;  %v5009_v15 = vadd.f32 %v16114_v10, %v5008_v57 }
 0x3af   : > { %v11024_v37 = vpop.f32.mrf.mxu1 }
 0x3b0   : > { %v5033_v8 = vadd.f32 %v11024_v37, %v16114_v10  ;;  %v5170_v19 = vmul.f32 %v16126_v1, %v5130_v40  ;;  %v5128_v13 = vmax.f32 %v5022_v20, 0.0 }
 0x3b1   : > { %v5024_v31 = vpop.f32.mrf.mxu1 }
 0x3b2   : > { %v5131_v32 = vmax.f32 %v5033_v8, 0.0  ;;  %v5025_v27 = vadd.f32 %v16114_v10, %v5024_v31  ;;  %v5126_v8 = vmax.f32 %v5014_v49, 0.0  ;;  %v16161_v57 = vadd.f32 %v16138_v6, %v5170_v19 }
 0x3b4   : > { %v5171_v21 = vmul.f32 %v16126_v1, %v5131_v32  ;;  %v5129_v43 = vmax.f32 %v5025_v27, 0.0  ;;  %v5167_v27 = vmul.f32 %v16126_v1, %v5127_v41  ;;  %v5166_v20 = vmul.f32 %v16126_v1, %v5126_v8 }
 0x3b6   : > { %v16149_v37 = vadd.f32 %v16138_v6, %v5171_v21  ;;  %v5169_v31 = vmul.f32 %v16126_v1, %v5129_v43  ;;  %v4993_v21 = vadd.f32 %v16114_v10, %v16093_v63  ;;  %v16202_v43 = vadd.f32 %v16138_v6, %v5167_v27 }
 0x3b7   : > { %v4990_v63 = vadd.f32 %v16114_v10, %v16085_v39  ;;  %v16216_v49 = vadd.f32 %v16138_v6, %v5166_v20  ;;  %v4985_v39 = vadd.f32 %v16076_v51, %v16114_v10  ;;  %v4982_v51 = vadd.f32 %v16072_v60, %v16114_v10 }
 0x3b8   : > { %v5121_v41 = vmax.f32 %v4993_v21, 0.0 }
 0x3b9   : > { %v5120_v8 = vmax.f32 %v4990_v63, 0.0  ;;  %v5119_v60 = vmax.f32 %v4985_v39, 0.0 }
 0x3ba   : > { %v5161_v27 = vmul.f32 %v16126_v1, %v5121_v41 }
 0x3bb   : > { %v5160_v20 = vmul.f32 %v16126_v1, %v5120_v8 }
 0x3bd   : > { %v16294_v63 = vadd.f32 %v16138_v6, %v5160_v20 }
 0x3cb   : > { %v16097_v28 = vpop.f32.mrf.mxu1 }
 0x3cd   : > { %v16099_v5 = vpop.f32.mrf.mxu1 }
 0x3cf   : > { %v16101_v54 = vpop.f32.mrf.mxu1 }
 0x3d1   : > { %v16103_v26 = vpop.f32.mrf.mxu1 }
 0x3eb   : > { %v16105_v36 = vpop.f32.mrf.mxu1 }
 0x3ed   : > { %v16107_v45 = vpop.f32.mrf.mxu1 }
 0x3ef   : > { %v11032_v35 = vpop.f32.mrf.mxu1 }
 0x3f1   : > { %v16109_v14 = vpop.f32.mrf.mxu1 }
 0x40b   : > { %v11035_v24 = vpop.f32.mrf.mxu1 }
 0x40c   : > { %v5078_v3 = vadd.f32 %v11035_v24, %v16114_v10 }
 0x40d   : > { %v5069_v46 = vpop.f32.mrf.mxu1 }
 0x40e   : > { %v5142_v56 = vmax.f32 %v5078_v3, 0.0  ;;  %v5070_v24 = vadd.f32 %v16114_v10, %v5069_v46  ;;  %v5065_v46 = vadd.f32 %v11032_v35, %v16114_v10  ;;  %v5062_v35 = vadd.f32 %v16105_v36, %v16114_v10 }
 0x40f   : > { %v11036_v16 = vpop.f32.mrf.mxu1 }
 0x410   : > { %v5081_v53 = vadd.f32 %v11036_v16, %v16114_v10  ;;  %v5139_v36 = vmax.f32 %v5065_v46, 0.0 }
 0x411   : > { %v5072_v61 = vpop.f32.mrf.mxu1 }
 0x412   : > { %v5143_v33 = vmax.f32 %v5081_v53, 0.0  ;;  %v5073_v22 = vadd.f32 %v16114_v10, %v5072_v61 }
 0x414   : > { %v5183_v2 = vmul.f32 %v16126_v1, %v5143_v33 }
 0x428   : > { %v11039_v29 = vpop.f32.mrf.mxu1 }
 0x429   : > { %v5094_v50 = vadd.f32 %v11039_v29, %v16114_v10  ;;  %v5006_v29 = vadd.f32 %v16114_v10, %v16095_v9  ;;  %v5001_v9 = vadd.f32 %v16087_v18, %v16114_v10  ;;  %v4998_v18 = vadd.f32 %v16080_v42, %v16114_v10 }
 0x42a   : > { %v5085_v7 = vpop.f32.mrf.mxu1 }
 0x42b   : > { %v5146_v12 = vmax.f32 %v5094_v50, 0.0  ;;  %v5086_v47 = vadd.f32 %v16114_v10, %v5085_v7  ;;  %v5168_v50 = vmul.f32 %v16126_v1, %v5128_v13  ;;  %v5141_v7 = vmax.f32 %v5073_v22, 0.0 }
 0x42c   : > { %v11040_v44 = vpop.f32.mrf.mxu1  ;;  %v5123_v42 = vmax.f32 %v5001_v9, 0.0  ;;  %v5179_v13 = vmul.f32 %v16126_v1, %v5139_v36 }
 0x42d   : > { %v5097_v25 = vadd.f32 %v11040_v44, %v16114_v10  ;;  %v5186_v30 = vmul.f32 %v16126_v1, %v5146_v12  ;;  %v5144_v55 = vmax.f32 %v5086_v47, 0.0  ;;  %v5125_v44 = vmax.f32 %v5009_v15, 0.0 }
 0x42e   : > { %v5088_v4 = vpop.f32.mrf.mxu1  ;;  %v16175_v12 = vadd.f32 %v16138_v6, %v5169_v31  ;;  %v5182_v47 = vmul.f32 %v16126_v1, %v5142_v56  ;;  %v16189_v53 = vadd.f32 %v16138_v6, %v5168_v50  ;;  %v5181_v58 = vmul.f32 %v16126_v1, %v5141_v7 }
 0x42f   : > { %v5147_v34 = vmax.f32 %v5097_v25, 0.0  ;;  %v5089_v52 = vadd.f32 %v16114_v10, %v5088_v4  ;;  %v16154_v16 = vadd.f32 %v16138_v6, %v5186_v30  ;;  %v5184_v61 = vmul.f32 %v16126_v1, %v5144_v55 }
 0x430   : > { %v5140_v25 = vmax.f32 %v5070_v24, 0.0  ;;  %v5124_v4 = vmax.f32 %v5006_v29, 0.0  ;;  %v5165_v3 = vmul.f32 %v16126_v1, %v5125_v44  ;;  %v5138_v30 = vmax.f32 %v5062_v35, 0.0 }
 0x431   : > { %v5187_v62 = vmul.f32 %v16126_v1, %v5147_v34  ;;  %v5145_v59 = vmax.f32 %v5089_v52, 0.0  ;;  %v16182_v40 = vadd.f32 %v16138_v6, %v5184_v61  ;;  %v5057_v34 = vadd.f32 %v16114_v10, %v16109_v14 }
 0x432   : > { %v16195_v52 = vadd.f32 %v16138_v6, %v5183_v2  ;;  %v5054_v14 = vadd.f32 %v16114_v10, %v16107_v45  ;;  %v16209_v55 = vadd.f32 %v16138_v6, %v5182_v47  ;;  %v5164_v19 = vmul.f32 %v16126_v1, %v5124_v4 }
 0x433   : > { %v16144_v48 = vadd.f32 %v16138_v6, %v5187_v62  ;;  %v5185_v23 = vmul.f32 %v16126_v1, %v5145_v59  ;;  %v5180_v62 = vmul.f32 %v16126_v1, %v5140_v25  ;;  %v5122_v59 = vmax.f32 %v4998_v18, 0.0 }
 0x434   : > { %v5049_v45 = vadd.f32 %v16101_v54, %v16114_v10  ;;  %v5137_v33 = vmax.f32 %v5057_v34, 0.0  ;;  %v16224_v22 = vadd.f32 %v16138_v6, %v5181_v58  ;;  %v16231_v15 = vadd.f32 %v16138_v6, %v5165_v3 }
 0x435   : > { %10473 = vmatprep.subr.mxu0 %v16144_v48  ;;  %v16168_v32 = vadd.f32 %v16138_v6, %v5185_v23  ;;  %v5163_v23 = vmul.f32 %v16126_v1, %v5123_v42  ;;  %v5046_v54 = vadd.f32 %v16097_v28, %v16114_v10  ;;  %v5178_v31 = vmul.f32 %v16126_v1, %v5138_v30 }
 0x436   : > { %10474 = vmatpush3.msra.mxu0 %v16149_v37  ;;  %v5136_v56 = vmax.f32 %v5054_v14, 0.0  ;;  %v16238_v24 = vadd.f32 %v16138_v6, %v5180_v62  ;;  %v5162_v61 = vmul.f32 %v16126_v1, %v5122_v59  ;;  %v16245_v29 = vadd.f32 %v16138_v6, %v5164_v19 }
 0x437   : > { %10475 = vmatprep.subr.mxu0 %v16154_v16  ;;  %v5135_v28 = vmax.f32 %v5049_v45, 0.0  ;;  %v5041_v50 = vadd.f32 %v16114_v10, %v16103_v26  ;;  %v16251_v46 = vadd.f32 %v16138_v6, %v5179_v13  ;;  %v5177_v2 = vmul.f32 %v16126_v1, %v5137_v33 }
 0x438   : > { %10476 = vmatpush3.msra.mxu0 %v16161_v57  ;;  %v4977_v7 = vadd.f32 %v16114_v10, %v16078_v38  ;;  %v16258_v9 = vadd.f32 %v16138_v6, %v5163_v23  ;;  %v5134_v44 = vmax.f32 %v5046_v54, 0.0  ;;  %v5038_v26 = vadd.f32 %v16114_v10, %v16099_v5 }
 0x439   : > { %10477 = vmatprep.subr.mxu0 %v16168_v32  ;;  %v16265_v35 = vadd.f32 %v16138_v6, %v5178_v31  ;;  %v5176_v47 = vmul.f32 %v16126_v1, %v5136_v56  ;;  %v5118_v25 = vmax.f32 %v4982_v51, 0.0  ;;  %v4974_v38 = vadd.f32 %v16114_v10, %v16074_v11 }
 0x43a   : > { %10478 = vmatpush3.msra.mxu0 %v16175_v12  ;;  %v16272_v18 = vadd.f32 %v16138_v6, %v5162_v61  ;;  %v5175_v5 = vmul.f32 %v16126_v1, %v5135_v28  ;;  %v5133_v4 = vmax.f32 %v5041_v50, 0.0  ;;  %v16278_v36 = vadd.f32 %v16138_v6, %v5177_v2 }
 0x43b   : > { %10479 = vmatprep.subr.mxu0 %v16182_v40  ;;  %v5159_v34 = vmul.f32 %v16126_v1, %v5119_v60  ;;  %v5117_v58 = vmax.f32 %v4977_v7, 0.0  ;;  %v16283_v11 = vadd.f32 %v16138_v6, %v5161_v27  ;;  %v5174_v21 = vmul.f32 %v16126_v1, %v5134_v44 }
 0x43c   : > { %10480 = vmatpush3.msra.mxu0 %v16189_v53  ;;  %v5132_v3 = vmax.f32 %v5038_v26, 0.0  ;;  %v16288_v30 = vadd.f32 %v16138_v6, %v5176_v47  ;;  %v5158_v62 = vmul.f32 %v16126_v1, %v5118_v25  ;;  %v5116_v59 = vmax.f32 %v4974_v38, 0.0  ;;  %v5232_v38 = vld [vmem:[%s18165_s21] sm:$0xff] }
 0x43d   : > { %10481 = vmatprep.subr.mxu0 %v16195_v52  ;;  %v16298_v45 = vadd.f32 %v16138_v6, %v5175_v5  ;;  %v5173_v13 = vmul.f32 %v16126_v1, %v5133_v4  ;;  %v16303_v33 = vadd.f32 %v16138_v6, %v5159_v34  ;;  %v5157_v39 = vmul.f32 %v16126_v1, %v5117_v58  ;;  %v5236_v34 = vld [vmem:[%s18165_s21 + $0x20] sm:$0xff] }
 0x43e   : > { %10482 = vmatpush3.msra.mxu0 %v16202_v43  ;;  %v16308_v41 = vadd.f32 %v16138_v6, %v5174_v21  ;;  %v5172_v54 = vmul.f32 %v16126_v1, %v5132_v3  ;;  %v16314_v51 = vadd.f32 %v16138_v6, %v5158_v62  ;;  %v5156_v61 = vmul.f32 %v16126_v1, %v5116_v59  ;;  %v5239_v3 = vld [vmem:[%s18165_s21 + $0x38] sm:$0xff]  ;;  %v5242_v62 = vld [vmem:[%s18165_s21 + $0x50] sm:$0xff]  ;;  %v5240_v59 = vld [vmem:[%s18165_s21 + $0x40] sm:$0xff] }
 0x43f   : > { %10483 = vmatprep.subr.mxu0 %v16209_v55  ;;  %v16320_v50 = vadd.f32 %v16138_v6, %v5173_v13  ;;  %v16325_v7 = vadd.f32 %v16138_v6, %v5157_v39  ;;  %v5243_v13 = vld [vmem:[%s18165_s21 + $0x58] sm:$0xff]  ;;  %v5245_v39 = vld [vmem:[%s18165_s21 + $0x68] sm:$0xff] }
 0x440   : > { %10484 = vmatpush3.msra.mxu0 %v16216_v49  ;;  %v16329_v27 = vadd.f32 %v16138_v6, %v5172_v54  ;;  %v16335_v25 = vadd.f32 %v16138_v6, %v5156_v61  ;;  %v5244_v54 = vld [vmem:[%s18165_s21 + $0x60] sm:$0xff] }
 0x441   : > { %10485 = vmatprep.subr.mxu0 %v16224_v22  ;;  %v5252_v61 = vld [vmem:[%s18165_s21 + $0xa0] sm:$0xff] }
 0x442   : > { %10486 = vmatpush3.msra.mxu0 %v16231_v15 }
 0x443   : > { %10487 = vmatprep.subr.mxu0 %v16238_v24 }
 0x444   : > { %10488 = vmatpush3.msra.mxu0 %v16245_v29 }
 0x445   : > { %10489 = vmatprep.subr.mxu0 %v16251_v46 }
 0x446   : > { %10490 = vmatpush3.msra.mxu0 %v16258_v9 }
 0x447   : > { %10491 = vmatprep.subr.mxu0 %v16265_v35 }
 0x448   : > { %v11043_v42 = vpop.f32.mrf.mxu1  ;;  %10492 = vmatpush3.msra.mxu0 %v16272_v18 }
 0x449   : > { %v5110_v14 = vadd.f32 %v11043_v42, %v16114_v10  ;;  %10493 = vmatprep.subr.mxu0 %v16278_v36  ;;  %v5235_v42 = vld [vmem:[%s18165_s21 + $0x18] sm:$0xff] }
 0x44a   : > { %v5101_v19 = vpop.f32.mrf.mxu1  ;;  %10494 = vmatpush3.msra.mxu0 %v16283_v11 }
 0x44b   : > { %10495 = vmatprep.subr.mxu0 %v16288_v30  ;;  %v5150_v31 = vmax.f32 %v5110_v14, 0.0  ;;  %v5102_v8 = vadd.f32 %v16114_v10, %v5101_v19  ;;  %v5237_v14 = vld [vmem:[%s18165_s21 + $0x28] sm:$0xff] }
 0x44c   : > { %v11044_v23 = vpop.f32.mrf.mxu1  ;;  %10496 = vmatpush3.msra.mxu0 %v16294_v63  ;;  %v5241_v19 = vld [vmem:[%s18165_s21 + $0x48] sm:$0xff] }
 0x44d   : > { %v5113_v56 = vadd.f32 %v11044_v23, %v16114_v10  ;;  %10497 = vmatprep.subr.mxu0 %v16298_v45  ;;  %v5190_v44 = vmul.f32 %v16126_v1, %v5150_v31  ;;  %v5246_v23 = vld [vmem:[%s18165_s21 + $0x70] sm:$0xff]  ;;  %v5249_v31 = vld [vmem:[%s18165_s21 + $0x88] sm:$0xff] }
 0x44e   : > { %v5104_v28 = vpop.f32.mrf.mxu1  ;;  %10498 = vmatpush3.msra.mxu0 %v16303_v33 }
 0x44f   : > { %v5151_v2 = vmax.f32 %v5113_v56, 0.0  ;;  %v5105_v60 = vadd.f32 %v16114_v10, %v5104_v28  ;;  %10499 = vmatprep.subr.mxu0 %v16308_v41  ;;  %v5148_v10 = vmax.f32 %v5102_v8, 0.0  ;;  %v16348_v4 = vadd.f32 %v16138_v6, %v5190_v44  ;;  %v5248_v56 = vld [vmem:[%s18165_s21 + $0x80] sm:$0xff]  ;;  %v5255_v8 = vld [vmem:[%s18165_s21 + $0xb8] sm:$0xff]  ;;  %v5261_v44 = vld [vmem:[%s18165_s21 + $0xe8] sm:$0x3f] }
 0x450   : > { %10500 = vmatpush3.msra.mxu0 %v16314_v51  ;;  %v5247_v28 = vld [vmem:[%s18165_s21 + $0x78] sm:$0xff] }
 0x451   : > { %v5191_v26 = vmul.f32 %v16126_v1, %v5151_v2  ;;  %v5149_v47 = vmax.f32 %v5105_v60, 0.0  ;;  %10501 = vmatprep.subr.mxu0 %v16320_v50  ;;  %v5188_v58 = vmul.f32 %v16126_v1, %v5148_v10  ;;  %v5251_v2 = vld [vmem:[%s18165_s21 + $0x98] sm:$0xff]  ;;  %v5258_v60 = vld [vmem:[%s18165_s21 + $0xd0] sm:$0xff]  ;;  %v10137_v10 = vld [vmem:[%s18165_s21 + $0x100] sm:$0xff] }
 0x452   : > { %10502 = vmatpush3.msra.mxu0 %v16325_v7 }
 0x453   : > { %v16342_v20 = vadd.f32 %v16138_v6, %v5191_v26  ;;  %10503 = vmatprep.subr.mxu0 %v16329_v27  ;;  %v5189_v5 = vmul.f32 %v16126_v1, %v5149_v47  ;;  %v16371_v1 = vadd.f32 %v16138_v6, %v5188_v58  ;;  %v5250_v26 = vld [vmem:[%s18165_s21 + $0x90] sm:$0xff]  ;;  %v5256_v58 = vld [vmem:[%s18165_s21 + $0xc0] sm:$0xff] }
 0x454   : > { %10504 = vmatpush3.msra.mxu0 %v16335_v25  ;;  %v5254_v47 = vld [vmem:[%s18165_s21 + $0xb0] sm:$0xff] }
 0x455   : > { %5362 = vmatmul.mubr.f32.vlgmr.msra.gmra.mxu0 %v5232_v38  ;;  %11045 = vmatprep.subr.msk.mxu1 %vm5293_vm9, %v16342_v20  ;;  %v16365_v21 = vadd.f32 %v16138_v6, %v5189_v5  ;;  %v5238_v6 = vld [vmem:[%s18165_s21 + $0x30] sm:$0xff]  ;;  %v10140_v38 = vld [vmem:[%s18165_s21 + $0x118] sm:$0xff]  ;;  %v5253_v5 = vld [vmem:[%s18165_s21 + $0xa8] sm:$0xff] }
 0x456   : > { %10549 = vmatprep.subr.mxu0 %v16144_v48  ;;  %11046 = vmatpush3.msk.msra.mxu1 %vm5293_vm9, %v16342_v20 }
 0x457   : > { %10550 = vmatpush3.msra.mxu0 %v16149_v37  ;;  %11047 = vmatprep.subr.mxu1 %v16348_v4 }
 0x458   : > { %10551 = vmatprep.subr.mxu0 %v16154_v16  ;;  %5366 = vmatprep.mubr.f32.mxu0 %v5236_v34  ;;  %v5257_v34 = vld [vmem:[%s18165_s21 + $0xc8] sm:$0xff] }
 0x459   : > { %11048 = vmatpush3.msra.mxu1 %v16348_v4  ;;  %10552 = vmatpush3.msra.mxu0 %v16161_v57 }
 0x45a   : > { %5367 = vmatmul.mubr.f32.gmra.mxu0 %v5235_v42  ;;  %11049 = vmatprep.subr.mxu1 %v16365_v21  ;;  %v5260_v42 = vld [vmem:[%s18165_s21 + $0xe0] sm:$0x3f] }
 0x45b   : > { %10553 = vmatprep.subr.mxu0 %v16168_v32  ;;  %11050 = vmatpush3.msra.mxu1 %v16365_v21 }
 0x45c   : > { %10554 = vmatpush3.msra.mxu0 %v16175_v12  ;;  %11051 = vmatprep.subr.mxu1 %v16371_v1 }
 0x45d   : > { %10555 = vmatprep.subr.mxu0 %v16182_v40  ;;  %5371 = vmatprep.mubr.f32.mxu0 %v5239_v3  ;;  %v10143_v3 = vld [vmem:[%s18165_s21 + $0x130] sm:$0xff] }
 0x45e   : > { %11052 = vmatpush3.msra.mxu1 %v16371_v1  ;;  %10556 = vmatpush3.msra.mxu0 %v16189_v53 }
 0x45f   : > { %5372 = vmatmul.mubr.f32.gmra.mxu0 %v5238_v6  ;;  %11054 = vmatmul.mubr.msk.f32.vlgmr.msra.gmra.mxu1 %vm5262_vm8, %v5237_v14  ;;  %v5259_v6 = vld [vmem:[%s18165_s21 + $0xd8] sm:$0x3f] }
 0x460   : > { %10557 = vmatprep.subr.mxu0 %v16195_v52  ;;  %11068 = vmatprep.subr.msk.mxu1 %vm5293_vm9, %v16342_v20  ;;  %v10136_v14 = vld [vmem:[%s18165_s21 + $0xf8] sm:$0xff] }
 0x461   : > { %10558 = vmatpush3.msra.mxu0 %v16202_v43  ;;  %11069 = vmatpush3.msk.msra.mxu1 %vm5293_vm9, %v16342_v20 }
 0x462   : > { %10559 = vmatprep.subr.mxu0 %v16209_v55  ;;  %11070 = vmatprep.subr.mxu1 %v16348_v4 }
 0x463   : > { %5376 = vmatprep.mubr.f32.mxu0 %v5242_v62  ;;  %11056 = vmatprep.mubr.msk.f32.mxu1 %vm5262_vm8, %v5240_v59  ;;  %v10146_v62 = vld [vmem:[%s18165_s21 + $0x148] sm:$0xff]  ;;  %v10135_v59 = vld [vmem:[%s18165_s21 + $0xf0] sm:$0xff] }
 0x464   : > { %10560 = vmatpush3.msra.mxu0 %v16216_v49  ;;  %11071 = vmatpush3.msra.mxu1 %v16348_v4 }
 0x465   : > { %5377 = vmatmul.mubr.f32.gmra.mxu0 %v5241_v19  ;;  %11057 = vmatmul.mubr.msk.f32.gmra.mxu1 %vm5262_vm8, %v5243_v13  ;;  %v10139_v19 = vld [vmem:[%s18165_s21 + $0x110] sm:$0xff]  ;;  %v10138_v13 = vld [vmem:[%s18165_s21 + $0x108] sm:$0xff] }
 0x466   : > { %10561 = vmatprep.subr.mxu0 %v16224_v22  ;;  %11072 = vmatprep.subr.mxu1 %v16365_v21 }
 0x467   : > { %10562 = vmatpush3.msra.mxu0 %v16231_v15  ;;  %11073 = vmatpush3.msra.mxu1 %v16365_v21 }
 0x468   : > { %10563 = vmatprep.subr.mxu0 %v16238_v24  ;;  %11074 = vmatprep.subr.mxu1 %v16371_v1 }
 0x469   : > { %5381 = vmatprep.mubr.f32.mxu0 %v5245_v39  ;;  %11059 = vmatprep.mubr.msk.f32.mxu1 %vm5262_vm8, %v5246_v23  ;;  %v10149_v39 = vld [vmem:[%s18165_s21 + $0x160] sm:$0xff]  ;;  %v10142_v23 = vld [vmem:[%s18165_s21 + $0x128] sm:$0xff] }
 0x46a   : > { %10564 = vmatpush3.msra.mxu0 %v16245_v29  ;;  %11075 = vmatpush3.msra.mxu1 %v16371_v1 }
 0x46b   : > { %5382 = vmatmul.mubr.f32.gmra.mxu0 %v5244_v54  ;;  %11060 = vmatmul.mubr.msk.f32.gmra.mxu1 %vm5262_vm8, %v5249_v31  ;;  %v10152_v54 = vld [vmem:[%s18165_s21 + $0x178] sm:$0xff]  ;;  %v10141_v31 = vld [vmem:[%s18165_s21 + $0x120] sm:$0xff] }
 0x46c   : > { %10565 = vmatprep.subr.mxu0 %v16251_v46  ;;  %10625 = vmatprep.subr.mxu1 %v16144_v48 }
 0x46d   : > { %10566 = vmatpush3.msra.mxu0 %v16258_v9  ;;  %5386 = vmatprep.mubr.f32.mxu0 %v5248_v56  ;;  %v10155_v56 = vld [vmem:[%s18165_s21 + $0x190] sm:$0xff] }
 0x46e   : > { %10567 = vmatprep.subr.mxu0 %v16265_v35  ;;  %11062 = vmatprep.mubr.msk.f32.mxu1 %vm5262_vm8, %v5252_v61  ;;  %v10145_v61 = vld [vmem:[%s18165_s21 + $0x140] sm:$0xff] }
 0x46f   : > { %10568 = vmatpush3.msra.mxu0 %v16272_v18  ;;  %11063 = vmatmul.mubr.msk.f32.gmra.mxu1 %vm5262_vm8, %v5255_v8  ;;  %v10158_v8 = vld [vmem:[%s18165_s21 + $0x1a8] sm:$0xff] }
 0x470   : > { %5387 = vmatmul.mubr.f32.gmra.mxu0 %v5247_v28  ;;  %10569 = vmatprep.subr.mxu0 %v16278_v36  ;;  %v10144_v28 = vld [vmem:[%s18165_s21 + $0x138] sm:$0xff] }
 0x471   : > { %10570 = vmatpush3.msra.mxu0 %v16283_v11  ;;  %5391 = vmatprep.mubr.f32.mxu0 %v5251_v2  ;;  %v10161_v2 = vld [vmem:[%s18165_s21 + $0x1c0] sm:$0xff] }
 0x472   : > { %10571 = vmatprep.subr.mxu0 %v16288_v30  ;;  %11065 = vmatprep.mubr.msk.f32.mxu1 %vm5262_vm8, %v5258_v60  ;;  %v10148_v60 = vld [vmem:[%s18165_s21 + $0x158] sm:$0xff] }
 0x473   : > { %10572 = vmatpush3.msra.mxu0 %v16294_v63  ;;  %11066 = vmatmul.mubr.msk.f32.gmra.mxu1 %vm5262_vm8, %v5261_v44  ;;  %v10164_v44 = vld [vmem:[%s18165_s21 + $0x1d8] sm:$0x3f] }
 0x474   : > { %5392 = vmatmul.mubr.f32.gmra.mxu0 %v5250_v26  ;;  %10573 = vmatprep.subr.mxu0 %v16298_v45  ;;  %v10147_v26 = vld [vmem:[%s18165_s21 + $0x150] sm:$0xff] }
 0x475   : > { %10574 = vmatpush3.msra.mxu0 %v16303_v33  ;;  %5396 = vmatprep.mubr.f32.mxu0 %v5254_v47  ;;  %v10177_v47 = vld [vmem:[%s18165_s21 + $0x1e8] sm:$0xff] }
 0x476   : > { %10575 = vmatprep.subr.mxu0 %v16308_v41  ;;  %11076 = vmatprep.mubr.msk.f32.mxu1 %vm5262_vm8, %v10137_v10  ;;  %v10151_v10 = vld [vmem:[%s18165_s21 + $0x170] sm:$0xff] }
 0x477   : > { %10576 = vmatpush3.msra.mxu0 %v16314_v51  ;;  %11077 = vmatmul.mubr.msk.f32.vlgmr.msra.gmra.mxu1 %vm5262_vm8, %v10140_v38  ;;  %v10176_v38 = vld [vmem:[%s18165_s21 + $0x1e0] sm:$0xff] }
 0x478   : > { %5397 = vmatmul.mubr.f32.gmra.mxu0 %v5253_v5  ;;  %10577 = vmatprep.subr.mxu0 %v16320_v50  ;;  %v10150_v5 = vld [vmem:[%s18165_s21 + $0x168] sm:$0xff] }
 0x479   : > { %10626 = vmatpush3.msra.mxu1 %v16149_v37  ;;  %10578 = vmatpush3.msra.mxu0 %v16325_v7 }
 0x47a   : > { %10627 = vmatprep.subr.mxu1 %v16154_v16  ;;  %10579 = vmatprep.subr.mxu0 %v16329_v27 }
 0x47b   : > { %10628 = vmatpush3.msra.mxu1 %v16161_v57  ;;  %5401 = vmatprep.mubr.f32.mxu0 %v5257_v34  ;;  %v10180_v34 = vld [vmem:[%s18165_s21 + $0x200] sm:$0xff] }
 0x47c   : > { %10580 = vmatpush3.msra.mxu0 %v16335_v25  ;;  %10629 = vmatprep.subr.mxu1 %v16168_v32 }
 0x47d   : > { %5402 = vmatmul.mubr.f32.gmra.mxu0 %v5256_v58  ;;  %10630 = vmatpush3.msra.mxu1 %v16175_v12  ;;  %v10154_v58 = vld [vmem:[%s18165_s21 + $0x188] sm:$0xff] }
 0x47e   : > { %11091 = vmatprep.subr.msk.mxu0 %vm5293_vm9, %v16342_v20  ;;  %10631 = vmatprep.subr.mxu1 %v16182_v40 }
 0x47f   : > { %10632 = vmatpush3.msra.mxu1 %v16189_v53  ;;  %5406 = vmatprep.mubr.f32.mxu0 %v5260_v42  ;;  %v10179_v42 = vld [vmem:[%s18165_s21 + $0x1f8] sm:$0xff] }
 0x480   : > { %10633 = vmatprep.subr.mxu1 %v16195_v52  ;;  %11079 = vmatprep.mubr.msk.f32.mxu1 %vm5262_vm8, %v10143_v3  ;;  %v10153_v3 = vld [vmem:[%s18165_s21 + $0x180] sm:$0xff] }
 0x481   : > { %5407 = vmatmul.mubr.f32.gmra.mxu0 %v5259_v6  ;;  %10634 = vmatpush3.msra.mxu1 %v16202_v43  ;;  %v10221_v6 = vld [vmem:[%s18165_s21 + $0x2f0] sm:$0xff] }
 0x482   : > { %10635 = vmatprep.subr.mxu1 %v16209_v55  ;;  %5652 = vmatprep.mubr.f32.mxu0 %v10136_v14  ;;  %v10225_v14 = vld [vmem:[%s18165_s21 + $0x310] sm:$0xff] }
 0x483   : > { %10636 = vmatpush3.msra.mxu1 %v16216_v49 }
 0x484   : > { %10637 = vmatprep.subr.mxu1 %v16224_v22  ;;  %11080 = vmatmul.mubr.msk.f32.gmra.mxu1 %vm5262_vm8, %v10146_v62  ;;  %v10220_v62 = vld [vmem:[%s18165_s21 + $0x2e8] sm:$0xff] }
 0x485   : > { %5653 = vmatmul.mubr.f32.vlgmr.msra.gmra.mxu0 %v10135_v59  ;;  %10638 = vmatpush3.msra.mxu1 %v16231_v15  ;;  %v10228_v59 = vld [vmem:[%s18165_s21 + $0x328] sm:$0xff] }
 0x486   : > { %11092 = vmatpush3.msk.msra.mxu0 %vm5293_vm9, %v16342_v20  ;;  %10639 = vmatprep.subr.mxu1 %v16238_v24 }
 0x487   : > { %11093 = vmatprep.subr.mxu0 %v16348_v4  ;;  %10640 = vmatpush3.msra.mxu1 %v16245_v29 }
 0x488   : > { %11094 = vmatpush3.msra.mxu0 %v16348_v4  ;;  %5657 = vmatprep.mubr.f32.mxu0 %v10139_v19  ;;  %v10224_v19 = vld [vmem:[%s18165_s21 + $0x308] sm:$0xff] }
 0x489   : > { %10641 = vmatprep.subr.mxu1 %v16251_v46  ;;  %11095 = vmatprep.subr.mxu0 %v16365_v21 }
 0x48a   : > { %5658 = vmatmul.mubr.f32.gmra.mxu0 %v10138_v13  ;;  %10642 = vmatpush3.msra.mxu1 %v16258_v9  ;;  %v10231_v13 = vld [vmem:[%s18165_s21 + $0x340] sm:$0xff] }
 0x48b   : > { %11096 = vmatpush3.msra.mxu0 %v16365_v21  ;;  %10643 = vmatprep.subr.mxu1 %v16265_v35 }
 0x48c   : > { %11097 = vmatprep.subr.mxu0 %v16371_v1  ;;  %11082 = vmatprep.mubr.msk.f32.mxu1 %vm5262_vm8, %v10149_v39  ;;  %v10223_v39 = vld [vmem:[%s18165_s21 + $0x300] sm:$0xff] }
 0x48d   : > { %10644 = vmatpush3.msra.mxu1 %v16272_v18  ;;  %11098 = vmatpush3.msra.mxu0 %v16371_v1 }
 0x48e   : > { %5662 = vmatprep.mubr.f32.mxu0 %v10142_v23  ;;  %11083 = vmatmul.mubr.msk.f32.gmra.mxu1 %vm5262_vm8, %v10152_v54  ;;  %v10234_v23 = vld [vmem:[%s18165_s21 + $0x358] sm:$0xff]  ;;  %v10227_v54 = vld [vmem:[%s18165_s21 + $0x320] sm:$0xff] }
 0x48f   : > { %10645 = vmatprep.subr.mxu1 %v16278_v36  ;;  %11114 = vmatprep.subr.msk.mxu0 %vm5293_vm9, %v16342_v20 }
 0x490   : > { %5663 = vmatmul.mubr.f32.gmra.mxu0 %v10141_v31  ;;  %10646 = vmatpush3.msra.mxu1 %v16283_v11  ;;  %v10237_v31 = vld [vmem:[%s18165_s21 + $0x370] sm:$0xff] }
 0x491   : > { %10647 = vmatprep.subr.mxu1 %v16288_v30  ;;  %11085 = vmatprep.mubr.msk.f32.mxu1 %vm5262_vm8, %v10155_v56  ;;  %v10226_v56 = vld [vmem:[%s18165_s21 + $0x318] sm:$0xff] }
 0x492   : > { %10648 = vmatpush3.msra.mxu1 %v16294_v63  ;;  %5667 = vmatprep.mubr.f32.mxu0 %v10145_v61  ;;  %v10240_v61 = vld [vmem:[%s18165_s21 + $0x388] sm:$0xff] }
 0x493   : > { %11086 = vmatmul.mubr.msk.f32.gmra.mxu1 %vm5262_vm8, %v10158_v8  ;;  %10649 = vmatprep.subr.mxu1 %v16298_v45  ;;  %v10230_v8 = vld [vmem:[%s18165_s21 + $0x338] sm:$0xff] }
 0x494   : > { %5668 = vmatmul.mubr.f32.gmra.mxu0 %v10144_v28  ;;  %10650 = vmatpush3.msra.mxu1 %v16303_v33  ;;  %v10243_v28 = vld [vmem:[%s18165_s21 + $0x3a0] sm:$0xff] }
 0x495   : > { %10651 = vmatprep.subr.mxu1 %v16308_v41  ;;  %11088 = vmatprep.mubr.msk.f32.mxu1 %vm5262_vm8, %v10161_v2  ;;  %v10229_v2 = vld [vmem:[%s18165_s21 + $0x330] sm:$0xff] }
 0x496   : > { %10652 = vmatpush3.msra.mxu1 %v16314_v51  ;;  %5672 = vmatprep.mubr.f32.mxu0 %v10148_v60  ;;  %v10246_v60 = vld [vmem:[%s18165_s21 + $0x3b8] sm:$0x3f] }
 0x497   : > { %11089 = vmatmul.mubr.msk.f32.gmra.mxu1 %vm5262_vm8, %v10164_v44  ;;  %10653 = vmatprep.subr.mxu1 %v16320_v50  ;;  %v10233_v44 = vld [vmem:[%s18165_s21 + $0x350] sm:$0xff] }
 0x498   : > { %5673 = vmatmul.mubr.f32.gmra.mxu0 %v10147_v26  ;;  %10654 = vmatpush3.msra.mxu1 %v16325_v7  ;;  %v10232_v26 = vld [vmem:[%s18165_s21 + $0x348] sm:$0xff] }
 0x499   : > { %10655 = vmatprep.subr.mxu1 %v16329_v27  ;;  %5953 = vmatprep.mubr.f32.mxu1 %v10177_v47  ;;  %v10236_v47 = vld [vmem:[%s18165_s21 + $0x368] sm:$0xff] }
 0x49a   : > { %10656 = vmatpush3.msra.mxu1 %v16335_v25  ;;  %5677 = vmatprep.mubr.f32.mxu0 %v10151_v10  ;;  %v10235_v10 = vld [vmem:[%s18165_s21 + $0x360] sm:$0xff] }
 0x49b   : > { %5954 = vmatmul.mubr.f32.vlgmr.msra.gmra.mxu1 %v10176_v38  ;;  %10701 = vmatprep.subr.mxu1 %v16144_v48  ;;  %v10183_v48 = vld [vmem:[%s18165_s21 + $0x218] sm:$0xff]  ;;  %v10239_v38 = vld [vmem:[%s18165_s21 + $0x380] sm:$0xff] }
 0x49c   : > { %5678 = vmatmul.mubr.f32.gmra.mxu0 %v10150_v5  ;;  %10702 = vmatpush3.msra.mxu1 %v16149_v37  ;;  %v10157_v37 = vld [vmem:[%s18165_s21 + $0x1a0] sm:$0xff]  ;;  %v10238_v5 = vld [vmem:[%s18165_s21 + $0x378] sm:$0xff] }
 0x49d   : > { %10703 = vmatprep.subr.mxu1 %v16154_v16  ;;  %5958 = vmatprep.mubr.f32.mxu1 %v10180_v34  ;;  %v10182_v16 = vld [vmem:[%s18165_s21 + $0x210] sm:$0xff]  ;;  %v10242_v34 = vld [vmem:[%s18165_s21 + $0x398] sm:$0xff] }
 0x49e   : > { %10704 = vmatpush3.msra.mxu1 %v16161_v57  ;;  %5682 = vmatprep.mubr.f32.mxu0 %v10154_v58  ;;  %v10156_v57 = vld [vmem:[%s18165_s21 + $0x198] sm:$0xff]  ;;  %v10241_v58 = vld [vmem:[%s18165_s21 + $0x390] sm:$0xff] }
 0x49f   : > { %5959 = vmatmul.mubr.f32.gmra.mxu1 %v10179_v42  ;;  %10705 = vmatprep.subr.mxu1 %v16168_v32  ;;  %v10186_v32 = vld [vmem:[%s18165_s21 + $0x230] sm:$0xff] }
 0x4a0   : > { %5683 = vmatmul.mubr.f32.gmra.mxu0 %v10153_v3  ;;  %10706 = vmatpush3.msra.mxu1 %v16175_v12  ;;  %v10160_v12 = vld [vmem:[%s18165_s21 + $0x1b8] sm:$0xff]  ;;  %v10245_v42 = vld [vmem:[%s18165_s21 + $0x3b0] sm:$0x3f]  ;;  %v10244_v3 = vld [vmem:[%s18165_s21 + $0x3a8] sm:$0x3f] }
 0x4a1   : > { %10707 = vmatprep.subr.mxu1 %v16182_v40  ;;  %5963 = vmatprep.mubr.f32.mxu1 %v10183_v48  ;;  %v10185_v40 = vld [vmem:[%s18165_s21 + $0x228] sm:$0xff] }
 0x4a2   : > { %10708 = vmatpush3.msra.mxu1 %v16189_v53  ;;  %5687 = vmatprep.mubr.f32.mxu0 %v10157_v37  ;;  %v10159_v53 = vld [vmem:[%s18165_s21 + $0x1b0] sm:$0xff] }
 0x4a3   : > { %5964 = vmatmul.mubr.f32.gmra.mxu1 %v10182_v16  ;;  %10709 = vmatprep.subr.mxu1 %v16195_v52  ;;  %v10189_v52 = vld [vmem:[%s18165_s21 + $0x248] sm:$0xff] }
 0x4a4   : > { %5688 = vmatmul.mubr.f32.gmra.mxu0 %v10156_v57  ;;  %10710 = vmatpush3.msra.mxu1 %v16202_v43  ;;  %v10163_v43 = vld [vmem:[%s18165_s21 + $0x1d0] sm:$0x3f] }
 0x4a5   : > { %10711 = vmatprep.subr.mxu1 %v16209_v55  ;;  %5968 = vmatprep.mubr.f32.mxu1 %v10186_v32  ;;  %v10188_v55 = vld [vmem:[%s18165_s21 + $0x240] sm:$0xff] }
 0x4a6   : > { %10712 = vmatpush3.msra.mxu1 %v16216_v49  ;;  %5692 = vmatprep.mubr.f32.mxu0 %v10160_v12  ;;  %v10162_v49 = vld [vmem:[%s18165_s21 + $0x1c8] sm:$0x3f] }
 0x4a7   : > { %5969 = vmatmul.mubr.f32.gmra.mxu1 %v10185_v40  ;;  %10713 = vmatprep.subr.mxu1 %v16224_v22  ;;  %v10192_v22 = vld [vmem:[%s18165_s21 + $0x260] sm:$0xff] }
 0x4a8   : > { %5693 = vmatmul.mubr.f32.gmra.mxu0 %v10159_v53  ;;  %10714 = vmatpush3.msra.mxu1 %v16231_v15  ;;  %v10178_v15 = vld [vmem:[%s18165_s21 + $0x1f0] sm:$0xff] }
 0x4a9   : > { %10715 = vmatprep.subr.mxu1 %v16238_v24  ;;  %5973 = vmatprep.mubr.f32.mxu1 %v10189_v52  ;;  %v10191_v24 = vld [vmem:[%s18165_s21 + $0x258] sm:$0xff] }
 0x4aa   : > { %10716 = vmatpush3.msra.mxu1 %v16245_v29  ;;  %5697 = vmatprep.mubr.f32.mxu0 %v10163_v43  ;;  %v10181_v29 = vld [vmem:[%s18165_s21 + $0x208] sm:$0xff] }
 0x4ab   : > { %5974 = vmatmul.mubr.f32.gmra.mxu1 %v10188_v55  ;;  %10717 = vmatprep.subr.mxu1 %v16251_v46  ;;  %v10195_v46 = vld [vmem:[%s18165_s21 + $0x278] sm:$0xff] }
 0x4ac   : > { %5698 = vmatmul.mubr.f32.gmra.mxu0 %v10162_v49  ;;  %10718 = vmatpush3.msra.mxu1 %v16258_v9  ;;  %v10194_v9 = vld [vmem:[%s18165_s21 + $0x270] sm:$0xff] }
 0x4ad   : > { %10719 = vmatprep.subr.mxu1 %v16265_v35  ;;  %5978 = vmatprep.mubr.f32.mxu1 %v10192_v22  ;;  %v10184_v35 = vld [vmem:[%s18165_s21 + $0x220] sm:$0xff] }
 0x4ae   : > { %10720 = vmatpush3.msra.mxu1 %v16272_v18  ;;  %11099 = vmatprep.mubr.msk.f32.mxu0 %vm5262_vm8, %v10178_v15  ;;  %v10187_v18 = vld [vmem:[%s18165_s21 + $0x238] sm:$0xff] }
 0x4af   : > { %5979 = vmatmul.mubr.f32.gmra.mxu1 %v10191_v24  ;;  %10721 = vmatprep.subr.mxu1 %v16278_v36  ;;  %v10198_v36 = vld [vmem:[%s18165_s21 + $0x290] sm:$0xff] }
 0x4b0   : > { %11100 = vmatmul.mubr.msk.f32.vlgmr.msra.gmra.mxu0 %vm5262_vm8, %v10181_v29  ;;  %10722 = vmatpush3.msra.mxu1 %v16283_v11  ;;  %v10197_v11 = vld [vmem:[%s18165_s21 + $0x288] sm:$0xff] }
 0x4b1   : > { %11115 = vmatpush3.msk.msra.mxu0 %vm5293_vm9, %v16342_v20  ;;  %10723 = vmatprep.subr.mxu1 %v16288_v30  ;;  %v10190_v30 = vld [vmem:[%s18165_s21 + $0x250] sm:$0xff]  ;;  %v10205_v20 = vld [vmem:[%s18165_s21 + $0x2c8] sm:$0x3f] }
 0x4b2   : > { %11116 = vmatprep.subr.mxu0 %v16348_v4  ;;  %5983 = vmatprep.mubr.f32.mxu1 %v10195_v46 }
 0x4b3   : > { %10724 = vmatpush3.msra.mxu1 %v16294_v63  ;;  %11117 = vmatpush3.msra.mxu0 %v16348_v4  ;;  %v10193_v63 = vld [vmem:[%s18165_s21 + $0x268] sm:$0xff]  ;;  %v10219_v4 = vld [vmem:[%s18165_s21 + $0x2e0] sm:$0xff] }
 0x4b4   : > { %5984 = vmatmul.mubr.f32.gmra.mxu1 %v10194_v9  ;;  %11102 = vmatprep.mubr.msk.f32.mxu0 %vm5262_vm8, %v10184_v35 }
 0x4b5   : > { %10725 = vmatprep.subr.mxu1 %v16298_v45  ;;  %11118 = vmatprep.subr.mxu0 %v16365_v21  ;;  %v10201_v45 = vld [vmem:[%s18165_s21 + $0x2a8] sm:$0xff] }
 0x4b6   : > { %11103 = vmatmul.mubr.msk.f32.gmra.mxu0 %vm5262_vm8, %v10187_v18  ;;  %10726 = vmatpush3.msra.mxu1 %v16303_v33  ;;  %v10196_v33 = vld [vmem:[%s18165_s21 + $0x280] sm:$0xff] }
 0x4b7   : > { %11119 = vmatpush3.msra.mxu0 %v16365_v21  ;;  %10727 = vmatprep.subr.mxu1 %v16308_v41  ;;  %v10200_v41 = vld [vmem:[%s18165_s21 + $0x2a0] sm:$0xff]  ;;  %v10217_v21 = vld [vmem:[%s18165_s21 + $0x2d0] sm:$0xff] }
 0x4b8   : > { %11120 = vmatprep.subr.mxu0 %v16371_v1  ;;  %5988 = vmatprep.mubr.f32.mxu1 %v10198_v36 }
 0x4b9   : > { %10728 = vmatpush3.msra.mxu1 %v16314_v51  ;;  %11121 = vmatpush3.msra.mxu0 %v16371_v1  ;;  %v10199_v51 = vld [vmem:[%s18165_s21 + $0x298] sm:$0xff] }
 0x4ba   : > { %5989 = vmatmul.mubr.f32.gmra.mxu1 %v10197_v11  ;;  %11105 = vmatprep.mubr.msk.f32.mxu0 %vm5262_vm8, %v10190_v30  ;;  %v10222_v1 = vld [vmem:[%s18165_s21 + $0x2f8] sm:$0xff] }
 0x4bb   : > { %10729 = vmatprep.subr.mxu1 %v16320_v50  ;;  %11106 = vmatmul.mubr.msk.f32.gmra.mxu0 %vm5262_vm8, %v10193_v63  ;;  %v10204_v50 = vld [vmem:[%s18165_s21 + $0x2c0] sm:$0x3f] }
 0x4bc   : > { %10730 = vmatpush3.msra.mxu1 %v16325_v7  ;;  %5993 = vmatprep.mubr.f32.mxu1 %v10201_v45  ;;  %v10202_v7 = vld [vmem:[%s18165_s21 + $0x2b0] sm:$0xff] }
 0x4bd   : > { %10731 = vmatprep.subr.mxu1 %v16329_v27  ;;  %11108 = vmatprep.mubr.msk.f32.mxu0 %vm5262_vm8, %v10196_v33  ;;  %v10203_v27 = vld [vmem:[%s18165_s21 + $0x2b8] sm:$0x3f] }
 0x4be   : > { %10732 = vmatpush3.msra.mxu1 %v16335_v25  ;;  %11137 = vmatprep.subr.bf16.mxu0 %v18220_v0  ;;  %v10218_v25 = vld [vmem:[%s18165_s21 + $0x2d8] sm:$0xff] }
 0x4bf   : > { %5994 = vmatmul.mubr.f32.gmra.mxu1 %v10200_v41  ;;  %11109 = vmatmul.mubr.msk.f32.gmra.mxu0 %vm5262_vm8, %v10199_v51 }
 0x4c0   : > { %5998 = vmatprep.mubr.f32.mxu1 %v10204_v50  ;;  %11111 = vmatprep.mubr.msk.f32.mxu0 %vm5262_vm8, %v10202_v7 }
 0x4c1   : > { %7680 = vmatprep.subr.bf16.mxu1 %v18218_v17 }
 0x4c3   : > { %5999 = vmatmul.mubr.f32.gmra.mxu1 %v10203_v27  ;;  %11112 = vmatmul.mubr.msk.f32.gmra.mxu0 %vm5262_vm8, %v10205_v20 }
 0x4c4   : > { %6254 = vmatprep.mubr.f32.mxu1 %v10218_v25  ;;  %11122 = vmatprep.mubr.msk.f32.mxu0 %vm5262_vm8, %v10219_v4 }
 0x4c7   : > { %6255 = vmatmul.mubr.f32.vlgmr.msra.gmra.mxu1 %v10217_v21  ;;  %11123 = vmatmul.mubr.msk.f32.vlgmr.msra.gmra.mxu0 %vm5262_vm8, %v10222_v1 }
 0x4c8   : > { %6259 = vmatprep.mubr.f32.mxu1 %v10221_v6  ;;  %11125 = vmatprep.mubr.msk.f32.mxu0 %vm5262_vm8, %v10225_v14 }
 0x4cb   : > { %6260 = vmatmul.mubr.f32.gmra.mxu1 %v10220_v62  ;;  %11126 = vmatmul.mubr.msk.f32.gmra.mxu0 %vm5262_vm8, %v10228_v59 }
 0x4cc   : > { %6264 = vmatprep.mubr.f32.mxu1 %v10224_v19  ;;  %11128 = vmatprep.mubr.msk.f32.mxu0 %vm5262_vm8, %v10231_v13 }
 0x4cf   : > { %6265 = vmatmul.mubr.f32.gmra.mxu1 %v10223_v39  ;;  %11129 = vmatmul.mubr.msk.f32.gmra.mxu0 %vm5262_vm8, %v10234_v23 }
 0x4d0   : > { %6269 = vmatprep.mubr.f32.mxu1 %v10227_v54  ;;  %11131 = vmatprep.mubr.msk.f32.mxu0 %vm5262_vm8, %v10237_v31 }
 0x4d3   : > { %6270 = vmatmul.mubr.f32.gmra.mxu1 %v10226_v56  ;;  %11132 = vmatmul.mubr.msk.f32.gmra.mxu0 %vm5262_vm8, %v10240_v61 }
 0x4d4   : > { %6274 = vmatprep.mubr.f32.mxu1 %v10230_v8  ;;  %11134 = vmatprep.mubr.msk.f32.mxu0 %vm5262_vm8, %v10243_v28 }
 0x4d7   : > { %6275 = vmatmul.mubr.f32.gmra.mxu1 %v10229_v2  ;;  %11135 = vmatmul.mubr.msk.f32.gmra.mxu0 %vm5262_vm8, %v10246_v60  ;;  %vm9491_vm8 = vcmask 521216  }
 0x4d8   : > { %6279 = vmatprep.mubr.f32.mxu1 %v10233_v44 }
 0x4db   : > { %6280 = vmatmul.mubr.f32.gmra.mxu1 %v10232_v26 }
 0x4dc   : > { %6284 = vmatprep.mubr.f32.mxu1 %v10236_v47 }
 0x4df   : > { %6285 = vmatmul.mubr.f32.gmra.mxu1 %v10235_v10 }
 0x4e0   : > { %6289 = vmatprep.mubr.f32.mxu1 %v10239_v38 }
 0x4e3   : > { %6290 = vmatmul.mubr.f32.gmra.mxu1 %v10238_v5 }
 0x4e4   : > { %6294 = vmatprep.mubr.f32.mxu1 %v10242_v34 }
 0x4e7   : > { %6295 = vmatmul.mubr.f32.gmra.mxu1 %v10241_v58 }
 0x4e8   : > { %6299 = vmatprep.mubr.f32.mxu1 %v10245_v42 }
 0x4eb   : > { %6300 = vmatmul.mubr.f32.gmra.mxu1 %v10244_v3 }
 0x515   : > { %v10505_v48 = vpop.f32.mrf.mxu0 }
 0x517   : > { %v10506_v37 = vpop.f32.mrf.mxu0 }
 0x518   : > { %v10507_v16 = vadd.f32 %v10506_v37, %v10505_v48 }
 0x51a   : > { %v10508_v57 = vpop.f32.mrf.mxu0 }
 0x51c   : > { %v10509_v32 = vpop.f32.mrf.mxu0 }
 0x51d   : > { %v10510_v12 = vadd.f32 %v10509_v32, %v10508_v57 }
 0x51f   : > { %v10511_v40 = vpop.f32.mrf.mxu0  ;;  %v11055_v53 = vpop.f32.mrf.mxu1 }
 0x520   : > { %v16885_v52 = vadd.f32 %v11055_v53, %v10510_v12 }
 0x521   : > { %v10512_v43 = vpop.f32.mrf.mxu0  ;;  %v5478_v55 = vpop.f32.mrf.mxu1 }
 0x522   : > { %v16887_v49 = vadd.f32 %v10512_v43, %v10511_v40  ;;  %v16889_v22 = vadd.f32 %v10507_v16, %v5478_v55 }
 0x525   : > { %v10514_v15 = vpop.f32.mrf.mxu0  ;;  %v11058_v24 = vpop.f32.mrf.mxu1 }
 0x527   : > { %v10515_v29 = vpop.f32.mrf.mxu0  ;;  %v16891_v46 = vpop.f32.mrf.mxu1 }
 0x528   : > { %v10516_v9 = vadd.f32 %v10515_v29, %v10514_v15 }
 0x52a   : > { %v16893_v35 = vadd.f32 %v11058_v24, %v10516_v9 }
 0x52b   : > { %v10517_v18 = vpop.f32.mrf.mxu0  ;;  %v11061_v36 = vpop.f32.mrf.mxu1 }
 0x52d   : > { %v10518_v11 = vpop.f32.mrf.mxu0  ;;  %v5498_v30 = vpop.f32.mrf.mxu1 }
 0x52e   : > { %v10519_v63 = vadd.f32 %v10518_v11, %v10517_v18 }
 0x52f   : > { %v11064_v41 = vpop.f32.mrf.mxu1 }
 0x530   : > { %v10520_v45 = vpop.f32.mrf.mxu0  ;;  %v16895_v33 = vadd.f32 %v10519_v63, %v5498_v30 }
 0x531   : > { %v5508_v27 = vpop.f32.mrf.mxu1 }
 0x532   : > { %v10521_v51 = vpop.f32.mrf.mxu0 }
 0x533   : > { %v10522_v50 = vadd.f32 %v10521_v51, %v10520_v45  ;;  %v11067_v1 = vpop.f32.mrf.mxu1 }
 0x534   : > { %v10523_v7 = vpop.f32.mrf.mxu0 }
 0x535   : > { %v16897_v20 = vadd.f32 %v11061_v36, %v10522_v50  ;;  %v5518_v59 = vpop.f32.mrf.mxu1 }
 0x536   : > { %v10524_v25 = vpop.f32.mrf.mxu0 }
 0x537   : > { %v10525_v4 = vadd.f32 %v10524_v25, %v10523_v7  ;;  %v11078_v54 = vpop.f32.mrf.mxu1 }
 0x538   : > { %v10526_v21 = vpop.f32.mrf.mxu0 }
 0x539   : > { %v16899_v6 = vadd.f32 %v10525_v4, %v5508_v27  ;;  %v16905_v28 = vpop.f32.mrf.mxu1 }
 0x53a   : > { %v10527_v14 = vpop.f32.mrf.mxu0 }
 0x53b   : > { %v10528_v62 = vadd.f32 %v10527_v14, %v10526_v21 }
 0x53d   : > { %v16901_v19 = vadd.f32 %v11064_v41, %v10528_v62  ;;  %v10529_v13 = vpop.f32.mrf.mxu0 }
 0x53f   : > { %v10530_v39 = vpop.f32.mrf.mxu0 }
 0x540   : > { %v10531_v23 = vadd.f32 %v10530_v39, %v10529_v13 }
 0x541   : > { %v10532_v31 = vpop.f32.mrf.mxu0 }
 0x542   : > { %v16903_v56 = vadd.f32 %v10531_v23, %v5518_v59 }
 0x543   : > { %v10533_v61 = vpop.f32.mrf.mxu0 }
 0x544   : > { %18275 = vst [vmem:[#allocation22_spill] sm:$0xff] %v16903_v56  ;;  %v10534_v8 = vadd.f32 %v10533_v61, %v10532_v31  ;;  %v11081_v44 = vpop.f32.mrf.mxu1 }
 0x545   : > { %v16907_v2 = vpop.f32.mrf.mxu0 }
 0x546   : > { %v16909_v60 = vadd.f32 %v11067_v1, %v10534_v8  ;;  %v16913_v10 = vpop.f32.mrf.mxu1 }
 0x547   : > { %v16911_v26 = vpop.f32.mrf.mxu0 }
 0x548   : > { %18276 = vst [vmem:[#allocation23_spill] sm:$0xff] %v16909_v60 }
 0x54a   : > { %v10584_v47 = vpop.f32.mrf.mxu0 }
 0x54c   : > { %v10585_v38 = vpop.f32.mrf.mxu0 }
 0x54d   : > { %v10586_v5 = vadd.f32 %v10585_v38, %v10584_v47 }
 0x54e   : > { %v11084_v34 = vpop.f32.mrf.mxu1 }
 0x54f   : > { %v16915_v58 = vadd.f32 %v11078_v54, %v10586_v5 }
 0x550   : > { %v16917_v42 = vpop.f32.mrf.mxu0  ;;  %v5789_v3 = vpop.f32.mrf.mxu1 }
 0x552   : > { %v16921_v37 = vpop.f32.mrf.mxu0 }
 0x553   : > { %v11087_v16 = vpop.f32.mrf.mxu1  ;;  %v10589_v48 = vadd.f32 %v16921_v37, %v16917_v42  ;;  %v13337_v42 = vld [vmem:[%s18282_s25 + $0x20] ss:$0 sps:$4 sm:$0xff]   ;;  %v18283_v37 = vmax.f32 %v16885_v52, %v16915_v58  ;;  %v13338_v52 = vld [vmem:[%s18282_s25 + $0x18] sm:$0xff]  }
 0x554   : > { %v10590_v57 = vpop.f32.mrf.mxu0 }
 0x555   : > { %v5799_v32 = vpop.f32.mrf.mxu1 }
 0x556   : > { %v10591_v12 = vpop.f32.mrf.mxu0 }
 0x557   : > { %v10592_v40 = vadd.f32 %v10591_v12, %v10590_v57  ;;  %v11090_v53 = vpop.f32.mrf.mxu1 }
 0x558   : > { %v10593_v43 = vpop.f32.mrf.mxu0 }
 0x559   : > { %v16923_v55 = vadd.f32 %v11081_v44, %v10592_v40  ;;  %v5809_v15 = vpop.f32.mrf.mxu1 }
 0x55a   : > { %v10594_v24 = vpop.f32.mrf.mxu0 }
 0x55b   : > { %v10595_v29 = vadd.f32 %v10594_v24, %v10593_v43  ;;  %v10657_v9 = vpop.f32.mrf.mxu1 }
 0x55c   : > { %v10596_v36 = vpop.f32.mrf.mxu0 }
 0x55d   : > { %v16927_v11 = vadd.f32 %v10595_v29, %v5789_v3  ;;  %v10658_v30 = vpop.f32.mrf.mxu1 }
 0x55e   : > { %v10597_v63 = vpop.f32.mrf.mxu0  ;;  %v10659_v5 = vadd.f32 %v10658_v30, %v10657_v9 }
 0x55f   : > { %v10598_v45 = vadd.f32 %v10597_v63, %v10596_v36  ;;  %v10660_v41 = vpop.f32.mrf.mxu1 }
 0x560   : > { %v10599_v50 = vpop.f32.mrf.mxu0 }
 0x561   : > { %v16931_v7 = vadd.f32 %v11084_v34, %v10598_v45  ;;  %v10661_v27 = vpop.f32.mrf.mxu1 }
 0x562   : > { %v10600_v25 = vpop.f32.mrf.mxu0 }
 0x563   : > { %v10601_v4 = vadd.f32 %v10600_v25, %v10599_v50  ;;  %v16933_v21 = vpop.f32.mrf.mxu1 }
 0x564   : > { %v10602_v14 = vpop.f32.mrf.mxu0 }
 0x565   : > { %v16937_v62 = vadd.f32 %v10601_v4, %v5799_v32  ;;  %v10664_v59 = vpop.f32.mrf.mxu1 }
 0x566   : > { %v10603_v13 = vpop.f32.mrf.mxu0  ;;  %v10665_v9 = vadd.f32 %v10664_v59, %v16933_v21 }
 0x567   : > { %v10604_v39 = vadd.f32 %v10603_v13, %v10602_v14  ;;  %v16939_v23 = vpop.f32.mrf.mxu1 }
 0x568   : > { %v10605_v31 = vpop.f32.mrf.mxu0 }
 0x569   : > { %v16943_v61 = vadd.f32 %v11087_v16, %v10604_v39  ;;  %v10667_v8 = vpop.f32.mrf.mxu1 }
 0x56a   : > { %v10606_v44 = vpop.f32.mrf.mxu0 }
 0x56b   : > { %v10607_v47 = vadd.f32 %v10606_v44, %v10605_v31  ;;  %v16945_v38 = vpop.f32.mrf.mxu1 }
 0x56c   : > { %v10608_v34 = vpop.f32.mrf.mxu0 }
 0x56d   : > { %v16949_v3 = vadd.f32 %v10607_v47, %v5809_v15  ;;  %v16951_v57 = vpop.f32.mrf.mxu1 }
 0x56e   : > { %v10609_v32 = vpop.f32.mrf.mxu0 }
 0x56f   : > { %18277 = vst [vmem:[#allocation24_spill] sm:$0xff] %v16949_v3  ;;  %v10610_v12 = vadd.f32 %v10609_v32, %v10608_v34  ;;  %v16953_v40 = vpop.f32.mrf.mxu1  ;;  %v10583_v34 = vadd.f32 %v16911_v26, %v16907_v2  ;;  %v10662_v2 = vadd.f32 %v10661_v27, %v10660_v41  ;;  %v6966_v41 = vsel %vm2585_vm2, %v13337_v42, 0 }
 0x570   : > { %v11101_v43 = vpop.f32.mrf.mxu0  ;;  %11138 = vmatpush3.bf16.msra.mxu0 %v6966_v41  ;;  %vm13515_vm2 = vmmov 0  }
 0x571   : > { %v16957_v24 = vadd.f32 %v11090_v53, %v10610_v12  ;;  %v16959_v29 = vpop.f32.mrf.mxu1  ;;  %v5770_v16 = vadd.f32 %v10583_v34, %v16905_v28  ;;  %v6076_v3 = vadd.f32 %v11101_v43, %v10662_v2  ;;  %v5780_v28 = vadd.f32 %v10589_v48, %v16913_v10 }
 0x572   : > { %v6070_v36 = vpop.f32.mrf.mxu0  ;;  %v10668_v48 = vadd.f32 %v10667_v8, %v16939_v23  ;;  %v6464_v8 = vld [vmem:[#allocation4 + $0x2] sm:$0xff] }
 0x573   : > { %18278 = vst [vmem:[#allocation25_spill] sm:$0xff] %v16957_v24  ;;  %v6071_v51 = vadd.f32 %v10659_v5, %v6070_v36  ;;  %v5818_v26 = vmax.f32 %v16889_v22, %v5770_v16  ;;  %v5489_v22 = vadd.f32 %v16887_v49, %v16891_v46  ;;  %v18284_v46 = vmov 0.0  }
 0x574   : > { %v16963_v15 = vpop.f32.mrf.mxu1  ;;  %11139 = vmatprep.subr.bf16.mxu0 %v18284_v46  ;;  %v10671_v16 = vadd.f32 %v16951_v57, %v16945_v38  ;;  %v13339_v38 = vld [vmem:[%s18282_s25 + $0x10] sm:$0xff]   ;;  %11147 = vmatprep.mubr.msk.bf16.mxu0 %vm13515_vm2, %v18284_v46 }
 0x575   : > { %v6119_v56 = vmax.f32 %v5818_v26, %v6071_v51  ;;  %v5820_v51 = vmax.f32 %v5489_v22, %v5780_v28  ;;  %11140 = vmatpush3.bf16.msra.mxu0 %v13338_v52 }
 0x576   : > { %v11104_v45 = vpop.f32.mrf.mxu0  ;;  %v16965_v50 = vpop.f32.mrf.mxu1  ;;  %11141 = vmatprep.subr.bf16.mxu0 %v18284_v46 }
 0x577   : > { %v6086_v59 = vadd.f32 %v11104_v45, %v10668_v48 }
 0x578   : > { %v6080_v25 = vpop.f32.mrf.mxu0 }
 0x579   : > { %11142 = vmatpush3.bf16.msra.mxu0 %v13339_v38 }
 0x57a   : > { %v16967_v4 = vpop.f32.mrf.mxu1  ;;  %11143 = vmatprep.subr.bf16.mxu0 %v18284_v46 }
 0x57b   : > { %v16969_v14 = vpop.f32.mrf.mxu0 }
 0x57c   : > { %v16971_v13 = vpop.f32.mrf.mxu1 }
 0x57d   : > { %v16973_v53 = vpop.f32.mrf.mxu0 }
 0x57e   : > { %v6091_v2 = vadd.f32 %v10671_v16, %v16973_v53 }
 0x57f   : > { %v16975_v39 = vpop.f32.mrf.mxu1  ;;  %v16977_v31 = vpop.f32.mrf.mxu0 }
 0x581   : > { %v16979_v44 = vpop.f32.mrf.mxu1  ;;  %v16981_v47 = vpop.f32.mrf.mxu0 }
 0x583   : > { %v16985_v32 = vpop.f32.mrf.mxu1  ;;  %v16987_v12 = vpop.f32.mrf.mxu0 }
 0x584   : > { %18279 = vst [vmem:[#allocation26_spill] sm:$0xff] %v16987_v12 }
 0x585   : > { %v16989_v17 = vpop.f32.mrf.mxu1  ;;  %v16991_v63 = vpop.f32.mrf.mxu0 }
 0x586   : > { %18280 = vst [vmem:[#allocation27_spill] sm:$0xff] %v16989_v17  ;;  %18281 = vst [vmem:[#allocation28_spill] sm:$0xff] %v16991_v63 }
 0x587   : > { %v10733_v54 = vpop.f32.mrf.mxu1  ;;  %v11124_v1 = vpop.f32.mrf.mxu0 }
 0x589   : > { %v10734_v18 = vpop.f32.mrf.mxu1  ;;  %v6371_v0 = vpop.f32.mrf.mxu0 }
 0x58a   : > { %v10735_v24 = vadd.f32 %v10734_v18, %v10733_v54  ;;  %v6081_v18 = vadd.f32 %v10665_v9, %v6080_v25 }
 0x58b   : > { %v10736_v60 = vpop.f32.mrf.mxu1  ;;  %v11127_v17 = vpop.f32.mrf.mxu0 }
 0x58c   : > { %v6372_v12 = vadd.f32 %v10735_v24, %v6371_v0  ;;  %v6120_v0 = vmax.f32 %v18283_v37, %v6076_v3  ;;  %v6121_v58 = vmax.f32 %v5820_v51, %v6081_v18  ;;  %v6454_v3 = vld [vmem:[#allocation4 + $0x1] sm:$0xff]  ;;  %v18286_v37 = vmax.f32 %v16895_v33, %v16927_v11 }
 0x58d   : > { %v10737_v63 = vpop.f32.mrf.mxu1  ;;  %v10680_v11 = vadd.f32 %v16971_v13, %v16967_v4  ;;  %v13341_v4 = vld [vmem:[%s18282_s25] sm:$0xff]  }
 0x58e   : > { %v6420_v30 = vmax.f32 %v6119_v56, %v6372_v12  ;;  %v10738_v5 = vadd.f32 %v10737_v63, %v10736_v60  ;;  %v6381_v60 = vpop.f32.mrf.mxu0  ;;  %v18285_v63 = vmax.f32 %v16893_v35, %v16923_v55  ;;  %v10674_v35 = vadd.f32 %v16959_v29, %v16953_v40 }
 0x58f   : > { %v10739_v36 = vpop.f32.mrf.mxu1  ;;  %v6123_v40 = vmax.f32 %v18286_v37, %v6091_v2 }
 0x590   : > { %6434 = vst.msk [vmem:[#allocation4 + $0xb] sm:$0xff] %vm2461_vm1, %v6420_v30  ;;  %v6377_v10 = vadd.f32 %v11124_v1, %v10738_v5  ;;  %v11130_v54 = vpop.f32.mrf.mxu0  ;;  %v6122_v45 = vmax.f32 %v18285_v63, %v6086_v59  ;;  %v6096_v53 = vadd.f32 %v16969_v14, %v10674_v35  ;;  %v13340_v14 = vld [vmem:[%s18282_s25 + $0x8] sm:$0xff]  }
 0x591   : > { %v10740_v56 = vpop.f32.mrf.mxu1  ;;  %11144 = vmatpush3.bf16.msra.mxu0 %v13340_v14 }
 0x592   : > { %v6421_v27 = vmax.f32 %v6120_v0, %v6377_v10  ;;  %v10741_v21 = vadd.f32 %v10740_v56, %v10739_v36  ;;  %v6391_v57 = vpop.f32.mrf.mxu0  ;;  %v10677_v56 = vadd.f32 %v16965_v50, %v16963_v15  ;;  %11145 = vmatprep.subr.bf16.mxu0 %v18284_v46 }
 0x593   : > { %v10742_v49 = vpop.f32.mrf.mxu1 }
 0x594   : > { %6435 = vst.msk [vmem:[#allocation4 + $0x13] sm:$0xff] %vm2461_vm1, %v6421_v27  ;;  %v6382_v1 = vadd.f32 %v10741_v21, %v6381_v60  ;;  %v11133_v48 = vpop.f32.mrf.mxu0  ;;  %v18287_v21 = vmax.f32 %v16897_v20, %v16931_v7  ;;  %v6106_v20 = vadd.f32 %v16977_v31, %v10680_v11 }
 0x595   : > { %v10743_v23 = vpop.f32.mrf.mxu1  ;;  %11146 = vmatpush3.bf16.msra.mxu0 %v13341_v4 }
 0x596   : > { %v6422_v43 = vmax.f32 %v6121_v58, %v6382_v1  ;;  %v10744_v24 = vadd.f32 %v10743_v23, %v10742_v49  ;;  %v6124_v59 = vmax.f32 %v18287_v21, %v6096_v53  ;;  %v6101_v49 = vadd.f32 %v10677_v56, %v16981_v47  ;;  %v6401_v58 = vpop.f32.mrf.mxu0  ;;  %11167 = vmatprep.subr.mxu0 %v18284_v46  ;;  %v18297_v21 = vld [vmem:[#allocation25_spill] sm:$0xff] }
 0x597   : > { %v10745_v25 = vpop.f32.mrf.mxu1  ;;  %v6465_v34 = vld [vmem:[#allocation4 + $0xa] sm:$0xff] }
 0x598   : > { %v6455_v12 = vld [vmem:[#allocation4 + $0x9] sm:$0xff]  ;;  %6436 = vst.msk [vmem:[#allocation4 + $0x1b] sm:$0xff] %vm2461_vm1, %v6422_v43  ;;  %v6387_v26 = vadd.f32 %v11127_v17, %v10744_v24  ;;  %v12856_v28 = vpack.i.bf16 %v6465_v34, %v6464_v8  ;;  %v18288_v8 = vmax.f32 %v16899_v6, %v16937_v62  ;;  %v11136_v31 = vpop.f32.mrf.mxu0  ;;  %v18289_v6 = vmax.f32 %v16901_v19, %v16943_v61 }
 0x599   : > { %v12851_v9 = vpack.i.bf16 %v6455_v12, %v6454_v3  ;;  %v10746_v55 = vpop.f32.mrf.mxu1  ;;  %v6476_v36 = vld [vmem:[#allocation4 + $0xb] sm:$0xff] }
 0x59a   : > { %v6423_v30 = vmax.f32 %v6122_v45, %v6387_v26  ;;  %v10747_v5 = vadd.f32 %v10746_v55, %v10745_v25  ;;  %12857 = vrot.lane.b32.xlu0 %v12856_v28, %s18267_s8  ;;  %v6125_v3 = vmax.f32 %v18288_v8, %v6101_v49  ;;  %v6126_v62 = vmax.f32 %v18289_v6, %v6106_v20  ;;  %v18290_v26 = vld [vmem:[#allocation27_spill] sm:$0xff]  ;;  %v6411_v19 = vpop.f32.mrf.mxu0 }
 0x59b   : > { %12852 = vrot.lane.b32.xlu1 %v12851_v9, %s18261_s30  ;;  %v10748_v17 = vpop.f32.mrf.mxu1  ;;  %v6477_v42 = vld [vmem:[#allocation4 + $0x13] sm:$0xff]  ;;  %v10686_v28 = vadd.f32 %v18290_v26, %v16985_v32 }
 0x59c   : > { %v17031_v22 = vld [vmem:[#allocation4 + $0x12] sm:$0xff]  ;;  %6437 = vst.msk [vmem:[#allocation4 + $0x23] sm:$0xff] %vm2461_vm1, %v6423_v30  ;;  %v6392_v29 = vadd.f32 %v10747_v5, %v6391_v57  ;;  %v12866_v0 = vpack.i.bf16 %v6477_v42, %v6476_v36 }
 0x59d   : > { %v12861_v18 = vpack.i.bf16 %v17031_v22, %v6465_v34  ;;  %v10749_v10 = vpop.f32.mrf.mxu1  ;;  %v6486_v51 = vld [vmem:[#allocation4 + $0xc] sm:$0xff]  ;;  %v10683_v34 = vadd.f32 %v16979_v44, %v16975_v39  ;;  %v18291_v39 = vld [vmem:[#allocation28_spill] sm:$0xff] }
 0x59e   : > { %v6424_v60 = vmax.f32 %v6123_v40, %v6392_v29  ;;  %v10750_v33 = vadd.f32 %v10749_v10, %v10748_v17  ;;  %12867 = vrot.lane.b32.xlu0 %v12866_v0, %s18269_s4  ;;  %v6456_v35 = vld [vmem:[#allocation4 + $0x11] sm:$0xff]  ;;  %v18294_v29 = vld [vmem:[#allocation24_spill] sm:$0xff] }
 0x59f   : > { %12862 = vrot.lane.b32.xlu1 %v12861_v18, %s18268_s7  ;;  %v10751_v41 = vpop.f32.mrf.mxu1  ;;  %v6487_v27 = vld [vmem:[#allocation4 + $0x14] sm:$0xff]  ;;  %v6111_v44 = vadd.f32 %v10683_v34, %v18291_v39 }
 0x5a0   : > { %6438 = vst.msk [vmem:[#allocation4 + $0x2b] sm:$0xff] %vm2461_vm1, %v6424_v60  ;;  %v6397_v15 = vadd.f32 %v11130_v54, %v10750_v33  ;;  %v12871_v50 = vpack.i.bf16 %v6487_v27, %v6486_v51  ;;  %v6498_v23 = vld [vmem:[#allocation4 + $0x15] sm:$0xff] }
 0x5a1   : > { %v10752_v52 = vpop.f32.mrf.mxu1  ;;  %v6457_v25 = vld [vmem:[#allocation4 + $0x19] sm:$0xff]  ;;  %v18292_v36 = vld [vmem:[#allocation26_spill] sm:$0xff] }
 0x5a2   : > { %v6425_v13 = vmax.f32 %v6124_v59, %v6397_v15  ;;  %v10753_v1 = vadd.f32 %v10752_v52, %v10751_v41  ;;  %v6508_v38 = vld [vmem:[#allocation4 + $0x16] sm:$0xff]  ;;  %v12891_v30 = vpack.i.bf16 %v6457_v25, %v6456_v35  ;;  %v6116_v42 = vadd.f32 %v18292_v36, %v10686_v28 }
 0x5a3   : > { %12872 = vrot.lane.b32.xlu1 %v12871_v50, %s18270_s1  ;;  %v10754_v7 = vpop.f32.mrf.mxu1  ;;  %v17059_v47 = vld [vmem:[#allocation4 + $0x1c] sm:$0xff]  ;;  %v18293_v40 = vld [vmem:[#allocation22_spill] sm:$0xff] }
 0x5a4   : > { %v6499_v54 = vld [vmem:[#allocation4 + $0x1d] sm:$0xff]  ;;  %6439 = vst.msk [vmem:[#allocation4 + $0x33] sm:$0xff] %vm2461_vm1, %v6425_v13  ;;  %v6402_v16 = vadd.f32 %v10753_v1, %v6401_v58  ;;  %v12876_v43 = vpack.i.bf16 %v17059_v47, %v6487_v27  ;;  %v18295_v0 = vmax.f32 %v18293_v40, %v18294_v29 }
 0x5a5   : > { %v12881_v24 = vpack.i.bf16 %v6499_v54, %v6498_v23  ;;  %v10755_v63 = vpop.f32.mrf.mxu1  ;;  %v6509_v45 = vld [vmem:[#allocation4 + $0x1e] sm:$0xff] }
 0x5a6   : > { %v6426_v12 = vmax.f32 %v6125_v3, %v6402_v16  ;;  %v10756_v2 = vadd.f32 %v10755_v63, %v10754_v7  ;;  %12877 = vrot.lane.b32.xlu0 %v12876_v43, %s18273_s17  ;;  %v12886_v57 = vpack.i.bf16 %v6509_v45, %v6508_v38  ;;  %v6467_v61 = vld [vmem:[#allocation4 + $0x1a] sm:$0xff]  ;;  %v6468_v53 = vld [vmem:[#allocation4 + $0x22] sm:$0xff]  ;;  %v6127_v18 = vmax.f32 %v18295_v0, %v6111_v44 }
 0x5a7   : > { %12882 = vrot.lane.b32.xlu1 %v12881_v24, %s18272_s0  ;;  %v10757_v9 = vpop.f32.mrf.mxu1  ;;  %v12896_v10 = vpack.i.bf16 %v6467_v61, %v17031_v22  ;;  %v6479_v60 = vld [vmem:[#allocation4 + $0x23] sm:$0xff]  ;;  %v6478_v51 = vld [vmem:[#allocation4 + $0x1b] sm:$0xff]  ;;  %v6480_v25 = vld [vmem:[#allocation4 + $0x2b] sm:$0xff] }
 0x5a8   : > { %6440 = vst.msk [vmem:[#allocation4 + $0x3b] sm:$0xff] %vm2461_vm1, %v6426_v12  ;;  %v6407_v55 = vadd.f32 %v11133_v48, %v10756_v2  ;;  %v12901_v48 = vpack.i.bf16 %v6468_v53, %v6467_v61  ;;  %v6489_v33 = vld [vmem:[#allocation4 + $0x24] sm:$0xff]  ;;  %v18296_v27 = vld [vmem:[#allocation23_spill] sm:$0xff]  ;;  %v12906_v50 = vpack.i.bf16 %v6479_v60, %v6478_v51 }
 0x5a9   : > { %v10758_v5 = vpop.f32.mrf.mxu1  ;;  %v18298_v59 = vmax.f32 %v18296_v27, %v18297_v21  ;;  %v12911_v22 = vpack.i.bf16 %v6489_v33, %v17059_v47  ;;  %v6500_v13 = vld [vmem:[#allocation4 + $0x25] sm:$0xff] }
 0x5aa   : > { %v6427_v17 = vmax.f32 %v6126_v62, %v6407_v55  ;;  %v10759_v32 = vadd.f32 %v10758_v5, %v10757_v9  ;;  %12887 = vrot.lane.b32.xlu0 %v12886_v57, %s18271_s2  ;;  %v6459_v23 = vld [vmem:[#allocation4 + $0x29] sm:$0xff]  ;;  %v6458_v47 = vld [vmem:[#allocation4 + $0x21] sm:$0xff] }
 0x5ab   : > { %12892 = vrot.lane.b32.xlu1 %v12891_v30, %s18261_s30  ;;  %v10760_v37 = vpop.f32.mrf.mxu1  ;;  %v6128_v49 = vmax.f32 %v18298_v59, %v6116_v42  ;;  %v6490_v52 = vld [vmem:[#allocation4 + $0x2c] sm:$0xff]  ;;  %v12931_v3 = vpack.i.bf16 %v6459_v23, %v6458_v47  ;;  %v7080_v47 = vld [vmem:[%s18162_s18 + $0x8] sm:$0xff] }
 0x5ac   : > { %6441 = vst.msk [vmem:[#allocation4 + $0x43] sm:$0xff] %vm2461_vm1, %v6427_v17  ;;  %v6412_v14 = vadd.f32 %v10759_v32, %v6411_v19  ;;  %v6501_v58 = vld [vmem:[#allocation4 + $0x2d] sm:$0xff]  ;;  %v12916_v1 = vpack.i.bf16 %v6490_v52, %v6489_v33 }
 0x5ad   : > { %v10761_v56 = vpop.f32.mrf.mxu1  ;;  %v12921_v20 = vpack.i.bf16 %v6501_v58, %v6500_v13  ;;  %v6511_v7 = vld [vmem:[#allocation4 + $0x2e] sm:$0xff]  ;;  %v6510_v54 = vld [vmem:[#allocation4 + $0x26] sm:$0xff]  ;;  %v6507_v58 = vld [vmem:[#allocation4 + $0x5d] sm:$0x3f] }
 0x5ae   : > { %v6428_v11 = vmax.f32 %v6127_v18, %v6412_v14  ;;  %v10762_v41 = vadd.f32 %v10761_v56, %v10760_v37  ;;  %12897 = vrot.lane.b32.xlu0 %v12896_v10, %s18267_s8  ;;  %v12926_v8 = vpack.i.bf16 %v6511_v7, %v6510_v54  ;;  %v6469_v16 = vld [vmem:[#allocation4 + $0x2a] sm:$0xff]  ;;  %v6470_v43 = vld [vmem:[#allocation4 + $0x32] sm:$0xff]  ;;  %v6497_v37 = vld [vmem:[#allocation4 + $0x5c] sm:$0x3f] }
 0x5af   : > { %12902 = vrot.lane.b32.xlu1 %v12901_v48, %s18268_s7  ;;  %v12936_v24 = vpack.i.bf16 %v6469_v16, %v6468_v53  ;;  %v12941_v63 = vpack.i.bf16 %v6470_v43, %v6469_v16  ;;  %v6491_v45 = vld [vmem:[#allocation4 + $0x34] sm:$0xff]  ;;  %v6517_v7 = vld [vmem:[#allocation4 + $0x5e] sm:$0x3f] }
 0x5b0   : > { %6442 = vst.msk [vmem:[#allocation4 + $0x4b] sm:$0xff] %vm2461_vm1, %v6428_v11  ;;  %v6417_v15 = vadd.f32 %v11136_v31, %v10762_v41  ;;  %v6481_v31 = vld [vmem:[#allocation4 + $0x33] sm:$0xff]  ;;  %v12951_v12 = vpack.i.bf16 %v6491_v45, %v6490_v52  ;;  %v6482_v17 = vld [vmem:[#allocation4 + $0x3b] sm:$0xff] }
 0x5b1   : > { %v12946_v34 = vpack.i.bf16 %v6481_v31, %v6480_v25  ;;  %v6502_v62 = vld [vmem:[#allocation4 + $0x35] sm:$0xff] }
 0x5b2   : > { %v6429_v4 = vmax.f32 %v6128_v49, %v6417_v15  ;;  %12907 = vrot.lane.b32.xlu0 %v12906_v50, %s18269_s4  ;;  %v6461_v38 = vld [vmem:[#allocation4 + $0x39] sm:$0xff]  ;;  %v6460_v39 = vld [vmem:[#allocation4 + $0x31] sm:$0xff] }
 0x5b3   : > { %12912 = vrot.lane.b32.xlu1 %v12911_v22, %s18270_s1  ;;  %v6492_v2 = vld [vmem:[#allocation4 + $0x3c] sm:$0xff]  ;;  %v12971_v55 = vpack.i.bf16 %v6461_v38, %v6460_v39  ;;  %v7079_v23 = vld [vmem:[%s18162_s18] sm:$0xff] }
 0x5b4   : > { %6443 = vst.msk [vmem:[#allocation4 + $0x53] sm:$0x3f] %vm3179_vm7, %v6429_v4  ;;  %v6503_v6 = vld [vmem:[#allocation4 + $0x3d] sm:$0xff]  ;;  %v12956_v26 = vpack.i.bf16 %v6492_v2, %v6491_v45  ;;  %v7083_v16 = vld [vmem:[%s18162_s18 + $0x20] sm:$0xff]  ;;  %vm9190_vm7 = vcmask 258048  }
 0x5b5   : > { %v12961_v28 = vpack.i.bf16 %v6503_v6, %v6502_v62  ;;  %v6513_v9 = vld [vmem:[#allocation4 + $0x3e] sm:$0xff]  ;;  %v6512_v35 = vld [vmem:[#allocation4 + $0x36] sm:$0xff]  ;;  %9191 = vst.msk [vmem:[#allocation8] sm:$0x1f] %vm9190_vm7, %v18284_v46  ;;  %9192 = vst.msk [vmem:[#allocation8 + $0xb] sm:$0x1f] %vm9190_vm7, %v18284_v46 }
 0x5b6   : > { %12917 = vrot.lane.b32.xlu0 %v12916_v1, %s18273_s17  ;;  %v12966_v44 = vpack.i.bf16 %v6513_v9, %v6512_v35  ;;  %v6471_v57 = vld [vmem:[#allocation4 + $0x3a] sm:$0xff]  ;;  %v6472_v30 = vld [vmem:[#allocation4 + $0x42] sm:$0xff]  ;;  %v7087_v31 = vld [vmem:[%s18162_s18 + $0x40] sm:$0xff] }
 0x5b7   : > { %12922 = vrot.lane.b32.xlu1 %v12921_v20, %s18272_s0  ;;  %v12976_v5 = vpack.i.bf16 %v6471_v57, %v6470_v43  ;;  %v12981_v19 = vpack.i.bf16 %v6472_v30, %v6471_v57  ;;  %v6483_v61 = vld [vmem:[#allocation4 + $0x43] sm:$0xff]  ;;  %v6484_v4 = vld [vmem:[#allocation4 + $0x4b] sm:$0xff]  ;;  %v7084_v43 = vld [vmem:[%s18162_s18 + $0x28] sm:$0xff] }
 0x5b8   : > { %v6493_v53 = vld [vmem:[#allocation4 + $0x44] sm:$0xff]  ;;  %v12986_v32 = vpack.i.bf16 %v6483_v61, %v6482_v17  ;;  %v7088_v45 = vld [vmem:[%s18162_s18 + $0x48] sm:$0x3f] }
 0x5b9   : > { %v12996_v36 = vpack.i.bf16 %v6493_v53, %v6492_v2  ;;  %v6504_v29 = vld [vmem:[#allocation4 + $0x45] sm:$0xff] }
 0x5ba   : > { %12927 = vrot.lane.b32.xlu0 %v12926_v8, %s18271_s2  ;;  %v6463_v10 = vld [vmem:[#allocation4 + $0x49] sm:$0x3f]  ;;  %v6462_v48 = vld [vmem:[#allocation4 + $0x41] sm:$0xff] }
 0x5bb   : > { %12932 = vrot.lane.b32.xlu1 %v12931_v3, %s18261_s30  ;;  %v6496_v42 = vld [vmem:[#allocation4 + $0x54] sm:$0xff]  ;;  %v6494_v14 = vld [vmem:[#allocation4 + $0x4c] sm:$0xff]  ;;  %v13016_v60 = vpack.i.bf16 %v6463_v10, %v6462_v48  ;;  %v7081_v8 = vld [vmem:[%s18162_s18 + $0x10] sm:$0xff] }
 0x5bc   : > { %v6505_v40 = vld [vmem:[#allocation4 + $0x4d] sm:$0xff]  ;;  %v12991_v0 = vpack.i.bf16 %v6497_v37, %v6496_v42  ;;  %v13001_v56 = vpack.i.bf16 %v6494_v14, %v6493_v53  ;;  %v6506_v52 = vld [vmem:[#allocation4 + $0x55] sm:$0xff]  ;;  %v6444_v6 = vld [vmem:[#allocation4] sm:$0xff] }
 0x5bd   : > { %v13006_v18 = vpack.i.bf16 %v6505_v40, %v6504_v29  ;;  %v6515_v33 = vld [vmem:[#allocation4 + $0x4e] sm:$0xff]  ;;  %v6514_v41 = vld [vmem:[#allocation4 + $0x46] sm:$0xff]  ;;  %v13041_v1 = vpack.i.bf16 %v6507_v58, %v6506_v52  ;;  %v6516_v20 = vld [vmem:[#allocation4 + $0x56] sm:$0xff] }
 0x5be   : > { %12937 = vrot.lane.b32.xlu0 %v12936_v24, %s18267_s8  ;;  %v6475_v11 = vld [vmem:[#allocation4 + $0x52] sm:$0x3f]  ;;  %v6474_v51 = vld [vmem:[#allocation4 + $0x4a] sm:$0xff]  ;;  %v13011_v27 = vpack.i.bf16 %v6515_v33, %v6514_v41  ;;  %v13046_v54 = vpack.i.bf16 %v6517_v7, %v6516_v20  ;;  %v7085_v24 = vld [vmem:[%s18162_s18 + $0x30] sm:$0xff] }
 0x5bf   : > { %12942 = vrot.lane.b32.xlu1 %v12941_v63, %s18268_s7  ;;  %v13026_v21 = vpack.i.bf16 %v6475_v11, %v6474_v51  ;;  %v6473_v59 = vld [vmem:[#allocation4 + $0x4a] sm:$0x3f]  ;;  %v6495_v49 = vld [vmem:[#allocation4 + $0x54] sm:$0x3f] }
 0x5c0   : > { %v13021_v15 = vpack.i.bf16 %v6473_v59, %v6472_v30  ;;  %v13036_v50 = vpack.i.bf16 %v6495_v49, %v6494_v14  ;;  %v6485_v22 = vld [vmem:[#allocation4 + $0x53] sm:$0x3f]  ;;  %v7082_v3 = vld [vmem:[%s18162_s18 + $0x18] sm:$0xff] }
 0x5c1   : > { %v13031_v13 = vpack.i.bf16 %v6485_v22, %v6484_v4  ;;  %v7086_v63 = vld [vmem:[%s18162_s18 + $0x38] sm:$0xff] }
 0x5c2   : > { %12947 = vrot.lane.b32.xlu0 %v12946_v34, %s18269_s4  ;;  %v6445_v9 = vld [vmem:[#allocation4 + $0x8] sm:$0xff] }
 0x5c3   : > { %12952 = vrot.lane.b32.xlu1 %v12951_v12, %s18270_s1 }
 0x5c6   : > { %12957 = vrot.lane.b32.xlu0 %v12956_v26, %s18273_s17 }
 0x5c7   : > { %12962 = vrot.lane.b32.xlu1 %v12961_v28, %s18272_s0 }
 0x5ca   : > { %12967 = vrot.lane.b32.xlu0 %v12966_v44, %s18271_s2 }
 0x5cb   : > { %12972 = vrot.lane.b32.xlu1 %v12971_v55, %s18261_s30 }
 0x5ce   : > { %12977 = vrot.lane.b32.xlu0 %v12976_v5, %s18267_s8 }
 0x5cf   : > { %12982 = vrot.lane.b32.xlu1 %v12981_v19, %s18268_s7 }
 0x5d2   : > { %12987 = vrot.lane.b32.xlu0 %v12986_v32, %s18269_s4 }
 0x5d3   : > { %12997 = vrot.lane.b32.xlu1 %v12996_v36, %s18270_s1 }
 0x5d6   : > { %12992 = vrot.lane.b32.xlu0 %v12991_v0, %s18273_s17 }
 0x5d7   : > { %13007 = vrot.lane.b32.xlu1 %v13006_v18, %s18272_s0 }
 0x5da   : > { %13002 = vrot.lane.b32.xlu0 %v13001_v56, %s18273_s17 }
 0x5db   : > { %13017 = vrot.lane.b32.xlu1 %v13016_v60, %s18261_s30 }
 0x5de   : > { %13012 = vrot.lane.b32.xlu0 %v13011_v27, %s18271_s2 }
 0x5df   : > { %13027 = vrot.lane.b32.xlu1 %v13026_v21, %s18268_s7  ;;  %s18305_s7 = sld [smem:[#allocation36_spill]] }
 0x5e2   : > { %13022 = vrot.lane.b32.xlu0 %v13021_v15, %s18267_s8 }
 0x5e3   : > { %13037 = vrot.lane.b32.xlu1 %v13036_v50, %s18270_s1  ;;  %s18302_s1 = smov %s18301_s5 }
 0x5e6   : > { %13032 = vrot.lane.b32.xlu0 %v13031_v13, %s18269_s4  ;;  %v6447_v13 = vld [vmem:[#allocation4 + $0x18] sm:$0xff] }
 0x5e7   : > { %13042 = vrot.lane.b32.xlu1 %v13041_v1, %s18272_s0  ;;  %v6446_v1 = vld [vmem:[#allocation4 + $0x10] sm:$0xff]  ;;  %s13516_s0 = smov 80  }
 0x5ea   : > { %13047 = vrot.lane.b32.xlu0 %v13046_v54, %s18271_s2 }
 0x5eb   : > { %7091 = vperm.xlu1 %12130, %v7079_v23  }
 0x5ee   : > { %7096 = vperm.xlu0 %12129, %v7080_v47  }
 0x5ef   : > { %7101 = vperm.xlu1 %12130, %v7081_v8  }
 0x5f2   : > { %7106 = vperm.xlu0 %12129, %v7082_v3  }
 0x5f3   : > { %7111 = vperm.xlu1 %12130, %v7083_v16  }
 0x5f6   : > { %7116 = vperm.xlu0 %12129, %v7084_v43  }
 0x5f7   : > { %7121 = vperm.xlu1 %12130, %v7085_v24  }
 0x5fa   : > { %7126 = vperm.xlu0 %12129, %v7086_v63  }
 0x5fb   : > { %7131 = vperm.xlu1 %12130, %v7087_v31  }
 0x5fe   : > { %7136 = vperm.xlu0 %12129, %v7088_v45  }
 0x60c   : > { %v12858_v25 = vpop.permute.xlu0 %12857 }
 0x60d   : > { %v12853_v34 = vpop.permute.xlu1 %12852  ;;  %v12860_v26 = vunpack.i.h.bf16 %v12858_v25  ;;  %v12859_v28 = vunpack.i.l.bf16 %v12858_v25 }
 0x60e   : > { %v12855_v12 = vunpack.i.h.bf16 %v12853_v34  ;;  %v12854_v2 = vunpack.i.l.bf16 %v12853_v34 }
 0x610   : > { %v6822_v38 = vsel %vm2461_vm1, %v6444_v6, %v12854_v2  ;;  %v6823_v35 = vsel %vm2461_vm1, %v6445_v9, %v12855_v12  ;;  %v12868_v39 = vpop.permute.xlu0 %12867 }
 0x611   : > { %v12863_v62 = vpop.permute.xlu1 %12862  ;;  %v12870_v30 = vunpack.i.h.bf16 %v12868_v39  ;;  %v12869_v5 = vunpack.i.l.bf16 %v12868_v39  ;;  %v6832_v19 = vsel %vm4561_vm13, %v6822_v38, %v12859_v28  ;;  %v6833_v61 = vsel %vm4561_vm13, %v6823_v35, %v12860_v26 }
 0x612   : > { %v12865_v44 = vunpack.i.h.bf16 %v12863_v62  ;;  %v12864_v55 = vunpack.i.l.bf16 %v12863_v62 }
 0x614   : > { %v6842_v53 = vsel %vm4598_vm14, %v6832_v19, %v12864_v55  ;;  %v6843_v17 = vsel %vm4598_vm14, %v6833_v61, %v12865_v44 }
 0x615   : > { %v12873_v57 = vpop.permute.xlu1 %12872  ;;  %v6852_v40 = vsel %vm4635_vm15, %v6842_v53, %v12869_v5  ;;  %v6853_v29 = vsel %vm4635_vm15, %v6843_v17, %v12870_v30 }
 0x616   : > { %v12875_v32 = vunpack.i.h.bf16 %v12873_v57  ;;  %v12874_v36 = vunpack.i.l.bf16 %v12873_v57 }
 0x618   : > { %v12878_v42 = vpop.permute.xlu0 %12877  ;;  %v6862_v14 = vsel %vm4672_vm0, %v6852_v40, %v12874_v36  ;;  %v6863_v10 = vsel %vm4672_vm0, %v6853_v29, %v12875_v32 }
 0x619   : > { %v12883_v37 = vpop.permute.xlu1 %12882  ;;  %v12880_v0 = vunpack.i.h.bf16 %v12878_v42  ;;  %v12879_v18 = vunpack.i.l.bf16 %v12878_v42 }
 0x61a   : > { %v12885_v48 = vunpack.i.h.bf16 %v12883_v37  ;;  %v12884_v56 = vunpack.i.l.bf16 %v12883_v37 }
 0x61b   : > { %v6872_v60 = vsel %vm4709_vm3, %v6862_v14, %v12879_v18  ;;  %v6873_v33 = vsel %vm4709_vm3, %v6863_v10, %v12880_v0  ;;  %v6448_v18 = vld [vmem:[#allocation4 + $0x20] sm:$0xff]  ;;  %v6449_v14 = vld [vmem:[#allocation4 + $0x28] sm:$0xff] }
 0x61c   : > { %v12888_v11 = vpop.permute.xlu0 %12887  ;;  %v6882_v21 = vsel %vm4746_vm4, %v6872_v60, %v12884_v56  ;;  %v6883_v59 = vsel %vm4746_vm4, %v6873_v33, %v12885_v48 }
 0x61d   : > { %v12893_v41 = vpop.permute.xlu1 %12892  ;;  %v12890_v51 = vunpack.i.h.bf16 %v12888_v11  ;;  %v12889_v27 = vunpack.i.l.bf16 %v12888_v11 }
 0x61e   : > { %v12895_v49 = vunpack.i.h.bf16 %v12893_v41  ;;  %v12894_v15 = vunpack.i.l.bf16 %v12893_v41 }
 0x61f   : > { %v6892_v50 = vsel %vm4783_vm5, %v6882_v21, %v12889_v27  ;;  %v6893_v22 = vsel %vm4783_vm5, %v6883_v59, %v12890_v51 }
 0x620   : > { %v6902_v52 = vpack.c.bf16 %v6893_v22, %v6892_v50  ;;  %v12898_v58 = vpop.permute.xlu0 %12897  ;;  %v6825_v23 = vsel %vm2461_vm1, %v6447_v13, %v12895_v49  ;;  %v6824_v54 = vsel %vm2461_vm1, %v6446_v1, %v12894_v15 }
 0x621   : > { %v12903_v4 = vpop.permute.xlu1 %12902  ;;  %v12900_v20 = vunpack.i.h.bf16 %v12898_v58  ;;  %v12899_v7 = vunpack.i.l.bf16 %v12898_v58 }
 0x622   : > { %v12905_v47 = vunpack.i.h.bf16 %v12903_v4  ;;  %v12904_v8 = vunpack.i.l.bf16 %v12903_v4  ;;  %11148 = vmatmul.mubr.msk.bf16.vlgmr.msra.gmra.mxu0 %vm4881_vm6, %v6902_v52 }
 0x623   : > { %v6834_v3 = vsel %vm4561_vm13, %v6824_v54, %v12899_v7  ;;  %v6835_v16 = vsel %vm4561_vm13, %v6825_v23, %v12900_v20  ;;  %11151 = vmatprep.mubr.msk.bf16.mxu0 %vm13515_vm2, %v18284_v46 }
 0x624   : > { %v12908_v43 = vpop.permute.xlu0 %12907  ;;  %v6844_v45 = vsel %vm4598_vm14, %v6834_v3, %v12904_v8  ;;  %v6845_v25 = vsel %vm4598_vm14, %v6835_v16, %v12905_v47 }
 0x625   : > { %v12913_v24 = vpop.permute.xlu1 %12912  ;;  %v12910_v63 = vunpack.i.h.bf16 %v12908_v43  ;;  %v12909_v31 = vunpack.i.l.bf16 %v12908_v43 }
 0x626   : > { %v12915_v34 = vunpack.i.h.bf16 %v12913_v24  ;;  %v12914_v12 = vunpack.i.l.bf16 %v12913_v24 }
 0x627   : > { %v6854_v2 = vsel %vm4635_vm15, %v6844_v45, %v12909_v31  ;;  %v6855_v6 = vsel %vm4635_vm15, %v6845_v25, %v12910_v63 }
 0x628   : > { %v12918_v62 = vpop.permute.xlu0 %12917  ;;  %v6864_v38 = vsel %vm4672_vm0, %v6854_v2, %v12914_v12  ;;  %v6865_v35 = vsel %vm4672_vm0, %v6855_v6, %v12915_v34 }
 0x629   : > { %v12923_v26 = vpop.permute.xlu1 %12922  ;;  %v12920_v28 = vunpack.i.h.bf16 %v12918_v62  ;;  %v12919_v9 = vunpack.i.l.bf16 %v12918_v62 }
 0x62a   : > { %v12925_v39 = vunpack.i.h.bf16 %v12923_v26  ;;  %v12924_v44 = vunpack.i.l.bf16 %v12923_v26 }
 0x62b   : > { %v6874_v55 = vsel %vm4709_vm3, %v6864_v38, %v12919_v9  ;;  %v6875_v57 = vsel %vm4709_vm3, %v6865_v35, %v12920_v28 }
 0x62c   : > { %v12928_v30 = vpop.permute.xlu0 %12927  ;;  %v6884_v53 = vsel %vm4746_vm4, %v6874_v55, %v12924_v44  ;;  %v6885_v17 = vsel %vm4746_vm4, %v6875_v57, %v12925_v39  ;;  %v6450_v44 = vld [vmem:[#allocation4 + $0x30] sm:$0xff]  ;;  %v6451_v55 = vld [vmem:[#allocation4 + $0x38] sm:$0xff] }
 0x62d   : > { %v12933_v5 = vpop.permute.xlu1 %12932  ;;  %v12930_v19 = vunpack.i.h.bf16 %v12928_v30  ;;  %v12929_v61 = vunpack.i.l.bf16 %v12928_v30 }
 0x62e   : > { %v12935_v32 = vunpack.i.h.bf16 %v12933_v5  ;;  %v12934_v36 = vunpack.i.l.bf16 %v12933_v5 }
 0x62f   : > { %v6894_v42 = vsel %vm4783_vm5, %v6884_v53, %v12929_v61  ;;  %v6895_v37 = vsel %vm4783_vm5, %v6885_v17, %v12930_v19 }
 0x630   : > { %v12938_v40 = vpop.permute.xlu0 %12937  ;;  %v6903_v0 = vpack.c.bf16 %v6895_v37, %v6894_v42  ;;  %v6827_v56 = vsel %vm2461_vm1, %v6449_v14, %v12935_v32  ;;  %v6826_v60 = vsel %vm2461_vm1, %v6448_v18, %v12934_v36 }
 0x631   : > { %v12943_v29 = vpop.permute.xlu1 %12942  ;;  %v12940_v10 = vunpack.i.h.bf16 %v12938_v40  ;;  %v12939_v48 = vunpack.i.l.bf16 %v12938_v40 }
 0x632   : > { %v12945_v33 = vunpack.i.h.bf16 %v12943_v29  ;;  %v12944_v11 = vunpack.i.l.bf16 %v12943_v29  ;;  %11152 = vmatmul.mubr.msk.bf16.gmra.mxu0 %vm4881_vm6, %v6903_v0 }
 0x633   : > { %v6836_v41 = vsel %vm4561_vm13, %v6826_v60, %v12939_v48  ;;  %v6837_v51 = vsel %vm4561_vm13, %v6827_v56, %v12940_v10  ;;  %11155 = vmatprep.mubr.msk.bf16.mxu0 %vm13515_vm2, %v18284_v46 }
 0x634   : > { %v12948_v27 = vpop.permute.xlu0 %12947  ;;  %v6846_v15 = vsel %vm4598_vm14, %v6836_v41, %v12944_v11  ;;  %v6847_v50 = vsel %vm4598_vm14, %v6837_v51, %v12945_v33 }
 0x635   : > { %v12953_v21 = vpop.permute.xlu1 %12952  ;;  %v12950_v59 = vunpack.i.h.bf16 %v12948_v27  ;;  %v12949_v49 = vunpack.i.l.bf16 %v12948_v27 }
 0x636   : > { %v12955_v22 = vunpack.i.h.bf16 %v12953_v21  ;;  %v12954_v52 = vunpack.i.l.bf16 %v12953_v21 }
 0x637   : > { %v6856_v58 = vsel %vm4635_vm15, %v6846_v15, %v12949_v49  ;;  %v6857_v4 = vsel %vm4635_vm15, %v6847_v50, %v12950_v59 }
 0x638   : > { %v12958_v13 = vpop.permute.xlu0 %12957  ;;  %v6866_v23 = vsel %vm4672_vm0, %v6856_v58, %v12954_v52  ;;  %v6867_v54 = vsel %vm4672_vm0, %v6857_v4, %v12955_v22 }
 0x639   : > { %v12963_v1 = vpop.permute.xlu1 %12962  ;;  %v12960_v20 = vunpack.i.h.bf16 %v12958_v13  ;;  %v12959_v7 = vunpack.i.l.bf16 %v12958_v13 }
 0x63a   : > { %v12965_v47 = vunpack.i.h.bf16 %v12963_v1  ;;  %v12964_v8 = vunpack.i.l.bf16 %v12963_v1 }
 0x63b   : > { %v6876_v3 = vsel %vm4709_vm3, %v6866_v23, %v12959_v7  ;;  %v6877_v16 = vsel %vm4709_vm3, %v6867_v54, %v12960_v20  ;;  %v6452_v54 = vld [vmem:[#allocation4 + $0x40] sm:$0xff] }
 0x63c   : > { %v12968_v43 = vpop.permute.xlu0 %12967  ;;  %v6886_v45 = vsel %vm4746_vm4, %v6876_v3, %v12964_v8  ;;  %v6887_v25 = vsel %vm4746_vm4, %v6877_v16, %v12965_v47  ;;  %v6453_v47 = vld [vmem:[#allocation4 + $0x48] sm:$0x3f] }
 0x63d   : > { %v12973_v24 = vpop.permute.xlu1 %12972  ;;  %v12970_v63 = vunpack.i.h.bf16 %v12968_v43  ;;  %v12969_v31 = vunpack.i.l.bf16 %v12968_v43 }
 0x63e   : > { %v12975_v26 = vunpack.i.h.bf16 %v12973_v24  ;;  %v12974_v28 = vunpack.i.l.bf16 %v12973_v24 }
 0x63f   : > { %v6896_v34 = vsel %vm4783_vm5, %v6886_v45, %v12969_v31  ;;  %v6897_v12 = vsel %vm4783_vm5, %v6887_v25, %v12970_v63 }
 0x640   : > { %v6904_v2 = vpack.c.bf16 %v6897_v12, %v6896_v34  ;;  %v12978_v6 = vpop.permute.xlu0 %12977  ;;  %v6829_v57 = vsel %vm2461_vm1, %v6451_v55, %v12975_v26  ;;  %v6828_v30 = vsel %vm2461_vm1, %v6450_v44, %v12974_v28 }
 0x641   : > { %v12983_v62 = vpop.permute.xlu1 %12982  ;;  %v12980_v9 = vunpack.i.h.bf16 %v12978_v6  ;;  %v12979_v38 = vunpack.i.l.bf16 %v12978_v6 }
 0x642   : > { %11156 = vmatmul.mubr.msk.bf16.gmra.mxu0 %vm4881_vm6, %v6904_v2  ;;  %v12985_v5 = vunpack.i.h.bf16 %v12983_v62  ;;  %v12984_v19 = vunpack.i.l.bf16 %v12983_v62 }
 0x643   : > { %11159 = vmatprep.mubr.msk.bf16.mxu0 %vm13515_vm2, %v18284_v46  ;;  %v6838_v61 = vsel %vm4561_vm13, %v6828_v30, %v12979_v38  ;;  %v6839_v53 = vsel %vm4561_vm13, %v6829_v57, %v12980_v9 }
 0x644   : > { %v12988_v35 = vpop.permute.xlu0 %12987  ;;  %v6848_v37 = vsel %vm4598_vm14, %v6838_v61, %v12984_v19  ;;  %v6849_v40 = vsel %vm4598_vm14, %v6839_v53, %v12985_v5 }
 0x645   : > { %v12998_v39 = vpop.permute.xlu1 %12997  ;;  %v12990_v17 = vunpack.i.h.bf16 %v12988_v35  ;;  %v12989_v32 = vunpack.i.l.bf16 %v12988_v35 }
 0x646   : > { %v13000_v29 = vunpack.i.h.bf16 %v12998_v39  ;;  %v12999_v0 = vunpack.i.l.bf16 %v12998_v39 }
 0x647   : > { %v6858_v18 = vsel %vm4635_vm15, %v6848_v37, %v12989_v32  ;;  %v6859_v14 = vsel %vm4635_vm15, %v6849_v40, %v12990_v17 }
 0x648   : > { %v17216_v36 = vpop.permute.xlu0 %12992  ;;  %v6868_v33 = vsel %vm4672_vm0, %v6858_v18, %v12999_v0  ;;  %v6869_v11 = vsel %vm4672_vm0, %v6859_v14, %v13000_v29  ;;  %v13342_v29 = vld [vmem:[%s18299_s10 + $0x38] sm:$0xff]   ;;  %v13343_v0 = vld [vmem:[%s18299_s10 + $0x30] sm:$0xff]   ;;  %v18300_v18 = vmov 0   ;;  %v17267_v14 = vld [vmem:[%s18155_s11] ss:$0 sm:$0xff] }
 0x649   : > { %v13008_v42 = vpop.permute.xlu1 %13007  ;;  %v12995_v9 = vunpack.i.h.bf16 %v17216_v36  ;;  %v12994_v38 = vunpack.i.l.bf16 %v17216_v36  ;;  %7681 = vmatpush1.bf16.msra.mxu1 %v13342_v29 }
 0x64a   : > { %v13010_v27 = vunpack.i.h.bf16 %v13008_v42  ;;  %v13009_v21 = vunpack.i.l.bf16 %v13008_v42  ;;  %7682 = vmatprep.subr.bf16.mxu1 %v18300_v18 }
 0x64c   : > { %v13003_v10 = vpop.permute.xlu0 %13002 }
 0x64d   : > { %v13018_v48 = vpop.permute.xlu1 %13017  ;;  %v13005_v56 = vunpack.i.h.bf16 %v13003_v10  ;;  %v13004_v60 = vunpack.i.l.bf16 %v13003_v10  ;;  %7683 = vmatpush1.bf16.msra.mxu1 %v13343_v0 }
 0x64e   : > { %v13020_v22 = vunpack.i.h.bf16 %v13018_v48  ;;  %v13019_v52 = vunpack.i.l.bf16 %v13018_v48  ;;  %7684 = vmatprep.subr.bf16.mxu1 %v18300_v18 }
 0x64f   : > { %v6878_v41 = vsel %vm4709_vm3, %v6868_v33, %v13004_v60  ;;  %v6879_v51 = vsel %vm4709_vm3, %v6869_v11, %v13005_v56  ;;  %v17273_v56 = vld [vmem:[%s18155_s11 + $0x1] ss:$0 sm:$0xff]  ;;  %v17278_v11 = vld [vmem:[%s18155_s11 + $0x2] ss:$0 sm:$0xff] }
 0x650   : > { %v13013_v59 = vpop.permute.xlu0 %13012  ;;  %v6888_v58 = vsel %vm4746_vm4, %v6878_v41, %v13009_v21  ;;  %v6889_v4 = vsel %vm4746_vm4, %v6879_v51, %v13010_v27  ;;  %v6831_v16 = vsel %vm2461_vm1, %v6453_v47, %v13020_v22  ;;  %v6830_v43 = vsel %vm2461_vm1, %v6452_v54, %v13019_v52  ;;  %v13344_v52 = vld [vmem:[%s18299_s10 + $0x28] sm:$0xff]   ;;  %v13346_v54 = vld [vmem:[%s18299_s10 + $0x18] sm:$0xff]  }
 0x651   : > { %v13028_v49 = vpop.permute.xlu1 %13027  ;;  %v13015_v15 = vunpack.i.h.bf16 %v13013_v59  ;;  %v13014_v50 = vunpack.i.l.bf16 %v13013_v59  ;;  %vm7150_vm1 = vcmask 124928   ;;  %7685 = vmatpush1.bf16.msra.mxu1 %v13344_v52 }
 0x652   : > { %v13030_v31 = vunpack.i.h.bf16 %v13028_v49  ;;  %v13029_v45 = vunpack.i.l.bf16 %v13028_v49  ;;  %7151 = vst.msk [vmem:[#allocation5 + $0x8] sm:$0x7] %vm7150_vm1, %v18284_v46  ;;  %7153 = vst.msk [vmem:[#allocation5 + $0x61] sm:$0x7] %vm7150_vm1, %v18284_v46  ;;  %7686 = vmatprep.subr.bf16.mxu1 %v18300_v18 }
 0x653   : > { %v6898_v13 = vsel %vm4783_vm5, %v6888_v58, %v13014_v50  ;;  %v6899_v1 = vsel %vm4783_vm5, %v6889_v4, %v13015_v15 }
 0x654   : > { %v6905_v20 = vpack.c.bf16 %v6899_v1, %v6898_v13  ;;  %v13023_v7 = vpop.permute.xlu0 %13022  ;;  %v13345_v1 = vld [vmem:[%s18299_s10 + $0x20] sm:$0xff]  }
 0x655   : > { %v13038_v23 = vpop.permute.xlu1 %13037  ;;  %v13025_v8 = vunpack.i.h.bf16 %v13023_v7  ;;  %v13024_v3 = vunpack.i.l.bf16 %v13023_v7  ;;  %7687 = vmatpush1.bf16.msra.mxu1 %v13345_v1 }
 0x656   : > { %11160 = vmatmul.mubr.msk.bf16.gmra.mxu0 %vm4881_vm6, %v6905_v20  ;;  %v13040_v6 = vunpack.i.h.bf16 %v13038_v23  ;;  %v13039_v62 = vunpack.i.l.bf16 %v13038_v23  ;;  %7688 = vmatprep.subr.bf16.mxu1 %v18300_v18 }
 0x657   : > { %v6840_v24 = vsel %vm4561_vm13, %v6830_v43, %v13024_v3  ;;  %v6841_v63 = vsel %vm4561_vm13, %v6831_v16, %v13025_v8  ;;  %11163 = vmatprep.mubr.msk.bf16.mxu0 %vm13515_vm2, %v18284_v46 }
 0x658   : > { %v13033_v25 = vpop.permute.xlu0 %13032  ;;  %v6850_v26 = vsel %vm4598_vm14, %v6840_v24, %v13029_v45  ;;  %v6851_v28 = vsel %vm4598_vm14, %v6841_v63, %v13030_v31  ;;  %v13347_v45 = vld [vmem:[%s18299_s10 + $0x10] sm:$0xff]   ;;  %vm7565_vm14 = vcmask 916480  }
 0x659   : > { %v13035_v34 = vunpack.i.h.bf16 %v13033_v25  ;;  %v13034_v12 = vunpack.i.l.bf16 %v13033_v25  ;;  %v13043_v2 = vpop.permute.xlu1 %13042  ;;  %v7185_v7 = vld [vmem:[#allocation5 + $0x2] sm:$0xff]  ;;  %7689 = vmatpush1.bf16.msra.mxu1 %v13346_v54 }
 0x65a   : > { %v13045_v57 = vunpack.i.h.bf16 %v13043_v2  ;;  %v13044_v30 = vunpack.i.l.bf16 %v13043_v2  ;;  %v7175_v23 = vld [vmem:[#allocation5 + $0x1] sm:$0xff]  ;;  %7690 = vmatprep.subr.bf16.mxu1 %v18300_v18 }
 0x65b   : > { %v6860_v35 = vsel %vm4635_vm15, %v6850_v26, %v13034_v12  ;;  %v6861_v39 = vsel %vm4635_vm15, %v6851_v28, %v13035_v34 }
 0x65c   : > { %v6870_v44 = vsel %vm4672_vm0, %v6860_v35, %v13039_v62  ;;  %v6871_v55 = vsel %vm4672_vm0, %v6861_v39, %v13040_v6  ;;  %v13048_v5 = vpop.permute.xlu0 %13047  ;;  %vm7794_vm0 = vcmask 637952  }
 0x65d   : > { %v6880_v19 = vsel %vm4709_vm3, %v6870_v44, %v12994_v38  ;;  %v6881_v61 = vsel %vm4709_vm3, %v6871_v55, %v12995_v9  ;;  %v13050_v53 = vunpack.i.h.bf16 %v13048_v5  ;;  %v13049_v17 = vunpack.i.l.bf16 %v13048_v5  ;;  %7691 = vmatpush1.bf16.msra.mxu1 %v13347_v45  ;;  %v13348_v55 = vld [vmem:[%s18299_s10 + $0x8] sm:$0xff]  }
 0x65e   : > { %v6890_v32 = vsel %vm4746_vm4, %v6880_v19, %v13044_v30  ;;  %v6891_v36 = vsel %vm4746_vm4, %v6881_v61, %v13045_v57  ;;  %7692 = vmatprep.subr.bf16.mxu1 %v18300_v18  ;;  %v13349_v19 = vld [vmem:[%s18299_s10] sm:$0xff]   ;;  %vm8175_vm4 = vcmask 129024  }
 0x65f   : > { %v6900_v42 = vsel %vm4783_vm5, %v6890_v32, %v13049_v17  ;;  %v6901_v37 = vsel %vm4783_vm5, %v6891_v36, %v13050_v53  ;;  %8176 = vst.msk [vmem:[#allocation6] sm:$0x7f] %vm8175_vm4, %v18284_v46  ;;  %8177 = vst.msk [vmem:[#allocation6 + $0x1d] sm:$0x7f] %vm8175_vm4, %v18284_v46 }
 0x660   : > { %v6906_v40 = vpack.c.bf16 %v6901_v37, %v6900_v42 }
 0x661   : > { %7693 = vmatpush1.bf16.msra.mxu1 %v13348_v55 }
 0x662   : > { %11164 = vmatmul.mubr.msk.bf16.gmra.mxu0 %vm4881_vm6, %v6906_v40  ;;  %7694 = vmatprep.subr.bf16.mxu1 %v18300_v18  ;;  %vm8486_vm6 = vcmask 260096  }
 0x663   : > { %11187 = vmatprep.mubr.msk.f32.mxu0 %vm13515_vm2, %v18284_v46  ;;  %8487 = vst.msk [vmem:[#allocation7] sm:$0x7f] %vm8486_vm6, %v18284_v46  ;;  %8488 = vst.msk [vmem:[#allocation7 + $0x1d] sm:$0x7f] %vm8486_vm6, %v18284_v46 }
 0x665   : > { %7695 = vmatpush1.bf16.msra.mxu1 %v13349_v19 }
 0x666   : > { %v7092_v15 = vpop.permute.xlu1 %7091  ;;  %7710 = vmatprep.subr.bf16.mxu1 %v18300_v18 }
 0x669   : > { %v7097_v4 = vpop.permute.xlu0 %7096 }
 0x66a   : > { %v7102_v35 = vpop.permute.xlu1 %7101 }
 0x66d   : > { %v7107_v30 = vpop.permute.xlu0 %7106 }
 0x6e2   : > { %v7002_v10 = vpop.f32.mrf.mxu0 }
 0x6e3   : > { %v7003_v48 = vadd.f32 %v17267_v14, %v7002_v10 }
 0x6e4   : > { %v11149_v60 = vpop.f32.mrf.mxu0 }
 0x6e5   : > { %v7041_v33 = vmax.f32 %v7003_v48, 0.0  ;;  %v13350_v60 = vld [vmem:[%s18299_s10 + $0x40] sm:$0xff]  }
 0x6e6   : > { %v7005_v41 = vpop.f32.mrf.mxu0  ;;  %7711 = vmatpush2.bf16.msra.mxu1 %v13350_v60 }
 0x6e7   : > { %v7055_v51 = vmul.f32 %v17273_v56, %v7041_v33  ;;  %v7006_v27 = vadd.f32 %v17267_v14, %v7005_v41  ;;  %11225 = vmatprep.subr.mxu1 %v18284_v46 }
 0x6e8   : > { %v11150_v21 = vpop.f32.mrf.mxu0 }
 0x6e9   : > { %v7069_v59 = vadd.f32 %v17278_v11, %v7055_v51  ;;  %v7042_v49 = vmax.f32 %v7006_v27, 0.0 }
 0x6eb   : > { %v7139_v50 = vmul.f32 %v7092_v15, %v7069_v59  ;;  %v7056_v22 = vmul.f32 %v17273_v56, %v7042_v49 }
 0x6ed   : > { %7154 = vst.msk [vmem:[#allocation5 + $0xb] sm:$0xff] %vm4561_vm13, %v7139_v50  ;;  %v7070_v58 = vadd.f32 %v17278_v11, %v7056_v22 }
 0x6ef   : > { %v7140_v13 = vmul.f32 %v7097_v4, %v7070_v58  ;;  %v7112_v58 = vpop.permute.xlu1 %7111 }
 0x6f1   : > { %7155 = vst.msk [vmem:[#allocation5 + $0x13] sm:$0xff] %vm4561_vm13, %v7140_v13 }
 0x6f2   : > { %v7010_v20 = vpop.f32.mrf.mxu0 }
 0x6f3   : > { %v7011_v47 = vadd.f32 %v17267_v14, %v7010_v20 }
 0x6f4   : > { %v11153_v8 = vpop.f32.mrf.mxu0  ;;  %v7186_v3 = vld [vmem:[#allocation5 + $0xa] sm:$0xff] }
 0x6f5   : > { %v7176_v16 = vld [vmem:[#allocation5 + $0x9] sm:$0xff]  ;;  %v7043_v43 = vmax.f32 %v7011_v47, 0.0  ;;  %v13056_v24 = vpack.i.bf16 %v7186_v3, %v7185_v7  ;;  %v7117_v47 = vpop.permute.xlu0 %7116 }
 0x6f6   : > { %v13051_v63 = vpack.i.bf16 %v7176_v16, %v7175_v23  ;;  %v7013_v31 = vpop.f32.mrf.mxu0  ;;  %v7197_v2 = vld [vmem:[#allocation5 + $0xb] sm:$0xff] }
 0x6f7   : > { %v7057_v25 = vmul.f32 %v17273_v56, %v7043_v43  ;;  %v7014_v34 = vadd.f32 %v17267_v14, %v7013_v31  ;;  %13057 = vrot.lane.b32.xlu0 %v13056_v24, %s18269_s4 }
 0x6f8   : > { %13052 = vrot.lane.b32.xlu1 %v13051_v63, %s18267_s8  ;;  %v11154_v12 = vpop.f32.mrf.mxu0  ;;  %v7198_v6 = vld [vmem:[#allocation5 + $0x13] sm:$0xff] }
 0x6f9   : > { %v7187_v62 = vld [vmem:[#allocation5 + $0x12] sm:$0xff]  ;;  %v7071_v26 = vadd.f32 %v17278_v11, %v7057_v25  ;;  %v7044_v28 = vmax.f32 %v7014_v34, 0.0  ;;  %v13066_v9 = vpack.i.bf16 %v7198_v6, %v7197_v2 }
 0x6fa   : > { %v13061_v38 = vpack.i.bf16 %v7187_v62, %v7186_v3  ;;  %v7207_v17 = vld [vmem:[#allocation5 + $0xc] sm:$0xff] }
 0x6fb   : > { %v7141_v39 = vmul.f32 %v7102_v35, %v7071_v26  ;;  %v7058_v44 = vmul.f32 %v17273_v56, %v7044_v28  ;;  %13067 = vrot.lane.b32.xlu0 %v13066_v9, %s18271_s2  ;;  %v7177_v42 = vld [vmem:[#allocation5 + $0x11] sm:$0xff] }
 0x6fc   : > { %13062 = vrot.lane.b32.xlu1 %v13061_v38, %s18273_s17 }
 0x6fd   : > { %7156 = vst.msk [vmem:[#allocation5 + $0x1b] sm:$0xff] %vm4561_vm13, %v7141_v39  ;;  %v7072_v57 = vadd.f32 %v17278_v11, %v7058_v44 }
 0x6ff   : > { %v7142_v5 = vmul.f32 %v7107_v30, %v7072_v57 }
 0x701   : > { %7157 = vst.msk [vmem:[#allocation5 + $0x23] sm:$0xff] %vm4561_vm13, %v7142_v5 }
 0x702   : > { %v7018_v61 = vpop.f32.mrf.mxu0 }
 0x703   : > { %v7019_v53 = vadd.f32 %v17267_v14, %v7018_v61 }
 0x704   : > { %v11157_v32 = vpop.f32.mrf.mxu0  ;;  %v7208_v36 = vld [vmem:[#allocation5 + $0x14] sm:$0xff] }
 0x705   : > { %v7178_v37 = vld [vmem:[#allocation5 + $0x19] sm:$0xff]  ;;  %v7045_v40 = vmax.f32 %v7019_v53, 0.0  ;;  %v13071_v29 = vpack.i.bf16 %v7208_v36, %v7207_v17  ;;  %v7122_v32 = vpop.permute.xlu1 %7121 }
 0x706   : > { %v13076_v0 = vpack.i.bf16 %v7178_v37, %v7177_v42  ;;  %v7188_v10 = vld [vmem:[#allocation5 + $0x1a] sm:$0xff]  ;;  %v7021_v48 = vpop.f32.mrf.mxu0 }
 0x707   : > { %v7059_v33 = vmul.f32 %v17273_v56, %v7045_v40  ;;  %v7022_v41 = vadd.f32 %v17267_v14, %v7021_v48  ;;  %13072 = vrot.lane.b32.xlu1 %v13071_v29, %s13516_s0  ;;  %v13081_v27 = vpack.i.bf16 %v7188_v10, %v7187_v62  ;;  %v7229_v21 = vld [vmem:[#allocation5 + $0x16] sm:$0xff] }
 0x708   : > { %13077 = vrot.lane.b32.xlu0 %v13076_v0, %s18267_s8  ;;  %v11158_v51 = vpop.f32.mrf.mxu0  ;;  %v7230_v59 = vld [vmem:[#allocation5 + $0x1e] sm:$0xff]  ;;  %v7219_v7 = vld [vmem:[#allocation5 + $0x15] sm:$0xff] }
 0x709   : > { %v7209_v49 = vld [vmem:[#allocation5 + $0x1c] sm:$0xff]  ;;  %v7073_v15 = vadd.f32 %v17278_v11, %v7059_v33  ;;  %v7046_v50 = vmax.f32 %v7022_v41, 0.0  ;;  %v7577_v22 = vpack.c.bf16 %v7230_v59, %v7229_v21 }
 0x70a   : > { %v13086_v52 = vpack.i.bf16 %v7209_v49, %v7208_v36  ;;  %v7220_v4 = vld [vmem:[#allocation5 + $0x1d] sm:$0xff] }
 0x70b   : > { %v7143_v13 = vmul.f32 %v7112_v58, %v7073_v15  ;;  %v7060_v1 = vmul.f32 %v17273_v56, %v7046_v50  ;;  %13082 = vrot.lane.b32.xlu1 %v13081_v27, %s18269_s4  ;;  %10281 = vmatprep.mubr.msk.bf16.mxu1 %vm4561_vm13, %v7577_v22  ;;  %v7189_v20 = vld [vmem:[#allocation5 + $0x22] sm:$0xff]  ;;  %v13091_v54 = vpack.i.bf16 %v7220_v4, %v7219_v7 }
 0x70c   : > { %13087 = vrot.lane.b32.xlu0 %v13086_v52, %s13517_s27  ;;  %v13096_v8 = vpack.i.bf16 %v7189_v20, %v7188_v10  ;;  %v7200_v3 = vld [vmem:[#allocation5 + $0x23] sm:$0xff]  ;;  %v7199_v43 = vld [vmem:[#allocation5 + $0x1b] sm:$0xff]  ;;  %v7127_v10 = vpop.permute.xlu0 %7126 }
 0x70d   : > { %7158 = vst.msk [vmem:[#allocation5 + $0x2b] sm:$0xff] %vm4561_vm13, %v7143_v13  ;;  %v7074_v23 = vadd.f32 %v17278_v11, %v7060_v1  ;;  %v13101_v24 = vpack.i.bf16 %v7200_v3, %v7199_v43  ;;  %v7179_v31 = vld [vmem:[#allocation5 + $0x21] sm:$0xff]  ;;  %v7132_v1 = vpop.permute.xlu1 %7131 }
 0x70f   : > { %v7144_v16 = vmul.f32 %v7117_v47, %v7074_v23  ;;  %13092 = vrot.lane.b32.xlu1 %v13091_v54, %s18226_s24 }
 0x710   : > { %13097 = vrot.lane.b32.xlu0 %v13096_v8, %s18273_s17  ;;  %v7137_v3 = vpop.permute.xlu0 %7136 }
 0x711   : > { %7159 = vst.msk [vmem:[#allocation5 + $0x33] sm:$0xff] %vm4561_vm13, %v7144_v16 }
 0x713   : > { %13102 = vrot.lane.b32.xlu1 %v13101_v24, %s18271_s2 }
 0x714   : > { %v7210_v63 = vld [vmem:[#allocation5 + $0x24] sm:$0xff] }
 0x715   : > { %v7180_v45 = vld [vmem:[#allocation5 + $0x29] sm:$0xff]  ;;  %v13106_v25 = vpack.i.bf16 %v7210_v63, %v7209_v49 }
 0x716   : > { %v13111_v34 = vpack.i.bf16 %v7180_v45, %v7179_v31  ;;  %v7026_v12 = vpop.f32.mrf.mxu0  ;;  %v7190_v2 = vld [vmem:[#allocation5 + $0x2a] sm:$0xff] }
 0x717   : > { %v7027_v6 = vadd.f32 %v17267_v14, %v7026_v12  ;;  %13107 = vrot.lane.b32.xlu0 %v13106_v25, %s13516_s0  ;;  %v13116_v9 = vpack.i.bf16 %v7190_v2, %v7189_v20  ;;  %v7221_v5 = vld [vmem:[#allocation5 + $0x25] sm:$0xff] }
 0x718   : > { %13112 = vrot.lane.b32.xlu1 %v13111_v34, %s18267_s8  ;;  %v11161_v62 = vpop.f32.mrf.mxu0  ;;  %v7211_v26 = vld [vmem:[#allocation5 + $0x2c] sm:$0xff] }
 0x719   : > { %v7047_v28 = vmax.f32 %v7027_v6, 0.0  ;;  %v13121_v38 = vpack.i.bf16 %v7211_v26, %v7210_v63  ;;  %v7222_v39 = vld [vmem:[#allocation5 + $0x2d] sm:$0xff] }
 0x71a   : > { %v7029_v35 = vpop.f32.mrf.mxu0  ;;  %v7191_v44 = vld [vmem:[#allocation5 + $0x32] sm:$0xff]  ;;  %v13126_v53 = vpack.i.bf16 %v7222_v39, %v7221_v5 }
 0x71b   : > { %v7061_v55 = vmul.f32 %v17273_v56, %v7047_v28  ;;  %v7030_v57 = vadd.f32 %v17267_v14, %v7029_v35  ;;  %13117 = vrot.lane.b32.xlu0 %v13116_v9, %s18269_s4  ;;  %v13131_v17 = vpack.i.bf16 %v7191_v44, %v7190_v2  ;;  %v7202_v36 = vld [vmem:[#allocation5 + $0x33] sm:$0xff]  ;;  %v7201_v40 = vld [vmem:[#allocation5 + $0x2b] sm:$0xff] }
 0x71c   : > { %13122 = vrot.lane.b32.xlu1 %v13121_v38, %s13517_s27  ;;  %v11162_v30 = vpop.f32.mrf.mxu0  ;;  %v13136_v0 = vpack.i.bf16 %v7202_v36, %v7201_v40  ;;  %v7181_v50 = vld [vmem:[#allocation5 + $0x31] sm:$0xff]  ;;  %v7228_v40 = vld [vmem:[#allocation5 + $0x5d] sm:$0x3f] }
 0x71d   : > { %v7075_v19 = vadd.f32 %v17278_v11, %v7061_v55  ;;  %v7048_v61 = vmax.f32 %v7030_v57, 0.0 }
 0x71f   : > { %v7145_v42 = vmul.f32 %v7122_v32, %v7075_v19  ;;  %v7062_v37 = vmul.f32 %v17273_v56, %v7048_v61  ;;  %13127 = vrot.lane.b32.xlu0 %v13126_v53, %s18226_s24 }
 0x720   : > { %13132 = vrot.lane.b32.xlu1 %v13131_v17, %s18273_s17  ;;  %v7218_v17 = vld [vmem:[#allocation5 + $0x5c] sm:$0x3f] }
 0x721   : > { %7160 = vst.msk [vmem:[#allocation5 + $0x3b] sm:$0xff] %vm4561_vm13, %v7145_v42  ;;  %v7076_v29 = vadd.f32 %v17278_v11, %v7062_v37 }
 0x722   : > { %v7034_v48 = vpop.f32.mrf.mxu0 }
 0x723   : > { %v7146_v60 = vmul.f32 %v7127_v10, %v7076_v29  ;;  %v7035_v33 = vadd.f32 %v17267_v14, %v7034_v48  ;;  %13137 = vrot.lane.b32.xlu0 %v13136_v0, %s18271_s2 }
 0x724   : > { %v11165_v41 = vpop.f32.mrf.mxu0 }
 0x725   : > { %7161 = vst.msk [vmem:[#allocation5 + $0x43] sm:$0xff] %vm4561_vm13, %v7146_v60  ;;  %v7049_v51 = vmax.f32 %v7035_v33, 0.0 }
 0x726   : > { %v7037_v27 = vpop.f32.mrf.mxu0 }
 0x727   : > { %v7063_v21 = vmul.f32 %v17273_v56, %v7049_v51  ;;  %v7038_v59 = vadd.f32 %v17267_v14, %v7037_v27  ;;  %v7165_v51 = vld [vmem:[#allocation5] sm:$0xff] }
 0x728   : > { %v11166_v49 = vpop.f32.mrf.mxu0  ;;  %v7212_v15 = vld [vmem:[#allocation5 + $0x34] sm:$0xff] }
 0x729   : > { %v7182_v22 = vld [vmem:[#allocation5 + $0x39] sm:$0xff]  ;;  %v7077_v52 = vadd.f32 %v17278_v11, %v7063_v21  ;;  %v7050_v58 = vmax.f32 %v7038_v59, 0.0  ;;  %v13141_v4 = vpack.i.bf16 %v7212_v15, %v7211_v26  ;;  %v7166_v59 = vld [vmem:[#allocation5 + $0x8] sm:$0xff] }
 0x72a   : > { %v13146_v13 = vpack.i.bf16 %v7182_v22, %v7181_v50  ;;  %v7192_v20 = vld [vmem:[#allocation5 + $0x3a] sm:$0xff] }
 0x72b   : > { %v7147_v7 = vmul.f32 %v7132_v1, %v7077_v52  ;;  %v7064_v23 = vmul.f32 %v17273_v56, %v7050_v58  ;;  %13142 = vrot.lane.b32.xlu1 %v13141_v4, %s13516_s0  ;;  %v13151_v47 = vpack.i.bf16 %v7192_v20, %v7191_v44  ;;  %v7223_v56 = vld [vmem:[#allocation5 + $0x35] sm:$0xff] }
 0x72c   : > { %13147 = vrot.lane.b32.xlu0 %v13146_v13, %s18267_s8  ;;  %v7213_v54 = vld [vmem:[#allocation5 + $0x3c] sm:$0xff] }
 0x72d   : > { %7162 = vst.msk [vmem:[#allocation5 + $0x4b] sm:$0xff] %vm4561_vm13, %v7147_v7  ;;  %v7078_v14 = vadd.f32 %v17278_v11, %v7064_v23  ;;  %v13156_v8 = vpack.i.bf16 %v7213_v54, %v7212_v15  ;;  %v7224_v16 = vld [vmem:[#allocation5 + $0x3d] sm:$0xff] }
 0x72e   : > { %v7193_v43 = vld [vmem:[#allocation5 + $0x42] sm:$0xff]  ;;  %v13161_v63 = vpack.i.bf16 %v7224_v16, %v7223_v56 }
 0x72f   : > { %v7148_v24 = vmul.f32 %v7137_v3, %v7078_v14  ;;  %13152 = vrot.lane.b32.xlu1 %v13151_v47, %s18269_s4  ;;  %v13166_v31 = vpack.i.bf16 %v7193_v43, %v7192_v20  ;;  %v7204_v45 = vld [vmem:[#allocation5 + $0x43] sm:$0xff]  ;;  %v7203_v11 = vld [vmem:[#allocation5 + $0x3b] sm:$0xff] }
 0x730   : > { %13157 = vrot.lane.b32.xlu0 %v13156_v8, %s13517_s27  ;;  %v13171_v34 = vpack.i.bf16 %v7204_v45, %v7203_v11  ;;  %v7183_v62 = vld [vmem:[#allocation5 + $0x41] sm:$0xff] }
 0x731   : > { %7164 = vst.msk [vmem:[#allocation5 + $0x53] sm:$0x3f] %vm7163_vm10, %v7148_v24 }
 0x733   : > { %13162 = vrot.lane.b32.xlu1 %v13161_v63, %s18226_s24 }
 0x734   : > { %13167 = vrot.lane.b32.xlu0 %v13166_v31, %s18273_s17  ;;  %v7214_v25 = vld [vmem:[#allocation5 + $0x44] sm:$0xff] }
 0x735   : > { %v13176_v12 = vpack.i.bf16 %v7214_v25, %v7213_v54  ;;  %v7194_v2 = vld [vmem:[#allocation5 + $0x4a] sm:$0x3f] }
 0x736   : > { %v7184_v6 = vld [vmem:[#allocation5 + $0x49] sm:$0x3f]  ;;  %v13186_v26 = vpack.i.bf16 %v7194_v2, %v7193_v43 }
 0x737   : > { %13172 = vrot.lane.b32.xlu1 %v13171_v34, %s18271_s2  ;;  %v13181_v28 = vpack.i.bf16 %v7184_v6, %v7183_v62  ;;  %v7225_v35 = vld [vmem:[#allocation5 + $0x45] sm:$0xff] }
 0x738   : > { %13177 = vrot.lane.b32.xlu0 %v13176_v12, %s13516_s0  ;;  %v7226_v9 = vld [vmem:[#allocation5 + $0x4d] sm:$0xff]  ;;  %v7227_v37 = vld [vmem:[#allocation5 + $0x55] sm:$0xff] }
 0x739   : > { %v7215_v38 = vld [vmem:[#allocation5 + $0x4c] sm:$0xff]  ;;  %v13196_v39 = vpack.i.bf16 %v7226_v9, %v7225_v35  ;;  %v7217_v53 = vld [vmem:[#allocation5 + $0x54] sm:$0xff]  ;;  %v13221_v29 = vpack.i.bf16 %v7228_v40, %v7227_v37 }
 0x73a   : > { %v13191_v44 = vpack.i.bf16 %v7215_v38, %v7214_v25  ;;  %v7206_v55 = vld [vmem:[#allocation5 + $0x53] sm:$0x3f]  ;;  %v7205_v30 = vld [vmem:[#allocation5 + $0x4b] sm:$0xff]  ;;  %v13216_v36 = vpack.i.bf16 %v7218_v17, %v7217_v53 }
 0x73b   : > { %13182 = vrot.lane.b32.xlu1 %v13181_v28, %s18267_s8  ;;  %v7196_v57 = vld [vmem:[#allocation5 + $0x52] sm:$0x3f]  ;;  %v7195_v5 = vld [vmem:[#allocation5 + $0x4a] sm:$0xff]  ;;  %v13206_v19 = vpack.i.bf16 %v7206_v55, %v7205_v30  ;;  %v7168_v53 = vld [vmem:[#allocation5 + $0x18] sm:$0xff] }
 0x73c   : > { %13187 = vrot.lane.b32.xlu0 %v13186_v26, %s18269_s4  ;;  %v13201_v61 = vpack.i.bf16 %v7196_v57, %v7195_v5  ;;  %v7216_v32 = vld [vmem:[#allocation5 + $0x54] sm:$0x3f]  ;;  %v7231_v9 = vld [vmem:[#allocation5 + $0x26] sm:$0xff] }
 0x73d   : > { %v13211_v42 = vpack.i.bf16 %v7216_v32, %v7215_v38  ;;  %v7232_v12 = vld [vmem:[#allocation5 + $0x2e] sm:$0xff] }
 0x73e   : > { %v7579_v38 = vpack.c.bf16 %v7232_v12, %v7231_v9 }
 0x73f   : > { %13192 = vrot.lane.b32.xlu1 %v13191_v44, %s13517_s27 }
 0x740   : > { %13197 = vrot.lane.b32.xlu0 %v13196_v39, %s18226_s24 }
 0x743   : > { %13202 = vrot.lane.b32.xlu1 %v13201_v61, %s18273_s17  ;;  %v7167_v61 = vld [vmem:[#allocation5 + $0x10] sm:$0xff] }
 0x744   : > { %13207 = vrot.lane.b32.xlu0 %v13206_v19, %s18271_s2 }
 0x747   : > { %13212 = vrot.lane.b32.xlu1 %v13211_v42, %s13516_s0 }
 0x748   : > { %13217 = vrot.lane.b32.xlu0 %v13216_v36, %s13517_s27 }
 0x74b   : > { %13222 = vrot.lane.b32.xlu1 %v13221_v29, %s18226_s24  ;;  %s10430_s24 = sshll.u32 %s18307_s28, 6  ;;  %s13519_s28 = smov [#allocation11]  }
 0x769   : > { %v13058_v0 = vpop.permute.xlu0 %13057 }
 0x76a   : > { %v13053_v10 = vpop.permute.xlu1 %13052  ;;  %v13060_v27 = vunpack.i.h.bf16 %v13058_v0  ;;  %v13059_v21 = vunpack.i.l.bf16 %v13058_v0 }
 0x76b   : > { %v13055_v33 = vunpack.i.h.bf16 %v13053_v10  ;;  %v13054_v41 = vunpack.i.l.bf16 %v13053_v10 }
 0x76d   : > { %v13068_v48 = vpop.permute.xlu0 %13067  ;;  %v7503_v50 = vsel %vm4561_vm13, %v7165_v51, %v13054_v41  ;;  %v7504_v22 = vsel %vm4561_vm13, %v7166_v59, %v13055_v33 }
 0x76e   : > { %v13063_v60 = vpop.permute.xlu1 %13062  ;;  %v13070_v4 = vunpack.i.h.bf16 %v13068_v48  ;;  %v13069_v13 = vunpack.i.l.bf16 %v13068_v48  ;;  %v7513_v1 = vsel %vm4635_vm15, %v7503_v50, %v13059_v21  ;;  %v7514_v20 = vsel %vm4635_vm15, %v7504_v22, %v13060_v27 }
 0x76f   : > { %v13065_v52 = vunpack.i.h.bf16 %v13063_v60  ;;  %v13064_v58 = vunpack.i.l.bf16 %v13063_v60 }
 0x771   : > { %v7524_v23 = vsel %vm4709_vm3, %v7514_v20, %v13065_v52  ;;  %v7523_v54 = vsel %vm4709_vm3, %v7513_v1, %v13064_v58 }
 0x772   : > { %v7533_v43 = vsel %vm4783_vm5, %v7523_v54, %v13069_v13  ;;  %v7534_v24 = vsel %vm4783_vm5, %v7524_v23, %v13070_v4  ;;  %v7234_v4 = vld [vmem:[#allocation5 + $0x3e] sm:$0xff] }
 0x779   : > { %v13073_v49 = vpop.permute.xlu1 %13072 }
 0x77a   : > { %v13078_v15 = vpop.permute.xlu0 %13077  ;;  %v13075_v14 = vunpack.i.h.bf16 %v13073_v49  ;;  %v13074_v47 = vunpack.i.l.bf16 %v13073_v49 }
 0x77b   : > { %v13080_v44 = vunpack.i.h.bf16 %v13078_v15  ;;  %v13079_v55 = vunpack.i.l.bf16 %v13078_v15 }
 0x77c   : > { %v7545_v63 = vsel %vm7543_vm11, %v7534_v24, %v13075_v14  ;;  %v7544_v31 = vsel %vm7543_vm11, %v7533_v43, %v13074_v47 }
 0x77d   : > { %v13083_v7 = vpop.permute.xlu1 %13082  ;;  %v7505_v37 = vsel %vm4561_vm13, %v7167_v61, %v13079_v55  ;;  %v7506_v40 = vsel %vm4561_vm13, %v7168_v53, %v13080_v44 }
 0x77e   : > { %v13088_v8 = vpop.permute.xlu0 %13087  ;;  %v13085_v57 = vunpack.i.h.bf16 %v13083_v7  ;;  %v13084_v30 = vunpack.i.l.bf16 %v13083_v7  ;;  %v7233_v7 = vld [vmem:[#allocation5 + $0x36] sm:$0xff] }
 0x77f   : > { %v13090_v3 = vunpack.i.h.bf16 %v13088_v8  ;;  %v13089_v16 = vunpack.i.l.bf16 %v13088_v8  ;;  %v7581_v23 = vpack.c.bf16 %v7234_v4, %v7233_v7 }
 0x780   : > { %v7515_v10 = vsel %vm4635_vm15, %v7505_v37, %v13084_v30  ;;  %v7516_v48 = vsel %vm4635_vm15, %v7506_v40, %v13085_v57 }
 0x781   : > { %v13093_v56 = vpop.permute.xlu1 %13092  ;;  %v7556_v25 = vsel %vm7554_vm12, %v7545_v63, %v13090_v3  ;;  %v7555_v34 = vsel %vm7554_vm12, %v7544_v31, %v13089_v16  ;;  %v7169_v31 = vld [vmem:[#allocation5 + $0x20] sm:$0xff] }
 0x782   : > { %v13095_v45 = vunpack.i.h.bf16 %v13093_v56  ;;  %v13094_v11 = vunpack.i.l.bf16 %v13093_v56  ;;  %v13098_v26 = vpop.permute.xlu0 %13097 }
 0x783   : > { %v13100_v5 = vunpack.i.h.bf16 %v13098_v26  ;;  %v13099_v19 = vunpack.i.l.bf16 %v13098_v26 }
 0x784   : > { %v7566_v2 = vsel %vm7565_vm14, %v7555_v34, %v13094_v11  ;;  %v7567_v6 = vsel %vm7565_vm14, %v7556_v25, %v13095_v45  ;;  %v7170_v45 = vld [vmem:[#allocation5 + $0x28] sm:$0xff] }
 0x785   : > { %v7576_v62 = vpack.c.bf16 %v7567_v6, %v7566_v2  ;;  %v13103_v28 = vpop.permute.xlu1 %13102  ;;  %v7526_v41 = vsel %vm4709_vm3, %v7516_v48, %v13100_v5  ;;  %v7525_v51 = vsel %vm4709_vm3, %v7515_v10, %v13099_v19 }
 0x786   : > { %v13105_v17 = vunpack.i.h.bf16 %v13103_v28  ;;  %v13104_v32 = vunpack.i.l.bf16 %v13103_v28 }
 0x787   : > { %7713 = vmatmul.mubr.bf16.vlgmr.msra.gmra.mxu1 %v7576_v62 }
 0x788   : > { %10282 = vmatprep.mubr.msk.bf16.mxu1 %vm4561_vm13, %v7579_v38  ;;  %v7535_v27 = vsel %vm4783_vm5, %v7525_v51, %v13104_v32  ;;  %v7536_v21 = vsel %vm4783_vm5, %v7526_v41, %v13105_v17  ;;  %v7235_v41 = vld [vmem:[#allocation5 + $0x46] sm:$0xff] }
 0x789   : > { %v13108_v35 = vpop.permute.xlu0 %13107 }
 0x78a   : > { %v13113_v39 = vpop.permute.xlu1 %13112  ;;  %v13110_v29 = vunpack.i.h.bf16 %v13108_v35  ;;  %v13109_v0 = vunpack.i.l.bf16 %v13108_v35 }
 0x78b   : > { %v13115_v3 = vunpack.i.h.bf16 %v13113_v39  ;;  %v13114_v16 = vunpack.i.l.bf16 %v13113_v39 }
 0x78c   : > { %v7547_v49 = vsel %vm7543_vm11, %v7536_v21, %v13110_v29  ;;  %v7546_v15 = vsel %vm7543_vm11, %v7535_v27, %v13109_v0 }
 0x78d   : > { %v13118_v36 = vpop.permute.xlu0 %13117  ;;  %v7507_v2 = vsel %vm4561_vm13, %v7169_v31, %v13114_v16  ;;  %v7508_v6 = vsel %vm4561_vm13, %v7170_v45, %v13115_v3 }
 0x78e   : > { %v13123_v42 = vpop.permute.xlu1 %13122  ;;  %v13120_v43 = vunpack.i.h.bf16 %v13118_v36  ;;  %v13119_v24 = vunpack.i.l.bf16 %v13118_v36 }
 0x78f   : > { %v13125_v60 = vunpack.i.h.bf16 %v13123_v42  ;;  %v13124_v33 = vunpack.i.l.bf16 %v13123_v42  ;;  %v7236_v42 = vld [vmem:[#allocation5 + $0x4e] sm:$0xff] }
 0x790   : > { %v7517_v28 = vsel %vm4635_vm15, %v7507_v2, %v13119_v24  ;;  %v7518_v9 = vsel %vm4635_vm15, %v7508_v6, %v13120_v43  ;;  %v7583_v21 = vpack.c.bf16 %v7236_v42, %v7235_v41  ;;  %v7174_v6 = vld [vmem:[#allocation5 + $0x48] sm:$0x3f] }
 0x791   : > { %v13128_v59 = vpop.permute.xlu0 %13127  ;;  %v7558_v52 = vsel %vm7554_vm12, %v7547_v49, %v13125_v60  ;;  %v7557_v58 = vsel %vm7554_vm12, %v7546_v15, %v13124_v33  ;;  %v7171_v15 = vld [vmem:[#allocation5 + $0x30] sm:$0xff] }
 0x792   : > { %v13130_v50 = vunpack.i.h.bf16 %v13128_v59  ;;  %v13129_v22 = vunpack.i.l.bf16 %v13128_v59  ;;  %v13133_v54 = vpop.permute.xlu1 %13132  ;;  %v7172_v59 = vld [vmem:[#allocation5 + $0x38] sm:$0xff] }
 0x793   : > { %v13135_v56 = vunpack.i.h.bf16 %v13133_v54  ;;  %v13134_v63 = vunpack.i.l.bf16 %v13133_v54 }
 0x794   : > { %v7568_v13 = vsel %vm7565_vm14, %v7557_v58, %v13129_v22  ;;  %v7569_v1 = vsel %vm7565_vm14, %v7558_v52, %v13130_v50 }
 0x795   : > { %v7578_v20 = vpack.c.bf16 %v7569_v1, %v7568_v13  ;;  %v13138_v14 = vpop.permute.xlu0 %13137  ;;  %v7528_v39 = vsel %vm4709_vm3, %v7518_v9, %v13135_v56  ;;  %v7527_v44 = vsel %vm4709_vm3, %v7517_v28, %v13134_v63  ;;  %v7173_v63 = vld [vmem:[#allocation5 + $0x40] sm:$0xff] }
 0x796   : > { %v13140_v11 = vunpack.i.h.bf16 %v13138_v14  ;;  %v13139_v25 = vunpack.i.l.bf16 %v13138_v14 }
 0x797   : > { %7721 = vmatmul.mubr.bf16.gmra.mxu1 %v7578_v20 }
 0x798   : > { %10283 = vmatprep.mubr.msk.bf16.mxu1 %vm4561_vm13, %v7581_v23  ;;  %v7537_v55 = vsel %vm4783_vm5, %v7527_v44, %v13139_v25  ;;  %v7538_v57 = vsel %vm4783_vm5, %v7528_v39, %v13140_v11 }
 0x79d   : > { %v13143_v47 = vpop.permute.xlu1 %13142 }
 0x79e   : > { %v13148_v8 = vpop.permute.xlu0 %13147  ;;  %v13145_v62 = vunpack.i.h.bf16 %v13143_v47  ;;  %v13144_v26 = vunpack.i.l.bf16 %v13143_v47 }
 0x79f   : > { %v13150_v37 = vunpack.i.h.bf16 %v13148_v8  ;;  %v13149_v0 = vunpack.i.l.bf16 %v13148_v8 }
 0x7a0   : > { %v7549_v19 = vsel %vm7543_vm11, %v7538_v57, %v13145_v62  ;;  %v7548_v61 = vsel %vm7543_vm11, %v7537_v55, %v13144_v26  ;;  %v7237_v55 = vld [vmem:[#allocation5 + $0x56] sm:$0xff]  ;;  %v7238_v57 = vld [vmem:[#allocation5 + $0x5e] sm:$0x3f] }
 0x7a1   : > { %v13153_v34 = vpop.permute.xlu1 %13152  ;;  %v7510_v50 = vsel %vm4561_vm13, %v7172_v59, %v13150_v37  ;;  %v7509_v58 = vsel %vm4561_vm13, %v7171_v15, %v13149_v0  ;;  %v7585_v37 = vpack.c.bf16 %v7238_v57, %v7237_v55 }
 0x7a2   : > { %v13158_v12 = vpop.permute.xlu0 %13157  ;;  %v13155_v10 = vunpack.i.h.bf16 %v13153_v34  ;;  %v13154_v51 = vunpack.i.l.bf16 %v13153_v34 }
 0x7a3   : > { %v13160_v38 = vunpack.i.h.bf16 %v13158_v12  ;;  %v13159_v35 = vunpack.i.l.bf16 %v13158_v12 }
 0x7a4   : > { %v7520_v4 = vsel %vm4635_vm15, %v7510_v50, %v13155_v10  ;;  %v7519_v20 = vsel %vm4635_vm15, %v7509_v58, %v13154_v51 }
 0x7a5   : > { %v13163_v30 = vpop.permute.xlu1 %13162  ;;  %v7560_v32 = vsel %vm7554_vm12, %v7549_v19, %v13160_v38  ;;  %v7559_v36 = vsel %vm7554_vm12, %v7548_v61, %v13159_v35 }
 0x7a6   : > { %v13168_v5 = vpop.permute.xlu0 %13167  ;;  %v13165_v53 = vunpack.i.h.bf16 %v13163_v30  ;;  %v13164_v17 = vunpack.i.l.bf16 %v13163_v30 }
 0x7a7   : > { %v13170_v27 = vunpack.i.h.bf16 %v13168_v5  ;;  %v13169_v49 = vunpack.i.l.bf16 %v13168_v5 }
 0x7a8   : > { %v7570_v40 = vsel %vm7565_vm14, %v7559_v36, %v13164_v17  ;;  %v7571_v29 = vsel %vm7565_vm14, %v7560_v32, %v13165_v53 }
 0x7a9   : > { %v13173_v48 = vpop.permute.xlu1 %13172  ;;  %v7580_v33 = vpack.c.bf16 %v7571_v29, %v7570_v40  ;;  %v7530_v7 = vsel %vm4709_vm3, %v7520_v4, %v13170_v27  ;;  %v7529_v23 = vsel %vm4709_vm3, %v7519_v20, %v13169_v49 }
 0x7aa   : > { %v13178_v60 = vpop.permute.xlu0 %13177  ;;  %v13175_v22 = vunpack.i.h.bf16 %v13173_v48  ;;  %v13174_v52 = vunpack.i.l.bf16 %v13173_v48 }
 0x7ab   : > { %7729 = vmatmul.mubr.bf16.gmra.mxu1 %v7580_v33  ;;  %v13180_v54 = vunpack.i.h.bf16 %v13178_v60  ;;  %v13179_v14 = vunpack.i.l.bf16 %v13178_v60 }
 0x7ac   : > { %10284 = vmatprep.mubr.msk.bf16.mxu1 %vm4561_vm13, %v7583_v21  ;;  %v7539_v8 = vsel %vm4783_vm5, %v7529_v23, %v13174_v52  ;;  %v7540_v3 = vsel %vm4783_vm5, %v7530_v7, %v13175_v22 }
 0x7ad   : > { %v13183_v1 = vpop.permute.xlu1 %13182  ;;  %v7551_v34 = vsel %vm7543_vm11, %v7540_v3, %v13180_v54  ;;  %v7550_v12 = vsel %vm7543_vm11, %v7539_v8, %v13179_v14 }
 0x7ae   : > { %v13188_v13 = vpop.permute.xlu0 %13187  ;;  %v13184_v47 = vunpack.i.l.bf16 %v13183_v1  ;;  %v13185_v16 = vunpack.i.h.bf16 %v13183_v1 }
 0x7af   : > { %v13189_v43 = vunpack.i.l.bf16 %v13188_v13  ;;  %v13190_v2 = vunpack.i.h.bf16 %v13188_v13 }
 0x7b0   : > { %v7511_v62 = vsel %vm4561_vm13, %v7173_v63, %v13184_v47  ;;  %v7512_v26 = vsel %vm4561_vm13, %v7174_v6, %v13185_v16 }
 0x7b1   : > { %v13193_v56 = vpop.permute.xlu1 %13192  ;;  %v7521_v30 = vsel %vm4635_vm15, %v7511_v62, %v13189_v43  ;;  %v7522_v17 = vsel %vm4635_vm15, %v7512_v26, %v13190_v2 }
 0x7b2   : > { %v13198_v24 = vpop.permute.xlu0 %13197  ;;  %v13195_v11 = vunpack.i.h.bf16 %v13193_v56  ;;  %v13194_v25 = vunpack.i.l.bf16 %v13193_v56 }
 0x7b3   : > { %v13200_v31 = vunpack.i.h.bf16 %v13198_v24  ;;  %v13199_v45 = vunpack.i.l.bf16 %v13198_v24 }
 0x7b4   : > { %v7562_v28 = vsel %vm7554_vm12, %v7551_v34, %v13195_v11  ;;  %v7561_v9 = vsel %vm7554_vm12, %v7550_v12, %v13194_v25 }
 0x7b5   : > { %v13203_v35 = vpop.permute.xlu1 %13202  ;;  %v7572_v39 = vsel %vm7565_vm14, %v7561_v9, %v13199_v45  ;;  %v7573_v44 = vsel %vm7565_vm14, %v7562_v28, %v13200_v31  ;;  %v10271_v31 = vld [vmem:[%s18156_s12] ss:$0 sm:$0xff] }
 0x7b6   : > { %v13208_v38 = vpop.permute.xlu0 %13207  ;;  %v13205_v5 = vunpack.i.h.bf16 %v13203_v35  ;;  %v13204_v19 = vunpack.i.l.bf16 %v13203_v35  ;;  %v7582_v32 = vpack.c.bf16 %v7573_v44, %v7572_v39  ;;  %v10286_v35 = vld [vmem:[%s18156_s12 + $0x1] ss:$0 sm:$0xff] }
 0x7b7   : > { %v13210_v61 = vunpack.i.h.bf16 %v13208_v38  ;;  %v13209_v53 = vunpack.i.l.bf16 %v13208_v38 }
 0x7b8   : > { %v7532_v36 = vsel %vm4709_vm3, %v7522_v17, %v13205_v5  ;;  %v7531_v42 = vsel %vm4709_vm3, %v7521_v30, %v13204_v19  ;;  %7737 = vmatmul.mubr.bf16.gmra.mxu1 %v7582_v32  ;;  %v10287_v30 = vld [vmem:[%s18156_s12 + $0x2] ss:$0 sm:$0xff] }
 0x7b9   : > { %v13213_v29 = vpop.permute.xlu1 %13212  ;;  %10285 = vmatprep.mubr.msk.bf16.mxu1 %vm4561_vm13, %v7585_v37  ;;  %v7541_v33 = vsel %vm4783_vm5, %v7531_v42, %v13209_v53  ;;  %v7542_v41 = vsel %vm4783_vm5, %v7532_v36, %v13210_v61 }
 0x7ba   : > { %v13218_v40 = vpop.permute.xlu0 %13217  ;;  %v13215_v0 = vunpack.i.h.bf16 %v13213_v29  ;;  %v13214_v10 = vunpack.i.l.bf16 %v13213_v29 }
 0x7bb   : > { %v13220_v48 = vunpack.i.h.bf16 %v13218_v40  ;;  %v13219_v60 = vunpack.i.l.bf16 %v13218_v40 }
 0x7bc   : > { %v7552_v51 = vsel %vm7543_vm11, %v7541_v33, %v13214_v10  ;;  %v7553_v27 = vsel %vm7543_vm11, %v7542_v41, %v13215_v0 }
 0x7bd   : > { %v13223_v21 = vpop.permute.xlu1 %13222  ;;  %v7563_v15 = vsel %vm7554_vm12, %v7552_v51, %v13219_v60  ;;  %v7564_v50 = vsel %vm7554_vm12, %v7553_v27, %v13220_v48 }
 0x7be   : > { %v13225_v59 = vunpack.i.h.bf16 %v13223_v21  ;;  %v13224_v49 = vunpack.i.l.bf16 %v13223_v21 }
 0x7c0   : > { %v7574_v22 = vsel %vm7565_vm14, %v7563_v15, %v13224_v49  ;;  %v7575_v52 = vsel %vm7565_vm14, %v7564_v50, %v13225_v59 }
 0x7c1   : > { %v7584_v58 = vpack.c.bf16 %v7575_v52, %v7574_v22 }
 0x7c3   : > { %7745 = vmatmul.mubr.bf16.gmra.mxu1 %v7584_v58 }
 0x7c4   : > { %11245 = vmatprep.mubr.msk.f32.mxu1 %vm13515_vm2, %v18284_v46 }
 0x847   : > { %v7714_v4 = vpop.f32.mrf.mxu1 }
 0x848   : > { %v7715_v10 = vadd.f32 %v10271_v31, %v7714_v4 }
 0x849   : > { %v7716_v13 = vpop.f32.mrf.mxu1 }
 0x84a   : > { %v7753_v21 = vmax.f32 %v7715_v10, 0.0  ;;  %v7791_v13 = vld [vmem:[%s18166_s22] sm:$0xff]  ;;  %v13356_v10 = vld [vmem:[%s18302_s1 + $0x10] sm:$0xff]  }
 0x84b   : > { %v7717_v1 = vpop.f32.mrf.mxu1 }
 0x84c   : > { %v7718_v37 = vadd.f32 %v10271_v31, %v7717_v1  ;;  %v7767_v22 = vmul.f32 %v10286_v35, %v7753_v21  ;;  %v10299_v1 = vld [vmem:[%s18166_s22 + $0x30] sm:$0xff] }
 0x84d   : > { %v7719_v20 = vpop.f32.mrf.mxu1 }
 0x84e   : > { %v7754_v41 = vmax.f32 %v7718_v37, 0.0  ;;  %v17520_v4 = vadd.f32 %v10287_v30, %v7767_v22  ;;  %v7792_v20 = vld [vmem:[%s18166_s22 + $0x8] sm:$0xff] }
 0x850   : > { %v7768_v15 = vmul.f32 %v10286_v35, %v7754_v41 }
 0x852   : > { %v17514_v58 = vadd.f32 %v10287_v30, %v7768_v15 }
 0x857   : > { %v7722_v7 = vpop.f32.mrf.mxu1 }
 0x858   : > { %v7723_v17 = vadd.f32 %v10271_v31, %v7722_v7  ;;  %v10300_v7 = vld [vmem:[%s18166_s22 + $0x38] sm:$0xff] }
 0x859   : > { %v7724_v23 = vpop.f32.mrf.mxu1 }
 0x85a   : > { %v7755_v48 = vmax.f32 %v7723_v17, 0.0  ;;  %v7793_v23 = vld [vmem:[%s18166_s22 + $0x10] sm:$0x3f] }
 0x85b   : > { %v7725_v54 = vpop.f32.mrf.mxu1 }
 0x85c   : > { %v7726_v5 = vadd.f32 %v10271_v31, %v7725_v54  ;;  %v7769_v59 = vmul.f32 %v10286_v35, %v7755_v48  ;;  %v10301_v54 = vld [vmem:[%s18166_s22 + $0x40] sm:$0x3f] }
 0x85d   : > { %v7727_v14 = vpop.f32.mrf.mxu1 }
 0x85e   : > { %v7756_v40 = vmax.f32 %v7726_v5, 0.0  ;;  %v17508_v52 = vadd.f32 %v10287_v30, %v7769_v59  ;;  %v10292_v14 = vld [vmem:[%s18166_s22 + $0x18] sm:$0xff] }
 0x860   : > { %v7770_v51 = vmul.f32 %v10286_v35, %v7756_v40 }
 0x862   : > { %v17502_v50 = vadd.f32 %v10287_v30, %v7770_v51  ;;  %v13357_v51 = vld [vmem:[%s18302_s1 + $0x8] sm:$0xff]  }
 0x86b   : > { %v7730_v47 = vpop.f32.mrf.mxu1 }
 0x86c   : > { %v7731_v39 = vadd.f32 %v10271_v31, %v7730_v47  ;;  %v10293_v47 = vld [vmem:[%s18166_s22 + $0x20] sm:$0xff] }
 0x86d   : > { %v7732_v8 = vpop.f32.mrf.mxu1 }
 0x86e   : > { %v7757_v32 = vmax.f32 %v7731_v39, 0.0  ;;  %v10294_v8 = vld [vmem:[%s18166_s22 + $0x28] sm:$0x3f] }
 0x86f   : > { %v7733_v3 = vpop.f32.mrf.mxu1 }
 0x870   : > { %v7734_v28 = vadd.f32 %v10271_v31, %v7733_v3  ;;  %v7771_v60 = vmul.f32 %v10286_v35, %v7757_v32  ;;  %v10306_v3 = vld [vmem:[%s18166_s22 + $0x48] sm:$0xff] }
 0x871   : > { %v7735_v16 = vpop.f32.mrf.mxu1 }
 0x872   : > { %v7758_v19 = vmax.f32 %v7734_v28, 0.0  ;;  %v17496_v49 = vadd.f32 %v10287_v30, %v7771_v60  ;;  %v10307_v16 = vld [vmem:[%s18166_s22 + $0x50] sm:$0xff] }
 0x874   : > { %v7772_v29 = vmul.f32 %v10286_v35, %v7758_v19 }
 0x876   : > { %v17490_v27 = vadd.f32 %v10287_v30, %v7772_v29 }
 0x878   : > { %v7738_v43 = vpop.f32.mrf.mxu1 }
 0x879   : > { %v7739_v2 = vadd.f32 %v10271_v31, %v7738_v43  ;;  %v10308_v43 = vld [vmem:[%s18166_s22 + $0x58] sm:$0x3f] }
 0x87a   : > { %v7740_v24 = vpop.f32.mrf.mxu1 }
 0x87b   : > { %v7759_v44 = vmax.f32 %v7739_v2, 0.0  ;;  %v13351_v24 = vld [vmem:[%s18301_s5 + $0x38] sm:$0xff]  }
 0x87c   : > { %v7741_v56 = vpop.f32.mrf.mxu1 }
 0x87d   : > { %v7742_v34 = vadd.f32 %v10271_v31, %v7741_v56  ;;  %v7773_v36 = vmul.f32 %v10286_v35, %v7759_v44  ;;  %v13352_v56 = vld [vmem:[%s18302_s1 + $0x30] sm:$0xff]  }
 0x87e   : > { %v7743_v63 = vpop.f32.mrf.mxu1 }
 0x87f   : > { %v7760_v9 = vmax.f32 %v7742_v34, 0.0  ;;  %v17484_v33 = vadd.f32 %v10287_v30, %v7773_v36  ;;  %v13353_v63 = vld [vmem:[%s18302_s1 + $0x28] sm:$0xff]  }
 0x881   : > { %v7774_v61 = vmul.f32 %v10286_v35, %v7760_v9 }
 0x883   : > { %v7746_v45 = vpop.f32.mrf.mxu1  ;;  %v17478_v0 = vadd.f32 %v10287_v30, %v7774_v61 }
 0x884   : > { %v7747_v11 = vadd.f32 %v10271_v31, %v7746_v45  ;;  %v13355_v45 = vld [vmem:[%s18302_s1 + $0x18] sm:$0xff]  }
 0x885   : > { %v7748_v25 = vpop.f32.mrf.mxu1 }
 0x886   : > { %v7761_v6 = vmax.f32 %v7747_v11, 0.0 }
 0x887   : > { %v7749_v12 = vpop.f32.mrf.mxu1 }
 0x888   : > { %v7750_v62 = vadd.f32 %v10271_v31, %v7749_v12  ;;  %v7775_v55 = vmul.f32 %v10286_v35, %v7761_v6  ;;  %v13354_v31 = vld [vmem:[%s18302_s1 + $0x20] sm:$0xff]  }
 0x889   : > { %v7751_v26 = vpop.f32.mrf.mxu1 }
 0x88a   : > { %v7762_v38 = vmax.f32 %v7750_v62, 0.0  ;;  %v17470_v42 = vadd.f32 %v10287_v30, %v7775_v55 }
 0x88c   : > { %v7776_v57 = vmul.f32 %v10286_v35, %v7762_v38 }
 0x88e   : > { %v17468_v53 = vadd.f32 %v10287_v30, %v7776_v57 }
 0x890   : > { %11168 = vmatpush3.msk.msra.mxu0 %vm5293_vm9, %v17468_v53  ;;  %11226 = vmatpush3.msk.msra.mxu1 %vm5293_vm9, %v17468_v53 }
 0x891   : > { %11169 = vmatprep.subr.mxu0 %v18284_v46  ;;  %11227 = vmatprep.subr.mxu1 %v18284_v46 }
 0x892   : > { %11170 = vmatpush3.msra.mxu0 %v17470_v42  ;;  %11228 = vmatpush3.msra.mxu1 %v17470_v42 }
 0x893   : > { %11171 = vmatprep.subr.mxu0 %v18284_v46  ;;  %11229 = vmatprep.subr.mxu1 %v18284_v46 }
 0x894   : > { %11172 = vmatpush3.msra.mxu0 %v17478_v0  ;;  %11230 = vmatpush3.msra.mxu1 %v17478_v0 }
 0x895   : > { %11173 = vmatprep.subr.mxu0 %v18284_v46  ;;  %11231 = vmatprep.subr.mxu1 %v18284_v46 }
 0x896   : > { %11174 = vmatpush3.msra.mxu0 %v17484_v33  ;;  %11232 = vmatpush3.msra.mxu1 %v17484_v33 }
 0x897   : > { %11175 = vmatprep.subr.mxu0 %v18284_v46  ;;  %11233 = vmatprep.subr.mxu1 %v18284_v46 }
 0x898   : > { %11176 = vmatpush3.msra.mxu0 %v17490_v27  ;;  %11234 = vmatpush3.msra.mxu1 %v17490_v27 }
 0x899   : > { %11177 = vmatprep.subr.mxu0 %v18284_v46  ;;  %11235 = vmatprep.subr.mxu1 %v18284_v46 }
 0x89a   : > { %11178 = vmatpush3.msra.mxu0 %v17496_v49  ;;  %11236 = vmatpush3.msra.mxu1 %v17496_v49 }
 0x89b   : > { %11179 = vmatprep.subr.mxu0 %v18284_v46  ;;  %11237 = vmatprep.subr.mxu1 %v18284_v46 }
 0x89c   : > { %11180 = vmatpush3.msra.mxu0 %v17502_v50  ;;  %11238 = vmatpush3.msra.mxu1 %v17502_v50 }
 0x89d   : > { %11181 = vmatprep.subr.mxu0 %v18284_v46  ;;  %11239 = vmatprep.subr.mxu1 %v18284_v46 }
 0x89e   : > { %11182 = vmatpush3.msra.mxu0 %v17508_v52  ;;  %11240 = vmatpush3.msra.mxu1 %v17508_v52 }
 0x89f   : > { %11183 = vmatprep.subr.mxu0 %v18284_v46  ;;  %11241 = vmatprep.subr.mxu1 %v18284_v46 }
 0x8a0   : > { %11184 = vmatpush3.msra.mxu0 %v17514_v58  ;;  %11242 = vmatpush3.msra.mxu1 %v17514_v58 }
 0x8a1   : > { %11185 = vmatprep.subr.mxu0 %v18284_v46  ;;  %11243 = vmatprep.subr.mxu1 %v18284_v46 }
 0x8a2   : > { %11186 = vmatpush3.msra.mxu0 %v17520_v4  ;;  %11244 = vmatpush3.msra.mxu1 %v17520_v4 }
 0x8a3   : > { %11196 = vmatprep.subr.mxu0 %v18284_v46  ;;  %11188 = vmatmul.mubr.msk.f32.vlgmr.msra.gmra.mxu0 %vm7794_vm0, %v7791_v13 }
 0x8a4   : > { %11197 = vmatpush3.msk.msra.mxu0 %vm5293_vm9, %v17468_v53  ;;  %11190 = vmatprep.mubr.msk.f32.mxu0 %vm13515_vm2, %v18284_v46 }
 0x8a5   : > { %11198 = vmatprep.subr.mxu0 %v18284_v46  ;;  %11246 = vmatmul.mubr.msk.f32.vlgmr.msra.gmra.mxu1 %vm7794_vm0, %v10299_v1 }
 0x8a6   : > { %11199 = vmatpush3.msra.mxu0 %v17470_v42  ;;  %11248 = vmatprep.mubr.msk.f32.mxu1 %vm13515_vm2, %v18284_v46 }
 0x8a7   : > { %11200 = vmatprep.subr.mxu0 %v18284_v46  ;;  %11191 = vmatmul.mubr.msk.f32.gmra.mxu0 %vm7794_vm0, %v7792_v20 }
 0x8a8   : > { %11201 = vmatpush3.msra.mxu0 %v17478_v0  ;;  %11193 = vmatprep.mubr.msk.f32.mxu0 %vm13515_vm2, %v18284_v46 }
 0x8a9   : > { %11202 = vmatprep.subr.mxu0 %v18284_v46  ;;  %11249 = vmatmul.mubr.msk.f32.gmra.mxu1 %vm7794_vm0, %v10300_v7 }
 0x8aa   : > { %11203 = vmatpush3.msra.mxu0 %v17484_v33  ;;  %11251 = vmatprep.mubr.msk.f32.mxu1 %vm13515_vm2, %v18284_v46 }
 0x8ab   : > { %11204 = vmatprep.subr.mxu0 %v18284_v46  ;;  %11194 = vmatmul.mubr.msk.f32.gmra.mxu0 %vm7794_vm0, %v7793_v23 }
 0x8ac   : > { %11205 = vmatpush3.msra.mxu0 %v17490_v27  ;;  %11216 = vmatprep.mubr.msk.f32.mxu0 %vm13515_vm2, %v18284_v46 }
 0x8ad   : > { %11206 = vmatprep.subr.mxu0 %v18284_v46  ;;  %11252 = vmatmul.mubr.msk.f32.gmra.mxu1 %vm7794_vm0, %v10301_v54 }
 0x8ae   : > { %11207 = vmatpush3.msra.mxu0 %v17496_v49  ;;  %8400 = vmatprep.subr.bf16.mxu1 %v18300_v18 }
 0x8af   : > { %11208 = vmatprep.subr.mxu0 %v18284_v46  ;;  %8401 = vmatpush1.bf16.msra.mxu1 %v13351_v24 }
 0x8b0   : > { %11209 = vmatpush3.msra.mxu0 %v17502_v50  ;;  %8402 = vmatprep.subr.bf16.mxu1 %v18300_v18 }
 0x8b1   : > { %11210 = vmatprep.subr.mxu0 %v18284_v46 }
 0x8b2   : > { %11211 = vmatpush3.msra.mxu0 %v17508_v52 }
 0x8b3   : > { %11212 = vmatprep.subr.mxu0 %v18284_v46  ;;  %8403 = vmatpush1.bf16.msra.mxu1 %v13352_v56 }
 0x8b4   : > { %11213 = vmatpush3.msra.mxu0 %v17514_v58  ;;  %8404 = vmatprep.subr.bf16.mxu1 %v18300_v18 }
 0x8b5   : > { %11214 = vmatprep.subr.mxu0 %v18284_v46 }
 0x8b6   : > { %11215 = vmatpush3.msra.mxu0 %v17520_v4 }
 0x8b7   : > { %11254 = vmatprep.subr.mxu0 %v18284_v46  ;;  %11217 = vmatmul.mubr.msk.f32.vlgmr.msra.gmra.mxu0 %vm7794_vm0, %v10292_v14  ;;  %v13359_v14 = vld [vmem:[%s18302_s1 + $0x40] sm:$0xff]  }
 0x8b8   : > { %11255 = vmatpush3.msk.msra.mxu0 %vm5293_vm9, %v17468_v53  ;;  %11219 = vmatprep.mubr.msk.f32.mxu0 %vm13515_vm2, %v18284_v46 }
 0x8b9   : > { %11256 = vmatprep.subr.mxu0 %v18284_v46  ;;  %8405 = vmatpush1.bf16.msra.mxu1 %v13353_v63 }
 0x8ba   : > { %11257 = vmatpush3.msra.mxu0 %v17470_v42  ;;  %8406 = vmatprep.subr.bf16.mxu1 %v18300_v18 }
 0x8bb   : > { %11258 = vmatprep.subr.mxu0 %v18284_v46  ;;  %11220 = vmatmul.mubr.msk.f32.gmra.mxu0 %vm7794_vm0, %v10293_v47 }
 0x8bc   : > { %11259 = vmatpush3.msra.mxu0 %v17478_v0  ;;  %11222 = vmatprep.mubr.msk.f32.mxu0 %vm13515_vm2, %v18284_v46 }
 0x8bd   : > { %11260 = vmatprep.subr.mxu0 %v18284_v46  ;;  %8407 = vmatpush1.bf16.msra.mxu1 %v13354_v31 }
 0x8be   : > { %11261 = vmatpush3.msra.mxu0 %v17484_v33  ;;  %8408 = vmatprep.subr.bf16.mxu1 %v18300_v18 }
 0x8bf   : > { %11262 = vmatprep.subr.mxu0 %v18284_v46  ;;  %11223 = vmatmul.mubr.msk.f32.gmra.mxu0 %vm7794_vm0, %v10294_v8 }
 0x8c0   : > { %11263 = vmatpush3.msra.mxu0 %v17490_v27  ;;  %11274 = vmatprep.mubr.msk.f32.mxu0 %vm13515_vm2, %v18284_v46 }
 0x8c1   : > { %11264 = vmatprep.subr.mxu0 %v18284_v46  ;;  %8409 = vmatpush1.bf16.msra.mxu1 %v13355_v45 }
 0x8c2   : > { %11265 = vmatpush3.msra.mxu0 %v17496_v49  ;;  %8410 = vmatprep.subr.bf16.mxu1 %v18300_v18 }
 0x8c3   : > { %11266 = vmatprep.subr.mxu0 %v18284_v46 }
 0x8c4   : > { %11267 = vmatpush3.msra.mxu0 %v17502_v50 }
 0x8c5   : > { %11268 = vmatprep.subr.mxu0 %v18284_v46  ;;  %8411 = vmatpush1.bf16.msra.mxu1 %v13356_v10 }
 0x8c6   : > { %11269 = vmatpush3.msra.mxu0 %v17508_v52  ;;  %8412 = vmatprep.subr.bf16.mxu1 %v18300_v18 }
 0x8c7   : > { %11270 = vmatprep.subr.mxu0 %v18284_v46 }
 0x8c8   : > { %11271 = vmatpush3.msra.mxu0 %v17514_v58  ;;  %v13358_v58 = vld [vmem:[%s18302_s1] sm:$0xff]   ;;  %s18309_s1 = sld [smem:[#allocation41_spill]] }
 0x8c9   : > { %11272 = vmatprep.subr.mxu0 %v18284_v46  ;;  %8413 = vmatpush1.bf16.msra.mxu1 %v13357_v51 }
 0x8ca   : > { %11273 = vmatpush3.msra.mxu0 %v17520_v4  ;;  %8414 = vmatprep.subr.bf16.mxu1 %v18300_v18 }
 0x8cb   : > { %11275 = vmatmul.mubr.msk.f32.vlgmr.msra.gmra.mxu0 %vm7794_vm0, %v10306_v3 }
 0x8cc   : > { %11277 = vmatprep.mubr.msk.f32.mxu0 %vm13515_vm2, %v18284_v46 }
 0x8cd   : > { %8415 = vmatpush1.bf16.msra.mxu1 %v13358_v58 }
 0x8ce   : > { %8430 = vmatprep.subr.bf16.mxu1 %v18300_v18 }
 0x8cf   : > { %11278 = vmatmul.mubr.msk.f32.gmra.mxu0 %vm7794_vm0, %v10307_v16 }
 0x8d0   : > { %11280 = vmatprep.mubr.msk.f32.mxu0 %vm13515_vm2, %v18284_v46 }
 0x8d1   : > { %8431 = vmatpush2.bf16.msra.mxu1 %v13359_v14 }
 0x8d3   : > { %11281 = vmatmul.mubr.msk.f32.gmra.mxu0 %vm7794_vm0, %v10308_v43 }
 0x963   : > { %v7873_v11 = vpop.f32.mrf.mxu0 }
 0x965   : > { %v11189_v25 = vpop.f32.mrf.mxu0  ;;  %v8062_v34 = vpop.f32.mrf.mxu1 }
 0x967   : > { %v7878_v12 = vpop.f32.mrf.mxu0  ;;  %v11247_v2 = vpop.f32.mrf.mxu1 }
 0x968   : > { %v8466_v2 = vld [vmem:[%s18163_s19 + $0x8] sm:$0xff] }
 0x969   : > { %v11192_v6 = vpop.f32.mrf.mxu0  ;;  %v8067_v62 = vpop.f32.mrf.mxu1 }
 0x96a   : > { %v8465_v6 = vld [vmem:[%s18163_s19] sm:$0xff] }
 0x96b   : > { %v7883_v26 = vpop.f32.mrf.mxu0  ;;  %v11250_v28 = vpop.f32.mrf.mxu1 }
 0x96d   : > { %v11195_v9 = vpop.f32.mrf.mxu0  ;;  %v8072_v38 = vpop.f32.mrf.mxu1 }
 0x96f   : > { %v11253_v35 = vpop.f32.mrf.mxu1 }
 0x977   : > { %v7966_v39 = vpop.f32.mrf.mxu0 }
 0x978   : > { %v7980_v19 = vmax.f32 %v7873_v11, %v7966_v39 }
 0x979   : > { %v11218_v44 = vpop.f32.mrf.mxu0 }
 0x97a   : > { %v8076_v53 = vmax.f32 %v7980_v19, %v8062_v34  ;;  %v8203_v34 = vld [vmem:[#allocation6 + $0x1d] sm:$0x3f] }
 0x97b   : > { %v7971_v55 = vpop.f32.mrf.mxu0 }
 0x97c   : > { %v7981_v61 = vmax.f32 %v7878_v12, %v7971_v55 }
 0x97d   : > { %v11221_v57 = vpop.f32.mrf.mxu0 }
 0x97e   : > { %v8077_v37 = vmax.f32 %v7981_v61, %v8067_v62  ;;  %v8467_v62 = vld [vmem:[%s18163_s19 + $0x10] sm:$0x3f] }
 0x97f   : > { %v7976_v30 = vpop.f32.mrf.mxu0 }
 0x980   : > { %v7982_v42 = vmax.f32 %v7883_v26, %v7976_v30 }
 0x981   : > { %v11224_v5 = vpop.f32.mrf.mxu0 }
 0x982   : > { %v8078_v48 = vmax.f32 %v7982_v42, %v8072_v38 }
 0x98b   : > { %v8158_v17 = vpop.f32.mrf.mxu0 }
 0x98c   : > { %v8172_v32 = vmax.f32 %v8076_v53, %v8158_v17 }
 0x98d   : > { %v11276_v36 = vpop.f32.mrf.mxu0 }
 0x98e   : > { %8178 = vst.msk [vmem:[#allocation6 + $0x7] sm:$0xff] %vm4561_vm13, %v8172_v32 }
 0x98f   : > { %v8163_v40 = vpop.f32.mrf.mxu0 }
 0x990   : > { %v8173_v29 = vmax.f32 %v8077_v37, %v8163_v40 }
 0x991   : > { %v11279_v0 = vpop.f32.mrf.mxu0 }
 0x992   : > { %8179 = vst.msk [vmem:[#allocation6 + $0xf] sm:$0xff] %vm4561_vm13, %v8173_v29 }
 0x993   : > { %v8168_v60 = vpop.f32.mrf.mxu0 }
 0x994   : > { %v8174_v33 = vmax.f32 %v8078_v48, %v8168_v60 }
 0x995   : > { %v11282_v41 = vpop.f32.mrf.mxu0  ;;  %v8187_v27 = vld [vmem:[#allocation6 + $0x2] sm:$0xff] }
 0x996   : > { %8180 = vst.msk [vmem:[#allocation6 + $0x17] sm:$0x3f] %vm7163_vm10, %v8174_v33  ;;  %v8184_v59 = vld [vmem:[#allocation6 + $0x1] sm:$0xff] }
 0x997   : > { %v8193_v4 = vld [vmem:[#allocation6 + $0x7] sm:$0xff] }
 0x998   : > { %v8190_v13 = vld [vmem:[#allocation6 + $0x6] sm:$0xff] }
 0x999   : > { %v8188_v21 = vld [vmem:[#allocation6 + $0xa] sm:$0xff]  ;;  %v8181_v44 = vld [vmem:[#allocation6] sm:$0xff] }
 0x99a   : > { %v8185_v49 = vld [vmem:[#allocation6 + $0x9] sm:$0xff]  ;;  %v13231_v15 = vpack.i.bf16 %v8188_v21, %v8187_v27  ;;  %v8186_v3 = vld [vmem:[#allocation6 + $0x11] sm:$0x3f] }
 0x99b   : > { %v13226_v50 = vpack.i.bf16 %v8185_v49, %v8184_v59  ;;  %v8194_v22 = vld [vmem:[#allocation6 + $0xf] sm:$0xff]  ;;  %v8205_v49 = vld [vmem:[#allocation6 + $0x1e] sm:$0x3f] }
 0x99c   : > { %v8191_v52 = vld [vmem:[#allocation6 + $0xe] sm:$0xff]  ;;  %13232 = vrot.lane.b32.xlu1 %v13231_v15, %s18269_s4  ;;  %v13241_v1 = vpack.i.bf16 %v8194_v22, %v8193_v4 }
 0x99d   : > { %13227 = vrot.lane.b32.xlu0 %v13226_v50, %s18267_s8  ;;  %v13236_v20 = vpack.i.bf16 %v8191_v52, %v8190_v13  ;;  %v8196_v7 = vld [vmem:[#allocation6 + $0x10] sm:$0xff]  ;;  %v8182_v47 = vld [vmem:[#allocation6 + $0x8] sm:$0xff]  ;;  %v8197_v11 = vld [vmem:[#allocation6 + $0x18] sm:$0x3f] }
 0x99e   : > { %v8204_v23 = vld [vmem:[#allocation6 + $0x16] sm:$0xff]  ;;  %v13246_v8 = vpack.i.bf16 %v8196_v7, %v8182_v47  ;;  %v8198_v18 = vld [vmem:[#allocation6 + $0xc] sm:$0xff] }
 0x99f   : > { %v8312_v54 = vpack.c.bf16 %v8204_v23, %v8191_v52  ;;  %v8199_v16 = vld [vmem:[#allocation6 + $0x14] sm:$0xff]  ;;  %v8200_v12 = vld [vmem:[#allocation6 + $0x1c] sm:$0x3f]  ;;  %v8314_v23 = vpack.c.bf16 %v8205_v49, %v8205_v49 }
 0x9a0   : > { %13242 = vrot.lane.b32.xlu1 %v13241_v1, %s18271_s2  ;;  %v8202_v43 = vld [vmem:[#allocation6 + $0x15] sm:$0xff]  ;;  %v8201_v24 = vld [vmem:[#allocation6 + $0xd] sm:$0xff]  ;;  %v13251_v56 = vpack.i.bf16 %v8199_v16, %v8198_v18 }
 0x9a1   : > { %13237 = vrot.lane.b32.xlu0 %v13236_v20, %s18273_s17  ;;  %10323 = vmatprep.mubr.msk.bf16.mxu1 %vm4561_vm13, %v8312_v54  ;;  %v13256_v63 = vpack.i.bf16 %v8202_v43, %v8201_v24  ;;  %v8192_v31 = vld [vmem:[#allocation6 + $0x16] sm:$0x3f]  ;;  %v8183_v22 = vld [vmem:[#allocation6 + $0x10] sm:$0x3f] }
 0x9a2   : > { %v8189_v45 = vld [vmem:[#allocation6 + $0x12] sm:$0x3f] }
 0x9a3   : > { %v8195_v25 = vld [vmem:[#allocation6 + $0x17] sm:$0x3f] }
 0x9a4   : > { %8213 = vrot.lane.b32.xlu1 %v8186_v3, %s18267_s8 }
 0x9a5   : > { %13247 = vrot.lane.b32.xlu0 %v13246_v8, %s13516_s0 }
 0x9a8   : > { %13252 = vrot.lane.b32.xlu1 %v13251_v56, %s13517_s27 }
 0x9a9   : > { %13257 = vrot.lane.b32.xlu0 %v13256_v63, %s18303_s3 }
 0x9ac   : > { %8237 = vrot.lane.b32.xlu1 %v8192_v31, %s18273_s17 }
 0x9ad   : > { %8225 = vrot.lane.b32.xlu0 %v8189_v45, %s18269_s4  ;;  %v13360_v45 = vld [vmem:[%s18304_s6 + $0x78] sm:$0xff]  }
 0x9ae   : > { %10839 = vmatprep.subr.bf16.mxu0 %v13360_v45 }
 0x9b0   : > { %8261 = vrot.lane.b32.xlu1 %v8197_v11, %s13516_s0  ;;  %v13361_v11 = vld [vmem:[%s18304_s6 + $0x38] sm:$0xff]   ;;  %s728_s0 = sand.u32 1, %s13487_s26  }
 0x9b1   : > { %8249 = vrot.lane.b32.xlu0 %v8195_v25, %s18271_s2  ;;  %v13362_v25 = vld [vmem:[%s18304_s6 + $0x70] sm:$0xff]   ;;  %10840 = vmatpush3.bf16.msra.mxu0 %v13361_v11  ;;  %v13377_v11 = vld [vmem:[%s18304_s6 + $0x80] sm:$0xff]   ;;  %s9964_s29 = scalar_lea.sflag [#allocation12], %s728_s0 }
 0x9b2   : > { %10841 = vmatprep.subr.bf16.mxu0 %v13362_v25 }
 0x9b4   : > { %8285 = vrot.lane.b32.xlu1 %v8203_v34, %s18303_s3  ;;  %v13363_v34 = vld [vmem:[%s18304_s6 + $0x30] sm:$0xff]   ;;  %s10043_s3 = sshll.u32 %s728_s0, 2 }
 0x9b5   : > { %8273 = vrot.lane.b32.xlu0 %v8200_v12, %s13517_s27  ;;  %v13364_v12 = vld [vmem:[%s18304_s6 + $0x68] sm:$0xff]   ;;  %10842 = vmatpush3.bf16.msra.mxu0 %v13363_v34  ;;  %s730_s5 = scalar_lea.vmem [#allocation11], %s10043_s3  ;;  %s13439_s3 = sshll.u32 %s13519_s28, 4  ;;  %s13440_s3 = int_to_ptr.vmem [resolvable:$false] %s13439_s3 }
 0x9b6   : > { %10843 = vmatprep.subr.bf16.mxu0 %v13364_v12  ;;  %s9977_s17 = sshll.u32 %s730_s5, 4  ;;  %s18102_s17 = int_to_ptr.vmem [resolvable:$true] %s9977_s17 }
 0x9b7   : > { %s13435_s30 = scalar_lea.vmem %s18102_s17, 64  ;;  %p13442_p0 = scmp.lt.s32.totalorder %s18102_s17, %s13440_s3 }
 0x9b8   : > { %8475 = vperm.xlu1 %12130, %v8466_v2   ;;  %v13365_v2 = vld [vmem:[%s18304_s6 + $0x28] sm:$0xff]   ;;  %p13436_p11 = scmp.ne.s32.totalorder %s18102_s17, %s13435_s30 }
 0x9b9   : > { %8470 = vperm.xlu0 %12129, %v8465_v6   ;;  %10844 = vmatpush3.bf16.msra.mxu0 %v13365_v2  ;;  %v10313_v6 = vld [vmem:[%s18157_s13] ss:$0 sm:$0xff] }
 0x9ba   : > { %p13437_p12 = pnand %p13436_p11, %p13683_p5 }
 0x9bc   : > { %p13438_p13 = pneg %p13437_p12 }
 0x9bd   : > { %8480 = vperm.xlu0 %12129, %v8467_v62  }
 0xa0e   : > { %v13233_v26 = vpop.permute.xlu1 %13232 }
 0xa0f   : > { %v13228_v28 = vpop.permute.xlu0 %13227  ;;  %v13235_v35 = vunpack.i.h.bf16 %v13233_v26  ;;  %v13234_v39 = vunpack.i.l.bf16 %v13233_v26 }
 0xa10   : > { %v13230_v9 = vunpack.i.h.bf16 %v13228_v28  ;;  %v13229_v38 = vunpack.i.l.bf16 %v13228_v28  ;;  %v10325_v28 = vld [vmem:[%s18157_s13 + $0x1] ss:$0 sm:$0xff] }
 0xa12   : > { %v13243_v55 = vpop.permute.xlu1 %13242  ;;  %v8290_v30 = vsel %vm4561_vm13, %v8181_v44, %v13229_v38  ;;  %v8291_v5 = vsel %vm4561_vm13, %v8182_v47, %v13230_v9 }
 0xa13   : > { %v13238_v57 = vpop.permute.xlu0 %13237  ;;  %v13245_v53 = vunpack.i.h.bf16 %v13243_v55  ;;  %v13244_v17 = vunpack.i.l.bf16 %v13243_v55  ;;  %v8293_v32 = vsel %vm4635_vm15, %v8290_v30, %v13234_v39  ;;  %v8294_v36 = vsel %vm4635_vm15, %v8291_v5, %v13235_v35  ;;  %v10326_v35 = vld [vmem:[%s18157_s13 + $0x2] ss:$0 sm:$0xff] }
 0xa14   : > { %v13240_v19 = vunpack.i.h.bf16 %v13238_v57  ;;  %v13239_v61 = vunpack.i.l.bf16 %v13238_v57 }
 0xa16   : > { %v8214_v42 = vpop.permute.xlu1 %8213  ;;  %v8296_v40 = vsel %vm4709_vm3, %v8293_v32, %v13239_v61  ;;  %v8297_v29 = vsel %vm4709_vm3, %v8294_v36, %v13240_v19 }
 0xa17   : > { %v13248_v37 = vpop.permute.xlu0 %13247  ;;  %v8299_v48 = vsel %vm4783_vm5, %v8296_v40, %v13244_v17  ;;  %v8300_v60 = vsel %vm4783_vm5, %v8297_v29, %v13245_v53  ;;  %v8292_v4 = vsel %vm4561_vm13, %v8183_v22, %v8214_v42 }
 0xa18   : > { %v13250_v0 = vunpack.i.h.bf16 %v13248_v37  ;;  %v13249_v10 = vunpack.i.l.bf16 %v13248_v37 }
 0xa1a   : > { %v13253_v33 = vpop.permute.xlu1 %13252  ;;  %v8303_v15 = vsel %vm7543_vm11, %v8300_v60, %v13250_v0  ;;  %v8302_v50 = vsel %vm7543_vm11, %v8299_v48, %v13249_v10  ;;  %v13366_v10 = vld [vmem:[%s18304_s6 + $0x60] sm:$0xff]  }
 0xa1b   : > { %v13258_v41 = vpop.permute.xlu0 %13257  ;;  %v13255_v51 = vunpack.i.h.bf16 %v13253_v33  ;;  %v13254_v27 = vunpack.i.l.bf16 %v13253_v33  ;;  %v13367_v48 = vld [vmem:[%s18304_s6 + $0x20] sm:$0xff]   ;;  %10845 = vmatprep.subr.bf16.mxu0 %v13366_v10 }
 0xa1c   : > { %v13260_v21 = vunpack.i.h.bf16 %v13258_v41  ;;  %v13259_v59 = vunpack.i.l.bf16 %v13258_v41  ;;  %10846 = vmatpush3.bf16.msra.mxu0 %v13367_v48 }
 0xa1d   : > { %v8305_v52 = vsel %vm7554_vm12, %v8302_v50, %v13254_v27  ;;  %v8306_v58 = vsel %vm7554_vm12, %v8303_v15, %v13255_v51 }
 0xa1e   : > { %v8308_v13 = vsel %vm7565_vm14, %v8305_v52, %v13259_v59  ;;  %v8309_v1 = vsel %vm7565_vm14, %v8306_v58, %v13260_v21  ;;  %v8238_v7 = vpop.permute.xlu1 %8237  ;;  %v13368_v21 = vld [vmem:[%s18304_s6 + $0x58] sm:$0xff]   ;;  %v13370_v52 = vld [vmem:[%s18304_s6 + $0x50] sm:$0xff]  }
 0xa1f   : > { %v8226_v20 = vpop.permute.xlu0 %8225  ;;  %v8311_v54 = vpack.c.bf16 %v8309_v1, %v8308_v13  ;;  %v13369_v59 = vld [vmem:[%s18304_s6 + $0x18] sm:$0xff]   ;;  %10847 = vmatprep.subr.bf16.mxu0 %v13368_v21  ;;  %v13371_v58 = vld [vmem:[%s18304_s6 + $0x10] sm:$0xff]   ;;  %v13375_v1 = vld [vmem:[%s18304_s6 + $0x88] sm:$0xff]  }
 0xa20   : > { %v8295_v14 = vsel %vm4635_vm15, %v8292_v4, %v8226_v20  ;;  %10848 = vmatpush3.bf16.msra.mxu0 %v13369_v59  ;;  %v13372_v4 = vld [vmem:[%s18304_s6 + $0x48] sm:$0xff]   ;;  %11283 = vmatprep.subr.bf16.mxu1 %v13375_v1 }
 0xa21   : > { %8433 = vmatmul.mubr.bf16.vlgmr.msra.gmra.mxu1 %v8311_v54  ;;  %v8298_v47 = vsel %vm4709_vm3, %v8295_v14, %v8238_v7  ;;  %10849 = vmatprep.subr.bf16.mxu0 %v13370_v52  ;;  %vm8885_vm3 = vcmask 179200  }
 0xa22   : > { %v8262_v3 = vpop.permute.xlu1 %8261  ;;  %10324 = vmatprep.mubr.msk.bf16.mxu1 %vm4561_vm13, %v8314_v23  ;;  %vm8491_vm13 = vcmask 259072   ;;  %11284 = vmatpush3.bf16.msra.mxu1 %v13375_v1 }
 0xa23   : > { %v8250_v8 = vpop.permute.xlu0 %8249  ;;  %11285 = vmatprep.subr.bf16.mxu1 %v13377_v11 }
 0xa24   : > { %v8301_v16 = vsel %vm4783_vm5, %v8298_v47, %v8250_v8  ;;  %10850 = vmatpush3.bf16.msra.mxu0 %v13371_v58  ;;  %v13373_v47 = vld [vmem:[%s18304_s6 + $0x8] sm:$0xff]  }
 0xa25   : > { %v8304_v43 = vsel %vm7543_vm11, %v8301_v16, %v8262_v3  ;;  %10851 = vmatprep.subr.bf16.mxu0 %v13372_v4  ;;  %v13374_v16 = vld [vmem:[%s18304_s6 + $0x40] sm:$0xff]  }
 0xa26   : > { %v8286_v24 = vpop.permute.xlu1 %8285  ;;  %11286 = vmatpush3.bf16.msra.mxu1 %v13377_v11 }
 0xa27   : > { %v8274_v18 = vpop.permute.xlu0 %8273  ;;  %11291 = vmatprep.subr.mxu1 %v18284_v46 }
 0xa28   : > { %v8307_v56 = vsel %vm7554_vm12, %v8304_v43, %v8274_v18  ;;  %10852 = vmatpush3.bf16.msra.mxu0 %v13373_v47 }
 0xa29   : > { %v8310_v63 = vsel %vm7565_vm14, %v8307_v56, %v8286_v24  ;;  %10853 = vmatprep.subr.bf16.mxu0 %v13374_v16 }
 0xa2a   : > { %v8313_v31 = vpack.c.bf16 %v8310_v63, %v8310_v63  ;;  %v13376_v63 = vld [vmem:[%s18304_s6] sm:$0xff]   ;;  %s18100_s6 = scalar_lea.hbm %s18309_s1, %s10430_s24  ;;  %s13441_s24 = scalar_lea.vmem %s13440_s3, 128 }
 0xa2b   : > { %p13443_p1 = scmp.lt.s32.totalorder %s13441_s24, %s13435_s30 }
 0xa2c   : > { %8441 = vmatmul.mubr.bf16.gmra.mxu1 %v8313_v31  ;;  %10854 = vmatpush3.bf16.msra.mxu0 %v13376_v63 }
 0xa2d   : > { %11309 = vmatprep.subr.mxu0 %v18284_v46  ;;  %p13444_p2 = por %p13443_p1, %p13442_p0 }
 0xa2f   : > { %p13445_p3 = pnand %p13444_p2, %p13438_p13 }
 0xa33   : > { %v8476_v42 = vpop.permute.xlu1 %8475 }
 0xa34   : > { %v8471_v19 = vpop.permute.xlu0 %8470 }
 0xa38   : > { %v8481_v51 = vpop.permute.xlu0 %8480 }
 0xae1   : > { %v8434_v62 = vpop.f32.mrf.mxu1 }
 0xae2   : > { %v8435_v26 = vadd.f32 %v10313_v6, %v8434_v62  ;;  %v8517_v62 = vld [vmem:[#allocation7 + $0x1e] sm:$0x3f] }
 0xae3   : > { %v8436_v9 = vpop.f32.mrf.mxu1 }
 0xae4   : > { %v8448_v38 = vmax.f32 %v8435_v26, 0.0 }
 0xae5   : > { %v8437_v39 = vpop.f32.mrf.mxu1 }
 0xae6   : > { %v8455_v44 = vmul.f32 %v10325_v28, %v8448_v38  ;;  %v8438_v55 = vadd.f32 %v10313_v6, %v8437_v39  ;;  %v8515_v39 = vld [vmem:[#allocation7 + $0x1d] sm:$0x3f] }
 0xae7   : > { %v8439_v57 = vpop.f32.mrf.mxu1 }
 0xae8   : > { %v8462_v30 = vadd.f32 %v10326_v35, %v8455_v44  ;;  %v8449_v5 = vmax.f32 %v8438_v55, 0.0 }
 0xaea   : > { %v8483_v61 = vmul.f32 %v8471_v19, %v8462_v30  ;;  %v8456_v53 = vmul.f32 %v10325_v28, %v8449_v5 }
 0xaec   : > { %v8442_v17 = vpop.f32.mrf.mxu1  ;;  %8489 = vst.msk [vmem:[#allocation7 + $0x7] sm:$0xff] %vm4635_vm15, %v8483_v61  ;;  %v8463_v32 = vadd.f32 %v10326_v35, %v8456_v53 }
 0xaed   : > { %v8443_v36 = vadd.f32 %v10313_v6, %v8442_v17 }
 0xaee   : > { %v8444_v37 = vpop.f32.mrf.mxu1  ;;  %v8484_v40 = vmul.f32 %v8476_v42, %v8463_v32 }
 0xaef   : > { %v8450_v29 = vmax.f32 %v8443_v36, 0.0 }
 0xaf0   : > { %v8445_v0 = vpop.f32.mrf.mxu1  ;;  %8490 = vst.msk [vmem:[#allocation7 + $0xf] sm:$0xff] %vm4635_vm15, %v8484_v40 }
 0xaf1   : > { %v8457_v60 = vmul.f32 %v10325_v28, %v8450_v29  ;;  %v8613_v28 = vpack.c.bf16 %v8517_v62, %v8517_v62 }
 0xaf2   : > { %v8446_v33 = vpop.f32.mrf.mxu1 }
 0xaf3   : > { %v8464_v41 = vadd.f32 %v10326_v35, %v8457_v60  ;;  %v8496_v49 = vld [vmem:[#allocation7 + $0x1] sm:$0xff] }
 0xaf4   : > { %v8499_v13 = vld [vmem:[#allocation7 + $0x2] sm:$0xff] }
 0xaf5   : > { %v8485_v27 = vmul.f32 %v8481_v51, %v8464_v41  ;;  %v8502_v43 = vld [vmem:[#allocation7 + $0x6] sm:$0xff] }
 0xaf6   : > { %v8493_v37 = vld [vmem:[#allocation7] sm:$0xff] }
 0xaf7   : > { %8492 = vst.msk [vmem:[#allocation7 + $0x17] sm:$0x3f] %vm8491_vm13, %v8485_v27  ;;  %v8497_v15 = vld [vmem:[#allocation7 + $0x9] sm:$0xff]  ;;  %v8498_v9 = vld [vmem:[#allocation7 + $0x11] sm:$0x3f] }
 0xaf8   : > { %v13261_v50 = vpack.i.bf16 %v8497_v15, %v8496_v49  ;;  %v8500_v22 = vld [vmem:[#allocation7 + $0xa] sm:$0xff] }
 0xaf9   : > { %v13266_v20 = vpack.i.bf16 %v8500_v22, %v8499_v13  ;;  %v8503_v7 = vld [vmem:[#allocation7 + $0xe] sm:$0xff] }
 0xafa   : > { %13262 = vrot.lane.b32.xlu0 %v13261_v50, %s18269_s4  ;;  %v17782_v23 = vld [vmem:[#allocation7 + $0x8] sm:$0xff]  ;;  %v13271_v24 = vpack.i.bf16 %v8503_v7, %v8502_v43 }
 0xafb   : > { %v8510_v56 = vld [vmem:[#allocation7 + $0xc] sm:$0xff] }
 0xafc   : > { %v8513_v2 = vld [vmem:[#allocation7 + $0xd] sm:$0xff] }
 0xafd   : > { %v8505_v51 = vld [vmem:[#allocation7 + $0x7] sm:$0xff]  ;;  %v8506_v27 = vld [vmem:[#allocation7 + $0xf] sm:$0xff] }
 0xafe   : > { %v8516_v54 = vld [vmem:[#allocation7 + $0x16] sm:$0xff]  ;;  %13267 = vrot.lane.b32.xlu0 %v13266_v20, %s18271_s2 }
 0xaff   : > { %v8508_v14 = vld [vmem:[#allocation7 + $0x10] sm:$0xff]  ;;  %v8610_v8 = vpack.c.bf16 %v8516_v54, %v8503_v7  ;;  %v8512_v45 = vld [vmem:[#allocation7 + $0x1c] sm:$0x3f] }
 0xb00   : > { %v13276_v3 = vpack.i.bf16 %v8508_v14, %v17782_v23  ;;  %v8511_v18 = vld [vmem:[#allocation7 + $0x14] sm:$0xff] }
 0xb01   : > { %11287 = vmatprep.mubr.msk.bf16.mxu1 %vm4635_vm15, %v8610_v8  ;;  %v8501_v31 = vld [vmem:[#allocation7 + $0x12] sm:$0x3f]  ;;  %v13281_v25 = vpack.i.bf16 %v8511_v18, %v8510_v56  ;;  %v8509_v26 = vld [vmem:[#allocation7 + $0x18] sm:$0x3f] }
 0xb02   : > { %13277 = vrot.lane.b32.xlu1 %v13276_v3, %s18269_s4  ;;  %13272 = vrot.lane.b32.xlu0 %v13271_v24, %s13517_s27  ;;  %v8514_v34 = vld [vmem:[#allocation7 + $0x15] sm:$0xff]  ;;  %v13296_v12 = vpack.i.bf16 %v8501_v31, %v8512_v45  ;;  %v13291_v38 = vpack.i.bf16 %v8498_v9, %v8509_v26 }
 0xb03   : > { %v13286_v6 = vpack.i.bf16 %v8514_v34, %v8513_v2  ;;  %11288 = vmatmul.mubr.msk.bf16.vlgmr.msra.gmra.mxu1 %vm4635_vm15, %v8613_v28  ;;  %v8504_v35 = vld [vmem:[#allocation7 + $0x16] sm:$0x3f]  ;;  %v8495_v8 = vld [vmem:[#allocation7 + $0x10] sm:$0x3f] }
 0xb04   : > { %11297 = vmatprep.mubr.msk.f32.mxu1 %vm13515_vm2, %v18284_v46  ;;  %v13301_v44 = vpack.i.bf16 %v8504_v35, %v8515_v39  ;;  %v8507_v3 = vld [vmem:[#allocation7 + $0x17] sm:$0x3f] }
 0xb06   : > { %13282 = vrot.lane.b32.xlu1 %v13281_v25, %s18271_s2  ;;  %13297 = vrot.lane.b32.xlu0 %v13296_v12, %s18271_s2 }
 0xb0a   : > { %13287 = vrot.lane.b32.xlu1 %v13286_v6, %s13517_s27 }
 0xb0e   : > { %13292 = vrot.lane.b32.xlu1 %v13291_v38, %s18269_s4 }
 0xb12   : > { %13302 = vrot.lane.b32.xlu1 %v13301_v44, %s13517_s27  ;;  %v10327_v44 = vld [vmem:[%s18158_s14] ss:$0 sm:$0xff] }
 0xb6c   : > { %v13263_v55 = vpop.permute.xlu0 %13262 }
 0xb6d   : > { %v13265_v5 = vunpack.i.h.bf16 %v13263_v55  ;;  %v13264_v19 = vunpack.i.l.bf16 %v13263_v55 }
 0xb6f   : > { %v8591_v48 = vsel %vm4635_vm15, %v17782_v23, %v13265_v5  ;;  %v8590_v60 = vsel %vm4635_vm15, %v8493_v37, %v13264_v19 }
 0xb70   : > { %v13268_v57 = vpop.permute.xlu0 %13267 }
 0xb71   : > { %v13270_v53 = vunpack.i.h.bf16 %v13268_v57  ;;  %v13269_v17 = vunpack.i.l.bf16 %v13268_v57 }
 0xb73   : > { %v8593_v33 = vsel %vm4783_vm5, %v8590_v60, %v13269_v17  ;;  %v8594_v41 = vsel %vm4783_vm5, %v8591_v48, %v13270_v53  ;;  %v10348_v48 = vld [vmem:[%s18158_s14 + $0x1] ss:$0 sm:$0xff] }
 0xb74   : > { %v13278_v30 = vpop.permute.xlu1 %13277  ;;  %v13273_v61 = vpop.permute.xlu0 %13272 }
 0xb75   : > { %v13280_v36 = vunpack.i.h.bf16 %v13278_v30  ;;  %v13279_v42 = vunpack.i.l.bf16 %v13278_v30  ;;  %v13275_v40 = vunpack.i.h.bf16 %v13273_v61  ;;  %v13274_v29 = vunpack.i.l.bf16 %v13273_v61 }
 0xb77   : > { %v8600_v59 = vsel %vm4635_vm15, %v8506_v27, %v13280_v36  ;;  %v8599_v49 = vsel %vm4635_vm15, %v8505_v51, %v13279_v42  ;;  %v8596_v22 = vsel %vm7554_vm12, %v8593_v33, %v13274_v29  ;;  %v8597_v52 = vsel %vm7554_vm12, %v8594_v41, %v13275_v40  ;;  %v10349_v41 = vld [vmem:[%s18158_s14 + $0x2] ss:$0 sm:$0xff] }
 0xb78   : > { %v13283_v32 = vpop.permute.xlu1 %13282  ;;  %v8608_v23 = vpack.c.bf16 %v8597_v52, %v8596_v22  ;;  %v13298_v54 = vpop.permute.xlu0 %13297  ;;  %v10358_v22 = vld [vmem:[%s18167_s23 + $0x18] sm:$0x3f]  ;;  %v13378_v52 = vld [vmem:[%s18305_s7 + $0x88] sm:$0xff]  }
 0xb79   : > { %v13285_v0 = vunpack.i.h.bf16 %v13283_v32  ;;  %v13284_v10 = vunpack.i.l.bf16 %v13283_v32  ;;  %v13300_v18 = vunpack.i.h.bf16 %v13298_v54  ;;  %v13299_v24 = vunpack.i.l.bf16 %v13298_v54  ;;  %v13386_v54 = vld [vmem:[%s18305_s7 + $0x60] sm:$0xff]  }
 0xb7b   : > { %v8602_v58 = vsel %vm4783_vm5, %v8599_v49, %v13284_v10  ;;  %v8603_v4 = vsel %vm4783_vm5, %v8600_v59, %v13285_v0  ;;  %v8884_v49 = vld [vmem:[%s18167_s23] sm:$0x3f] }
 0xb7c   : > { %v13288_v21 = vpop.permute.xlu1 %13287 }
 0xb7d   : > { %v13290_v15 = vunpack.i.h.bf16 %v13288_v21  ;;  %v13289_v50 = vunpack.i.l.bf16 %v13288_v21 }
 0xb7f   : > { %v8605_v13 = vsel %vm7554_vm12, %v8602_v58, %v13289_v50  ;;  %v8606_v1 = vsel %vm7554_vm12, %v8603_v4, %v13290_v15  ;;  %v10355_v15 = vld [vmem:[%s18167_s23 + $0x10] sm:$0x3f]  ;;  %v10352_v50 = vld [vmem:[%s18167_s23 + $0x8] sm:$0x3f]  ;;  %v13379_v58 = vld [vmem:[%s18305_s7 + $0x80] sm:$0xff]  }
 0xb80   : > { %v13293_v20 = vpop.permute.xlu1 %13292  ;;  %v8609_v7 = vpack.c.bf16 %v8606_v1, %v8605_v13  ;;  %v13380_v4 = vld [vmem:[%s18305_s7 + $0x78] sm:$0xff]   ;;  %v13382_v1 = vld [vmem:[%s18305_s7 + $0x70] sm:$0xff]  }
 0xb81   : > { %v13295_v14 = vunpack.i.h.bf16 %v13293_v20  ;;  %v13294_v47 = vunpack.i.l.bf16 %v13293_v20  ;;  %v13381_v13 = vld [vmem:[%s18305_s7 + $0x38] sm:$0xff]   ;;  %v13383_v20 = vld [vmem:[%s18305_s7 + $0x30] sm:$0xff]  }
 0xb82   : > { %8803 = vmatprep.mubr.bf16.mxu0 %v8609_v7  ;;  %v13384_v7 = vld [vmem:[%s18305_s7 + $0x68] sm:$0xff]  }
 0xb83   : > { %v8592_v16 = vsel %vm4635_vm15, %v8495_v8, %v13295_v14  ;;  %v8601_v43 = vsel %vm4635_vm15, %v8507_v3, %v13294_v47  ;;  %8804 = vmatmul.mubr.bf16.vlgmr.msra.gmra.mxu0 %v8608_v23  ;;  %v13385_v23 = vld [vmem:[%s18305_s7 + $0x28] sm:$0xff]   ;;  %v13387_v14 = vld [vmem:[%s18305_s7 + $0x20] sm:$0xff]   ;;  %v13388_v47 = vld [vmem:[%s18305_s7 + $0x58] sm:$0xff]  }
 0xb84   : > { %v13303_v56 = vpop.permute.xlu1 %13302  ;;  %v8595_v45 = vsel %vm4783_vm5, %v8592_v16, %v13300_v18  ;;  %v8604_v11 = vsel %vm4783_vm5, %v8601_v43, %v13299_v24  ;;  %v13389_v8 = vld [vmem:[%s18305_s7 + $0x18] sm:$0xff]   ;;  %v13390_v3 = vld [vmem:[%s18305_s7 + $0x50] sm:$0xff]  }
 0xb85   : > { %v13305_v63 = vunpack.i.h.bf16 %v13303_v56  ;;  %v13304_v31 = vunpack.i.l.bf16 %v13303_v56  ;;  %v13391_v16 = vld [vmem:[%s18305_s7 + $0x10] sm:$0xff]  }
 0xb87   : > { %v8598_v25 = vsel %vm7554_vm12, %v8595_v45, %v13305_v63  ;;  %v8607_v34 = vsel %vm7554_vm12, %v8604_v11, %v13304_v31 }
 0xb88   : > { %v8611_v12 = vpack.c.bf16 %v8598_v25, %v8598_v25  ;;  %v8612_v2 = vpack.c.bf16 %v8607_v34, %v8607_v34 }
 0xb8a   : > { %8811 = vmatprep.mubr.bf16.mxu0 %v8612_v2  ;;  %v13392_v2 = vld [vmem:[%s18305_s7 + $0x48] sm:$0xff]  }
 0xb8b   : > { %8812 = vmatmul.mubr.bf16.gmra.mxu0 %v8611_v12 }
 0xb8c   : > { %11315 = vmatprep.mubr.msk.f32.mxu0 %vm13515_vm2, %v18284_v46 }
 0xbc3   : > { %v11289_v6 = vpop.f32.mrf.mxu1 }
 0xbc5   : > { %v8853_v62 = vpop.f32.mrf.mxu1 }
 0xbc7   : > { %v11290_v26 = vpop.f32.mrf.mxu1 }
 0xbc8   : > { %v13395_v26 = vld [vmem:[%s18305_s7] sm:$0xff]  }
 0xbc9   : > { %v8856_v30 = vpop.f32.mrf.mxu1 }
 0xc43   : > { %v10855_v28 = vpop.f32.mrf.mxu0 }
 0xc45   : > { %v10856_v9 = vpop.f32.mrf.mxu0 }
 0xc46   : > { %v10857_v35 = vadd.f32 %v10856_v9, %v10855_v28 }
 0xc47   : > { %v10858_v38 = vpop.f32.mrf.mxu0 }
 0xc48   : > { %v8806_v5 = vadd.f32 %v10857_v35, %v10327_v44 }
 0xc49   : > { %v10859_v39 = vpop.f32.mrf.mxu0 }
 0xc4a   : > { %v10860_v55 = vadd.f32 %v10859_v39, %v10858_v38  ;;  %v8854_v36 = vadd.f32 %v8853_v62, %v8806_v5  ;;  %v13394_v62 = vld [vmem:[%s18305_s7 + $0x40] sm:$0xff]  }
 0xc4b   : > { %v10861_v57 = vpop.f32.mrf.mxu0 }
 0xc4c   : > { %v8809_v19 = vadd.f32 %v10860_v55, %v10327_v44  ;;  %v8867_v0 = vmax.f32 %v8854_v36, 0.0 }
 0xc4d   : > { %v10862_v61 = vpop.f32.mrf.mxu0 }
 0xc4e   : > { %v10863_v53 = vadd.f32 %v10862_v61, %v10861_v57  ;;  %v8857_v17 = vadd.f32 %v8856_v30, %v8809_v19  ;;  %v8874_v51 = vmul.f32 %v10348_v48, %v8867_v0  ;;  %v9481_v19 = vld [vmem:[%s18164_s20] sm:$0x3f] }
 0xc4f   : > { %v10864_v32 = vpop.f32.mrf.mxu0 }
 0xc50   : > { %v8814_v42 = vadd.f32 %v10863_v53, %v10327_v44  ;;  %v8868_v29 = vmax.f32 %v8857_v17, 0.0  ;;  %v8881_v59 = vadd.f32 %v10349_v41, %v8874_v51 }
 0xc51   : > { %v10865_v37 = vpop.f32.mrf.mxu0 }
 0xc52   : > { %v8862_v40 = vadd.f32 %v11289_v6, %v8814_v42  ;;  %v8875_v33 = vmul.f32 %v10348_v48, %v8868_v29  ;;  %v13393_v6 = vld [vmem:[%s18305_s7 + $0x8] sm:$0xff]  }
 0xc54   : > { %v8869_v10 = vmax.f32 %v8862_v40, 0.0  ;;  %v8882_v21 = vadd.f32 %v10349_v41, %v8875_v33 }
 0xc56   : > { %v8876_v60 = vmul.f32 %v10348_v48, %v8869_v10 }
 0xc58   : > { %v8883_v27 = vadd.f32 %v10349_v41, %v8876_v60 }
 0xc5a   : > { %11292 = vmatpush3.msk.msra.mxu1 %vm5293_vm9, %v8883_v27  ;;  %11310 = vmatpush3.msk.msra.mxu0 %vm5293_vm9, %v8883_v27 }
 0xc5b   : > { %11293 = vmatprep.subr.mxu1 %v18284_v46  ;;  %11311 = vmatprep.subr.mxu0 %v18284_v46 }
 0xc5c   : > { %11294 = vmatpush3.msra.mxu1 %v8882_v21  ;;  %11312 = vmatpush3.msra.mxu0 %v8882_v21 }
 0xc5d   : > { %11295 = vmatprep.subr.mxu1 %v18284_v46  ;;  %11313 = vmatprep.subr.mxu0 %v18284_v46 }
 0xc5e   : > { %11296 = vmatpush3.msra.mxu1 %v8881_v59  ;;  %11314 = vmatpush3.msra.mxu0 %v8881_v59 }
 0xc5f   : > { %11300 = vmatprep.subr.mxu1 %v18284_v46  ;;  %11298 = vmatmul.mubr.msk.f32.vlgmr.msra.gmra.mxu1 %vm8885_vm3, %v8884_v49 }
 0xc60   : > { %11301 = vmatpush3.msk.msra.mxu1 %vm5293_vm9, %v8883_v27  ;;  %11306 = vmatprep.mubr.msk.f32.mxu1 %vm13515_vm2, %v18284_v46 }
 0xc61   : > { %11302 = vmatprep.subr.mxu1 %v18284_v46  ;;  %11316 = vmatmul.mubr.msk.f32.vlgmr.msra.gmra.mxu0 %vm8885_vm3, %v10355_v15 }
 0xc62   : > { %11303 = vmatpush3.msra.mxu1 %v8882_v21  ;;  %10887 = vmatprep.subr.bf16.mxu0 %v13380_v4  ;;  %v13397_v4 = vld [vmem:[%s18306_s9 + $0x38] sm:$0xff]  }
 0xc63   : > { %11304 = vmatprep.subr.mxu1 %v18284_v46  ;;  %10888 = vmatpush3.bf16.msra.mxu0 %v13381_v13  ;;  %v13398_v13 = vld [vmem:[%s18306_s9 + $0xf8] sm:$0xff]  }
 0xc64   : > { %11305 = vmatpush3.msra.mxu1 %v8881_v59  ;;  %10889 = vmatprep.subr.bf16.mxu0 %v13382_v1  ;;  %v13399_v1 = vld [vmem:[%s18306_s9 + $0xb8] sm:$0xff]  }
 0xc65   : > { %11318 = vmatprep.subr.mxu1 %v18284_v46  ;;  %11307 = vmatmul.mubr.msk.f32.vlgmr.msra.gmra.mxu1 %vm8885_vm3, %v10352_v50 }
 0xc66   : > { %11319 = vmatpush3.msk.msra.mxu1 %vm5293_vm9, %v8883_v27  ;;  %11324 = vmatprep.mubr.msk.f32.mxu1 %vm13515_vm2, %v18284_v46 }
 0xc67   : > { %11320 = vmatprep.subr.mxu1 %v18284_v46  ;;  %10890 = vmatpush3.bf16.msra.mxu0 %v13383_v20  ;;  %v13400_v20 = vld [vmem:[%s18306_s9 + $0x70] sm:$0xff]  }
 0xc68   : > { %11321 = vmatpush3.msra.mxu1 %v8882_v21  ;;  %10891 = vmatprep.subr.bf16.mxu0 %v13384_v7  ;;  %v13402_v7 = vld [vmem:[%s18306_s9 + $0xf0] sm:$0xff]  }
 0xc69   : > { %11322 = vmatprep.subr.mxu1 %v18284_v46 }
 0xc6a   : > { %11323 = vmatpush3.msra.mxu1 %v8881_v59 }
 0xc6b   : > { %11325 = vmatmul.mubr.msk.f32.vlgmr.msra.gmra.mxu1 %vm8885_vm3, %v10358_v22  ;;  %11327 = vmatprep.subr.bf16.mxu1 %v18284_v46 }
 0xc6c   : > { %11331 = vmatprep.mubr.msk.bf16.mxu1 %vm13515_vm2, %v18284_v46  ;;  %11328 = vmatpush3.bf16.msra.mxu1 %v13378_v52 }
 0xc6d   : > { %11329 = vmatprep.subr.bf16.mxu1 %v18284_v46  ;;  %10892 = vmatpush3.bf16.msra.mxu0 %v13385_v23  ;;  %v13401_v23 = vld [vmem:[%s18306_s9 + $0x30] sm:$0xff]  }
 0xc6e   : > { %10893 = vmatprep.subr.bf16.mxu0 %v13386_v54  ;;  %v13403_v54 = vld [vmem:[%s18306_s9 + $0xb0] sm:$0xff]  }
 0xc70   : > { %11330 = vmatpush3.bf16.msra.mxu1 %v13379_v58  ;;  %v13396_v58 = vld [vmem:[%s18306_s9 + $0x78] sm:$0xff]  }
 0xc71   : > { %10894 = vmatpush3.bf16.msra.mxu0 %v13387_v14  ;;  %10912 = vmatprep.subr.bf16.mxu1 %v13396_v58  ;;  %v13404_v14 = vld [vmem:[%s18306_s9 + $0x68] sm:$0xff]  }
 0xc72   : > { %10895 = vmatprep.subr.bf16.mxu0 %v13388_v47  ;;  %v13406_v47 = vld [vmem:[%s18306_s9 + $0xe8] sm:$0xff]  }
 0xc75   : > { %10896 = vmatpush3.bf16.msra.mxu0 %v13389_v8  ;;  %v13405_v8 = vld [vmem:[%s18306_s9 + $0x28] sm:$0xff]  }
 0xc76   : > { %10897 = vmatprep.subr.bf16.mxu0 %v13390_v3  ;;  %v13407_v3 = vld [vmem:[%s18306_s9 + $0xa8] sm:$0xff]  }
 0xc79   : > { %10898 = vmatpush3.bf16.msra.mxu0 %v13391_v16  ;;  %v13408_v16 = vld [vmem:[%s18306_s9 + $0x60] sm:$0xff]  }
 0xc7a   : > { %10899 = vmatprep.subr.bf16.mxu0 %v13392_v2  ;;  %v13420_v2 = vld [vmem:[%s18306_s9 + $0x48] sm:$0xff]  }
 0xc7d   : > { %10900 = vmatpush3.bf16.msra.mxu0 %v13393_v6  ;;  %v13422_v6 = vld [vmem:[%s18306_s9 + $0xc8] sm:$0xff]  }
 0xc7e   : > { %10901 = vmatprep.subr.bf16.mxu0 %v13394_v62  ;;  %v13421_v62 = vld [vmem:[%s18306_s9 + $0x8] sm:$0xff]  }
 0xc81   : > { %10902 = vmatpush3.bf16.msra.mxu0 %v13395_v26  ;;  %v13423_v26 = vld [vmem:[%s18306_s9 + $0x88] sm:$0xff]  }
 0xc82   : > { %10934 = vmatprep.subr.bf16.mxu0 %v13398_v13 }
 0xd1f   : > { %v8958_v43 = vpop.f32.mrf.mxu1 }
 0xd21   : > { %v11299_v18 = vpop.f32.mrf.mxu1  ;;  %v9109_v24 = vpop.f32.mrf.mxu0 }
 0xd22   : > { %v13409_v18 = vld [vmem:[%s18306_s9 + $0x20] sm:$0xff]  }
 0xd23   : > { %v11317_v56 = vpop.f32.mrf.mxu0 }
 0xd24   : > { %v13412_v56 = vld [vmem:[%s18306_s9 + $0x58] sm:$0xff]  }
 0xd25   : > { %v9033_v63 = vpop.f32.mrf.mxu1 }
 0xd26   : > { %v9037_v31 = vmax.f32 %v8958_v43, %v9033_v63  ;;  %v13410_v43 = vld [vmem:[%s18306_s9 + $0xe0] sm:$0xff]   ;;  %v13414_v63 = vld [vmem:[%s18306_s9 + $0xd8] sm:$0xff]  }
 0xd27   : > { %v11308_v45 = vpop.f32.mrf.mxu1 }
 0xd28   : > { %v9113_v11 = vmax.f32 %v9037_v31, %v9109_v24  ;;  %v13411_v24 = vld [vmem:[%s18306_s9 + $0xa0] sm:$0xff]   ;;  %v13413_v31 = vld [vmem:[%s18306_s9 + $0x18] sm:$0xff]  }
 0xd29   : > { %v13415_v45 = vld [vmem:[%s18306_s9 + $0x98] sm:$0xff]  }
 0xd2b   : > { %v9185_v25 = vpop.f32.mrf.mxu1 }
 0xd2c   : > { %v9189_v34 = vmax.f32 %v9113_v11, %v9185_v25  ;;  %v13416_v11 = vld [vmem:[%s18306_s9 + $0x50] sm:$0xff]  }
 0xd2d   : > { %v11326_v12 = vpop.f32.mrf.mxu1  ;;  %v13418_v25 = vld [vmem:[%s18306_s9 + $0xd0] sm:$0xff]  }
 0xd2e   : > { %9193 = vst.msk [vmem:[#allocation8 + $0x5] sm:$0x3f] %vm8491_vm13, %v9189_v34  ;;  %v13417_v34 = vld [vmem:[%s18306_s9 + $0x10] sm:$0xff]  }
 0xd2f   : > { %v13419_v12 = vld [vmem:[%s18306_s9 + $0x90] sm:$0xff]  }
 0xd35   : > { %v9196_v28 = vld [vmem:[#allocation8 + $0x2] sm:$0x3f]  ;;  %v9200_v9 = vld [vmem:[#allocation8 + $0x8] sm:$0x3f] }
 0xd36   : > { %v9195_v38 = vld [vmem:[#allocation8 + $0x1] sm:$0x3f]  ;;  %v13311_v35 = vpack.i.bf16 %v9196_v28, %v9200_v9  ;;  %v9202_v55 = vld [vmem:[#allocation8 + $0xa] sm:$0x3f]  ;;  %v10361_v9 = vld [vmem:[%s18159_s15] ss:$0 sm:$0xff] }
 0xd37   : > { %v9199_v39 = vld [vmem:[#allocation8 + $0x6] sm:$0x3f]  ;;  %v9235_v5 = vpack.c.bf16 %v9202_v55, %v9202_v55  ;;  %v9194_v37 = vld [vmem:[#allocation8] sm:$0x3f] }
 0xd38   : > { %v13306_v44 = vpack.i.bf16 %v9195_v38, %v9199_v39  ;;  %13312 = vrot.lane.b32.xlu1 %v13311_v35, %s18271_s2  ;;  %v9197_v57 = vld [vmem:[#allocation8 + $0x4] sm:$0x3f] }
 0xd39   : > { %v9201_v30 = vld [vmem:[#allocation8 + $0x9] sm:$0x3f]  ;;  %11332 = vmatmul.mubr.msk.bf16.vlgmr.msra.gmra.mxu1 %vm4635_vm15, %v9235_v5 }
 0xd3a   : > { %13307 = vrot.lane.b32.xlu0 %v13306_v44, %s18269_s4  ;;  %v13316_v61 = vpack.i.bf16 %v9197_v57, %v9201_v30  ;;  %v9198_v42 = vld [vmem:[#allocation8 + $0x5] sm:$0x3f]  ;;  %10913 = vmatpush3.bf16.msra.mxu1 %v13397_v4  ;;  %v10381_v30 = vld [vmem:[%s18159_s15 + $0x1] ss:$0 sm:$0xff] }
 0xd3b   : > { %10914 = vmatprep.subr.bf16.mxu1 %v13400_v20 }
 0xd3c   : > { %9484 = vperm.xlu1 %12130, %v9481_v19   ;;  %v10382_v19 = vld [vmem:[%s18159_s15 + $0x2] ss:$0 sm:$0xff] }
 0xd3e   : > { %13317 = vrot.lane.b32.xlu0 %v13316_v61, %s13517_s27  ;;  %10915 = vmatpush3.bf16.msra.mxu1 %v13401_v23 }
 0xd3f   : > { %10916 = vmatprep.subr.bf16.mxu1 %v13404_v14  ;;  %v13428_v14 = vld [vmem:[%s18306_s9 + $0x118] sm:$0xff]  }
 0xd42   : > { %10917 = vmatpush3.bf16.msra.mxu1 %v13405_v8  ;;  %v13430_v8 = vld [vmem:[%s18306_s9 + $0x108] sm:$0xff]  }
 0xd43   : > { %10918 = vmatprep.subr.bf16.mxu1 %v13408_v16 }
 0xd46   : > { %10919 = vmatpush3.bf16.msra.mxu1 %v13409_v18 }
 0xd47   : > { %10920 = vmatprep.subr.bf16.mxu1 %v13412_v56 }
 0xd4a   : > { %10921 = vmatpush3.bf16.msra.mxu1 %v13413_v31 }
 0xd4b   : > { %10922 = vmatprep.subr.bf16.mxu1 %v13416_v11 }
 0xd4e   : > { %10923 = vmatpush3.bf16.msra.mxu1 %v13417_v34 }
 0xd4f   : > { %10924 = vmatprep.subr.bf16.mxu1 %v13420_v2 }
 0xd52   : > { %10925 = vmatpush3.bf16.msra.mxu1 %v13421_v62 }
 0xdaa   : > { %v13313_v53 = vpop.permute.xlu1 %13312 }
 0xdab   : > { %v13315_v40 = vunpack.i.h.bf16 %v13313_v53  ;;  %v13314_v29 = vunpack.i.l.bf16 %v13313_v53 }
 0xdac   : > { %v13308_v17 = vpop.permute.xlu0 %13307 }
 0xdad   : > { %v13310_v32 = vunpack.i.h.bf16 %v13308_v17  ;;  %v13309_v36 = vunpack.i.l.bf16 %v13308_v17 }
 0xdaf   : > { %v9227_v0 = vsel %vm4635_vm15, %v9194_v37, %v13310_v32  ;;  %v9230_v10 = vsel %vm4635_vm15, %v9198_v42, %v13309_v36  ;;  %vm9488_vm15 = vcmask 520192   ;;  %v13424_v36 = vld [vmem:[%s18306_s9 + $0x40] sm:$0xff]  }
 0xdb0   : > { %v13318_v48 = vpop.permute.xlu0 %13317  ;;  %v9228_v41 = vsel %vm4783_vm5, %v9227_v0, %v13315_v40  ;;  %v9231_v51 = vsel %vm4783_vm5, %v9230_v10, %v13314_v29  ;;  %9490 = vst.msk [vmem:[#allocation9 + $0xb] sm:$0x1f] %vm9488_vm15, %v18284_v46  ;;  %9489 = vst.msk [vmem:[#allocation9] sm:$0x1f] %vm9488_vm15, %v18284_v46  ;;  %v13425_v42 = vld [vmem:[%s18306_s9] sm:$0xff]   ;;  %10926 = vmatprep.subr.bf16.mxu1 %v13424_v36 }
 0xdb1   : > { %v13320_v60 = vunpack.i.h.bf16 %v13318_v48  ;;  %v13319_v33 = vunpack.i.l.bf16 %v13318_v48  ;;  %v13426_v37 = vld [vmem:[%s18306_s9 + $0xc0] sm:$0xff]   ;;  %10927 = vmatpush3.bf16.msra.mxu1 %v13425_v42 }
 0xdb2   : > { %v13427_v40 = vld [vmem:[%s18306_s9 + $0x80] sm:$0xff]   ;;  %11335 = vmatprep.subr.bf16.mxu1 %v18284_v46 }
 0xdb3   : > { %v9229_v27 = vsel %vm7554_vm12, %v9228_v41, %v13320_v60  ;;  %v9232_v21 = vsel %vm7554_vm12, %v9231_v51, %v13319_v33 }
 0xdb4   : > { %v9233_v59 = vpack.c.bf16 %v9229_v27, %v9229_v27  ;;  %v9234_v49 = vpack.c.bf16 %v9232_v21, %v9232_v21 }
 0xdb6   : > { %9422 = vmatprep.mubr.bf16.mxu0 %v9234_v49 }
 0xdb7   : > { %9423 = vmatmul.mubr.bf16.vlgmr.msra.gmra.mxu0 %v9233_v59  ;;  %v9485_v17 = vpop.permute.xlu1 %9484 }
 0xdb8   : > { %10935 = vmatpush3.bf16.msra.mxu0 %v13399_v1 }
 0xdb9   : > { %10936 = vmatprep.subr.bf16.mxu0 %v13402_v7 }
 0xdbc   : > { %10937 = vmatpush3.bf16.msra.mxu0 %v13403_v54 }
 0xdbd   : > { %10938 = vmatprep.subr.bf16.mxu0 %v13406_v47  ;;  %v13429_v47 = vld [vmem:[%s18306_s9 + $0x110] sm:$0xff]  }
 0xdc0   : > { %10939 = vmatpush3.bf16.msra.mxu0 %v13407_v3  ;;  %v13431_v3 = vld [vmem:[%s18306_s9 + $0x100] sm:$0xff]  }
 0xdc1   : > { %10940 = vmatprep.subr.bf16.mxu0 %v13410_v43 }
 0xdc4   : > { %10941 = vmatpush3.bf16.msra.mxu0 %v13411_v24 }
 0xdc5   : > { %10942 = vmatprep.subr.bf16.mxu0 %v13414_v63 }
 0xdc8   : > { %10943 = vmatpush3.bf16.msra.mxu0 %v13415_v45 }
 0xdc9   : > { %10944 = vmatprep.subr.bf16.mxu0 %v13418_v25 }
 0xdcc   : > { %10945 = vmatpush3.bf16.msra.mxu0 %v13419_v12  ;;  %v10383_v12 = vld [vmem:[%s18160_s16] ss:$0 sm:$0xff] }
 0xdcd   : > { %10946 = vmatprep.subr.bf16.mxu0 %v13422_v6 }
 0xdd0   : > { %10947 = vmatpush3.bf16.msra.mxu0 %v13423_v26 }
 0xdd1   : > { %10948 = vmatprep.subr.bf16.mxu0 %v13426_v37 }
 0xdd4   : > { %10949 = vmatpush3.bf16.msra.mxu0 %v13427_v40 }
 0xdf9   : > { %v17949_v15 = vpop.f32.mrf.mxu1 }
 0xdfb   : > { %v11333_v50 = vpop.f32.mrf.mxu1 }
 0xdfd   : > { %v9467_v22 = vpop.f32.mrf.mxu1 }
 0xdff   : > { %v11334_v52 = vpop.f32.mrf.mxu1 }
 0xe77   : > { %v10903_v28 = vpop.f32.mrf.mxu0 }
 0xe79   : > { %v10904_v38 = vpop.f32.mrf.mxu0 }
 0xe7a   : > { %v10905_v35 = vadd.f32 %v10904_v38, %v10903_v28  ;;  %v10421_v28 = vld [vmem:[%s18160_s16 + $0x1] ss:$0 sm:$0xff] }
 0xe7b   : > { %v10906_v39 = vpop.f32.mrf.mxu0 }
 0xe7c   : > { %v9425_v44 = vadd.f32 %v10905_v35, %v10361_v9  ;;  %v10422_v35 = vld [vmem:[%s18160_s16 + $0x2] ss:$0 sm:$0xff] }
 0xe7d   : > { %v10907_v55 = vpop.f32.mrf.mxu0 }
 0xe7e   : > { %v9465_v57 = vadd.f32 %v17949_v15, %v9425_v44 }
 0xe80   : > { %v9470_v5 = vmax.f32 %v9465_v57, 0.0 }
 0xe82   : > { %v9475_v61 = vmul.f32 %v10381_v30, %v9470_v5 }
 0xe84   : > { %v9480_v53 = vadd.f32 %v10382_v19, %v9475_v61 }
 0xe86   : > { %v9487_v32 = vmul.f32 %v9485_v17, %v9480_v53 }
 0xe88   : > { %9492 = vst.msk [vmem:[#allocation9 + $0x5] sm:$0x3f] %vm9491_vm8, %v9487_v32 }
 0xe8f   : > { %v9498_v29 = vld [vmem:[#allocation9 + $0x6] sm:$0x3f]  ;;  %v9493_v52 = vld [vmem:[#allocation9] sm:$0x3f] }
 0xe90   : > { %v9500_v0 = vld [vmem:[#allocation9 + $0x9] sm:$0x3f]  ;;  %v9494_v10 = vld [vmem:[#allocation9 + $0x1] sm:$0x3f] }
 0xe91   : > { %v13326_v48 = vpack.i.bf16 %v9498_v29, %v9500_v0  ;;  %v9496_v60 = vld [vmem:[#allocation9 + $0x4] sm:$0x3f]  ;;  %v9501_v16 = vld [vmem:[#allocation9 + $0xa] sm:$0x3f] }
 0xe92   : > { %v13321_v33 = vpack.i.bf16 %v9494_v10, %v9496_v60  ;;  %v9497_v59 = vld [vmem:[#allocation9 + $0x5] sm:$0x3f]  ;;  %v9526_v43 = vpack.c.bf16 %v9501_v16, %v9501_v16 }
 0xe93   : > { %13327 = vrot.lane.b32.xlu1 %v13326_v48, %s18271_s2  ;;  %v9499_v50 = vld [vmem:[#allocation9 + $0x8] sm:$0x3f]  ;;  %v9495_v58 = vld [vmem:[#allocation9 + $0x2] sm:$0x3f] }
 0xe94   : > { %13322 = vrot.lane.b32.xlu0 %v13321_v33, %s18271_s2 }
 0xf05   : > { %v13328_v41 = vpop.permute.xlu1 %13327 }
 0xf06   : > { %v13330_v51 = vunpack.i.h.bf16 %v13328_v41  ;;  %v13329_v27 = vunpack.i.l.bf16 %v13328_v41  ;;  %v13323_v21 = vpop.permute.xlu0 %13322 }
 0xf07   : > { %v13325_v49 = vunpack.i.h.bf16 %v13323_v21  ;;  %v13324_v15 = vunpack.i.l.bf16 %v13323_v21 }
 0xf08   : > { %v9520_v22 = vsel %vm4783_vm5, %v9497_v59, %v13330_v51  ;;  %v9521_v4 = vsel %vm4783_vm5, %v9499_v50, %v13329_v27 }
 0xf09   : > { %v9524_v13 = vpack.c.bf16 %v9520_v22, %v9520_v22  ;;  %v9518_v1 = vsel %vm4783_vm5, %v9493_v52, %v13325_v49  ;;  %v9519_v20 = vsel %vm4783_vm5, %v9495_v58, %v13324_v15  ;;  %v9525_v7 = vpack.c.bf16 %v9521_v4, %v9521_v4 }
 0xf0a   : > { %v9522_v23 = vpack.c.bf16 %v9518_v1, %v9518_v1  ;;  %v9523_v54 = vpack.c.bf16 %v9519_v20, %v9519_v20 }
 0xf0b   : > { %9897 = vmatprep.mubr.bf16.mxu0 %v9525_v7 }
 0xf0c   : > { %9857 = vmatprep.mubr.bf16.mxu1 %v9523_v54  ;;  %9898 = vmatmul.mubr.bf16.vlgmr.msra.gmra.mxu0 %v9524_v13 }
 0xf0d   : > { %9858 = vmatmul.mubr.bf16.vlgmr.msra.gmra.mxu1 %v9522_v23 }
 0xf0e   : > { %11336 = vmatpush3.bf16.msra.mxu1 %v13428_v14  ;;  %11343 = vmatprep.mubr.msk.bf16.mxu1 %vm13515_vm2, %v18284_v46 }
 0xf0f   : > { %11337 = vmatprep.subr.bf16.mxu1 %v18284_v46 }
 0xf12   : > { %11338 = vmatpush3.bf16.msra.mxu1 %v13429_v47 }
 0xf13   : > { %11339 = vmatprep.subr.bf16.mxu1 %v18284_v46 }
 0xf16   : > { %11340 = vmatpush3.bf16.msra.mxu1 %v13430_v8 }
 0xf17   : > { %11341 = vmatprep.subr.bf16.mxu1 %v18284_v46 }
 0xf1a   : > { %11342 = vmatpush3.bf16.msra.mxu1 %v13431_v3 }
 0xf1d   : > { %11344 = vmatmul.mubr.msk.bf16.vlgmr.msra.gmra.mxu1 %vm4783_vm5, %v9526_v43  ;;  %vm9958_vm5 = vcmask 517120  }
 0xfcc   : > { %v10950_v18 = vpop.f32.mrf.mxu0 }
 0xfcd   : > { %v10928_v24 = vpop.f32.mrf.mxu1 }
 0xfce   : > { %v10951_v56 = vpop.f32.mrf.mxu0 }
 0xfcf   : > { %v10929_v63 = vpop.f32.mrf.mxu1  ;;  %v10952_v2 = vadd.f32 %v10951_v56, %v10950_v18 }
 0xfd0   : > { %v10953_v31 = vpop.f32.mrf.mxu0  ;;  %v10930_v34 = vadd.f32 %v10929_v63, %v10928_v24 }
 0xfd1   : > { %v10931_v45 = vpop.f32.mrf.mxu1 }
 0xfd2   : > { %v10954_v11 = vpop.f32.mrf.mxu0  ;;  %v9860_v46 = vadd.f32 %v10930_v34, %v10383_v12 }
 0xfd3   : > { %v10932_v25 = vpop.f32.mrf.mxu1 }
 0xfd4   : > { %v9900_v6 = vadd.f32 %v10952_v2, %v9860_v46 }
 0xfdd   : > { %v9939_v62 = vpop.f32.mrf.mxu1 }
 0xfde   : > { %v9940_v26 = vadd.f32 %v9939_v62, %v9900_v6 }
 0xfdf   : > { %v11345_v9 = vpop.f32.mrf.mxu1 }
 0xfe0   : > { %v9945_v38 = vmax.f32 %v9940_v26, 0.0 }
 0xfe1   : > { %v9942_v39 = vpop.f32.mrf.mxu1 }
 0xfe2   : > { %v9950_v44 = vmul.f32 %v10421_v28, %v9945_v38 }
 0xfe3   : > { %v11346_v55 = vpop.f32.mrf.mxu1 }
 0xfe4   : > { %v9955_v57 = vadd.f32 %v10422_v35, %v9950_v44 }
 0xfe6   : > { %9956 = vst.msk [vmem:[#allocation10] sm:$0x3f] %vm9491_vm8, %v9955_v57 }
 0xfed   : > { %v9957_v30 = vld [vmem:[#allocation10] sm:$0x3]  ;;  %v9960_v5 = vld [vmem:[#allocation10 + $0x4] sm:$0x3] }
 0xfee   : > { %9959 = vst.msk [vmem:[%s730_s5] sm:$0x3] %vm9958_vm5, %v9957_v30  ;;  %10423 = vst.msk [vmem:[%s730_s5 + $0x2] sm:$0x3] %vm9958_vm5, %v9960_v5 }
 0xfef   : > { %13448 = shalt.err (!%p13445_p3)
}
 0xff0   : > { %s13449_s5 = scalar_lea.hbm %s18100_s6, 64  ;;  %s13453_s27 = scalar_lea.hbm %s18309_s1, 128 }
 0xff1   : > { %p13450_p4 = scmp.ne.s32.totalorder %s18100_s6, %s13449_s5  ;;  %p13454_p9 = scmp.lt.s32.totalorder %s18100_s6, %s18309_s1 }
 0xff2   : > { %p13455_p10 = scmp.lt.s32.totalorder %s13453_s27, %s13449_s5 }
 0xff3   : > { %p13451_p7 = pnand %p13450_p4, %p13683_p5 }
 0xff4   : > { %p13456_p11 = por %p13455_p10, %p13454_p9 }
 0xff5   : > { %p13452_p8 = pneg %p13451_p7 }
 0xff7   : > { %p13457_p12 = pnand %p13456_p11, %p13452_p8 }
 0xff9   : > { %13460 = shalt.err (!%p13457_p12)
}
 0xffa   : > { %s18310_s30 = smov 2  }
 0xffb   : > { %11348 = dma.vmem_to_hbm [thread:$0]  (%p13683_p5), %s18102_s17, 64, %s18100_s6, %s9964_s29, %s18269_s4, %s18269_s4, %s18310_s30  }
 0xffc PF: > { %s18311_s3 = sld [smem:[#allocation16_spill]] }
 0xffd   : > { %s18312_s24 = sld [smem:[#allocation14_spill]] }
0x1002   : > { %p11354_p13 = scmp.ge.s32.totalorder %s18311_s3, 2 }
0x1003   : > { %s9992_s2 = sand.u32 1, %s18312_s24  }
0x1004   : > { %p11351_p0 = pnand %p11354_p13, %p13687_p6  ;;  %s9993_s7 = scalar_lea.sflag [#allocation12], %s9992_s2 }
0x1006   : > { %p11352_p1 = pneg %p11351_p0 }
0x1008   : > { %13478 = dma.done.wait (%p11352_p1), %s9993_s7, 64  }
0x1009   : > { %13480 = vsyncadd (%p11352_p1), %s9993_s7, 4294967232  ;;  %s18314_s28 = sld [smem:[#allocation18_spill]]  ;;  %s18317_s5 = smov %s13487_s26 }
0x100a   : > { %s18315_s8 = sld [smem:[#allocation15_spill]] }
0x100b   : > { %s18316_s27 = sld [smem:[#allocation19_spill]] }
0x100f   : > { %p34_p2 = scmp.ge.s32.totalorder %s18314_s28, 4  }
0x1010   : > { %s18318_s26 = smov %s18315_s8 }
0x1011   :  { %36 = sbr.rel (!%p34_p2) target bundleno = 17 (0x11), region = 176 }
0x1016   :  { %9998 = vsyncpa [#allocation12], 1 }
0x1017   :  { %10000 = vsyncpa [#allocation12 + $0x1], 1 }

</bundles_post_ra>
